<compile_context>
chip_gen: v7x
topology: tpu7x:2x2x1
jax: 0.10.0
libtpu: 0.0.40
codegen_flags: <defaults>
</compile_context>

<pallas_src>
import functools

import jax
import jax.numpy as jnp
from jax.experimental import pallas as pl
from jax.experimental.pallas import tpu as pltpu


# Model constants — match nn.Conv2d(1, 10, kernel_size=5, stride=1).
C_IN = 1          # the kernel below assumes Cin == 1 (as in the PyTorch module)
C_OUT = 10
KSIZE = 5
C_PAD = 128       # pad Cout up to a full lane register -> unmasked stores


# ---------------------------------------------------------------------------
# Pallas kernel: fused conv(5x5, valid) + bias + ReLU + global average pool
# ---------------------------------------------------------------------------
def _cnn_fused_kernel(x_ref, w_ref, b_ref, o_ref, *, ho, wo):
    """One image per grid step.

    x_ref : (1, H, W, 1)         input image (NHWC, Cin=1), resident in VMEM
    w_ref : (KSIZE*KSIZE, C_PAD) conv weights, taps on rows, channels on lanes
    b_ref : (1, C_PAD)           conv bias (zero in padded channels)
    o_ref : (1, 1, C_PAD)        pooled output row for this image
    """
    # conv[y, x, c] = sum_{dy,dx} img[y+dy, x+dx] * w[dy*K+dx, c]
    # Each tap is a (ho, wo, 1) static slice of the resident image, broadcast
    # along the lane (channel) axis — im2col happens in registers, not in HBM.
    acc = jnp.zeros((ho, wo, C_PAD), jnp.float32)
    for dy in range(KSIZE):
        for dx in range(KSIZE):
            tap = x_ref[0, dy:dy + ho, dx:dx + wo, :]        # (ho, wo, 1)
            acc = acc + tap * w_ref[dy * KSIZE + dx, :]      # lane-dense FMA

    z = jnp.maximum(acc + b_ref[0, :], 0.0)                  # bias + ReLU

    # adaptive_avg_pool2d((1, 1)) == global mean over spatial, fused here so
    # the conv activation never leaves VMEM.
    inv_area = 1.0 / float(ho * wo)
    pooled = jnp.sum(z, axis=(0, 1), keepdims=True) * inv_area   # (1, 1, C_PAD)
    o_ref[...] = pooled[0][None]                                  # (1, 1, C_PAD)


# ---------------------------------------------------------------------------
# Wrapper: weight prep + pallas_call
# ---------------------------------------------------------------------------
def cnn_classifier_forward(x_nchw, params):
    """Forward pass of CNNClassifier: returns (N, 10) logits-like features."""
    n, cin, h, w = x_nchw.shape
    assert cin == C_IN, "kernel specialized for Cin == 1 (as in the module)"
    ho, wo = h - KSIZE + 1, w - KSIZE + 1

    # NCHW -> NHWC (channels on the minor/lane axis).
    x = jnp.transpose(x_nchw, (0, 2, 3, 1)).astype(jnp.float32)

    # One-time host-side weight prep:
    #   PyTorch weight (Cout, Cin, KH, KW) -> (KH*KW*Cin, Cout), Cout padded to
    #   a full 128-lane register so all kernel stores are lane-dense/unmasked.
    w2d = jnp.transpose(params["w"], (2, 3, 1, 0)).reshape(KSIZE * KSIZE * C_IN, C_OUT)
    w2d = jnp.pad(w2d, ((0, 0), (0, C_PAD - C_OUT))).astype(jnp.float32)
    bias = jnp.pad(params["b"], (0, C_PAD - C_OUT)).reshape(1, C_PAD).astype(jnp.float32)

    kernel = functools.partial(_cnn_fused_kernel, ho=ho, wo=wo)
    out = pl.pallas_call(
        kernel,
        out_shape=jax.ShapeDtypeStruct((n, 1, C_PAD), jnp.float32),
        grid_spec=pltpu.PrefetchScalarGridSpec(
            num_scalar_prefetch=0,
            grid=(n,),                                              # one image / step
            in_specs=[
                pl.BlockSpec((1, h, w, 1), lambda i: (i, 0, 0, 0)),      # image tile
                pl.BlockSpec((KSIZE * KSIZE, C_PAD), lambda i: (0, 0)),  # weights (resident)
                pl.BlockSpec((1, C_PAD), lambda i: (0, 0)),              # bias (resident)
            ],
            out_specs=pl.BlockSpec((1, 1, C_PAD), lambda i: (i, 0, 0)),
        ),
        compiler_params=pltpu.CompilerParams(
            dimension_semantics=("parallel",)),   # batch split across TCs on v7x
    )(x, w2d, bias)

    # Drop the lane padding -> (N, 10); matches the PyTorch x.view(-1, 10).
    return out[:, 0, :C_OUT]


# ---------------------------------------------------------------------------
# Pure-JAX reference (sanity check)
# ---------------------------------------------------------------------------
def reference_forward(x_nchw, params):
    x = jnp.transpose(x_nchw, (0, 2, 3, 1)).astype(jnp.float32)
    w_hwio = jnp.transpose(params["w"], (2, 3, 1, 0))
    out = jax.lax.conv_general_dilated(
        x, w_hwio, window_strides=(1, 1), padding="VALID",
        dimension_numbers=("NHWC", "HWIO", "NHWC"),
        precision=jax.lax.Precision.HIGHEST)
    out = jax.nn.relu(out + params["b"].reshape(1, 1, 1, -1))
    return jnp.mean(out, axis=(1, 2))          # global avg pool + view(-1, 10)


if __name__ == "__main__":
    key = jax.random.PRNGKey(0)
    kx, kw, kb = jax.random.split(key, 3)

    batch, h, w = 2, 16, 16
    x = jax.random.normal(kx, (batch, C_IN, h, w), jnp.float32)
    params = dict(
        w=0.1 * jax.random.normal(kw, (C_OUT, C_IN, KSIZE, KSIZE), jnp.float32),
        b=0.1 * jax.random.normal(kb, (C_OUT,), jnp.float32),
    )

    y = jax.block_until_ready(cnn_classifier_forward(x, params))
    y_ref = jax.block_until_ready(reference_forward(x, params))

    assert y.shape == y_ref.shape == (batch, C_OUT), y.shape
    max_err = float(jnp.max(jnp.abs(y - y_ref)))
    assert jnp.allclose(y, y_ref, rtol=1e-3, atol=1e-3), max_err

    print("KERNEL_OK")
</pallas_src>

<mosaic_0001>
module attributes {stable_mosaic.version = 11 : i64} {
  func.func @_cnn_fused_kernel(%arg0: i32, %arg1: memref<1x16x16x1xf32, #tpu.memory_space<vmem>>, %arg2: memref<25x128xf32, #tpu.memory_space<vmem>>, %arg3: memref<1x128xf32, #tpu.memory_space<vmem>>, %arg4: memref<1x1x128xf32, #tpu.memory_space<vmem>>) attributes {dimension_semantics = [#tpu.dimension_semantics<parallel>], iteration_bounds = array<i64: 2>, scalar_prefetch = 0 : i64, scratch_operands = 0 : i64, tpu.core_type = #tpu.core_type<tc>, window_params = [{transform_indices = @transform_0, window_bounds = array<i64: 1, 16, 16, 1>}, {pipeline_mode = #tpu.pipeline_mode<synchronous>, transform_indices = @transform_1, window_bounds = array<i64: 25, 128>}, {pipeline_mode = #tpu.pipeline_mode<synchronous>, transform_indices = @transform_2, window_bounds = array<i64: 1, 128>}, {transform_indices = @transform_3, window_bounds = array<i64: 1, 1, 128>}]} {
    %cst = arith.constant 0.000000e+00 : f32
    %0 = vector.broadcast %cst : f32 to vector<12x12x128xf32>
    %c0 = arith.constant 0 : index
    %c0_0 = arith.constant 0 : index
    %c0_1 = arith.constant 0 : index
    %c0_2 = arith.constant 0 : index
    %1 = vector.load %arg1[%c0, %c0_0, %c0_1, %c0_2] : memref<1x16x16x1xf32, #tpu.memory_space<vmem>>, vector<1x12x12x1xf32>
    %2 = vector.shape_cast %1 : vector<1x12x12x1xf32> to vector<12x12x1xf32>
    %c0_3 = arith.constant 0 : index
    %c0_4 = arith.constant 0 : index
    %3 = vector.load %arg2[%c0_3, %c0_4] : memref<25x128xf32, #tpu.memory_space<vmem>>, vector<1x128xf32>
    %4 = vector.shape_cast %3 : vector<1x128xf32> to vector<128xf32>
    %5 = vector.shape_cast %4 : vector<128xf32> to vector<1x1x128xf32>
    %6 = vector.broadcast %2 : vector<12x12x1xf32> to vector<12x12x128xf32>
    %7 = vector.broadcast %5 : vector<1x1x128xf32> to vector<12x12x128xf32>
    %8 = arith.mulf %6, %7 : vector<12x12x128xf32>
    %9 = arith.addf %0, %8 : vector<12x12x128xf32>
    %c0_5 = arith.constant 0 : index
    %c0_6 = arith.constant 0 : index
    %c1 = arith.constant 1 : index
    %c0_7 = arith.constant 0 : index
    %10 = vector.load %arg1[%c0_5, %c0_6, %c1, %c0_7] : memref<1x16x16x1xf32, #tpu.memory_space<vmem>>, vector<1x12x12x1xf32>
    %11 = vector.shape_cast %10 : vector<1x12x12x1xf32> to vector<12x12x1xf32>
    %c1_8 = arith.constant 1 : index
    %c0_9 = arith.constant 0 : index
    %12 = vector.load %arg2[%c1_8, %c0_9] : memref<25x128xf32, #tpu.memory_space<vmem>>, vector<1x128xf32>
    %13 = vector.shape_cast %12 : vector<1x128xf32> to vector<128xf32>
    %14 = vector.shape_cast %13 : vector<128xf32> to vector<1x1x128xf32>
    %15 = vector.broadcast %11 : vector<12x12x1xf32> to vector<12x12x128xf32>
    %16 = vector.broadcast %14 : vector<1x1x128xf32> to vector<12x12x128xf32>
    %17 = arith.mulf %15, %16 : vector<12x12x128xf32>
    %18 = arith.addf %9, %17 : vector<12x12x128xf32>
    %c0_10 = arith.constant 0 : index
    %c0_11 = arith.constant 0 : index
    %c2 = arith.constant 2 : index
    %c0_12 = arith.constant 0 : index
    %19 = vector.load %arg1[%c0_10, %c0_11, %c2, %c0_12] : memref<1x16x16x1xf32, #tpu.memory_space<vmem>>, vector<1x12x12x1xf32>
    %20 = vector.shape_cast %19 : vector<1x12x12x1xf32> to vector<12x12x1xf32>
    %c2_13 = arith.constant 2 : index
    %c0_14 = arith.constant 0 : index
    %21 = vector.load %arg2[%c2_13, %c0_14] : memref<25x128xf32, #tpu.memory_space<vmem>>, vector<1x128xf32>
    %22 = vector.shape_cast %21 : vector<1x128xf32> to vector<128xf32>
    %23 = vector.shape_cast %22 : vector<128xf32> to vector<1x1x128xf32>
    %24 = vector.broadcast %20 : vector<12x12x1xf32> to vector<12x12x128xf32>
    %25 = vector.broadcast %23 : vector<1x1x128xf32> to vector<12x12x128xf32>
    %26 = arith.mulf %24, %25 : vector<12x12x128xf32>
    %27 = arith.addf %18, %26 : vector<12x12x128xf32>
    %c0_15 = arith.constant 0 : index
    %c0_16 = arith.constant 0 : index
    %c3 = arith.constant 3 : index
    %c0_17 = arith.constant 0 : index
    %28 = vector.load %arg1[%c0_15, %c0_16, %c3, %c0_17] : memref<1x16x16x1xf32, #tpu.memory_space<vmem>>, vector<1x12x12x1xf32>
    %29 = vector.shape_cast %28 : vector<1x12x12x1xf32> to vector<12x12x1xf32>
    %c3_18 = arith.constant 3 : index
    %c0_19 = arith.constant 0 : index
    %30 = vector.load %arg2[%c3_18, %c0_19] : memref<25x128xf32, #tpu.memory_space<vmem>>, vector<1x128xf32>
    %31 = vector.shape_cast %30 : vector<1x128xf32> to vector<128xf32>
    %32 = vector.shape_cast %31 : vector<128xf32> to vector<1x1x128xf32>
    %33 = vector.broadcast %29 : vector<12x12x1xf32> to vector<12x12x128xf32>
    %34 = vector.broadcast %32 : vector<1x1x128xf32> to vector<12x12x128xf32>
    %35 = arith.mulf %33, %34 : vector<12x12x128xf32>
    %36 = arith.addf %27, %35 : vector<12x12x128xf32>
    %c0_20 = arith.constant 0 : index
    %c0_21 = arith.constant 0 : index
    %c4 = arith.constant 4 : index
    %c0_22 = arith.constant 0 : index
    %37 = vector.load %arg1[%c0_20, %c0_21, %c4, %c0_22] : memref<1x16x16x1xf32, #tpu.memory_space<vmem>>, vector<1x12x12x1xf32>
    %38 = vector.shape_cast %37 : vector<1x12x12x1xf32> to vector<12x12x1xf32>
    %c4_23 = arith.constant 4 : index
    %c0_24 = arith.constant 0 : index
    %39 = vector.load %arg2[%c4_23, %c0_24] : memref<25x128xf32, #tpu.memory_space<vmem>>, vector<1x128xf32>
    %40 = vector.shape_cast %39 : vector<1x128xf32> to vector<128xf32>
    %41 = vector.shape_cast %40 : vector<128xf32> to vector<1x1x128xf32>
    %42 = vector.broadcast %38 : vector<12x12x1xf32> to vector<12x12x128xf32>
    %43 = vector.broadcast %41 : vector<1x1x128xf32> to vector<12x12x128xf32>
    %44 = arith.mulf %42, %43 : vector<12x12x128xf32>
    %45 = arith.addf %36, %44 : vector<12x12x128xf32>
    %c0_25 = arith.constant 0 : index
    %c1_26 = arith.constant 1 : index
    %c0_27 = arith.constant 0 : index
    %c0_28 = arith.constant 0 : index
    %46 = vector.load %arg1[%c0_25, %c1_26, %c0_27, %c0_28] : memref<1x16x16x1xf32, #tpu.memory_space<vmem>>, vector<1x12x12x1xf32>
    %47 = vector.shape_cast %46 : vector<1x12x12x1xf32> to vector<12x12x1xf32>
    %c5 = arith.constant 5 : index
    %c0_29 = arith.constant 0 : index
    %48 = vector.load %arg2[%c5, %c0_29] : memref<25x128xf32, #tpu.memory_space<vmem>>, vector<1x128xf32>
    %49 = vector.shape_cast %48 : vector<1x128xf32> to vector<128xf32>
    %50 = vector.shape_cast %49 : vector<128xf32> to vector<1x1x128xf32>
    %51 = vector.broadcast %47 : vector<12x12x1xf32> to vector<12x12x128xf32>
    %52 = vector.broadcast %50 : vector<1x1x128xf32> to vector<12x12x128xf32>
    %53 = arith.mulf %51, %52 : vector<12x12x128xf32>
    %54 = arith.addf %45, %53 : vector<12x12x128xf32>
    %c0_30 = arith.constant 0 : index
    %c1_31 = arith.constant 1 : index
    %c1_32 = arith.constant 1 : index
    %c0_33 = arith.constant 0 : index
    %55 = vector.load %arg1[%c0_30, %c1_31, %c1_32, %c0_33] : memref<1x16x16x1xf32, #tpu.memory_space<vmem>>, vector<1x12x12x1xf32>
    %56 = vector.shape_cast %55 : vector<1x12x12x1xf32> to vector<12x12x1xf32>
    %c6 = arith.constant 6 : index
    %c0_34 = arith.constant 0 : index
    %57 = vector.load %arg2[%c6, %c0_34] : memref<25x128xf32, #tpu.memory_space<vmem>>, vector<1x128xf32>
    %58 = vector.shape_cast %57 : vector<1x128xf32> to vector<128xf32>
    %59 = vector.shape_cast %58 : vector<128xf32> to vector<1x1x128xf32>
    %60 = vector.broadcast %56 : vector<12x12x1xf32> to vector<12x12x128xf32>
    %61 = vector.broadcast %59 : vector<1x1x128xf32> to vector<12x12x128xf32>
    %62 = arith.mulf %60, %61 : vector<12x12x128xf32>
    %63 = arith.addf %54, %62 : vector<12x12x128xf32>
    %c0_35 = arith.constant 0 : index
    %c1_36 = arith.constant 1 : index
    %c2_37 = arith.constant 2 : index
    %c0_38 = arith.constant 0 : index
    %64 = vector.load %arg1[%c0_35, %c1_36, %c2_37, %c0_38] : memref<1x16x16x1xf32, #tpu.memory_space<vmem>>, vector<1x12x12x1xf32>
    %65 = vector.shape_cast %64 : vector<1x12x12x1xf32> to vector<12x12x1xf32>
    %c7 = arith.constant 7 : index
    %c0_39 = arith.constant 0 : index
    %66 = vector.load %arg2[%c7, %c0_39] : memref<25x128xf32, #tpu.memory_space<vmem>>, vector<1x128xf32>
    %67 = vector.shape_cast %66 : vector<1x128xf32> to vector<128xf32>
    %68 = vector.shape_cast %67 : vector<128xf32> to vector<1x1x128xf32>
    %69 = vector.broadcast %65 : vector<12x12x1xf32> to vector<12x12x128xf32>
    %70 = vector.broadcast %68 : vector<1x1x128xf32> to vector<12x12x128xf32>
    %71 = arith.mulf %69, %70 : vector<12x12x128xf32>
    %72 = arith.addf %63, %71 : vector<12x12x128xf32>
    %c0_40 = arith.constant 0 : index
    %c1_41 = arith.constant 1 : index
    %c3_42 = arith.constant 3 : index
    %c0_43 = arith.constant 0 : index
    %73 = vector.load %arg1[%c0_40, %c1_41, %c3_42, %c0_43] : memref<1x16x16x1xf32, #tpu.memory_space<vmem>>, vector<1x12x12x1xf32>
    %74 = vector.shape_cast %73 : vector<1x12x12x1xf32> to vector<12x12x1xf32>
    %c8 = arith.constant 8 : index
    %c0_44 = arith.constant 0 : index
    %75 = vector.load %arg2[%c8, %c0_44] : memref<25x128xf32, #tpu.memory_space<vmem>>, vector<1x128xf32>
    %76 = vector.shape_cast %75 : vector<1x128xf32> to vector<128xf32>
    %77 = vector.shape_cast %76 : vector<128xf32> to vector<1x1x128xf32>
    %78 = vector.broadcast %74 : vector<12x12x1xf32> to vector<12x12x128xf32>
    %79 = vector.broadcast %77 : vector<1x1x128xf32> to vector<12x12x128xf32>
    %80 = arith.mulf %78, %79 : vector<12x12x128xf32>
    %81 = arith.addf %72, %80 : vector<12x12x128xf32>
    %c0_45 = arith.constant 0 : index
    %c1_46 = arith.constant 1 : index
    %c4_47 = arith.constant 4 : index
    %c0_48 = arith.constant 0 : index
    %82 = vector.load %arg1[%c0_45, %c1_46, %c4_47, %c0_48] : memref<1x16x16x1xf32, #tpu.memory_space<vmem>>, vector<1x12x12x1xf32>
    %83 = vector.shape_cast %82 : vector<1x12x12x1xf32> to vector<12x12x1xf32>
    %c9 = arith.constant 9 : index
    %c0_49 = arith.constant 0 : index
    %84 = vector.load %arg2[%c9, %c0_49] : memref<25x128xf32, #tpu.memory_space<vmem>>, vector<1x128xf32>
    %85 = vector.shape_cast %84 : vector<1x128xf32> to vector<128xf32>
    %86 = vector.shape_cast %85 : vector<128xf32> to vector<1x1x128xf32>
    %87 = vector.broadcast %83 : vector<12x12x1xf32> to vector<12x12x128xf32>
    %88 = vector.broadcast %86 : vector<1x1x128xf32> to vector<12x12x128xf32>
    %89 = arith.mulf %87, %88 : vector<12x12x128xf32>
    %90 = arith.addf %81, %89 : vector<12x12x128xf32>
    %c0_50 = arith.constant 0 : index
    %c2_51 = arith.constant 2 : index
    %c0_52 = arith.constant 0 : index
    %c0_53 = arith.constant 0 : index
    %91 = vector.load %arg1[%c0_50, %c2_51, %c0_52, %c0_53] : memref<1x16x16x1xf32, #tpu.memory_space<vmem>>, vector<1x12x12x1xf32>
    %92 = vector.shape_cast %91 : vector<1x12x12x1xf32> to vector<12x12x1xf32>
    %c10 = arith.constant 10 : index
    %c0_54 = arith.constant 0 : index
    %93 = vector.load %arg2[%c10, %c0_54] : memref<25x128xf32, #tpu.memory_space<vmem>>, vector<1x128xf32>
    %94 = vector.shape_cast %93 : vector<1x128xf32> to vector<128xf32>
    %95 = vector.shape_cast %94 : vector<128xf32> to vector<1x1x128xf32>
    %96 = vector.broadcast %92 : vector<12x12x1xf32> to vector<12x12x128xf32>
    %97 = vector.broadcast %95 : vector<1x1x128xf32> to vector<12x12x128xf32>
    %98 = arith.mulf %96, %97 : vector<12x12x128xf32>
    %99 = arith.addf %90, %98 : vector<12x12x128xf32>
    %c0_55 = arith.constant 0 : index
    %c2_56 = arith.constant 2 : index
    %c1_57 = arith.constant 1 : index
    %c0_58 = arith.constant 0 : index
    %100 = vector.load %arg1[%c0_55, %c2_56, %c1_57, %c0_58] : memref<1x16x16x1xf32, #tpu.memory_space<vmem>>, vector<1x12x12x1xf32>
    %101 = vector.shape_cast %100 : vector<1x12x12x1xf32> to vector<12x12x1xf32>
    %c11 = arith.constant 11 : index
    %c0_59 = arith.constant 0 : index
    %102 = vector.load %arg2[%c11, %c0_59] : memref<25x128xf32, #tpu.memory_space<vmem>>, vector<1x128xf32>
    %103 = vector.shape_cast %102 : vector<1x128xf32> to vector<128xf32>
    %104 = vector.shape_cast %103 : vector<128xf32> to vector<1x1x128xf32>
    %105 = vector.broadcast %101 : vector<12x12x1xf32> to vector<12x12x128xf32>
    %106 = vector.broadcast %104 : vector<1x1x128xf32> to vector<12x12x128xf32>
    %107 = arith.mulf %105, %106 : vector<12x12x128xf32>
    %108 = arith.addf %99, %107 : vector<12x12x128xf32>
    %c0_60 = arith.constant 0 : index
    %c2_61 = arith.constant 2 : index
    %c2_62 = arith.constant 2 : index
    %c0_63 = arith.constant 0 : index
    %109 = vector.load %arg1[%c0_60, %c2_61, %c2_62, %c0_63] : memref<1x16x16x1xf32, #tpu.memory_space<vmem>>, vector<1x12x12x1xf32>
    %110 = vector.shape_cast %109 : vector<1x12x12x1xf32> to vector<12x12x1xf32>
    %c12 = arith.constant 12 : index
    %c0_64 = arith.constant 0 : index
    %111 = vector.load %arg2[%c12, %c0_64] : memref<25x128xf32, #tpu.memory_space<vmem>>, vector<1x128xf32>
    %112 = vector.shape_cast %111 : vector<1x128xf32> to vector<128xf32>
    %113 = vector.shape_cast %112 : vector<128xf32> to vector<1x1x128xf32>
    %114 = vector.broadcast %110 : vector<12x12x1xf32> to vector<12x12x128xf32>
    %115 = vector.broadcast %113 : vector<1x1x128xf32> to vector<12x12x128xf32>
    %116 = arith.mulf %114, %115 : vector<12x12x128xf32>
    %117 = arith.addf %108, %116 : vector<12x12x128xf32>
    %c0_65 = arith.constant 0 : index
    %c2_66 = arith.constant 2 : index
    %c3_67 = arith.constant 3 : index
    %c0_68 = arith.constant 0 : index
    %118 = vector.load %arg1[%c0_65, %c2_66, %c3_67, %c0_68] : memref<1x16x16x1xf32, #tpu.memory_space<vmem>>, vector<1x12x12x1xf32>
    %119 = vector.shape_cast %118 : vector<1x12x12x1xf32> to vector<12x12x1xf32>
    %c13 = arith.constant 13 : index
    %c0_69 = arith.constant 0 : index
    %120 = vector.load %arg2[%c13, %c0_69] : memref<25x128xf32, #tpu.memory_space<vmem>>, vector<1x128xf32>
    %121 = vector.shape_cast %120 : vector<1x128xf32> to vector<128xf32>
    %122 = vector.shape_cast %121 : vector<128xf32> to vector<1x1x128xf32>
    %123 = vector.broadcast %119 : vector<12x12x1xf32> to vector<12x12x128xf32>
    %124 = vector.broadcast %122 : vector<1x1x128xf32> to vector<12x12x128xf32>
    %125 = arith.mulf %123, %124 : vector<12x12x128xf32>
    %126 = arith.addf %117, %125 : vector<12x12x128xf32>
    %c0_70 = arith.constant 0 : index
    %c2_71 = arith.constant 2 : index
    %c4_72 = arith.constant 4 : index
    %c0_73 = arith.constant 0 : index
    %127 = vector.load %arg1[%c0_70, %c2_71, %c4_72, %c0_73] : memref<1x16x16x1xf32, #tpu.memory_space<vmem>>, vector<1x12x12x1xf32>
    %128 = vector.shape_cast %127 : vector<1x12x12x1xf32> to vector<12x12x1xf32>
    %c14 = arith.constant 14 : index
    %c0_74 = arith.constant 0 : index
    %129 = vector.load %arg2[%c14, %c0_74] : memref<25x128xf32, #tpu.memory_space<vmem>>, vector<1x128xf32>
    %130 = vector.shape_cast %129 : vector<1x128xf32> to vector<128xf32>
    %131 = vector.shape_cast %130 : vector<128xf32> to vector<1x1x128xf32>
    %132 = vector.broadcast %128 : vector<12x12x1xf32> to vector<12x12x128xf32>
    %133 = vector.broadcast %131 : vector<1x1x128xf32> to vector<12x12x128xf32>
    %134 = arith.mulf %132, %133 : vector<12x12x128xf32>
    %135 = arith.addf %126, %134 : vector<12x12x128xf32>
    %c0_75 = arith.constant 0 : index
    %c3_76 = arith.constant 3 : index
    %c0_77 = arith.constant 0 : index
    %c0_78 = arith.constant 0 : index
    %136 = vector.load %arg1[%c0_75, %c3_76, %c0_77, %c0_78] : memref<1x16x16x1xf32, #tpu.memory_space<vmem>>, vector<1x12x12x1xf32>
    %137 = vector.shape_cast %136 : vector<1x12x12x1xf32> to vector<12x12x1xf32>
    %c15 = arith.constant 15 : index
    %c0_79 = arith.constant 0 : index
    %138 = vector.load %arg2[%c15, %c0_79] : memref<25x128xf32, #tpu.memory_space<vmem>>, vector<1x128xf32>
    %139 = vector.shape_cast %138 : vector<1x128xf32> to vector<128xf32>
    %140 = vector.shape_cast %139 : vector<128xf32> to vector<1x1x128xf32>
    %141 = vector.broadcast %137 : vector<12x12x1xf32> to vector<12x12x128xf32>
    %142 = vector.broadcast %140 : vector<1x1x128xf32> to vector<12x12x128xf32>
    %143 = arith.mulf %141, %142 : vector<12x12x128xf32>
    %144 = arith.addf %135, %143 : vector<12x12x128xf32>
    %c0_80 = arith.constant 0 : index
    %c3_81 = arith.constant 3 : index
    %c1_82 = arith.constant 1 : index
    %c0_83 = arith.constant 0 : index
    %145 = vector.load %arg1[%c0_80, %c3_81, %c1_82, %c0_83] : memref<1x16x16x1xf32, #tpu.memory_space<vmem>>, vector<1x12x12x1xf32>
    %146 = vector.shape_cast %145 : vector<1x12x12x1xf32> to vector<12x12x1xf32>
    %c16 = arith.constant 16 : index
    %c0_84 = arith.constant 0 : index
    %147 = vector.load %arg2[%c16, %c0_84] : memref<25x128xf32, #tpu.memory_space<vmem>>, vector<1x128xf32>
    %148 = vector.shape_cast %147 : vector<1x128xf32> to vector<128xf32>
    %149 = vector.shape_cast %148 : vector<128xf32> to vector<1x1x128xf32>
    %150 = vector.broadcast %146 : vector<12x12x1xf32> to vector<12x12x128xf32>
    %151 = vector.broadcast %149 : vector<1x1x128xf32> to vector<12x12x128xf32>
    %152 = arith.mulf %150, %151 : vector<12x12x128xf32>
    %153 = arith.addf %144, %152 : vector<12x12x128xf32>
    %c0_85 = arith.constant 0 : index
    %c3_86 = arith.constant 3 : index
    %c2_87 = arith.constant 2 : index
    %c0_88 = arith.constant 0 : index
    %154 = vector.load %arg1[%c0_85, %c3_86, %c2_87, %c0_88] : memref<1x16x16x1xf32, #tpu.memory_space<vmem>>, vector<1x12x12x1xf32>
    %155 = vector.shape_cast %154 : vector<1x12x12x1xf32> to vector<12x12x1xf32>
    %c17 = arith.constant 17 : index
    %c0_89 = arith.constant 0 : index
    %156 = vector.load %arg2[%c17, %c0_89] : memref<25x128xf32, #tpu.memory_space<vmem>>, vector<1x128xf32>
    %157 = vector.shape_cast %156 : vector<1x128xf32> to vector<128xf32>
    %158 = vector.shape_cast %157 : vector<128xf32> to vector<1x1x128xf32>
    %159 = vector.broadcast %155 : vector<12x12x1xf32> to vector<12x12x128xf32>
    %160 = vector.broadcast %158 : vector<1x1x128xf32> to vector<12x12x128xf32>
    %161 = arith.mulf %159, %160 : vector<12x12x128xf32>
    %162 = arith.addf %153, %161 : vector<12x12x128xf32>
    %c0_90 = arith.constant 0 : index
    %c3_91 = arith.constant 3 : index
    %c3_92 = arith.constant 3 : index
    %c0_93 = arith.constant 0 : index
    %163 = vector.load %arg1[%c0_90, %c3_91, %c3_92, %c0_93] : memref<1x16x16x1xf32, #tpu.memory_space<vmem>>, vector<1x12x12x1xf32>
    %164 = vector.shape_cast %163 : vector<1x12x12x1xf32> to vector<12x12x1xf32>
    %c18 = arith.constant 18 : index
    %c0_94 = arith.constant 0 : index
    %165 = vector.load %arg2[%c18, %c0_94] : memref<25x128xf32, #tpu.memory_space<vmem>>, vector<1x128xf32>
    %166 = vector.shape_cast %165 : vector<1x128xf32> to vector<128xf32>
    %167 = vector.shape_cast %166 : vector<128xf32> to vector<1x1x128xf32>
    %168 = vector.broadcast %164 : vector<12x12x1xf32> to vector<12x12x128xf32>
    %169 = vector.broadcast %167 : vector<1x1x128xf32> to vector<12x12x128xf32>
    %170 = arith.mulf %168, %169 : vector<12x12x128xf32>
    %171 = arith.addf %162, %170 : vector<12x12x128xf32>
    %c0_95 = arith.constant 0 : index
    %c3_96 = arith.constant 3 : index
    %c4_97 = arith.constant 4 : index
    %c0_98 = arith.constant 0 : index
    %172 = vector.load %arg1[%c0_95, %c3_96, %c4_97, %c0_98] : memref<1x16x16x1xf32, #tpu.memory_space<vmem>>, vector<1x12x12x1xf32>
    %173 = vector.shape_cast %172 : vector<1x12x12x1xf32> to vector<12x12x1xf32>
    %c19 = arith.constant 19 : index
    %c0_99 = arith.constant 0 : index
    %174 = vector.load %arg2[%c19, %c0_99] : memref<25x128xf32, #tpu.memory_space<vmem>>, vector<1x128xf32>
    %175 = vector.shape_cast %174 : vector<1x128xf32> to vector<128xf32>
    %176 = vector.shape_cast %175 : vector<128xf32> to vector<1x1x128xf32>
    %177 = vector.broadcast %173 : vector<12x12x1xf32> to vector<12x12x128xf32>
    %178 = vector.broadcast %176 : vector<1x1x128xf32> to vector<12x12x128xf32>
    %179 = arith.mulf %177, %178 : vector<12x12x128xf32>
    %180 = arith.addf %171, %179 : vector<12x12x128xf32>
    %c0_100 = arith.constant 0 : index
    %c4_101 = arith.constant 4 : index
    %c0_102 = arith.constant 0 : index
    %c0_103 = arith.constant 0 : index
    %181 = vector.load %arg1[%c0_100, %c4_101, %c0_102, %c0_103] : memref<1x16x16x1xf32, #tpu.memory_space<vmem>>, vector<1x12x12x1xf32>
    %182 = vector.shape_cast %181 : vector<1x12x12x1xf32> to vector<12x12x1xf32>
    %c20 = arith.constant 20 : index
    %c0_104 = arith.constant 0 : index
    %183 = vector.load %arg2[%c20, %c0_104] : memref<25x128xf32, #tpu.memory_space<vmem>>, vector<1x128xf32>
    %184 = vector.shape_cast %183 : vector<1x128xf32> to vector<128xf32>
    %185 = vector.shape_cast %184 : vector<128xf32> to vector<1x1x128xf32>
    %186 = vector.broadcast %182 : vector<12x12x1xf32> to vector<12x12x128xf32>
    %187 = vector.broadcast %185 : vector<1x1x128xf32> to vector<12x12x128xf32>
    %188 = arith.mulf %186, %187 : vector<12x12x128xf32>
    %189 = arith.addf %180, %188 : vector<12x12x128xf32>
    %c0_105 = arith.constant 0 : index
    %c4_106 = arith.constant 4 : index
    %c1_107 = arith.constant 1 : index
    %c0_108 = arith.constant 0 : index
    %190 = vector.load %arg1[%c0_105, %c4_106, %c1_107, %c0_108] : memref<1x16x16x1xf32, #tpu.memory_space<vmem>>, vector<1x12x12x1xf32>
    %191 = vector.shape_cast %190 : vector<1x12x12x1xf32> to vector<12x12x1xf32>
    %c21 = arith.constant 21 : index
    %c0_109 = arith.constant 0 : index
    %192 = vector.load %arg2[%c21, %c0_109] : memref<25x128xf32, #tpu.memory_space<vmem>>, vector<1x128xf32>
    %193 = vector.shape_cast %192 : vector<1x128xf32> to vector<128xf32>
    %194 = vector.shape_cast %193 : vector<128xf32> to vector<1x1x128xf32>
    %195 = vector.broadcast %191 : vector<12x12x1xf32> to vector<12x12x128xf32>
    %196 = vector.broadcast %194 : vector<1x1x128xf32> to vector<12x12x128xf32>
    %197 = arith.mulf %195, %196 : vector<12x12x128xf32>
    %198 = arith.addf %189, %197 : vector<12x12x128xf32>
    %c0_110 = arith.constant 0 : index
    %c4_111 = arith.constant 4 : index
    %c2_112 = arith.constant 2 : index
    %c0_113 = arith.constant 0 : index
    %199 = vector.load %arg1[%c0_110, %c4_111, %c2_112, %c0_113] : memref<1x16x16x1xf32, #tpu.memory_space<vmem>>, vector<1x12x12x1xf32>
    %200 = vector.shape_cast %199 : vector<1x12x12x1xf32> to vector<12x12x1xf32>
    %c22 = arith.constant 22 : index
    %c0_114 = arith.constant 0 : index
    %201 = vector.load %arg2[%c22, %c0_114] : memref<25x128xf32, #tpu.memory_space<vmem>>, vector<1x128xf32>
    %202 = vector.shape_cast %201 : vector<1x128xf32> to vector<128xf32>
    %203 = vector.shape_cast %202 : vector<128xf32> to vector<1x1x128xf32>
    %204 = vector.broadcast %200 : vector<12x12x1xf32> to vector<12x12x128xf32>
    %205 = vector.broadcast %203 : vector<1x1x128xf32> to vector<12x12x128xf32>
    %206 = arith.mulf %204, %205 : vector<12x12x128xf32>
    %207 = arith.addf %198, %206 : vector<12x12x128xf32>
    %c0_115 = arith.constant 0 : index
    %c4_116 = arith.constant 4 : index
    %c3_117 = arith.constant 3 : index
    %c0_118 = arith.constant 0 : index
    %208 = vector.load %arg1[%c0_115, %c4_116, %c3_117, %c0_118] : memref<1x16x16x1xf32, #tpu.memory_space<vmem>>, vector<1x12x12x1xf32>
    %209 = vector.shape_cast %208 : vector<1x12x12x1xf32> to vector<12x12x1xf32>
    %c23 = arith.constant 23 : index
    %c0_119 = arith.constant 0 : index
    %210 = vector.load %arg2[%c23, %c0_119] : memref<25x128xf32, #tpu.memory_space<vmem>>, vector<1x128xf32>
    %211 = vector.shape_cast %210 : vector<1x128xf32> to vector<128xf32>
    %212 = vector.shape_cast %211 : vector<128xf32> to vector<1x1x128xf32>
    %213 = vector.broadcast %209 : vector<12x12x1xf32> to vector<12x12x128xf32>
    %214 = vector.broadcast %212 : vector<1x1x128xf32> to vector<12x12x128xf32>
    %215 = arith.mulf %213, %214 : vector<12x12x128xf32>
    %216 = arith.addf %207, %215 : vector<12x12x128xf32>
    %c0_120 = arith.constant 0 : index
    %c4_121 = arith.constant 4 : index
    %c4_122 = arith.constant 4 : index
    %c0_123 = arith.constant 0 : index
    %217 = vector.load %arg1[%c0_120, %c4_121, %c4_122, %c0_123] : memref<1x16x16x1xf32, #tpu.memory_space<vmem>>, vector<1x12x12x1xf32>
    %218 = vector.shape_cast %217 : vector<1x12x12x1xf32> to vector<12x12x1xf32>
    %c24 = arith.constant 24 : index
    %c0_124 = arith.constant 0 : index
    %219 = vector.load %arg2[%c24, %c0_124] : memref<25x128xf32, #tpu.memory_space<vmem>>, vector<1x128xf32>
    %220 = vector.shape_cast %219 : vector<1x128xf32> to vector<128xf32>
    %221 = vector.shape_cast %220 : vector<128xf32> to vector<1x1x128xf32>
    %222 = vector.broadcast %218 : vector<12x12x1xf32> to vector<12x12x128xf32>
    %223 = vector.broadcast %221 : vector<1x1x128xf32> to vector<12x12x128xf32>
    %224 = arith.mulf %222, %223 : vector<12x12x128xf32>
    %225 = arith.addf %216, %224 : vector<12x12x128xf32>
    %c0_125 = arith.constant 0 : index
    %c0_126 = arith.constant 0 : index
    %226 = vector.load %arg3[%c0_125, %c0_126] : memref<1x128xf32, #tpu.memory_space<vmem>>, vector<1x128xf32>
    %227 = vector.shape_cast %226 : vector<1x128xf32> to vector<128xf32>
    %228 = vector.shape_cast %227 : vector<128xf32> to vector<1x1x128xf32>
    %229 = vector.broadcast %228 : vector<1x1x128xf32> to vector<12x12x128xf32>
    %230 = arith.addf %225, %229 : vector<12x12x128xf32>
    %cst_127 = arith.constant 0.000000e+00 : f32
    %231 = vector.broadcast %cst_127 : f32 to vector<12x12x128xf32>
    %232 = arith.maximumf %230, %231 : vector<12x12x128xf32>
    %cst_128 = arith.constant dense<0.000000e+00> : vector<128xf32>
    %233 = vector.multi_reduction <add>, %232, %cst_128 [0, 1] : vector<12x12x128xf32> to vector<128xf32>
    %234 = vector.shape_cast %233 : vector<128xf32> to vector<1x1x128xf32>
    %cst_129 = arith.constant 0.0069444445 : f32
    %235 = vector.broadcast %cst_129 : f32 to vector<1x1x128xf32>
    %236 = arith.mulf %234, %235 : vector<1x1x128xf32>
    %237 = vector.shape_cast %236 : vector<1x1x128xf32> to vector<1x128xf32>
    %238 = vector.shape_cast %237 : vector<1x128xf32> to vector<1x1x128xf32>
    %c0_130 = arith.constant 0 : index
    %c0_131 = arith.constant 0 : index
    %c0_132 = arith.constant 0 : index
    %239 = vector.load %arg4[%c0_130, %c0_131, %c0_132] : memref<1x1x128xf32, #tpu.memory_space<vmem>>, vector<1x1x128xf32>
    tpu.vector_store %arg4[%c0_130, %c0_131, %c0_132], %238 {strides = array<i32>} : memref<1x1x128xf32, #tpu.memory_space<vmem>>, vector<1x1x128xf32>,
    return
  }
  func.func @transform_0(%arg0: i32) -> (i32, i32, i32, i32) {
    %c0_i32 = arith.constant 0 : i32
    %c0_i32_0 = arith.constant 0 : i32
    %c0_i32_1 = arith.constant 0 : i32
    %c0_i32_2 = arith.constant 0 : i32
    return %arg0, %c0_i32, %c0_i32_0, %c0_i32_1 : i32, i32, i32, i32
  }
  func.func @transform_1(%arg0: i32) -> (i32, i32) {
    %c0_i32 = arith.constant 0 : i32
    %c0_i32_0 = arith.constant 0 : i32
    %c0_i32_1 = arith.constant 0 : i32
    return %c0_i32, %c0_i32_0 : i32, i32
  }
  func.func @transform_2(%arg0: i32) -> (i32, i32) {
    %c0_i32 = arith.constant 0 : i32
    %c0_i32_0 = arith.constant 0 : i32
    %c0_i32_1 = arith.constant 0 : i32
    return %c0_i32, %c0_i32_0 : i32, i32
  }
  func.func @transform_3(%arg0: i32) -> (i32, i32, i32) {
    %c0_i32 = arith.constant 0 : i32
    %c0_i32_0 = arith.constant 0 : i32
    %c0_i32_1 = arith.constant 0 : i32
    return %arg0, %c0_i32, %c0_i32_0 : i32, i32, i32
  }
}

</mosaic_0001>

<bundles_post_ra>
// kernel: tpu_custom_call.1
= control target key start
LH: loop header
LB: loop body
LE: loop exit
PB: predicated region body
PF: predicated region fallthrough
CT: control target
= control target key end

     0   :  { %8 = vsyncpa [#allocation3], 0  ;;  %s10410_s0 = inlined_call_operand.vmem [shape: f32[2,16,16,1], index: 0, kind: input, shape index: {}]   ;;  %s10411_s1 = inlined_call_operand.vmem [shape: f32[25,128], index: 1, kind: input, shape index: {}]   ;;  %s10412_s2 = inlined_call_operand.vmem [shape: f32[1,128], index: 2, kind: input, shape index: {}]   ;;  %s10413_s3 = inlined_call_operand.hbm [shape: f32[2,1,128], index: 3, kind: output, shape index: {}]  }
   0x1   :  { %10 = vsyncpa [#allocation3 + $0x1], 0  ;;  %s5908_s12 = smov 0   ;;  %s5910_s13 = smov 0  }
   0x2   :  { %s5912_s14 = smov 0   ;;  %s5914_s15 = smov 0  }
   0x3 LB: > { %s5929_s16 = sadd.s32 4294967295, %s5884_s15   ;;  %s5264_s17 = sadd.s32 4294967294, %s5884_s15   ;;  %s5884_s15 = sphi %s5914_s15, %s11313_s15   ;;  %s5880_s14 = sphi %s5912_s14, %s11312_s14   ;;  %s5876_s13 = sphi %s5910_s13, %s11311_s13   ;;  %s5872_s12 = sphi %s5908_s12, %s11310_s12  }
   0x4   : > { %s5933_s18 = sadd.s32 1, %s5884_s15   ;;  %s91_s19 = sadd.s32 1, %s5880_s14 }
   0x5   : > { %s88_s20 = ssub.s32 %s5884_s15, %s5933_s18  ;;  %p101_p0 = scmp.ne.s32.totalorder %s5880_s14, %s5876_s13 }
   0x6   : > { %p89_p1 = scmp.eq.s32.totalorder %s88_s20, 0  ;;  %p102_p2 = scmp.eq.s32.totalorder %s5929_s16, 1 }
   0x7   : > { %p107_p3 = scmp.ne.s32.totalorder %s5876_s13, %s5872_s12  ;;  %p108_p4 = scmp.eq.s32.totalorder %s5264_s17, 1 }
   0x8   : > { %s5944_s21 = scalar_select %p89_p1, %s5880_s14, %s91_s19  }
   0x9   : > { %p5946_p5 = por %p102_p2, %p101_p0  ;;  %p5950_p6 = por %p108_p4, %p107_p3 }
   0xa   : > { %p5267_p7 = scmp.ge.s32.totalorder %s5884_s15, 1  ;;  %p140_p8 = scmp.lt.s32.totalorder %s5884_s15, 3 }
   0xc   : > { %p141_p9 = pnand %p5267_p7, %p140_p8 }
   0xe   : > { %144 = sbr.rel (%p141_p9) target bundleno = 1393 (0x571), region = 32 }
  0x15   : > { %p163_p10 = scmp.lt.s32.totalorder %s5929_s16, 1  ;;  %v5886_v0 = vmov 0   ;;  %vm5152_vm0 = vcmask 1043456   ;;  %s161_s29 = sand.u32 1, %s5876_s13  }
  0x16   : > { %5821 = vset.pattern.permute.xlu1 %v5886_v0  ;;  %5820 = vset.pattern.permute.xlu0 %v5886_v0  ;;  %s5776_s30 = sshll.u32 %s5929_s16, 4  ;;  %s162_s4 = scalar_lea.vmem [#allocation2], %s161_s29 }
  0x17   : > { %s164_s24 = scalar_select %p163_p10, %s5929_s16, 1 }
  0x18   : > { %s5209_s5 = sshll.u32 %s162_s4, 4  ;;  %s10368_s8 = scalar_lea.hbm %s10413_s3, %s5776_s30  ;;  %s10370_s5 = int_to_ptr.vmem [resolvable:$true] %s5209_s5 }
  0x19   : > { %s5779_s25 = sshll.u32 %s164_s24, 8  ;;  %s5197_s9 = scalar_lea.sflag [#allocation3], %s161_s29 }
  0x1a   : > { %s5961_s28 = scalar_lea.vmem %s10410_s0, %s5779_s25  ;;  %s5822_s10 = scalar_lea.vmem %s10370_s5, 16 }
  0x1b   : > { %v5964_v1 = vld [vmem:[%s5961_s28 + $0x10] sm:$0xff]  ;;  %v168_v2 = vld [vmem:[%s5961_s28] sm:$0xff]  ;;  %v171_v3 = vld [vmem:[%s5961_s28 + $0x18] sm:$0xf]  ;;  %p5823_p11 = scmp.ne.s32.totalorder %s10370_s5, %s5822_s10  ;;  %s5887_s16 = smov [#allocation2]  }
  0x1c   : > { %205 = vperm.xlu1 %5821, %v5964_v1   ;;  %195 = vperm.xlu0 %5820, %v168_v2   ;;  %v169_v4 = vld [vmem:[%s5961_s28 + $0x8] sm:$0xf]  ;;  %v5972_v6 = vld [vmem:[%s5961_s28 + $0x20] sm:$0xff]  ;;  %v175_v7 = vld [vmem:[%s5961_s28 + $0x38] sm:$0xf]  ;;  %s5826_s11 = sshll.u32 %s5887_s16, 4  ;;  %s5827_s11 = int_to_ptr.vmem [resolvable:$false] %s5826_s11 }
  0x1d   : > { %v173_v5 = vld [vmem:[%s5961_s28 + $0x28] sm:$0xf]  ;;  %v5977_v8 = vld [vmem:[%s5961_s28 + $0x30] sm:$0xff]  ;;  %v5982_v10 = vld [vmem:[%s5961_s28 + $0x40] sm:$0xff]  ;;  %p5824_p12 = pnand %p5823_p11, %p5946_p5  ;;  %s5828_s17 = scalar_lea.vmem %s5827_s11, 32 }
  0x1e   : > { %v177_v9 = vld [vmem:[%s5961_s28 + $0x48] sm:$0xf]  ;;  %v179_v11 = vld [vmem:[%s5961_s28 + $0x58] sm:$0xf]  ;;  %v5987_v12 = vld [vmem:[%s5961_s28 + $0x50] sm:$0xff]  ;;  %p5829_p0 = scmp.lt.s32.totalorder %s10370_s5, %s5827_s11  ;;  %p5830_p1 = scmp.lt.s32.totalorder %s5828_s17, %s5822_s10 }
  0x1f   : > { %v181_v13 = vld [vmem:[%s5961_s28 + $0x68] sm:$0xf]  ;;  %v5992_v14 = vld [vmem:[%s5961_s28 + $0x60] sm:$0xff]  ;;  %v183_v15 = vld [vmem:[%s5961_s28 + $0x78] sm:$0xf]  ;;  %p5825_p13 = pneg %p5824_p12 }
  0x20   : > { %210 = vperm.xlu1 %5821, %v171_v3   ;;  %200 = vperm.xlu0 %5820, %v169_v4   ;;  %v5997_v16 = vld [vmem:[%s5961_s28 + $0x70] sm:$0xff]  ;;  %v185_v17 = vld [vmem:[%s5961_s28 + $0x88] sm:$0xf]  ;;  %v6002_v18 = vld [vmem:[%s5961_s28 + $0x80] sm:$0xff]  ;;  %p5831_p2 = por %p5830_p1, %p5829_p0 }
  0x21   : > { %v187_v19 = vld [vmem:[%s5961_s28 + $0x98] sm:$0xf]  ;;  %v6007_v20 = vld [vmem:[%s5961_s28 + $0x90] sm:$0xff]  ;;  %v189_v21 = vld [vmem:[%s5961_s28 + $0xa8] sm:$0xf] }
  0x22   : > { %v6012_v22 = vld [vmem:[%s5961_s28 + $0xa0] sm:$0xff]  ;;  %v191_v23 = vld [vmem:[%s5961_s28 + $0xb8] sm:$0xf]  ;;  %v6017_v24 = vld [vmem:[%s5961_s28 + $0xb0] sm:$0xff]  ;;  %p5832_p3 = pnand %p5831_p2, %p5825_p13 }
  0x23   : > { %v366_v25 = vld [vmem:[%s5961_s28 + $0x9] sm:$0xf]  ;;  %v365_v26 = vld [vmem:[%s5961_s28 + $0x1] sm:$0xff]  ;;  %v368_v27 = vld [vmem:[%s5961_s28 + $0x19] sm:$0xf] }
  0x24   : > { %220 = vperm.xlu1 %5821, %v173_v5   ;;  %215 = vperm.xlu0 %5820, %v5972_v6   ;;  %v6024_v28 = vld [vmem:[%s5961_s28 + $0x11] sm:$0xff]  ;;  %v370_v29 = vld [vmem:[%s5961_s28 + $0x29] sm:$0xf]  ;;  %v6029_v30 = vld [vmem:[%s5961_s28 + $0x21] sm:$0xff] }
  0x25   : > { %v372_v31 = vld [vmem:[%s5961_s28 + $0x39] sm:$0xf]  ;;  %v6034_v32 = vld [vmem:[%s5961_s28 + $0x31] sm:$0xff]  ;;  %v374_v33 = vld [vmem:[%s5961_s28 + $0x49] sm:$0xf] }
  0x26   : > { %v6039_v34 = vld [vmem:[%s5961_s28 + $0x41] sm:$0xff]  ;;  %v376_v35 = vld [vmem:[%s5961_s28 + $0x59] sm:$0xf]  ;;  %v6044_v36 = vld [vmem:[%s5961_s28 + $0x51] sm:$0xff] }
  0x27   : > { %v378_v37 = vld [vmem:[%s5961_s28 + $0x69] sm:$0xf]  ;;  %v6049_v38 = vld [vmem:[%s5961_s28 + $0x61] sm:$0xff]  ;;  %v380_v39 = vld [vmem:[%s5961_s28 + $0x79] sm:$0xf] }
  0x28   : > { %230 = vperm.xlu1 %5821, %v175_v7   ;;  %225 = vperm.xlu0 %5820, %v5977_v8   ;;  %v6054_v40 = vld [vmem:[%s5961_s28 + $0x71] sm:$0xff]  ;;  %v382_v41 = vld [vmem:[%s5961_s28 + $0x89] sm:$0xf]  ;;  %v6059_v42 = vld [vmem:[%s5961_s28 + $0x81] sm:$0xff] }
  0x29   : > { %v384_v43 = vld [vmem:[%s5961_s28 + $0x99] sm:$0xf]  ;;  %v6064_v44 = vld [vmem:[%s5961_s28 + $0x91] sm:$0xff]  ;;  %v386_v45 = vld [vmem:[%s5961_s28 + $0xa9] sm:$0xf] }
  0x2a   : > { %v385_v46 = vld [vmem:[%s5961_s28 + $0xa1] sm:$0xff]  ;;  %v388_v47 = vld [vmem:[%s5961_s28 + $0xb9] sm:$0xf]  ;;  %v387_v48 = vld [vmem:[%s5961_s28 + $0xb1] sm:$0xff] }
  0x2b   : > { %v563_v49 = vld [vmem:[%s5961_s28 + $0xa] sm:$0xf]  ;;  %v562_v50 = vld [vmem:[%s5961_s28 + $0x2] sm:$0xff]  ;;  %v565_v51 = vld [vmem:[%s5961_s28 + $0x1a] sm:$0xf] }
  0x2c   : > { %240 = vperm.xlu1 %5821, %v177_v9   ;;  %235 = vperm.xlu0 %5820, %v5982_v10   ;;  %v564_v52 = vld [vmem:[%s5961_s28 + $0x12] sm:$0xff]  ;;  %v567_v53 = vld [vmem:[%s5961_s28 + $0x2a] sm:$0xf]  ;;  %v566_v54 = vld [vmem:[%s5961_s28 + $0x22] sm:$0xff] }
  0x2d   : > { %v569_v55 = vld [vmem:[%s5961_s28 + $0x3a] sm:$0xf]  ;;  %v568_v56 = vld [vmem:[%s5961_s28 + $0x32] sm:$0xff]  ;;  %v571_v57 = vld [vmem:[%s5961_s28 + $0x4a] sm:$0xf] }
  0x2e   : > { %v570_v58 = vld [vmem:[%s5961_s28 + $0x42] sm:$0xff]  ;;  %v573_v59 = vld [vmem:[%s5961_s28 + $0x5a] sm:$0xf]  ;;  %v572_v60 = vld [vmem:[%s5961_s28 + $0x52] sm:$0xff] }
  0x2f   : > { %v575_v61 = vld [vmem:[%s5961_s28 + $0x6a] sm:$0xf]  ;;  %v574_v62 = vld [vmem:[%s5961_s28 + $0x62] sm:$0xff]  ;;  %v577_v63 = vld [vmem:[%s5961_s28 + $0x7a] sm:$0xf] }
  0x30   : > { %250 = vperm.xlu1 %5821, %v179_v11   ;;  %245 = vperm.xlu0 %5820, %v5987_v12   ;;  %v576_v0 = vld [vmem:[%s5961_s28 + $0x72] sm:$0xff]  ;;  %v579_v2 = vld [vmem:[%s5961_s28 + $0x8a] sm:$0xf]  ;;  %v578_v3 = vld [vmem:[%s5961_s28 + $0x82] sm:$0xff] }
  0x31   : > { %v581_v7 = vld [vmem:[%s5961_s28 + $0x9a] sm:$0xf]  ;;  %v580_v9 = vld [vmem:[%s5961_s28 + $0x92] sm:$0xff] }
  0x34   : > { %260 = vperm.xlu1 %5821, %v181_v13   ;;  %255 = vperm.xlu0 %5820, %v5992_v14  }
  0x38   : > { %270 = vperm.xlu1 %5821, %v183_v15   ;;  %265 = vperm.xlu0 %5820, %v5997_v16   ;;  %v583_v15 = vld [vmem:[%s5961_s28 + $0xaa] sm:$0xf] }
  0x3c   : > { %280 = vperm.xlu1 %5821, %v185_v17   ;;  %275 = vperm.xlu0 %5820, %v6002_v18   ;;  %v582_v17 = vld [vmem:[%s5961_s28 + $0xa2] sm:$0xff] }
  0x40   : > { %290 = vperm.xlu1 %5821, %v187_v19   ;;  %285 = vperm.xlu0 %5820, %v6007_v20  }
  0x44   : > { %300 = vperm.xlu1 %5821, %v189_v21   ;;  %295 = vperm.xlu0 %5820, %v6012_v22  }
  0x48   : > { %310 = vperm.xlu1 %5821, %v191_v23   ;;  %305 = vperm.xlu0 %5820, %v6017_v24   ;;  %v585_v23 = vld [vmem:[%s5961_s28 + $0xba] sm:$0xf] }
  0x4c   : > { %397 = vperm.xlu1 %5821, %v366_v25   ;;  %392 = vperm.xlu0 %5820, %v365_v26   ;;  %v584_v25 = vld [vmem:[%s5961_s28 + $0xb2] sm:$0xff] }
  0x50   : > { %407 = vperm.xlu1 %5821, %v368_v27   ;;  %402 = vperm.xlu0 %5820, %v6024_v28  }
  0x54   : > { %417 = vperm.xlu1 %5821, %v370_v29   ;;  %412 = vperm.xlu0 %5820, %v6029_v30   ;;  %v760_v29 = vld [vmem:[%s5961_s28 + $0xb] sm:$0xf] }
  0x58   : > { %427 = vperm.xlu1 %5821, %v372_v31   ;;  %422 = vperm.xlu0 %5820, %v6034_v32   ;;  %v759_v31 = vld [vmem:[%s5961_s28 + $0x3] sm:$0xff] }
  0x5c   : > { %437 = vperm.xlu1 %5821, %v374_v33   ;;  %432 = vperm.xlu0 %5820, %v6039_v34  }
  0x60   : > { %447 = vperm.xlu1 %5821, %v376_v35   ;;  %442 = vperm.xlu0 %5820, %v6044_v36  }
  0x64   : > { %457 = vperm.xlu1 %5821, %v378_v37   ;;  %452 = vperm.xlu0 %5820, %v6049_v38   ;;  %v762_v37 = vld [vmem:[%s5961_s28 + $0x1b] sm:$0xf] }
  0x68   : > { %467 = vperm.xlu1 %5821, %v380_v39   ;;  %462 = vperm.xlu0 %5820, %v6054_v40   ;;  %v761_v39 = vld [vmem:[%s5961_s28 + $0x13] sm:$0xff] }
  0x6c   : > { %477 = vperm.xlu1 %5821, %v382_v41   ;;  %472 = vperm.xlu0 %5820, %v6059_v42  }
  0x70   : > { %487 = vperm.xlu1 %5821, %v384_v43   ;;  %482 = vperm.xlu0 %5820, %v6064_v44  }
  0x74   : > { %497 = vperm.xlu1 %5821, %v386_v45   ;;  %492 = vperm.xlu0 %5820, %v385_v46   ;;  %v764_v45 = vld [vmem:[%s5961_s28 + $0x2b] sm:$0xf]  ;;  %v763_v46 = vld [vmem:[%s5961_s28 + $0x23] sm:$0xff] }
  0x78   : > { %507 = vperm.xlu1 %5821, %v388_v47   ;;  %502 = vperm.xlu0 %5820, %v387_v48  }
  0x7c   : > { %594 = vperm.xlu1 %5821, %v563_v49   ;;  %589 = vperm.xlu0 %5820, %v562_v50   ;;  %v766_v49 = vld [vmem:[%s5961_s28 + $0x3b] sm:$0xf]  ;;  %v765_v50 = vld [vmem:[%s5961_s28 + $0x33] sm:$0xff] }
  0x80   : > { %604 = vperm.xlu1 %5821, %v565_v51   ;;  %599 = vperm.xlu0 %5820, %v564_v52  }
  0x84   : > { %614 = vperm.xlu1 %5821, %v567_v53   ;;  %609 = vperm.xlu0 %5820, %v566_v54   ;;  %v768_v53 = vld [vmem:[%s5961_s28 + $0x4b] sm:$0xf]  ;;  %v767_v54 = vld [vmem:[%s5961_s28 + $0x43] sm:$0xff] }
  0x88   : > { %624 = vperm.xlu1 %5821, %v569_v55   ;;  %619 = vperm.xlu0 %5820, %v568_v56  }
  0x8c   : > { %634 = vperm.xlu1 %5821, %v571_v57   ;;  %629 = vperm.xlu0 %5820, %v570_v58   ;;  %v770_v57 = vld [vmem:[%s5961_s28 + $0x5b] sm:$0xf]  ;;  %v769_v58 = vld [vmem:[%s5961_s28 + $0x53] sm:$0xff] }
  0x90   : > { %644 = vperm.xlu1 %5821, %v573_v59   ;;  %639 = vperm.xlu0 %5820, %v572_v60  }
  0x94   : > { %654 = vperm.xlu1 %5821, %v575_v61   ;;  %649 = vperm.xlu0 %5820, %v574_v62   ;;  %v772_v61 = vld [vmem:[%s5961_s28 + $0x6b] sm:$0xf]  ;;  %v771_v62 = vld [vmem:[%s5961_s28 + $0x63] sm:$0xff] }
  0x98   : > { %664 = vperm.xlu1 %5821, %v577_v63   ;;  %659 = vperm.xlu0 %5820, %v576_v0  }
  0x9b   : > { %v6089_v4 = vpop.permute.xlu1 %205  ;;  %v6091_v5 = vpop.permute.xlu0 %195 }
  0x9c   : > { %674 = vperm.xlu1 %5821, %v579_v2   ;;  %669 = vperm.xlu0 %5820, %v578_v3   ;;  %v774_v2 = vld [vmem:[%s5961_s28 + $0x7b] sm:$0xf]  ;;  %v773_v3 = vld [vmem:[%s5961_s28 + $0x73] sm:$0xff] }
  0x9f   : > { %v6095_v11 = vpop.permute.xlu1 %210  ;;  %v6097_v13 = vpop.permute.xlu0 %200 }
  0xa0   : > { %684 = vperm.xlu1 %5821, %v581_v7   ;;  %679 = vperm.xlu0 %5820, %v580_v9  }
  0xa3   : > { %v6101_v19 = vpop.permute.xlu1 %220  ;;  %v6103_v21 = vpop.permute.xlu0 %215 }
  0xa4   : > { %694 = vperm.xlu1 %5821, %v583_v15   ;;  %689 = vperm.xlu0 %5820, %v582_v17   ;;  %v776_v15 = vld [vmem:[%s5961_s28 + $0x8b] sm:$0xf]  ;;  %v775_v17 = vld [vmem:[%s5961_s28 + $0x83] sm:$0xff] }
  0xa7   : > { %v6107_v26 = vpop.permute.xlu1 %230  ;;  %v6109_v27 = vpop.permute.xlu0 %225 }
  0xa8   : > { %704 = vperm.xlu1 %5821, %v585_v23   ;;  %699 = vperm.xlu0 %5820, %v584_v25  }
  0xab   : > { %v6113_v33 = vpop.permute.xlu1 %240  ;;  %v6115_v35 = vpop.permute.xlu0 %235 }
  0xac   : > { %791 = vperm.xlu1 %5821, %v760_v29   ;;  %786 = vperm.xlu0 %5820, %v759_v31   ;;  %v778_v29 = vld [vmem:[%s5961_s28 + $0x9b] sm:$0xf]  ;;  %v777_v31 = vld [vmem:[%s5961_s28 + $0x93] sm:$0xff] }
  0xaf   : > { %v6119_v41 = vpop.permute.xlu1 %250  ;;  %v6121_v43 = vpop.permute.xlu0 %245 }
  0xb0   : > { %801 = vperm.xlu1 %5821, %v762_v37   ;;  %796 = vperm.xlu0 %5820, %v761_v39  }
  0xb3   : > { %v6125_v47 = vpop.permute.xlu1 %260  ;;  %v6127_v48 = vpop.permute.xlu0 %255 }
  0xb4   : > { %811 = vperm.xlu1 %5821, %v764_v45   ;;  %806 = vperm.xlu0 %5820, %v763_v46   ;;  %v780_v45 = vld [vmem:[%s5961_s28 + $0xab] sm:$0xf]  ;;  %v779_v46 = vld [vmem:[%s5961_s28 + $0xa3] sm:$0xff] }
  0xb7   : > { %v6131_v51 = vpop.permute.xlu1 %270  ;;  %v6133_v52 = vpop.permute.xlu0 %265 }
  0xb8   : > { %821 = vperm.xlu1 %5821, %v766_v49   ;;  %816 = vperm.xlu0 %5820, %v765_v50  }
  0xbb   : > { %v6137_v55 = vpop.permute.xlu1 %280  ;;  %v6139_v56 = vpop.permute.xlu0 %275 }
  0xbc   : > { %831 = vperm.xlu1 %5821, %v768_v53   ;;  %826 = vperm.xlu0 %5820, %v767_v54   ;;  %v782_v53 = vld [vmem:[%s5961_s28 + $0xbb] sm:$0xf]  ;;  %v781_v54 = vld [vmem:[%s5961_s28 + $0xb3] sm:$0xff] }
  0xbf   : > { %v6143_v59 = vpop.permute.xlu1 %290  ;;  %v6145_v60 = vpop.permute.xlu0 %285 }
  0xc0   : > { %841 = vperm.xlu1 %5821, %v770_v57   ;;  %836 = vperm.xlu0 %5820, %v769_v58  }
  0xc3   : > { %v6149_v63 = vpop.permute.xlu1 %300  ;;  %v6151_v0 = vpop.permute.xlu0 %295 }
  0xc4   : > { %851 = vperm.xlu1 %5821, %v772_v61   ;;  %846 = vperm.xlu0 %5820, %v771_v62   ;;  %v957_v61 = vld [vmem:[%s5961_s28 + $0xc] sm:$0xf]  ;;  %v956_v62 = vld [vmem:[%s5961_s28 + $0x4] sm:$0xff] }
  0xc7   : > { %v6155_v7 = vpop.permute.xlu1 %310  ;;  %v6157_v9 = vpop.permute.xlu0 %305 }
  0xc8   : > { %861 = vperm.xlu1 %5821, %v774_v2   ;;  %856 = vperm.xlu0 %5820, %v773_v3  }
  0xcb   : > { %v6161_v23 = vpop.permute.xlu1 %397  ;;  %v6163_v25 = vpop.permute.xlu0 %392 }
  0xcc   : > { %871 = vperm.xlu1 %5821, %v776_v15   ;;  %866 = vperm.xlu0 %5820, %v775_v17   ;;  %v959_v15 = vld [vmem:[%s5961_s28 + $0x1c] sm:$0xf]  ;;  %v958_v17 = vld [vmem:[%s5961_s28 + $0x14] sm:$0xff] }
  0xcf   : > { %v6167_v37 = vpop.permute.xlu1 %407  ;;  %v6169_v39 = vpop.permute.xlu0 %402 }
  0xd0   : > { %881 = vperm.xlu1 %5821, %v778_v29   ;;  %876 = vperm.xlu0 %5820, %v777_v31  }
  0xd3   : > { %v6173_v49 = vpop.permute.xlu1 %417  ;;  %v6175_v50 = vpop.permute.xlu0 %412 }
  0xd4   : > { %891 = vperm.xlu1 %5821, %v780_v45   ;;  %886 = vperm.xlu0 %5820, %v779_v46   ;;  %v961_v45 = vld [vmem:[%s5961_s28 + $0x2c] sm:$0xf]  ;;  %v960_v46 = vld [vmem:[%s5961_s28 + $0x24] sm:$0xff] }
  0xd7   : > { %v6179_v57 = vpop.permute.xlu1 %427  ;;  %v6181_v58 = vpop.permute.xlu0 %422 }
  0xd8   : > { %901 = vperm.xlu1 %5821, %v782_v53   ;;  %896 = vperm.xlu0 %5820, %v781_v54  }
  0xdb   : > { %v6185_v2 = vpop.permute.xlu1 %437  ;;  %v6187_v3 = vpop.permute.xlu0 %432 }
  0xdc   : > { %10416 = vst [vmem:[#allocation5_spill] sm:$0xff] %v6187_v3  ;;  %988 = vperm.xlu1 %5821, %v957_v61   ;;  %983 = vperm.xlu0 %5820, %v956_v62   ;;  %v963_v61 = vld [vmem:[%s5961_s28 + $0x3c] sm:$0xf]  ;;  %v962_v62 = vld [vmem:[%s5961_s28 + $0x34] sm:$0xff] }
  0xdf   : > { %v6191_v29 = vpop.permute.xlu1 %447  ;;  %v6193_v31 = vpop.permute.xlu0 %442 }
  0xe0   : > { %10417 = vst [vmem:[#allocation6_spill] sm:$0xff] %v6191_v29  ;;  %10418 = vst [vmem:[#allocation7_spill] sm:$0xff] %v6193_v31  ;;  %998 = vperm.xlu1 %5821, %v959_v15   ;;  %993 = vperm.xlu0 %5820, %v958_v17   ;;  %v965_v15 = vld [vmem:[%s5961_s28 + $0x4c] sm:$0xf]  ;;  %v964_v17 = vld [vmem:[%s5961_s28 + $0x44] sm:$0xff] }
  0xe3   : > { %v6197_v53 = vpop.permute.xlu1 %457  ;;  %v6199_v54 = vpop.permute.xlu0 %452 }
  0xe4   : > { %10419 = vst [vmem:[#allocation8_spill] sm:$0xff] %v6197_v53  ;;  %10420 = vst [vmem:[#allocation9_spill] sm:$0xff] %v6199_v54  ;;  %1008 = vperm.xlu1 %5821, %v961_v45   ;;  %1003 = vperm.xlu0 %5820, %v960_v46   ;;  %v967_v45 = vld [vmem:[%s5961_s28 + $0x5c] sm:$0xf]  ;;  %v966_v46 = vld [vmem:[%s5961_s28 + $0x54] sm:$0xff] }
  0xe7   : > { %v6203_v3 = vpop.permute.xlu1 %467  ;;  %v6205_v29 = vpop.permute.xlu0 %462 }
  0xe8   : > { %10421 = vst [vmem:[#allocation10_spill] sm:$0xff] %v6203_v3  ;;  %10422 = vst [vmem:[#allocation11_spill] sm:$0xff] %v6205_v29  ;;  %1018 = vperm.xlu1 %5821, %v963_v61   ;;  %1013 = vperm.xlu0 %5820, %v962_v62   ;;  %v969_v61 = vld [vmem:[%s5961_s28 + $0x6c] sm:$0xf]  ;;  %v968_v62 = vld [vmem:[%s5961_s28 + $0x64] sm:$0xff] }
  0xeb   : > { %v6209_v31 = vpop.permute.xlu1 %477  ;;  %v6211_v53 = vpop.permute.xlu0 %472 }
  0xec   : > { %10423 = vst [vmem:[#allocation12_spill] sm:$0xff] %v6209_v31  ;;  %10424 = vst [vmem:[#allocation13_spill] sm:$0xff] %v6211_v53  ;;  %1028 = vperm.xlu1 %5821, %v965_v15   ;;  %1023 = vperm.xlu0 %5820, %v964_v17   ;;  %v971_v15 = vld [vmem:[%s5961_s28 + $0x7c] sm:$0xf]  ;;  %v970_v17 = vld [vmem:[%s5961_s28 + $0x74] sm:$0xff] }
  0xef   : > { %v6215_v54 = vpop.permute.xlu1 %487  ;;  %v6217_v3 = vpop.permute.xlu0 %482 }
  0xf0   : > { %10425 = vst [vmem:[#allocation14_spill] sm:$0xff] %v6215_v54  ;;  %10426 = vst [vmem:[#allocation15_spill] sm:$0xff] %v6217_v3  ;;  %1038 = vperm.xlu1 %5821, %v967_v45   ;;  %1033 = vperm.xlu0 %5820, %v966_v46   ;;  %v973_v45 = vld [vmem:[%s5961_s28 + $0x8c] sm:$0xf]  ;;  %v972_v46 = vld [vmem:[%s5961_s28 + $0x84] sm:$0xff] }
  0xf3   : > { %v6221_v29 = vpop.permute.xlu1 %497  ;;  %v6223_v31 = vpop.permute.xlu0 %492 }
  0xf4   : > { %10427 = vst [vmem:[#allocation16_spill] sm:$0xff] %v6221_v29  ;;  %10428 = vst [vmem:[#allocation17_spill] sm:$0xff] %v6223_v31  ;;  %1048 = vperm.xlu1 %5821, %v969_v61   ;;  %1043 = vperm.xlu0 %5820, %v968_v62   ;;  %v975_v61 = vld [vmem:[%s5961_s28 + $0x9c] sm:$0xf]  ;;  %v974_v62 = vld [vmem:[%s5961_s28 + $0x94] sm:$0xff] }
  0xf7   : > { %v6227_v53 = vpop.permute.xlu1 %507  ;;  %v6229_v54 = vpop.permute.xlu0 %502 }
  0xf8   : > { %10429 = vst [vmem:[#allocation18_spill] sm:$0xff] %v6227_v53  ;;  %10430 = vst [vmem:[#allocation19_spill] sm:$0xff] %v6229_v54  ;;  %1058 = vperm.xlu1 %5821, %v971_v15   ;;  %1053 = vperm.xlu0 %5820, %v970_v17   ;;  %v977_v15 = vld [vmem:[%s5961_s28 + $0xac] sm:$0xf]  ;;  %v976_v17 = vld [vmem:[%s5961_s28 + $0xa4] sm:$0xff] }
  0xfb   : > { %v6233_v3 = vpop.permute.xlu1 %594  ;;  %v6235_v29 = vpop.permute.xlu0 %589 }
  0xfc   : > { %10431 = vst [vmem:[#allocation20_spill] sm:$0xff] %v6233_v3  ;;  %10432 = vst [vmem:[#allocation21_spill] sm:$0xff] %v6235_v29  ;;  %1068 = vperm.xlu1 %5821, %v973_v45   ;;  %1063 = vperm.xlu0 %5820, %v972_v46   ;;  %v979_v45 = vld [vmem:[%s5961_s28 + $0xbc] sm:$0xf]  ;;  %v978_v46 = vld [vmem:[%s5961_s28 + $0xb4] sm:$0xff] }
  0xff   : > { %v6239_v31 = vpop.permute.xlu1 %604  ;;  %v6241_v53 = vpop.permute.xlu0 %599 }
 0x100   : > { %10433 = vst [vmem:[#allocation22_spill] sm:$0xff] %v6239_v31  ;;  %10434 = vst [vmem:[#allocation23_spill] sm:$0xff] %v6241_v53  ;;  %1078 = vperm.xlu1 %5821, %v975_v61   ;;  %1073 = vperm.xlu0 %5820, %v974_v62   ;;  %v5276_v61 = vld [vmem:[%s5961_s28 + $0x18] sm:$0xf] }
 0x103   : > { %v6245_v54 = vpop.permute.xlu1 %614  ;;  %v6247_v3 = vpop.permute.xlu0 %609 }
 0x104   : > { %10435 = vst [vmem:[#allocation24_spill] sm:$0xff] %v6247_v3  ;;  %1088 = vperm.xlu1 %5821, %v977_v15   ;;  %1083 = vperm.xlu0 %5820, %v976_v17   ;;  %v5278_v15 = vld [vmem:[%s5961_s28 + $0x28] sm:$0xf] }
 0x107   : > { %v6251_v29 = vpop.permute.xlu1 %624  ;;  %v6253_v31 = vpop.permute.xlu0 %619 }
 0x108   : > { %10436 = vst [vmem:[#allocation25_spill] sm:$0xff] %v6253_v31  ;;  %1098 = vperm.xlu1 %5821, %v979_v45   ;;  %1093 = vperm.xlu0 %5820, %v978_v46   ;;  %v5280_v45 = vld [vmem:[%s5961_s28 + $0x38] sm:$0xf] }
 0x10b   : > { %v6256_v62 = vpop.permute.xlu1 %634  ;;  %v6258_v53 = vpop.permute.xlu0 %629 }
 0x10c   : > { %10437 = vst [vmem:[#allocation26_spill] sm:$0xff] %v6258_v53  ;;  %1186 = vperm.xlu1 %5821, %v5276_v61   ;;  %1181 = vperm.xlu0 %5820, %v5964_v1   ;;  %v5282_v1 = vld [vmem:[%s5961_s28 + $0x48] sm:$0xf] }
 0x10f   : > { %v6262_v17 = vpop.permute.xlu1 %644  ;;  %v6264_v3 = vpop.permute.xlu0 %639 }
 0x110   : > { %10438 = vst [vmem:[#allocation27_spill] sm:$0xff] %v6264_v3  ;;  %1196 = vperm.xlu1 %5821, %v5278_v15   ;;  %1191 = vperm.xlu0 %5820, %v5972_v6   ;;  %v5284_v6 = vld [vmem:[%s5961_s28 + $0x58] sm:$0xf] }
 0x113   : > { %v6268_v46 = vpop.permute.xlu1 %654  ;;  %v6270_v31 = vpop.permute.xlu0 %649 }
 0x114   : > { %10439 = vst [vmem:[#allocation28_spill] sm:$0xff] %v6270_v31  ;;  %1206 = vperm.xlu1 %5821, %v5280_v45   ;;  %1201 = vperm.xlu0 %5820, %v5977_v8   ;;  %v5286_v8 = vld [vmem:[%s5961_s28 + $0x68] sm:$0xf] }
 0x117   : > { %v6274_v61 = vpop.permute.xlu1 %664  ;;  %v6276_v53 = vpop.permute.xlu0 %659 }
 0x118   : > { %10440 = vst [vmem:[#allocation29_spill] sm:$0xff] %v6276_v53  ;;  %1216 = vperm.xlu1 %5821, %v5282_v1   ;;  %1211 = vperm.xlu0 %5820, %v5982_v10   ;;  %v5288_v10 = vld [vmem:[%s5961_s28 + $0x78] sm:$0xf] }
 0x11b   : > { %v6280_v15 = vpop.permute.xlu1 %674  ;;  %v6282_v3 = vpop.permute.xlu0 %669 }
 0x11c   : > { %10441 = vst [vmem:[#allocation30_spill] sm:$0xff] %v6282_v3  ;;  %1226 = vperm.xlu1 %5821, %v5284_v6   ;;  %1221 = vperm.xlu0 %5820, %v5987_v12   ;;  %v5290_v12 = vld [vmem:[%s5961_s28 + $0x88] sm:$0xf] }
 0x11f   : > { %v6286_v45 = vpop.permute.xlu1 %684  ;;  %v6288_v31 = vpop.permute.xlu0 %679 }
 0x120   : > { %1236 = vperm.xlu1 %5821, %v5286_v8   ;;  %1231 = vperm.xlu0 %5820, %v5992_v14   ;;  %v5292_v14 = vld [vmem:[%s5961_s28 + $0x98] sm:$0xf] }
 0x123   : > { %v6292_v1 = vpop.permute.xlu1 %694  ;;  %v6294_v53 = vpop.permute.xlu0 %689 }
 0x124   : > { %10442 = vst [vmem:[#allocation31_spill] sm:$0xff] %v6292_v1  ;;  %1246 = vperm.xlu1 %5821, %v5288_v10   ;;  %1241 = vperm.xlu0 %5820, %v5997_v16   ;;  %v5294_v16 = vld [vmem:[%s5961_s28 + $0xa8] sm:$0xf] }
 0x127   : > { %v6298_v6 = vpop.permute.xlu1 %704  ;;  %v6300_v3 = vpop.permute.xlu0 %699 }
 0x128   : > { %10443 = vst [vmem:[#allocation32_spill] sm:$0xff] %v6298_v6  ;;  %10444 = vst [vmem:[#allocation33_spill] sm:$0xff] %v6300_v3  ;;  %1256 = vperm.xlu1 %5821, %v5290_v12   ;;  %1251 = vperm.xlu0 %5820, %v6002_v18   ;;  %v5296_v18 = vld [vmem:[%s5961_s28 + $0xb8] sm:$0xf] }
 0x12b   : > { %v6304_v8 = vpop.permute.xlu1 %791  ;;  %v6306_v1 = vpop.permute.xlu0 %786 }
 0x12c   : > { %10445 = vst [vmem:[#allocation34_spill] sm:$0xff] %v6306_v1  ;;  %1266 = vperm.xlu1 %5821, %v5292_v14   ;;  %1261 = vperm.xlu0 %5820, %v6007_v20   ;;  %v5298_v14 = vld [vmem:[%s5961_s28 + $0xc8] sm:$0xf]  ;;  %v5297_v20 = vld [vmem:[%s5961_s28 + $0xc0] sm:$0xff] }
 0x12f   : > { %v6310_v10 = vpop.permute.xlu1 %801  ;;  %v6312_v6 = vpop.permute.xlu0 %796 }
 0x130   : > { %10446 = vst [vmem:[#allocation35_spill] sm:$0xff] %v6310_v10  ;;  %10447 = vst [vmem:[#allocation36_spill] sm:$0xff] %v6312_v6  ;;  %1276 = vperm.xlu1 %5821, %v5294_v16   ;;  %1271 = vperm.xlu0 %5820, %v6012_v22   ;;  %v5301_v22 = vld [vmem:[%s5961_s28 + $0x19] sm:$0xf] }
 0x133   : > { %v6316_v12 = vpop.permute.xlu1 %811  ;;  %v6318_v3 = vpop.permute.xlu0 %806 }
 0x134   : > { %10448 = vst [vmem:[#allocation37_spill] sm:$0xff] %v6318_v3  ;;  %1286 = vperm.xlu1 %5821, %v5296_v18   ;;  %1281 = vperm.xlu0 %5820, %v6017_v24   ;;  %v5303_v24 = vld [vmem:[%s5961_s28 + $0x29] sm:$0xf] }
 0x137   : > { %v6323_v1 = vpop.permute.xlu1 %821  ;;  %v6325_v10 = vpop.permute.xlu0 %816 }
 0x138   : > { %10449 = vst [vmem:[#allocation38_spill] sm:$0xff] %v6325_v10  ;;  %1296 = vperm.xlu1 %5821, %v5298_v14   ;;  %1291 = vperm.xlu0 %5820, %v5297_v20   ;;  %v5305_v14 = vld [vmem:[%s5961_s28 + $0x39] sm:$0xf] }
 0x13b   : > { %v6328_v16 = vpop.permute.xlu1 %831  ;;  %v6330_v6 = vpop.permute.xlu0 %826 }
 0x13c   : > { %10450 = vst [vmem:[#allocation39_spill] sm:$0xff] %v6330_v6  ;;  %1383 = vperm.xlu1 %5821, %v5301_v22   ;;  %1378 = vperm.xlu0 %5820, %v6024_v28   ;;  %v5307_v28 = vld [vmem:[%s5961_s28 + $0x49] sm:$0xf] }
 0x13f   : > { %v6334_v18 = vpop.permute.xlu1 %841  ;;  %v6336_v3 = vpop.permute.xlu0 %836 }
 0x140   : > { %10451 = vst [vmem:[#allocation40_spill] sm:$0xff] %v6336_v3  ;;  %1393 = vperm.xlu1 %5821, %v5303_v24   ;;  %1388 = vperm.xlu0 %5820, %v6029_v30   ;;  %v5309_v30 = vld [vmem:[%s5961_s28 + $0x59] sm:$0xf] }
 0x143   : > { %v6340_v20 = vpop.permute.xlu1 %851  ;;  %v6342_v10 = vpop.permute.xlu0 %846 }
 0x144   : > { %10452 = vst [vmem:[#allocation41_spill] sm:$0xff] %v6342_v10  ;;  %1403 = vperm.xlu1 %5821, %v5305_v14   ;;  %1398 = vperm.xlu0 %5820, %v6034_v32   ;;  %v5311_v32 = vld [vmem:[%s5961_s28 + $0x69] sm:$0xf] }
 0x147   : > { %v6346_v22 = vpop.permute.xlu1 %861  ;;  %v6348_v6 = vpop.permute.xlu0 %856 }
 0x148   : > { %1413 = vperm.xlu1 %5821, %v5307_v28   ;;  %1408 = vperm.xlu0 %5820, %v6039_v34   ;;  %v5313_v34 = vld [vmem:[%s5961_s28 + $0x79] sm:$0xf] }
 0x14b   : > { %v6352_v24 = vpop.permute.xlu1 %871  ;;  %v6354_v3 = vpop.permute.xlu0 %866 }
 0x14c   : > { %10453 = vst [vmem:[#allocation42_spill] sm:$0xff] %v6352_v24  ;;  %10454 = vst [vmem:[#allocation43_spill] sm:$0xff] %v6354_v3  ;;  %1423 = vperm.xlu1 %5821, %v5309_v30   ;;  %1418 = vperm.xlu0 %5820, %v6044_v36   ;;  %v5315_v36 = vld [vmem:[%s5961_s28 + $0x89] sm:$0xf]  ;;  %v5641_v3 = vld [vmem:[%s5961_s28 + $0xb4] sm:$0xff] }
 0x14f   : > { %v6358_v14 = vpop.permute.xlu1 %881  ;;  %v6360_v10 = vpop.permute.xlu0 %876 }
 0x150   : > { %10455 = vst [vmem:[#allocation44_spill] sm:$0xff] %v6358_v14  ;;  %10456 = vst [vmem:[#allocation45_spill] sm:$0xff] %v6360_v10  ;;  %1433 = vperm.xlu1 %5821, %v5311_v32   ;;  %1428 = vperm.xlu0 %5820, %v6049_v38   ;;  %v5317_v38 = vld [vmem:[%s5961_s28 + $0x99] sm:$0xf] }
 0x153   : > { %v6364_v28 = vpop.permute.xlu1 %891  ;;  %v6366_v24 = vpop.permute.xlu0 %886 }
 0x154   : > { %10457 = vst [vmem:[#allocation46_spill] sm:$0xff] %v6364_v28  ;;  %10458 = vst [vmem:[#allocation47_spill] sm:$0xff] %v6366_v24  ;;  %1443 = vperm.xlu1 %5821, %v5313_v34   ;;  %1438 = vperm.xlu0 %5820, %v6054_v40   ;;  %v5319_v40 = vld [vmem:[%s5961_s28 + $0xa9] sm:$0xf]  ;;  %v5318_v34 = vld [vmem:[%s5961_s28 + $0xa1] sm:$0xff] }
 0x157   : > { %v6370_v30 = vpop.permute.xlu1 %901  ;;  %v6372_v14 = vpop.permute.xlu0 %896 }
 0x158   : > { %10459 = vst [vmem:[#allocation48_spill] sm:$0xff] %v6370_v30  ;;  %10460 = vst [vmem:[#allocation49_spill] sm:$0xff] %v6372_v14  ;;  %1453 = vperm.xlu1 %5821, %v5315_v36   ;;  %1448 = vperm.xlu0 %5820, %v6059_v42   ;;  %v5321_v42 = vld [vmem:[%s5961_s28 + $0xb9] sm:$0xf]  ;;  %v5320_v36 = vld [vmem:[%s5961_s28 + $0xb1] sm:$0xff] }
 0x15b   : > { %v6376_v32 = vpop.permute.xlu1 %988  ;;  %v6378_v28 = vpop.permute.xlu0 %983 }
 0x15c   : > { %10461 = vst [vmem:[#allocation50_spill] sm:$0xff] %v6376_v32  ;;  %10462 = vst [vmem:[#allocation51_spill] sm:$0xff] %v6378_v28  ;;  %1463 = vperm.xlu1 %5821, %v5317_v38   ;;  %1458 = vperm.xlu0 %5820, %v6064_v44   ;;  %v5323_v44 = vld [vmem:[%s5961_s28 + $0xc9] sm:$0xf]  ;;  %v5322_v38 = vld [vmem:[%s5961_s28 + $0xc1] sm:$0xff] }
 0x15f   : > { %v6383_v24 = vpop.permute.xlu1 %998  ;;  %v6385_v30 = vpop.permute.xlu0 %993 }
 0x160   : > { %10463 = vst [vmem:[#allocation52_spill] sm:$0xff] %v6383_v24  ;;  %10464 = vst [vmem:[#allocation53_spill] sm:$0xff] %v6385_v30  ;;  %1473 = vperm.xlu1 %5821, %v5319_v40   ;;  %1468 = vperm.xlu0 %5820, %v5318_v34   ;;  %v5326_v40 = vld [vmem:[%s5961_s28 + $0x1a] sm:$0xf]  ;;  %v5325_v34 = vld [vmem:[%s5961_s28 + $0x12] sm:$0xff] }
 0x163   : > { %v6389_v32 = vpop.permute.xlu1 %1008  ;;  %v6391_v28 = vpop.permute.xlu0 %1003 }
 0x164   : > { %10465 = vst [vmem:[#allocation54_spill] sm:$0xff] %v6389_v32  ;;  %10466 = vst [vmem:[#allocation55_spill] sm:$0xff] %v6391_v28  ;;  %1483 = vperm.xlu1 %5821, %v5321_v42   ;;  %1478 = vperm.xlu0 %5820, %v5320_v36   ;;  %v5328_v42 = vld [vmem:[%s5961_s28 + $0x2a] sm:$0xf]  ;;  %v5327_v36 = vld [vmem:[%s5961_s28 + $0x22] sm:$0xff] }
 0x167   : > { %v6395_v14 = vpop.permute.xlu1 %1018  ;;  %v6397_v24 = vpop.permute.xlu0 %1013 }
 0x168   : > { %10467 = vst [vmem:[#allocation56_spill] sm:$0xff] %v6395_v14  ;;  %10468 = vst [vmem:[#allocation57_spill] sm:$0xff] %v6397_v24  ;;  %1493 = vperm.xlu1 %5821, %v5323_v44   ;;  %1488 = vperm.xlu0 %5820, %v5322_v38   ;;  %v5330_v44 = vld [vmem:[%s5961_s28 + $0x3a] sm:$0xf]  ;;  %v5329_v38 = vld [vmem:[%s5961_s28 + $0x32] sm:$0xff] }
 0x16b   : > { %v6401_v30 = vpop.permute.xlu1 %1028  ;;  %v6403_v32 = vpop.permute.xlu0 %1023 }
 0x16c   : > { %10469 = vst [vmem:[#allocation58_spill] sm:$0xff] %v6401_v30  ;;  %10470 = vst [vmem:[#allocation59_spill] sm:$0xff] %v6403_v32  ;;  %1580 = vperm.xlu1 %5821, %v5326_v40   ;;  %1575 = vperm.xlu0 %5820, %v5325_v34   ;;  %v5332_v40 = vld [vmem:[%s5961_s28 + $0x4a] sm:$0xf]  ;;  %v5331_v34 = vld [vmem:[%s5961_s28 + $0x42] sm:$0xff] }
 0x16f   : > { %v6407_v28 = vpop.permute.xlu1 %1038  ;;  %v6409_v14 = vpop.permute.xlu0 %1033 }
 0x170   : > { %10471 = vst [vmem:[#allocation60_spill] sm:$0xff] %v6407_v28  ;;  %10472 = vst [vmem:[#allocation61_spill] sm:$0xff] %v6409_v14  ;;  %1590 = vperm.xlu1 %5821, %v5328_v42   ;;  %1585 = vperm.xlu0 %5820, %v5327_v36   ;;  %v5334_v42 = vld [vmem:[%s5961_s28 + $0x5a] sm:$0xf]  ;;  %v5333_v36 = vld [vmem:[%s5961_s28 + $0x52] sm:$0xff] }
 0x173   : > { %v6413_v24 = vpop.permute.xlu1 %1048  ;;  %v6415_v30 = vpop.permute.xlu0 %1043 }
 0x174   : > { %10473 = vst [vmem:[#allocation62_spill] sm:$0xff] %v6413_v24  ;;  %10474 = vst [vmem:[#allocation63_spill] sm:$0xff] %v6415_v30  ;;  %1600 = vperm.xlu1 %5821, %v5330_v44   ;;  %1595 = vperm.xlu0 %5820, %v5329_v38   ;;  %v5336_v44 = vld [vmem:[%s5961_s28 + $0x6a] sm:$0xf]  ;;  %v5335_v38 = vld [vmem:[%s5961_s28 + $0x62] sm:$0xff] }
 0x177   : > { %v6419_v32 = vpop.permute.xlu1 %1058  ;;  %v6421_v28 = vpop.permute.xlu0 %1053 }
 0x178   : > { %10475 = vst [vmem:[#allocation64_spill] sm:$0xff] %v6419_v32  ;;  %10476 = vst [vmem:[#allocation65_spill] sm:$0xff] %v6421_v28  ;;  %1610 = vperm.xlu1 %5821, %v5332_v40   ;;  %1605 = vperm.xlu0 %5820, %v5331_v34   ;;  %v5338_v40 = vld [vmem:[%s5961_s28 + $0x7a] sm:$0xf]  ;;  %v5337_v34 = vld [vmem:[%s5961_s28 + $0x72] sm:$0xff] }
 0x17b   : > { %v6425_v14 = vpop.permute.xlu1 %1068  ;;  %v6427_v24 = vpop.permute.xlu0 %1063 }
 0x17c   : > { %10477 = vst [vmem:[#allocation66_spill] sm:$0xff] %v6425_v14  ;;  %10478 = vst [vmem:[#allocation67_spill] sm:$0xff] %v6427_v24  ;;  %1620 = vperm.xlu1 %5821, %v5334_v42   ;;  %1615 = vperm.xlu0 %5820, %v5333_v36   ;;  %v5340_v42 = vld [vmem:[%s5961_s28 + $0x8a] sm:$0xf]  ;;  %v5339_v36 = vld [vmem:[%s5961_s28 + $0x82] sm:$0xff] }
 0x17f   : > { %v6431_v30 = vpop.permute.xlu1 %1078  ;;  %v6433_v32 = vpop.permute.xlu0 %1073 }
 0x180   : > { %10479 = vst [vmem:[#allocation68_spill] sm:$0xff] %v6431_v30  ;;  %10480 = vst [vmem:[#allocation69_spill] sm:$0xff] %v6433_v32  ;;  %1630 = vperm.xlu1 %5821, %v5336_v44   ;;  %1625 = vperm.xlu0 %5820, %v5335_v38   ;;  %v5342_v44 = vld [vmem:[%s5961_s28 + $0x9a] sm:$0xf]  ;;  %v5341_v38 = vld [vmem:[%s5961_s28 + $0x92] sm:$0xff] }
 0x183   : > { %v6437_v28 = vpop.permute.xlu1 %1088  ;;  %v6439_v14 = vpop.permute.xlu0 %1083 }
 0x184   : > { %10481 = vst [vmem:[#allocation70_spill] sm:$0xff] %v6437_v28  ;;  %10482 = vst [vmem:[#allocation71_spill] sm:$0xff] %v6439_v14  ;;  %1640 = vperm.xlu1 %5821, %v5338_v40   ;;  %1635 = vperm.xlu0 %5820, %v5337_v34   ;;  %v5344_v40 = vld [vmem:[%s5961_s28 + $0xaa] sm:$0xf]  ;;  %v5343_v34 = vld [vmem:[%s5961_s28 + $0xa2] sm:$0xff] }
 0x187   : > { %v6443_v24 = vpop.permute.xlu1 %1098  ;;  %v6445_v30 = vpop.permute.xlu0 %1093 }
 0x188   : > { %10483 = vst [vmem:[#allocation72_spill] sm:$0xff] %v6443_v24  ;;  %10484 = vst [vmem:[#allocation73_spill] sm:$0xff] %v6445_v30  ;;  %1650 = vperm.xlu1 %5821, %v5340_v42   ;;  %1645 = vperm.xlu0 %5820, %v5339_v36   ;;  %v5346_v42 = vld [vmem:[%s5961_s28 + $0xba] sm:$0xf]  ;;  %v5345_v36 = vld [vmem:[%s5961_s28 + $0xb2] sm:$0xff] }
 0x18b   : > { %v6449_v32 = vpop.permute.xlu1 %1186  ;;  %v6451_v28 = vpop.permute.xlu0 %1181 }
 0x18c   : > { %10485 = vst [vmem:[#allocation74_spill] sm:$0xff] %v6449_v32  ;;  %10486 = vst [vmem:[#allocation75_spill] sm:$0xff] %v6451_v28  ;;  %1660 = vperm.xlu1 %5821, %v5342_v44   ;;  %1655 = vperm.xlu0 %5820, %v5341_v38   ;;  %v5348_v44 = vld [vmem:[%s5961_s28 + $0xca] sm:$0xf]  ;;  %v5347_v38 = vld [vmem:[%s5961_s28 + $0xc2] sm:$0xff] }
 0x18f   : > { %v6455_v14 = vpop.permute.xlu1 %1196  ;;  %v6457_v24 = vpop.permute.xlu0 %1191 }
 0x190   : > { %10487 = vst [vmem:[#allocation76_spill] sm:$0xff] %v6455_v14  ;;  %10488 = vst [vmem:[#allocation77_spill] sm:$0xff] %v6457_v24  ;;  %1670 = vperm.xlu1 %5821, %v5344_v40   ;;  %1665 = vperm.xlu0 %5820, %v5343_v34   ;;  %v5351_v40 = vld [vmem:[%s5961_s28 + $0x1b] sm:$0xf]  ;;  %v5350_v34 = vld [vmem:[%s5961_s28 + $0x13] sm:$0xff] }
 0x193   : > { %v6461_v30 = vpop.permute.xlu1 %1206  ;;  %v6463_v32 = vpop.permute.xlu0 %1201 }
 0x194   : > { %10489 = vst [vmem:[#allocation78_spill] sm:$0xff] %v6461_v30  ;;  %10490 = vst [vmem:[#allocation79_spill] sm:$0xff] %v6463_v32  ;;  %1680 = vperm.xlu1 %5821, %v5346_v42   ;;  %1675 = vperm.xlu0 %5820, %v5345_v36   ;;  %v5353_v42 = vld [vmem:[%s5961_s28 + $0x2b] sm:$0xf]  ;;  %v5352_v36 = vld [vmem:[%s5961_s28 + $0x23] sm:$0xff] }
 0x197   : > { %v6467_v28 = vpop.permute.xlu1 %1216  ;;  %v6469_v14 = vpop.permute.xlu0 %1211 }
 0x198   : > { %10491 = vst [vmem:[#allocation80_spill] sm:$0xff] %v6467_v28  ;;  %10492 = vst [vmem:[#allocation81_spill] sm:$0xff] %v6469_v14  ;;  %1690 = vperm.xlu1 %5821, %v5348_v44   ;;  %1685 = vperm.xlu0 %5820, %v5347_v38   ;;  %v5355_v44 = vld [vmem:[%s5961_s28 + $0x3b] sm:$0xf]  ;;  %v5354_v38 = vld [vmem:[%s5961_s28 + $0x33] sm:$0xff] }
 0x19b   : > { %v6473_v24 = vpop.permute.xlu1 %1226  ;;  %v6475_v30 = vpop.permute.xlu0 %1221 }
 0x19c   : > { %10493 = vst [vmem:[#allocation82_spill] sm:$0xff] %v6473_v24  ;;  %10494 = vst [vmem:[#allocation83_spill] sm:$0xff] %v6475_v30  ;;  %1777 = vperm.xlu1 %5821, %v5351_v40   ;;  %1772 = vperm.xlu0 %5820, %v5350_v34   ;;  %v5357_v40 = vld [vmem:[%s5961_s28 + $0x4b] sm:$0xf]  ;;  %v5356_v34 = vld [vmem:[%s5961_s28 + $0x43] sm:$0xff] }
 0x19f   : > { %v6479_v32 = vpop.permute.xlu1 %1236  ;;  %v6481_v28 = vpop.permute.xlu0 %1231 }
 0x1a0   : > { %10495 = vst [vmem:[#allocation84_spill] sm:$0xff] %v6479_v32  ;;  %10496 = vst [vmem:[#allocation85_spill] sm:$0xff] %v6481_v28  ;;  %1787 = vperm.xlu1 %5821, %v5353_v42   ;;  %1782 = vperm.xlu0 %5820, %v5352_v36   ;;  %v5359_v42 = vld [vmem:[%s5961_s28 + $0x5b] sm:$0xf]  ;;  %v5358_v36 = vld [vmem:[%s5961_s28 + $0x53] sm:$0xff] }
 0x1a3   : > { %v6485_v14 = vpop.permute.xlu1 %1246  ;;  %v6487_v24 = vpop.permute.xlu0 %1241 }
 0x1a4   : > { %10497 = vst [vmem:[#allocation86_spill] sm:$0xff] %v6485_v14  ;;  %10498 = vst [vmem:[#allocation87_spill] sm:$0xff] %v6487_v24  ;;  %1797 = vperm.xlu1 %5821, %v5355_v44   ;;  %1792 = vperm.xlu0 %5820, %v5354_v38   ;;  %v5361_v44 = vld [vmem:[%s5961_s28 + $0x6b] sm:$0xf]  ;;  %v5360_v38 = vld [vmem:[%s5961_s28 + $0x63] sm:$0xff] }
 0x1a7   : > { %v6491_v30 = vpop.permute.xlu1 %1256  ;;  %v6493_v32 = vpop.permute.xlu0 %1251 }
 0x1a8   : > { %10499 = vst [vmem:[#allocation88_spill] sm:$0xff] %v6491_v30  ;;  %10500 = vst [vmem:[#allocation89_spill] sm:$0xff] %v6493_v32  ;;  %1807 = vperm.xlu1 %5821, %v5357_v40   ;;  %1802 = vperm.xlu0 %5820, %v5356_v34   ;;  %v5363_v40 = vld [vmem:[%s5961_s28 + $0x7b] sm:$0xf]  ;;  %v5362_v34 = vld [vmem:[%s5961_s28 + $0x73] sm:$0xff] }
 0x1ab   : > { %v6497_v28 = vpop.permute.xlu1 %1266  ;;  %v6499_v14 = vpop.permute.xlu0 %1261 }
 0x1ac   : > { %10501 = vst [vmem:[#allocation90_spill] sm:$0xff] %v6497_v28  ;;  %10502 = vst [vmem:[#allocation91_spill] sm:$0xff] %v6499_v14  ;;  %1817 = vperm.xlu1 %5821, %v5359_v42   ;;  %1812 = vperm.xlu0 %5820, %v5358_v36   ;;  %v5365_v42 = vld [vmem:[%s5961_s28 + $0x8b] sm:$0xf]  ;;  %v5364_v36 = vld [vmem:[%s5961_s28 + $0x83] sm:$0xff] }
 0x1af   : > { %v6503_v24 = vpop.permute.xlu1 %1276  ;;  %v6505_v30 = vpop.permute.xlu0 %1271 }
 0x1b0   : > { %10503 = vst [vmem:[#allocation92_spill] sm:$0xff] %v6503_v24  ;;  %10504 = vst [vmem:[#allocation93_spill] sm:$0xff] %v6505_v30  ;;  %1827 = vperm.xlu1 %5821, %v5361_v44   ;;  %1822 = vperm.xlu0 %5820, %v5360_v38   ;;  %v5367_v44 = vld [vmem:[%s5961_s28 + $0x9b] sm:$0xf]  ;;  %v5366_v38 = vld [vmem:[%s5961_s28 + $0x93] sm:$0xff] }
 0x1b3   : > { %v6509_v32 = vpop.permute.xlu1 %1286  ;;  %v6511_v28 = vpop.permute.xlu0 %1281 }
 0x1b4   : > { %10505 = vst [vmem:[#allocation94_spill] sm:$0xff] %v6509_v32  ;;  %10506 = vst [vmem:[#allocation95_spill] sm:$0xff] %v6511_v28  ;;  %1837 = vperm.xlu1 %5821, %v5363_v40   ;;  %1832 = vperm.xlu0 %5820, %v5362_v34   ;;  %v5369_v40 = vld [vmem:[%s5961_s28 + $0xab] sm:$0xf]  ;;  %v5368_v34 = vld [vmem:[%s5961_s28 + $0xa3] sm:$0xff] }
 0x1b7   : > { %v6515_v14 = vpop.permute.xlu1 %1296  ;;  %v6517_v24 = vpop.permute.xlu0 %1291 }
 0x1b8   : > { %10507 = vst [vmem:[#allocation96_spill] sm:$0xff] %v6515_v14  ;;  %10508 = vst [vmem:[#allocation97_spill] sm:$0xff] %v6517_v24  ;;  %1847 = vperm.xlu1 %5821, %v5365_v42   ;;  %1842 = vperm.xlu0 %5820, %v5364_v36   ;;  %v5371_v42 = vld [vmem:[%s5961_s28 + $0xbb] sm:$0xf]  ;;  %v5370_v36 = vld [vmem:[%s5961_s28 + $0xb3] sm:$0xff] }
 0x1bb   : > { %v6521_v30 = vpop.permute.xlu1 %1383  ;;  %v6523_v32 = vpop.permute.xlu0 %1378 }
 0x1bc   : > { %10509 = vst [vmem:[#allocation98_spill] sm:$0xff] %v6521_v30  ;;  %10510 = vst [vmem:[#allocation99_spill] sm:$0xff] %v6523_v32  ;;  %1857 = vperm.xlu1 %5821, %v5367_v44   ;;  %1852 = vperm.xlu0 %5820, %v5366_v38   ;;  %v5373_v44 = vld [vmem:[%s5961_s28 + $0xcb] sm:$0xf]  ;;  %v5372_v38 = vld [vmem:[%s5961_s28 + $0xc3] sm:$0xff] }
 0x1bf   : > { %v6527_v28 = vpop.permute.xlu1 %1393  ;;  %v6529_v14 = vpop.permute.xlu0 %1388 }
 0x1c0   : > { %10511 = vst [vmem:[#allocation100_spill] sm:$0xff] %v6527_v28  ;;  %10512 = vst [vmem:[#allocation101_spill] sm:$0xff] %v6529_v14  ;;  %1867 = vperm.xlu1 %5821, %v5369_v40   ;;  %1862 = vperm.xlu0 %5820, %v5368_v34   ;;  %v5376_v40 = vld [vmem:[%s5961_s28 + $0x1c] sm:$0xf]  ;;  %v5375_v34 = vld [vmem:[%s5961_s28 + $0x14] sm:$0xff] }
 0x1c3   : > { %v6533_v24 = vpop.permute.xlu1 %1403  ;;  %v6535_v30 = vpop.permute.xlu0 %1398 }
 0x1c4   : > { %10513 = vst [vmem:[#allocation102_spill] sm:$0xff] %v6533_v24  ;;  %10514 = vst [vmem:[#allocation103_spill] sm:$0xff] %v6535_v30  ;;  %1877 = vperm.xlu1 %5821, %v5371_v42   ;;  %1872 = vperm.xlu0 %5820, %v5370_v36   ;;  %v5378_v42 = vld [vmem:[%s5961_s28 + $0x2c] sm:$0xf]  ;;  %v5377_v36 = vld [vmem:[%s5961_s28 + $0x24] sm:$0xff] }
 0x1c7   : > { %v6539_v32 = vpop.permute.xlu1 %1413  ;;  %v6541_v28 = vpop.permute.xlu0 %1408 }
 0x1c8   : > { %10515 = vst [vmem:[#allocation104_spill] sm:$0xff] %v6539_v32  ;;  %10516 = vst [vmem:[#allocation105_spill] sm:$0xff] %v6541_v28  ;;  %1887 = vperm.xlu1 %5821, %v5373_v44   ;;  %1882 = vperm.xlu0 %5820, %v5372_v38   ;;  %v5380_v44 = vld [vmem:[%s5961_s28 + $0x3c] sm:$0xf]  ;;  %v5379_v38 = vld [vmem:[%s5961_s28 + $0x34] sm:$0xff] }
 0x1cb   : > { %v6545_v14 = vpop.permute.xlu1 %1423  ;;  %v6547_v24 = vpop.permute.xlu0 %1418 }
 0x1cc   : > { %10517 = vst [vmem:[#allocation106_spill] sm:$0xff] %v6545_v14  ;;  %10518 = vst [vmem:[#allocation107_spill] sm:$0xff] %v6547_v24  ;;  %1974 = vperm.xlu1 %5821, %v5376_v40   ;;  %1969 = vperm.xlu0 %5820, %v5375_v34   ;;  %v5382_v40 = vld [vmem:[%s5961_s28 + $0x4c] sm:$0xf]  ;;  %v5381_v34 = vld [vmem:[%s5961_s28 + $0x44] sm:$0xff] }
 0x1cf   : > { %v6551_v30 = vpop.permute.xlu1 %1433  ;;  %v6553_v32 = vpop.permute.xlu0 %1428 }
 0x1d0   : > { %10519 = vst [vmem:[#allocation108_spill] sm:$0xff] %v6551_v30  ;;  %10520 = vst [vmem:[#allocation109_spill] sm:$0xff] %v6553_v32  ;;  %1984 = vperm.xlu1 %5821, %v5378_v42   ;;  %1979 = vperm.xlu0 %5820, %v5377_v36   ;;  %v5384_v42 = vld [vmem:[%s5961_s28 + $0x5c] sm:$0xf]  ;;  %v5383_v36 = vld [vmem:[%s5961_s28 + $0x54] sm:$0xff] }
 0x1d3   : > { %v6557_v28 = vpop.permute.xlu1 %1443  ;;  %v6559_v14 = vpop.permute.xlu0 %1438 }
 0x1d4   : > { %10521 = vst [vmem:[#allocation110_spill] sm:$0xff] %v6557_v28  ;;  %10522 = vst [vmem:[#allocation111_spill] sm:$0xff] %v6559_v14  ;;  %1994 = vperm.xlu1 %5821, %v5380_v44   ;;  %1989 = vperm.xlu0 %5820, %v5379_v38   ;;  %v5386_v44 = vld [vmem:[%s5961_s28 + $0x6c] sm:$0xf]  ;;  %v5385_v38 = vld [vmem:[%s5961_s28 + $0x64] sm:$0xff] }
 0x1d7   : > { %v6563_v24 = vpop.permute.xlu1 %1453  ;;  %v6565_v30 = vpop.permute.xlu0 %1448 }
 0x1d8   : > { %10523 = vst [vmem:[#allocation112_spill] sm:$0xff] %v6563_v24  ;;  %10524 = vst [vmem:[#allocation113_spill] sm:$0xff] %v6565_v30  ;;  %2004 = vperm.xlu1 %5821, %v5382_v40   ;;  %1999 = vperm.xlu0 %5820, %v5381_v34   ;;  %v5388_v40 = vld [vmem:[%s5961_s28 + $0x7c] sm:$0xf]  ;;  %v5387_v34 = vld [vmem:[%s5961_s28 + $0x74] sm:$0xff] }
 0x1db   : > { %v6569_v32 = vpop.permute.xlu1 %1463  ;;  %v6571_v28 = vpop.permute.xlu0 %1458 }
 0x1dc   : > { %10525 = vst [vmem:[#allocation114_spill] sm:$0xff] %v6569_v32  ;;  %10526 = vst [vmem:[#allocation115_spill] sm:$0xff] %v6571_v28  ;;  %2014 = vperm.xlu1 %5821, %v5384_v42   ;;  %2009 = vperm.xlu0 %5820, %v5383_v36   ;;  %v5390_v42 = vld [vmem:[%s5961_s28 + $0x8c] sm:$0xf]  ;;  %v5389_v36 = vld [vmem:[%s5961_s28 + $0x84] sm:$0xff] }
 0x1df   : > { %v6575_v14 = vpop.permute.xlu1 %1473  ;;  %v6577_v24 = vpop.permute.xlu0 %1468 }
 0x1e0   : > { %10527 = vst [vmem:[#allocation116_spill] sm:$0xff] %v6575_v14  ;;  %10528 = vst [vmem:[#allocation117_spill] sm:$0xff] %v6577_v24  ;;  %2024 = vperm.xlu1 %5821, %v5386_v44   ;;  %2019 = vperm.xlu0 %5820, %v5385_v38   ;;  %v5392_v44 = vld [vmem:[%s5961_s28 + $0x9c] sm:$0xf]  ;;  %v5391_v38 = vld [vmem:[%s5961_s28 + $0x94] sm:$0xff] }
 0x1e3   : > { %v6581_v30 = vpop.permute.xlu1 %1483  ;;  %v6583_v32 = vpop.permute.xlu0 %1478 }
 0x1e4   : > { %10529 = vst [vmem:[#allocation118_spill] sm:$0xff] %v6581_v30  ;;  %10530 = vst [vmem:[#allocation119_spill] sm:$0xff] %v6583_v32  ;;  %2034 = vperm.xlu1 %5821, %v5388_v40   ;;  %2029 = vperm.xlu0 %5820, %v5387_v34   ;;  %v5394_v40 = vld [vmem:[%s5961_s28 + $0xac] sm:$0xf]  ;;  %v5393_v34 = vld [vmem:[%s5961_s28 + $0xa4] sm:$0xff] }
 0x1e7   : > { %v6587_v28 = vpop.permute.xlu1 %1493  ;;  %v6589_v14 = vpop.permute.xlu0 %1488 }
 0x1e8   : > { %10531 = vst [vmem:[#allocation120_spill] sm:$0xff] %v6587_v28  ;;  %10532 = vst [vmem:[#allocation121_spill] sm:$0xff] %v6589_v14  ;;  %2044 = vperm.xlu1 %5821, %v5390_v42   ;;  %2039 = vperm.xlu0 %5820, %v5389_v36   ;;  %v5396_v42 = vld [vmem:[%s5961_s28 + $0xbc] sm:$0xf]  ;;  %v5395_v36 = vld [vmem:[%s5961_s28 + $0xb4] sm:$0xff] }
 0x1eb   : > { %v6593_v24 = vpop.permute.xlu1 %1580  ;;  %v6595_v30 = vpop.permute.xlu0 %1575 }
 0x1ec   : > { %10533 = vst [vmem:[#allocation122_spill] sm:$0xff] %v6593_v24  ;;  %10534 = vst [vmem:[#allocation123_spill] sm:$0xff] %v6595_v30  ;;  %2054 = vperm.xlu1 %5821, %v5392_v44   ;;  %2049 = vperm.xlu0 %5820, %v5391_v38   ;;  %v5398_v44 = vld [vmem:[%s5961_s28 + $0xcc] sm:$0xf]  ;;  %v5397_v38 = vld [vmem:[%s5961_s28 + $0xc4] sm:$0xff] }
 0x1ef   : > { %v6599_v32 = vpop.permute.xlu1 %1590  ;;  %v6601_v28 = vpop.permute.xlu0 %1585 }
 0x1f0   : > { %10535 = vst [vmem:[#allocation124_spill] sm:$0xff] %v6599_v32  ;;  %10536 = vst [vmem:[#allocation125_spill] sm:$0xff] %v6601_v28  ;;  %2064 = vperm.xlu1 %5821, %v5394_v40   ;;  %2059 = vperm.xlu0 %5820, %v5393_v34   ;;  %v5401_v40 = vld [vmem:[%s5961_s28 + $0x28] sm:$0xf]  ;;  %v5400_v34 = vld [vmem:[%s5961_s28 + $0x20] sm:$0xff] }
 0x1f3   : > { %v6605_v14 = vpop.permute.xlu1 %1600  ;;  %v6607_v24 = vpop.permute.xlu0 %1595 }
 0x1f4   : > { %10537 = vst [vmem:[#allocation126_spill] sm:$0xff] %v6605_v14  ;;  %10538 = vst [vmem:[#allocation127_spill] sm:$0xff] %v6607_v24  ;;  %2074 = vperm.xlu1 %5821, %v5396_v42   ;;  %2069 = vperm.xlu0 %5820, %v5395_v36   ;;  %v5403_v42 = vld [vmem:[%s5961_s28 + $0x38] sm:$0xf]  ;;  %v5402_v36 = vld [vmem:[%s5961_s28 + $0x30] sm:$0xff] }
 0x1f7   : > { %v6611_v30 = vpop.permute.xlu1 %1610  ;;  %v6613_v32 = vpop.permute.xlu0 %1605 }
 0x1f8   : > { %10539 = vst [vmem:[#allocation128_spill] sm:$0xff] %v6611_v30  ;;  %10540 = vst [vmem:[#allocation129_spill] sm:$0xff] %v6613_v32  ;;  %2084 = vperm.xlu1 %5821, %v5398_v44   ;;  %2079 = vperm.xlu0 %5820, %v5397_v38   ;;  %v5405_v44 = vld [vmem:[%s5961_s28 + $0x48] sm:$0xf]  ;;  %v5404_v38 = vld [vmem:[%s5961_s28 + $0x40] sm:$0xff] }
 0x1fb   : > { %v6617_v28 = vpop.permute.xlu1 %1620  ;;  %v6619_v14 = vpop.permute.xlu0 %1615 }
 0x1fc   : > { %10541 = vst [vmem:[#allocation130_spill] sm:$0xff] %v6617_v28  ;;  %10542 = vst [vmem:[#allocation131_spill] sm:$0xff] %v6619_v14  ;;  %2172 = vperm.xlu1 %5821, %v5401_v40   ;;  %2167 = vperm.xlu0 %5820, %v5400_v34   ;;  %v5407_v40 = vld [vmem:[%s5961_s28 + $0x58] sm:$0xf]  ;;  %v5406_v34 = vld [vmem:[%s5961_s28 + $0x50] sm:$0xff] }
 0x1ff   : > { %v6623_v24 = vpop.permute.xlu1 %1630  ;;  %v6625_v30 = vpop.permute.xlu0 %1625 }
 0x200   : > { %10543 = vst [vmem:[#allocation132_spill] sm:$0xff] %v6623_v24  ;;  %10544 = vst [vmem:[#allocation133_spill] sm:$0xff] %v6625_v30  ;;  %2182 = vperm.xlu1 %5821, %v5403_v42   ;;  %2177 = vperm.xlu0 %5820, %v5402_v36   ;;  %v5409_v42 = vld [vmem:[%s5961_s28 + $0x68] sm:$0xf]  ;;  %v5408_v36 = vld [vmem:[%s5961_s28 + $0x60] sm:$0xff] }
 0x203   : > { %v6629_v32 = vpop.permute.xlu1 %1640  ;;  %v6631_v28 = vpop.permute.xlu0 %1635 }
 0x204   : > { %10545 = vst [vmem:[#allocation134_spill] sm:$0xff] %v6629_v32  ;;  %10546 = vst [vmem:[#allocation135_spill] sm:$0xff] %v6631_v28  ;;  %2192 = vperm.xlu1 %5821, %v5405_v44   ;;  %2187 = vperm.xlu0 %5820, %v5404_v38   ;;  %v5411_v44 = vld [vmem:[%s5961_s28 + $0x78] sm:$0xf]  ;;  %v5410_v38 = vld [vmem:[%s5961_s28 + $0x70] sm:$0xff] }
 0x207   : > { %v6635_v14 = vpop.permute.xlu1 %1650  ;;  %v6637_v24 = vpop.permute.xlu0 %1645 }
 0x208   : > { %10547 = vst [vmem:[#allocation136_spill] sm:$0xff] %v6635_v14  ;;  %10548 = vst [vmem:[#allocation137_spill] sm:$0xff] %v6637_v24  ;;  %2202 = vperm.xlu1 %5821, %v5407_v40   ;;  %2197 = vperm.xlu0 %5820, %v5406_v34   ;;  %v5413_v40 = vld [vmem:[%s5961_s28 + $0x88] sm:$0xf]  ;;  %v5412_v34 = vld [vmem:[%s5961_s28 + $0x80] sm:$0xff] }
 0x20b   : > { %v6641_v30 = vpop.permute.xlu1 %1660  ;;  %v6643_v32 = vpop.permute.xlu0 %1655 }
 0x20c   : > { %10549 = vst [vmem:[#allocation138_spill] sm:$0xff] %v6641_v30  ;;  %10550 = vst [vmem:[#allocation139_spill] sm:$0xff] %v6643_v32  ;;  %2212 = vperm.xlu1 %5821, %v5409_v42   ;;  %2207 = vperm.xlu0 %5820, %v5408_v36   ;;  %v5415_v42 = vld [vmem:[%s5961_s28 + $0x98] sm:$0xf]  ;;  %v5414_v36 = vld [vmem:[%s5961_s28 + $0x90] sm:$0xff] }
 0x20f   : > { %v6647_v28 = vpop.permute.xlu1 %1670  ;;  %v6649_v14 = vpop.permute.xlu0 %1665 }
 0x210   : > { %10551 = vst [vmem:[#allocation140_spill] sm:$0xff] %v6647_v28  ;;  %10552 = vst [vmem:[#allocation141_spill] sm:$0xff] %v6649_v14  ;;  %2222 = vperm.xlu1 %5821, %v5411_v44   ;;  %2217 = vperm.xlu0 %5820, %v5410_v38   ;;  %v5417_v44 = vld [vmem:[%s5961_s28 + $0xa8] sm:$0xf]  ;;  %v5416_v38 = vld [vmem:[%s5961_s28 + $0xa0] sm:$0xff] }
 0x213   : > { %v6653_v24 = vpop.permute.xlu1 %1680  ;;  %v6655_v30 = vpop.permute.xlu0 %1675 }
 0x214   : > { %10553 = vst [vmem:[#allocation142_spill] sm:$0xff] %v6653_v24  ;;  %10554 = vst [vmem:[#allocation143_spill] sm:$0xff] %v6655_v30  ;;  %2232 = vperm.xlu1 %5821, %v5413_v40   ;;  %2227 = vperm.xlu0 %5820, %v5412_v34   ;;  %v5419_v40 = vld [vmem:[%s5961_s28 + $0xb8] sm:$0xf]  ;;  %v5418_v34 = vld [vmem:[%s5961_s28 + $0xb0] sm:$0xff] }
 0x217   : > { %v6659_v32 = vpop.permute.xlu1 %1690  ;;  %v6661_v28 = vpop.permute.xlu0 %1685 }
 0x218   : > { %10555 = vst [vmem:[#allocation144_spill] sm:$0xff] %v6659_v32  ;;  %10556 = vst [vmem:[#allocation145_spill] sm:$0xff] %v6661_v28  ;;  %2242 = vperm.xlu1 %5821, %v5415_v42   ;;  %2237 = vperm.xlu0 %5820, %v5414_v36   ;;  %v5421_v42 = vld [vmem:[%s5961_s28 + $0xc8] sm:$0xf]  ;;  %v5420_v36 = vld [vmem:[%s5961_s28 + $0xc0] sm:$0xff] }
 0x21b   : > { %v6665_v14 = vpop.permute.xlu1 %1777  ;;  %v6667_v24 = vpop.permute.xlu0 %1772 }
 0x21c   : > { %10557 = vst [vmem:[#allocation146_spill] sm:$0xff] %v6665_v14  ;;  %10558 = vst [vmem:[#allocation147_spill] sm:$0xff] %v6667_v24  ;;  %2252 = vperm.xlu1 %5821, %v5417_v44   ;;  %2247 = vperm.xlu0 %5820, %v5416_v38   ;;  %v5423_v44 = vld [vmem:[%s5961_s28 + $0xd8] sm:$0xf]  ;;  %v5422_v38 = vld [vmem:[%s5961_s28 + $0xd0] sm:$0xff] }
 0x21f   : > { %v6671_v30 = vpop.permute.xlu1 %1787  ;;  %v6673_v32 = vpop.permute.xlu0 %1782 }
 0x220   : > { %10559 = vst [vmem:[#allocation148_spill] sm:$0xff] %v6671_v30  ;;  %10560 = vst [vmem:[#allocation149_spill] sm:$0xff] %v6673_v32  ;;  %2262 = vperm.xlu1 %5821, %v5419_v40   ;;  %2257 = vperm.xlu0 %5820, %v5418_v34   ;;  %v5426_v40 = vld [vmem:[%s5961_s28 + $0x29] sm:$0xf]  ;;  %v5425_v34 = vld [vmem:[%s5961_s28 + $0x21] sm:$0xff] }
 0x223   : > { %v6677_v28 = vpop.permute.xlu1 %1797  ;;  %v6679_v14 = vpop.permute.xlu0 %1792 }
 0x224   : > { %10561 = vst [vmem:[#allocation150_spill] sm:$0xff] %v6677_v28  ;;  %10562 = vst [vmem:[#allocation151_spill] sm:$0xff] %v6679_v14  ;;  %2272 = vperm.xlu1 %5821, %v5421_v42   ;;  %2267 = vperm.xlu0 %5820, %v5420_v36   ;;  %v5428_v42 = vld [vmem:[%s5961_s28 + $0x39] sm:$0xf]  ;;  %v5427_v36 = vld [vmem:[%s5961_s28 + $0x31] sm:$0xff] }
 0x227   : > { %v6683_v24 = vpop.permute.xlu1 %1807  ;;  %v6685_v30 = vpop.permute.xlu0 %1802 }
 0x228   : > { %10563 = vst [vmem:[#allocation152_spill] sm:$0xff] %v6683_v24  ;;  %10564 = vst [vmem:[#allocation153_spill] sm:$0xff] %v6685_v30  ;;  %2282 = vperm.xlu1 %5821, %v5423_v44   ;;  %2277 = vperm.xlu0 %5820, %v5422_v38   ;;  %v5430_v44 = vld [vmem:[%s5961_s28 + $0x49] sm:$0xf]  ;;  %v5429_v38 = vld [vmem:[%s5961_s28 + $0x41] sm:$0xff] }
 0x22b   : > { %v6689_v32 = vpop.permute.xlu1 %1817  ;;  %v6691_v28 = vpop.permute.xlu0 %1812 }
 0x22c   : > { %10565 = vst [vmem:[#allocation154_spill] sm:$0xff] %v6689_v32  ;;  %10566 = vst [vmem:[#allocation155_spill] sm:$0xff] %v6691_v28  ;;  %2369 = vperm.xlu1 %5821, %v5426_v40   ;;  %2364 = vperm.xlu0 %5820, %v5425_v34   ;;  %v5432_v40 = vld [vmem:[%s5961_s28 + $0x59] sm:$0xf]  ;;  %v5431_v34 = vld [vmem:[%s5961_s28 + $0x51] sm:$0xff] }
 0x22f   : > { %v6695_v14 = vpop.permute.xlu1 %1827  ;;  %v6697_v24 = vpop.permute.xlu0 %1822 }
 0x230   : > { %10567 = vst [vmem:[#allocation156_spill] sm:$0xff] %v6695_v14  ;;  %10568 = vst [vmem:[#allocation157_spill] sm:$0xff] %v6697_v24  ;;  %2379 = vperm.xlu1 %5821, %v5428_v42   ;;  %2374 = vperm.xlu0 %5820, %v5427_v36   ;;  %v5434_v42 = vld [vmem:[%s5961_s28 + $0x69] sm:$0xf]  ;;  %v5433_v36 = vld [vmem:[%s5961_s28 + $0x61] sm:$0xff] }
 0x233   : > { %v6701_v30 = vpop.permute.xlu1 %1837  ;;  %v6703_v32 = vpop.permute.xlu0 %1832 }
 0x234   : > { %10569 = vst [vmem:[#allocation158_spill] sm:$0xff] %v6701_v30  ;;  %10570 = vst [vmem:[#allocation159_spill] sm:$0xff] %v6703_v32  ;;  %2389 = vperm.xlu1 %5821, %v5430_v44   ;;  %2384 = vperm.xlu0 %5820, %v5429_v38   ;;  %v5436_v44 = vld [vmem:[%s5961_s28 + $0x79] sm:$0xf]  ;;  %v5435_v38 = vld [vmem:[%s5961_s28 + $0x71] sm:$0xff] }
 0x237   : > { %v6707_v28 = vpop.permute.xlu1 %1847  ;;  %v6709_v14 = vpop.permute.xlu0 %1842 }
 0x238   : > { %10571 = vst [vmem:[#allocation160_spill] sm:$0xff] %v6707_v28  ;;  %10572 = vst [vmem:[#allocation161_spill] sm:$0xff] %v6709_v14  ;;  %2399 = vperm.xlu1 %5821, %v5432_v40   ;;  %2394 = vperm.xlu0 %5820, %v5431_v34   ;;  %v5438_v40 = vld [vmem:[%s5961_s28 + $0x89] sm:$0xf]  ;;  %v5437_v34 = vld [vmem:[%s5961_s28 + $0x81] sm:$0xff] }
 0x23b   : > { %v6713_v24 = vpop.permute.xlu1 %1857  ;;  %v6715_v30 = vpop.permute.xlu0 %1852 }
 0x23c   : > { %10573 = vst [vmem:[#allocation162_spill] sm:$0xff] %v6713_v24  ;;  %10574 = vst [vmem:[#allocation163_spill] sm:$0xff] %v6715_v30  ;;  %2409 = vperm.xlu1 %5821, %v5434_v42   ;;  %2404 = vperm.xlu0 %5820, %v5433_v36   ;;  %v5440_v42 = vld [vmem:[%s5961_s28 + $0x99] sm:$0xf]  ;;  %v5439_v36 = vld [vmem:[%s5961_s28 + $0x91] sm:$0xff] }
 0x23f   : > { %v6719_v32 = vpop.permute.xlu1 %1867  ;;  %v6721_v28 = vpop.permute.xlu0 %1862 }
 0x240   : > { %10575 = vst [vmem:[#allocation164_spill] sm:$0xff] %v6719_v32  ;;  %10576 = vst [vmem:[#allocation165_spill] sm:$0xff] %v6721_v28  ;;  %2419 = vperm.xlu1 %5821, %v5436_v44   ;;  %2414 = vperm.xlu0 %5820, %v5435_v38   ;;  %v5442_v44 = vld [vmem:[%s5961_s28 + $0xa9] sm:$0xf]  ;;  %v5441_v38 = vld [vmem:[%s5961_s28 + $0xa1] sm:$0xff] }
 0x243   : > { %v6725_v14 = vpop.permute.xlu1 %1877  ;;  %v6727_v24 = vpop.permute.xlu0 %1872 }
 0x244   : > { %10577 = vst [vmem:[#allocation166_spill] sm:$0xff] %v6725_v14  ;;  %10578 = vst [vmem:[#allocation167_spill] sm:$0xff] %v6727_v24  ;;  %2429 = vperm.xlu1 %5821, %v5438_v40   ;;  %2424 = vperm.xlu0 %5820, %v5437_v34   ;;  %v5444_v40 = vld [vmem:[%s5961_s28 + $0xb9] sm:$0xf]  ;;  %v5443_v34 = vld [vmem:[%s5961_s28 + $0xb1] sm:$0xff] }
 0x247   : > { %v6731_v30 = vpop.permute.xlu1 %1887  ;;  %v6733_v32 = vpop.permute.xlu0 %1882 }
 0x248   : > { %10579 = vst [vmem:[#allocation168_spill] sm:$0xff] %v6731_v30  ;;  %10580 = vst [vmem:[#allocation169_spill] sm:$0xff] %v6733_v32  ;;  %2439 = vperm.xlu1 %5821, %v5440_v42   ;;  %2434 = vperm.xlu0 %5820, %v5439_v36   ;;  %v5446_v42 = vld [vmem:[%s5961_s28 + $0xc9] sm:$0xf]  ;;  %v5445_v36 = vld [vmem:[%s5961_s28 + $0xc1] sm:$0xff] }
 0x24b   : > { %v6737_v28 = vpop.permute.xlu1 %1974  ;;  %v6739_v14 = vpop.permute.xlu0 %1969 }
 0x24c   : > { %10581 = vst [vmem:[#allocation170_spill] sm:$0xff] %v6737_v28  ;;  %10582 = vst [vmem:[#allocation171_spill] sm:$0xff] %v6739_v14  ;;  %2449 = vperm.xlu1 %5821, %v5442_v44   ;;  %2444 = vperm.xlu0 %5820, %v5441_v38   ;;  %v5448_v44 = vld [vmem:[%s5961_s28 + $0xd9] sm:$0xf]  ;;  %v5447_v38 = vld [vmem:[%s5961_s28 + $0xd1] sm:$0xff] }
 0x24f   : > { %v6743_v24 = vpop.permute.xlu1 %1984  ;;  %v6745_v30 = vpop.permute.xlu0 %1979 }
 0x250   : > { %10583 = vst [vmem:[#allocation172_spill] sm:$0xff] %v6743_v24  ;;  %10584 = vst [vmem:[#allocation173_spill] sm:$0xff] %v6745_v30  ;;  %2459 = vperm.xlu1 %5821, %v5444_v40   ;;  %2454 = vperm.xlu0 %5820, %v5443_v34   ;;  %v5451_v40 = vld [vmem:[%s5961_s28 + $0x2a] sm:$0xf]  ;;  %v5450_v34 = vld [vmem:[%s5961_s28 + $0x22] sm:$0xff] }
 0x253   : > { %v6749_v32 = vpop.permute.xlu1 %1994  ;;  %v6751_v28 = vpop.permute.xlu0 %1989 }
 0x254   : > { %10585 = vst [vmem:[#allocation174_spill] sm:$0xff] %v6749_v32  ;;  %10586 = vst [vmem:[#allocation175_spill] sm:$0xff] %v6751_v28  ;;  %2469 = vperm.xlu1 %5821, %v5446_v42   ;;  %2464 = vperm.xlu0 %5820, %v5445_v36   ;;  %v5453_v42 = vld [vmem:[%s5961_s28 + $0x3a] sm:$0xf]  ;;  %v5452_v36 = vld [vmem:[%s5961_s28 + $0x32] sm:$0xff] }
 0x257   : > { %v6755_v14 = vpop.permute.xlu1 %2004  ;;  %v6757_v24 = vpop.permute.xlu0 %1999 }
 0x258   : > { %10587 = vst [vmem:[#allocation176_spill] sm:$0xff] %v6755_v14  ;;  %10588 = vst [vmem:[#allocation177_spill] sm:$0xff] %v6757_v24  ;;  %2479 = vperm.xlu1 %5821, %v5448_v44   ;;  %2474 = vperm.xlu0 %5820, %v5447_v38   ;;  %v5455_v44 = vld [vmem:[%s5961_s28 + $0x4a] sm:$0xf]  ;;  %v5454_v38 = vld [vmem:[%s5961_s28 + $0x42] sm:$0xff] }
 0x25b   : > { %v6761_v30 = vpop.permute.xlu1 %2014  ;;  %v6763_v32 = vpop.permute.xlu0 %2009 }
 0x25c   : > { %10589 = vst [vmem:[#allocation178_spill] sm:$0xff] %v6761_v30  ;;  %10590 = vst [vmem:[#allocation179_spill] sm:$0xff] %v6763_v32  ;;  %2566 = vperm.xlu1 %5821, %v5451_v40   ;;  %2561 = vperm.xlu0 %5820, %v5450_v34   ;;  %v5457_v40 = vld [vmem:[%s5961_s28 + $0x5a] sm:$0xf]  ;;  %v5456_v34 = vld [vmem:[%s5961_s28 + $0x52] sm:$0xff] }
 0x25f   : > { %v6767_v28 = vpop.permute.xlu1 %2024  ;;  %v6769_v14 = vpop.permute.xlu0 %2019 }
 0x260   : > { %10591 = vst [vmem:[#allocation180_spill] sm:$0xff] %v6767_v28  ;;  %10592 = vst [vmem:[#allocation181_spill] sm:$0xff] %v6769_v14  ;;  %2576 = vperm.xlu1 %5821, %v5453_v42   ;;  %2571 = vperm.xlu0 %5820, %v5452_v36   ;;  %v5459_v42 = vld [vmem:[%s5961_s28 + $0x6a] sm:$0xf]  ;;  %v5458_v36 = vld [vmem:[%s5961_s28 + $0x62] sm:$0xff] }
 0x263   : > { %v6773_v24 = vpop.permute.xlu1 %2034  ;;  %v6775_v30 = vpop.permute.xlu0 %2029 }
 0x264   : > { %10593 = vst [vmem:[#allocation182_spill] sm:$0xff] %v6773_v24  ;;  %10594 = vst [vmem:[#allocation183_spill] sm:$0xff] %v6775_v30  ;;  %2586 = vperm.xlu1 %5821, %v5455_v44   ;;  %2581 = vperm.xlu0 %5820, %v5454_v38   ;;  %v5461_v44 = vld [vmem:[%s5961_s28 + $0x7a] sm:$0xf]  ;;  %v5460_v38 = vld [vmem:[%s5961_s28 + $0x72] sm:$0xff] }
 0x267   : > { %v6779_v32 = vpop.permute.xlu1 %2044  ;;  %v6781_v28 = vpop.permute.xlu0 %2039 }
 0x268   : > { %10595 = vst [vmem:[#allocation184_spill] sm:$0xff] %v6779_v32  ;;  %10596 = vst [vmem:[#allocation185_spill] sm:$0xff] %v6781_v28  ;;  %2596 = vperm.xlu1 %5821, %v5457_v40   ;;  %2591 = vperm.xlu0 %5820, %v5456_v34   ;;  %v5463_v40 = vld [vmem:[%s5961_s28 + $0x8a] sm:$0xf]  ;;  %v5462_v34 = vld [vmem:[%s5961_s28 + $0x82] sm:$0xff] }
 0x26b   : > { %v6785_v14 = vpop.permute.xlu1 %2054  ;;  %v6787_v24 = vpop.permute.xlu0 %2049 }
 0x26c   : > { %10597 = vst [vmem:[#allocation186_spill] sm:$0xff] %v6785_v14  ;;  %10598 = vst [vmem:[#allocation187_spill] sm:$0xff] %v6787_v24  ;;  %2606 = vperm.xlu1 %5821, %v5459_v42   ;;  %2601 = vperm.xlu0 %5820, %v5458_v36   ;;  %v5465_v42 = vld [vmem:[%s5961_s28 + $0x9a] sm:$0xf]  ;;  %v5464_v36 = vld [vmem:[%s5961_s28 + $0x92] sm:$0xff] }
 0x26f   : > { %v6791_v30 = vpop.permute.xlu1 %2064  ;;  %v6793_v32 = vpop.permute.xlu0 %2059 }
 0x270   : > { %10599 = vst [vmem:[#allocation188_spill] sm:$0xff] %v6791_v30  ;;  %10600 = vst [vmem:[#allocation189_spill] sm:$0xff] %v6793_v32  ;;  %2616 = vperm.xlu1 %5821, %v5461_v44   ;;  %2611 = vperm.xlu0 %5820, %v5460_v38   ;;  %v5467_v44 = vld [vmem:[%s5961_s28 + $0xaa] sm:$0xf]  ;;  %v5466_v38 = vld [vmem:[%s5961_s28 + $0xa2] sm:$0xff] }
 0x273   : > { %v6797_v28 = vpop.permute.xlu1 %2074  ;;  %v6799_v14 = vpop.permute.xlu0 %2069 }
 0x274   : > { %10601 = vst [vmem:[#allocation190_spill] sm:$0xff] %v6797_v28  ;;  %10602 = vst [vmem:[#allocation191_spill] sm:$0xff] %v6799_v14  ;;  %2626 = vperm.xlu1 %5821, %v5463_v40   ;;  %2621 = vperm.xlu0 %5820, %v5462_v34   ;;  %v5469_v40 = vld [vmem:[%s5961_s28 + $0xba] sm:$0xf]  ;;  %v5468_v34 = vld [vmem:[%s5961_s28 + $0xb2] sm:$0xff] }
 0x277   : > { %v6803_v24 = vpop.permute.xlu1 %2084  ;;  %v6805_v30 = vpop.permute.xlu0 %2079 }
 0x278   : > { %10603 = vst [vmem:[#allocation192_spill] sm:$0xff] %v6803_v24  ;;  %10604 = vst [vmem:[#allocation193_spill] sm:$0xff] %v6805_v30  ;;  %2636 = vperm.xlu1 %5821, %v5465_v42   ;;  %2631 = vperm.xlu0 %5820, %v5464_v36   ;;  %v5471_v42 = vld [vmem:[%s5961_s28 + $0xca] sm:$0xf]  ;;  %v5470_v36 = vld [vmem:[%s5961_s28 + $0xc2] sm:$0xff] }
 0x27b   : > { %v6809_v32 = vpop.permute.xlu1 %2172  ;;  %v6811_v28 = vpop.permute.xlu0 %2167 }
 0x27c   : > { %10605 = vst [vmem:[#allocation194_spill] sm:$0xff] %v6809_v32  ;;  %10606 = vst [vmem:[#allocation195_spill] sm:$0xff] %v6811_v28  ;;  %2646 = vperm.xlu1 %5821, %v5467_v44   ;;  %2641 = vperm.xlu0 %5820, %v5466_v38   ;;  %v5473_v44 = vld [vmem:[%s5961_s28 + $0xda] sm:$0xf]  ;;  %v5472_v38 = vld [vmem:[%s5961_s28 + $0xd2] sm:$0xff] }
 0x27f   : > { %v6815_v14 = vpop.permute.xlu1 %2182  ;;  %v6817_v24 = vpop.permute.xlu0 %2177 }
 0x280   : > { %10607 = vst [vmem:[#allocation196_spill] sm:$0xff] %v6815_v14  ;;  %10608 = vst [vmem:[#allocation197_spill] sm:$0xff] %v6817_v24  ;;  %2656 = vperm.xlu1 %5821, %v5469_v40   ;;  %2651 = vperm.xlu0 %5820, %v5468_v34   ;;  %v5476_v40 = vld [vmem:[%s5961_s28 + $0x2b] sm:$0xf]  ;;  %v5475_v34 = vld [vmem:[%s5961_s28 + $0x23] sm:$0xff] }
 0x283   : > { %v6821_v30 = vpop.permute.xlu1 %2192  ;;  %v6823_v32 = vpop.permute.xlu0 %2187 }
 0x284   : > { %10609 = vst [vmem:[#allocation198_spill] sm:$0xff] %v6821_v30  ;;  %10610 = vst [vmem:[#allocation199_spill] sm:$0xff] %v6823_v32  ;;  %2666 = vperm.xlu1 %5821, %v5471_v42   ;;  %2661 = vperm.xlu0 %5820, %v5470_v36   ;;  %v5478_v42 = vld [vmem:[%s5961_s28 + $0x3b] sm:$0xf]  ;;  %v5477_v36 = vld [vmem:[%s5961_s28 + $0x33] sm:$0xff] }
 0x287   : > { %v6827_v28 = vpop.permute.xlu1 %2202  ;;  %v6829_v14 = vpop.permute.xlu0 %2197 }
 0x288   : > { %10611 = vst [vmem:[#allocation200_spill] sm:$0xff] %v6827_v28  ;;  %10612 = vst [vmem:[#allocation201_spill] sm:$0xff] %v6829_v14  ;;  %2676 = vperm.xlu1 %5821, %v5473_v44   ;;  %2671 = vperm.xlu0 %5820, %v5472_v38   ;;  %v5480_v44 = vld [vmem:[%s5961_s28 + $0x4b] sm:$0xf]  ;;  %v5479_v38 = vld [vmem:[%s5961_s28 + $0x43] sm:$0xff] }
 0x28b   : > { %v6833_v24 = vpop.permute.xlu1 %2212  ;;  %v6835_v30 = vpop.permute.xlu0 %2207 }
 0x28c   : > { %10613 = vst [vmem:[#allocation202_spill] sm:$0xff] %v6833_v24  ;;  %10614 = vst [vmem:[#allocation203_spill] sm:$0xff] %v6835_v30  ;;  %2763 = vperm.xlu1 %5821, %v5476_v40   ;;  %2758 = vperm.xlu0 %5820, %v5475_v34   ;;  %v5482_v40 = vld [vmem:[%s5961_s28 + $0x5b] sm:$0xf]  ;;  %v5481_v34 = vld [vmem:[%s5961_s28 + $0x53] sm:$0xff] }
 0x28f   : > { %v6839_v32 = vpop.permute.xlu1 %2222  ;;  %v6841_v28 = vpop.permute.xlu0 %2217 }
 0x290   : > { %10615 = vst [vmem:[#allocation204_spill] sm:$0xff] %v6839_v32  ;;  %10616 = vst [vmem:[#allocation205_spill] sm:$0xff] %v6841_v28  ;;  %2773 = vperm.xlu1 %5821, %v5478_v42   ;;  %2768 = vperm.xlu0 %5820, %v5477_v36   ;;  %v5484_v42 = vld [vmem:[%s5961_s28 + $0x6b] sm:$0xf]  ;;  %v5483_v36 = vld [vmem:[%s5961_s28 + $0x63] sm:$0xff] }
 0x293   : > { %v6845_v14 = vpop.permute.xlu1 %2232  ;;  %v6847_v24 = vpop.permute.xlu0 %2227 }
 0x294   : > { %10617 = vst [vmem:[#allocation206_spill] sm:$0xff] %v6845_v14  ;;  %10618 = vst [vmem:[#allocation207_spill] sm:$0xff] %v6847_v24  ;;  %2783 = vperm.xlu1 %5821, %v5480_v44   ;;  %2778 = vperm.xlu0 %5820, %v5479_v38   ;;  %v5486_v44 = vld [vmem:[%s5961_s28 + $0x7b] sm:$0xf]  ;;  %v5485_v38 = vld [vmem:[%s5961_s28 + $0x73] sm:$0xff] }
 0x297   : > { %v6851_v30 = vpop.permute.xlu1 %2242  ;;  %v6853_v32 = vpop.permute.xlu0 %2237 }
 0x298   : > { %10619 = vst [vmem:[#allocation208_spill] sm:$0xff] %v6851_v30  ;;  %10620 = vst [vmem:[#allocation209_spill] sm:$0xff] %v6853_v32  ;;  %2793 = vperm.xlu1 %5821, %v5482_v40   ;;  %2788 = vperm.xlu0 %5820, %v5481_v34   ;;  %v5488_v40 = vld [vmem:[%s5961_s28 + $0x8b] sm:$0xf]  ;;  %v5487_v34 = vld [vmem:[%s5961_s28 + $0x83] sm:$0xff] }
 0x29b   : > { %v6857_v28 = vpop.permute.xlu1 %2252  ;;  %v6859_v14 = vpop.permute.xlu0 %2247 }
 0x29c   : > { %10621 = vst [vmem:[#allocation210_spill] sm:$0xff] %v6857_v28  ;;  %10622 = vst [vmem:[#allocation211_spill] sm:$0xff] %v6859_v14  ;;  %2803 = vperm.xlu1 %5821, %v5484_v42   ;;  %2798 = vperm.xlu0 %5820, %v5483_v36   ;;  %v5490_v42 = vld [vmem:[%s5961_s28 + $0x9b] sm:$0xf]  ;;  %v5489_v36 = vld [vmem:[%s5961_s28 + $0x93] sm:$0xff] }
 0x29f   : > { %v6863_v24 = vpop.permute.xlu1 %2262  ;;  %v6865_v30 = vpop.permute.xlu0 %2257 }
 0x2a0   : > { %10623 = vst [vmem:[#allocation212_spill] sm:$0xff] %v6863_v24  ;;  %10624 = vst [vmem:[#allocation213_spill] sm:$0xff] %v6865_v30  ;;  %2813 = vperm.xlu1 %5821, %v5486_v44   ;;  %2808 = vperm.xlu0 %5820, %v5485_v38   ;;  %v5492_v44 = vld [vmem:[%s5961_s28 + $0xab] sm:$0xf]  ;;  %v5491_v38 = vld [vmem:[%s5961_s28 + $0xa3] sm:$0xff] }
 0x2a3   : > { %v6869_v32 = vpop.permute.xlu1 %2272  ;;  %v6871_v28 = vpop.permute.xlu0 %2267 }
 0x2a4   : > { %10625 = vst [vmem:[#allocation214_spill] sm:$0xff] %v6869_v32  ;;  %10626 = vst [vmem:[#allocation215_spill] sm:$0xff] %v6871_v28  ;;  %2823 = vperm.xlu1 %5821, %v5488_v40   ;;  %2818 = vperm.xlu0 %5820, %v5487_v34   ;;  %v5494_v40 = vld [vmem:[%s5961_s28 + $0xbb] sm:$0xf]  ;;  %v5493_v34 = vld [vmem:[%s5961_s28 + $0xb3] sm:$0xff] }
 0x2a7   : > { %v6875_v14 = vpop.permute.xlu1 %2282  ;;  %v6877_v24 = vpop.permute.xlu0 %2277 }
 0x2a8   : > { %10627 = vst [vmem:[#allocation216_spill] sm:$0xff] %v6875_v14  ;;  %10628 = vst [vmem:[#allocation217_spill] sm:$0xff] %v6877_v24  ;;  %2833 = vperm.xlu1 %5821, %v5490_v42   ;;  %2828 = vperm.xlu0 %5820, %v5489_v36   ;;  %v5496_v42 = vld [vmem:[%s5961_s28 + $0xcb] sm:$0xf]  ;;  %v5495_v36 = vld [vmem:[%s5961_s28 + $0xc3] sm:$0xff] }
 0x2ab   : > { %v6881_v30 = vpop.permute.xlu1 %2369  ;;  %v6883_v32 = vpop.permute.xlu0 %2364 }
 0x2ac   : > { %10629 = vst [vmem:[#allocation218_spill] sm:$0xff] %v6881_v30  ;;  %10630 = vst [vmem:[#allocation219_spill] sm:$0xff] %v6883_v32  ;;  %2843 = vperm.xlu1 %5821, %v5492_v44   ;;  %2838 = vperm.xlu0 %5820, %v5491_v38   ;;  %v5498_v44 = vld [vmem:[%s5961_s28 + $0xdb] sm:$0xf]  ;;  %v5497_v38 = vld [vmem:[%s5961_s28 + $0xd3] sm:$0xff] }
 0x2af   : > { %v6887_v28 = vpop.permute.xlu1 %2379  ;;  %v6889_v14 = vpop.permute.xlu0 %2374 }
 0x2b0   : > { %10631 = vst [vmem:[#allocation220_spill] sm:$0xff] %v6887_v28  ;;  %10632 = vst [vmem:[#allocation221_spill] sm:$0xff] %v6889_v14  ;;  %2853 = vperm.xlu1 %5821, %v5494_v40   ;;  %2848 = vperm.xlu0 %5820, %v5493_v34   ;;  %v5501_v40 = vld [vmem:[%s5961_s28 + $0x2c] sm:$0xf]  ;;  %v5500_v34 = vld [vmem:[%s5961_s28 + $0x24] sm:$0xff] }
 0x2b3   : > { %v6893_v24 = vpop.permute.xlu1 %2389  ;;  %v6895_v30 = vpop.permute.xlu0 %2384 }
 0x2b4   : > { %10633 = vst [vmem:[#allocation222_spill] sm:$0xff] %v6893_v24  ;;  %10634 = vst [vmem:[#allocation223_spill] sm:$0xff] %v6895_v30  ;;  %2863 = vperm.xlu1 %5821, %v5496_v42   ;;  %2858 = vperm.xlu0 %5820, %v5495_v36   ;;  %v5503_v42 = vld [vmem:[%s5961_s28 + $0x3c] sm:$0xf]  ;;  %v5502_v36 = vld [vmem:[%s5961_s28 + $0x34] sm:$0xff] }
 0x2b7   : > { %v6899_v32 = vpop.permute.xlu1 %2399  ;;  %v6901_v28 = vpop.permute.xlu0 %2394 }
 0x2b8   : > { %10635 = vst [vmem:[#allocation224_spill] sm:$0xff] %v6899_v32  ;;  %10636 = vst [vmem:[#allocation225_spill] sm:$0xff] %v6901_v28  ;;  %2873 = vperm.xlu1 %5821, %v5498_v44   ;;  %2868 = vperm.xlu0 %5820, %v5497_v38   ;;  %v5505_v44 = vld [vmem:[%s5961_s28 + $0x4c] sm:$0xf]  ;;  %v5504_v38 = vld [vmem:[%s5961_s28 + $0x44] sm:$0xff] }
 0x2bb   : > { %v6905_v14 = vpop.permute.xlu1 %2409  ;;  %v6907_v24 = vpop.permute.xlu0 %2404 }
 0x2bc   : > { %10637 = vst [vmem:[#allocation226_spill] sm:$0xff] %v6905_v14  ;;  %10638 = vst [vmem:[#allocation227_spill] sm:$0xff] %v6907_v24  ;;  %2960 = vperm.xlu1 %5821, %v5501_v40   ;;  %2955 = vperm.xlu0 %5820, %v5500_v34   ;;  %v5507_v40 = vld [vmem:[%s5961_s28 + $0x5c] sm:$0xf]  ;;  %v5506_v34 = vld [vmem:[%s5961_s28 + $0x54] sm:$0xff] }
 0x2bf   : > { %v6911_v30 = vpop.permute.xlu1 %2419  ;;  %v6913_v32 = vpop.permute.xlu0 %2414 }
 0x2c0   : > { %10639 = vst [vmem:[#allocation228_spill] sm:$0xff] %v6911_v30  ;;  %10640 = vst [vmem:[#allocation229_spill] sm:$0xff] %v6913_v32  ;;  %2970 = vperm.xlu1 %5821, %v5503_v42   ;;  %2965 = vperm.xlu0 %5820, %v5502_v36   ;;  %v5509_v42 = vld [vmem:[%s5961_s28 + $0x6c] sm:$0xf]  ;;  %v5508_v36 = vld [vmem:[%s5961_s28 + $0x64] sm:$0xff] }
 0x2c3   : > { %v6917_v28 = vpop.permute.xlu1 %2429  ;;  %v6919_v14 = vpop.permute.xlu0 %2424 }
 0x2c4   : > { %10641 = vst [vmem:[#allocation230_spill] sm:$0xff] %v6917_v28  ;;  %10642 = vst [vmem:[#allocation231_spill] sm:$0xff] %v6919_v14  ;;  %2980 = vperm.xlu1 %5821, %v5505_v44   ;;  %2975 = vperm.xlu0 %5820, %v5504_v38   ;;  %v5511_v44 = vld [vmem:[%s5961_s28 + $0x7c] sm:$0xf]  ;;  %v5510_v38 = vld [vmem:[%s5961_s28 + $0x74] sm:$0xff] }
 0x2c7   : > { %v6923_v24 = vpop.permute.xlu1 %2439  ;;  %v6925_v30 = vpop.permute.xlu0 %2434 }
 0x2c8   : > { %10643 = vst [vmem:[#allocation232_spill] sm:$0xff] %v6923_v24  ;;  %10644 = vst [vmem:[#allocation233_spill] sm:$0xff] %v6925_v30  ;;  %2990 = vperm.xlu1 %5821, %v5507_v40   ;;  %2985 = vperm.xlu0 %5820, %v5506_v34   ;;  %v5513_v40 = vld [vmem:[%s5961_s28 + $0x8c] sm:$0xf]  ;;  %v5512_v34 = vld [vmem:[%s5961_s28 + $0x84] sm:$0xff] }
 0x2cb   : > { %v6929_v32 = vpop.permute.xlu1 %2449  ;;  %v6931_v28 = vpop.permute.xlu0 %2444 }
 0x2cc   : > { %10645 = vst [vmem:[#allocation234_spill] sm:$0xff] %v6929_v32  ;;  %10646 = vst [vmem:[#allocation235_spill] sm:$0xff] %v6931_v28  ;;  %3000 = vperm.xlu1 %5821, %v5509_v42   ;;  %2995 = vperm.xlu0 %5820, %v5508_v36   ;;  %v5515_v42 = vld [vmem:[%s5961_s28 + $0x9c] sm:$0xf]  ;;  %v5514_v36 = vld [vmem:[%s5961_s28 + $0x94] sm:$0xff] }
 0x2cf   : > { %v6935_v14 = vpop.permute.xlu1 %2459  ;;  %v6937_v24 = vpop.permute.xlu0 %2454 }
 0x2d0   : > { %10647 = vst [vmem:[#allocation236_spill] sm:$0xff] %v6935_v14  ;;  %10648 = vst [vmem:[#allocation237_spill] sm:$0xff] %v6937_v24  ;;  %3010 = vperm.xlu1 %5821, %v5511_v44   ;;  %3005 = vperm.xlu0 %5820, %v5510_v38   ;;  %v5517_v44 = vld [vmem:[%s5961_s28 + $0xac] sm:$0xf]  ;;  %v5516_v38 = vld [vmem:[%s5961_s28 + $0xa4] sm:$0xff] }
 0x2d3   : > { %v6941_v30 = vpop.permute.xlu1 %2469  ;;  %v6943_v32 = vpop.permute.xlu0 %2464 }
 0x2d4   : > { %10649 = vst [vmem:[#allocation238_spill] sm:$0xff] %v6941_v30  ;;  %10650 = vst [vmem:[#allocation239_spill] sm:$0xff] %v6943_v32  ;;  %3020 = vperm.xlu1 %5821, %v5513_v40   ;;  %3015 = vperm.xlu0 %5820, %v5512_v34   ;;  %v5519_v40 = vld [vmem:[%s5961_s28 + $0xbc] sm:$0xf]  ;;  %v5518_v34 = vld [vmem:[%s5961_s28 + $0xb4] sm:$0xff] }
 0x2d7   : > { %v6947_v28 = vpop.permute.xlu1 %2479  ;;  %v6949_v14 = vpop.permute.xlu0 %2474 }
 0x2d8   : > { %10651 = vst [vmem:[#allocation240_spill] sm:$0xff] %v6947_v28  ;;  %10652 = vst [vmem:[#allocation241_spill] sm:$0xff] %v6949_v14  ;;  %3030 = vperm.xlu1 %5821, %v5515_v42   ;;  %3025 = vperm.xlu0 %5820, %v5514_v36   ;;  %v5521_v42 = vld [vmem:[%s5961_s28 + $0xcc] sm:$0xf]  ;;  %v5520_v36 = vld [vmem:[%s5961_s28 + $0xc4] sm:$0xff] }
 0x2db   : > { %v6953_v24 = vpop.permute.xlu1 %2566  ;;  %v6955_v30 = vpop.permute.xlu0 %2561 }
 0x2dc   : > { %10653 = vst [vmem:[#allocation242_spill] sm:$0xff] %v6953_v24  ;;  %10654 = vst [vmem:[#allocation243_spill] sm:$0xff] %v6955_v30  ;;  %3040 = vperm.xlu1 %5821, %v5517_v44   ;;  %3035 = vperm.xlu0 %5820, %v5516_v38   ;;  %v5523_v44 = vld [vmem:[%s5961_s28 + $0xdc] sm:$0xf]  ;;  %v5522_v38 = vld [vmem:[%s5961_s28 + $0xd4] sm:$0xff] }
 0x2df   : > { %v6959_v32 = vpop.permute.xlu1 %2576  ;;  %v6961_v28 = vpop.permute.xlu0 %2571 }
 0x2e0   : > { %10655 = vst [vmem:[#allocation244_spill] sm:$0xff] %v6959_v32  ;;  %10656 = vst [vmem:[#allocation245_spill] sm:$0xff] %v6961_v28  ;;  %3050 = vperm.xlu1 %5821, %v5519_v40   ;;  %3045 = vperm.xlu0 %5820, %v5518_v34   ;;  %v5526_v40 = vld [vmem:[%s5961_s28 + $0x38] sm:$0xf]  ;;  %v5525_v34 = vld [vmem:[%s5961_s28 + $0x30] sm:$0xff] }
 0x2e3   : > { %v6965_v14 = vpop.permute.xlu1 %2586  ;;  %v6967_v24 = vpop.permute.xlu0 %2581 }
 0x2e4   : > { %10657 = vst [vmem:[#allocation246_spill] sm:$0xff] %v6965_v14  ;;  %10658 = vst [vmem:[#allocation247_spill] sm:$0xff] %v6967_v24  ;;  %3060 = vperm.xlu1 %5821, %v5521_v42   ;;  %3055 = vperm.xlu0 %5820, %v5520_v36   ;;  %v5528_v42 = vld [vmem:[%s5961_s28 + $0x48] sm:$0xf]  ;;  %v5527_v36 = vld [vmem:[%s5961_s28 + $0x40] sm:$0xff] }
 0x2e7   : > { %v6971_v30 = vpop.permute.xlu1 %2596  ;;  %v6973_v32 = vpop.permute.xlu0 %2591 }
 0x2e8   : > { %10659 = vst [vmem:[#allocation248_spill] sm:$0xff] %v6971_v30  ;;  %10660 = vst [vmem:[#allocation249_spill] sm:$0xff] %v6973_v32  ;;  %3070 = vperm.xlu1 %5821, %v5523_v44   ;;  %3065 = vperm.xlu0 %5820, %v5522_v38   ;;  %v5530_v44 = vld [vmem:[%s5961_s28 + $0x58] sm:$0xf]  ;;  %v5529_v38 = vld [vmem:[%s5961_s28 + $0x50] sm:$0xff] }
 0x2eb   : > { %v6977_v28 = vpop.permute.xlu1 %2606  ;;  %v6979_v14 = vpop.permute.xlu0 %2601 }
 0x2ec   : > { %10661 = vst [vmem:[#allocation250_spill] sm:$0xff] %v6977_v28  ;;  %10662 = vst [vmem:[#allocation251_spill] sm:$0xff] %v6979_v14  ;;  %3158 = vperm.xlu1 %5821, %v5526_v40   ;;  %3153 = vperm.xlu0 %5820, %v5525_v34   ;;  %v5532_v40 = vld [vmem:[%s5961_s28 + $0x68] sm:$0xf]  ;;  %v5531_v34 = vld [vmem:[%s5961_s28 + $0x60] sm:$0xff] }
 0x2ef   : > { %v6983_v24 = vpop.permute.xlu1 %2616  ;;  %v6985_v30 = vpop.permute.xlu0 %2611 }
 0x2f0   : > { %10663 = vst [vmem:[#allocation252_spill] sm:$0xff] %v6983_v24  ;;  %10664 = vst [vmem:[#allocation253_spill] sm:$0xff] %v6985_v30  ;;  %3168 = vperm.xlu1 %5821, %v5528_v42   ;;  %3163 = vperm.xlu0 %5820, %v5527_v36   ;;  %v5534_v42 = vld [vmem:[%s5961_s28 + $0x78] sm:$0xf]  ;;  %v5533_v36 = vld [vmem:[%s5961_s28 + $0x70] sm:$0xff] }
 0x2f3   : > { %v6989_v32 = vpop.permute.xlu1 %2626  ;;  %v6991_v28 = vpop.permute.xlu0 %2621 }
 0x2f4   : > { %10665 = vst [vmem:[#allocation254_spill] sm:$0xff] %v6989_v32  ;;  %10666 = vst [vmem:[#allocation255_spill] sm:$0xff] %v6991_v28  ;;  %3178 = vperm.xlu1 %5821, %v5530_v44   ;;  %3173 = vperm.xlu0 %5820, %v5529_v38   ;;  %v5536_v44 = vld [vmem:[%s5961_s28 + $0x88] sm:$0xf]  ;;  %v5535_v38 = vld [vmem:[%s5961_s28 + $0x80] sm:$0xff] }
 0x2f7   : > { %v6995_v14 = vpop.permute.xlu1 %2636  ;;  %v6997_v24 = vpop.permute.xlu0 %2631 }
 0x2f8   : > { %10667 = vst [vmem:[#allocation256_spill] sm:$0xff] %v6995_v14  ;;  %10668 = vst [vmem:[#allocation257_spill] sm:$0xff] %v6997_v24  ;;  %3188 = vperm.xlu1 %5821, %v5532_v40   ;;  %3183 = vperm.xlu0 %5820, %v5531_v34   ;;  %v5538_v40 = vld [vmem:[%s5961_s28 + $0x98] sm:$0xf]  ;;  %v5537_v34 = vld [vmem:[%s5961_s28 + $0x90] sm:$0xff] }
 0x2fb   : > { %v7001_v30 = vpop.permute.xlu1 %2646  ;;  %v7003_v32 = vpop.permute.xlu0 %2641 }
 0x2fc   : > { %10669 = vst [vmem:[#allocation258_spill] sm:$0xff] %v7001_v30  ;;  %10670 = vst [vmem:[#allocation259_spill] sm:$0xff] %v7003_v32  ;;  %3198 = vperm.xlu1 %5821, %v5534_v42   ;;  %3193 = vperm.xlu0 %5820, %v5533_v36   ;;  %v5540_v42 = vld [vmem:[%s5961_s28 + $0xa8] sm:$0xf]  ;;  %v5539_v36 = vld [vmem:[%s5961_s28 + $0xa0] sm:$0xff] }
 0x2ff   : > { %v7007_v28 = vpop.permute.xlu1 %2656  ;;  %v7009_v14 = vpop.permute.xlu0 %2651 }
 0x300   : > { %10671 = vst [vmem:[#allocation260_spill] sm:$0xff] %v7007_v28  ;;  %10672 = vst [vmem:[#allocation261_spill] sm:$0xff] %v7009_v14  ;;  %3208 = vperm.xlu1 %5821, %v5536_v44   ;;  %3203 = vperm.xlu0 %5820, %v5535_v38   ;;  %v5542_v44 = vld [vmem:[%s5961_s28 + $0xb8] sm:$0xf]  ;;  %v5541_v38 = vld [vmem:[%s5961_s28 + $0xb0] sm:$0xff] }
 0x303   : > { %v7013_v24 = vpop.permute.xlu1 %2666  ;;  %v7015_v30 = vpop.permute.xlu0 %2661 }
 0x304   : > { %10673 = vst [vmem:[#allocation262_spill] sm:$0xff] %v7013_v24  ;;  %10674 = vst [vmem:[#allocation263_spill] sm:$0xff] %v7015_v30  ;;  %3218 = vperm.xlu1 %5821, %v5538_v40   ;;  %3213 = vperm.xlu0 %5820, %v5537_v34   ;;  %v5544_v40 = vld [vmem:[%s5961_s28 + $0xc8] sm:$0xf]  ;;  %v5543_v34 = vld [vmem:[%s5961_s28 + $0xc0] sm:$0xff] }
 0x307   : > { %v7019_v32 = vpop.permute.xlu1 %2676  ;;  %v7021_v28 = vpop.permute.xlu0 %2671 }
 0x308   : > { %10675 = vst [vmem:[#allocation264_spill] sm:$0xff] %v7019_v32  ;;  %10676 = vst [vmem:[#allocation265_spill] sm:$0xff] %v7021_v28  ;;  %3228 = vperm.xlu1 %5821, %v5540_v42   ;;  %3223 = vperm.xlu0 %5820, %v5539_v36   ;;  %v5546_v42 = vld [vmem:[%s5961_s28 + $0xd8] sm:$0xf]  ;;  %v5545_v36 = vld [vmem:[%s5961_s28 + $0xd0] sm:$0xff] }
 0x30b   : > { %v7025_v14 = vpop.permute.xlu1 %2763  ;;  %v7027_v24 = vpop.permute.xlu0 %2758 }
 0x30c   : > { %10677 = vst [vmem:[#allocation266_spill] sm:$0xff] %v7025_v14  ;;  %10678 = vst [vmem:[#allocation267_spill] sm:$0xff] %v7027_v24  ;;  %3238 = vperm.xlu1 %5821, %v5542_v44   ;;  %3233 = vperm.xlu0 %5820, %v5541_v38   ;;  %v5548_v44 = vld [vmem:[%s5961_s28 + $0xe8] sm:$0xf]  ;;  %v5547_v38 = vld [vmem:[%s5961_s28 + $0xe0] sm:$0xff] }
 0x30f   : > { %v7031_v30 = vpop.permute.xlu1 %2773  ;;  %v7033_v32 = vpop.permute.xlu0 %2768 }
 0x310   : > { %10679 = vst [vmem:[#allocation268_spill] sm:$0xff] %v7031_v30  ;;  %10680 = vst [vmem:[#allocation269_spill] sm:$0xff] %v7033_v32  ;;  %3248 = vperm.xlu1 %5821, %v5544_v40   ;;  %3243 = vperm.xlu0 %5820, %v5543_v34   ;;  %v5551_v40 = vld [vmem:[%s5961_s28 + $0x39] sm:$0xf]  ;;  %v5550_v34 = vld [vmem:[%s5961_s28 + $0x31] sm:$0xff] }
 0x313   : > { %v7037_v28 = vpop.permute.xlu1 %2783  ;;  %v7039_v14 = vpop.permute.xlu0 %2778 }
 0x314   : > { %10681 = vst [vmem:[#allocation270_spill] sm:$0xff] %v7037_v28  ;;  %10682 = vst [vmem:[#allocation271_spill] sm:$0xff] %v7039_v14  ;;  %3258 = vperm.xlu1 %5821, %v5546_v42   ;;  %3253 = vperm.xlu0 %5820, %v5545_v36   ;;  %v5553_v42 = vld [vmem:[%s5961_s28 + $0x49] sm:$0xf]  ;;  %v5552_v36 = vld [vmem:[%s5961_s28 + $0x41] sm:$0xff] }
 0x317   : > { %v7043_v24 = vpop.permute.xlu1 %2793  ;;  %v7045_v30 = vpop.permute.xlu0 %2788 }
 0x318   : > { %10683 = vst [vmem:[#allocation272_spill] sm:$0xff] %v7043_v24  ;;  %10684 = vst [vmem:[#allocation273_spill] sm:$0xff] %v7045_v30  ;;  %3268 = vperm.xlu1 %5821, %v5548_v44   ;;  %3263 = vperm.xlu0 %5820, %v5547_v38   ;;  %v5555_v44 = vld [vmem:[%s5961_s28 + $0x59] sm:$0xf]  ;;  %v5554_v38 = vld [vmem:[%s5961_s28 + $0x51] sm:$0xff] }
 0x31b   : > { %v7049_v32 = vpop.permute.xlu1 %2803  ;;  %v7051_v28 = vpop.permute.xlu0 %2798 }
 0x31c   : > { %10685 = vst [vmem:[#allocation274_spill] sm:$0xff] %v7049_v32  ;;  %10686 = vst [vmem:[#allocation275_spill] sm:$0xff] %v7051_v28  ;;  %3355 = vperm.xlu1 %5821, %v5551_v40   ;;  %3350 = vperm.xlu0 %5820, %v5550_v34   ;;  %v5557_v40 = vld [vmem:[%s5961_s28 + $0x69] sm:$0xf]  ;;  %v5556_v34 = vld [vmem:[%s5961_s28 + $0x61] sm:$0xff] }
 0x31f   : > { %v7055_v14 = vpop.permute.xlu1 %2813  ;;  %v7057_v24 = vpop.permute.xlu0 %2808 }
 0x320   : > { %10687 = vst [vmem:[#allocation276_spill] sm:$0xff] %v7055_v14  ;;  %10688 = vst [vmem:[#allocation277_spill] sm:$0xff] %v7057_v24  ;;  %3365 = vperm.xlu1 %5821, %v5553_v42   ;;  %3360 = vperm.xlu0 %5820, %v5552_v36   ;;  %v5559_v42 = vld [vmem:[%s5961_s28 + $0x79] sm:$0xf]  ;;  %v5558_v36 = vld [vmem:[%s5961_s28 + $0x71] sm:$0xff] }
 0x323   : > { %v7061_v30 = vpop.permute.xlu1 %2823  ;;  %v7063_v32 = vpop.permute.xlu0 %2818 }
 0x324   : > { %10689 = vst [vmem:[#allocation278_spill] sm:$0xff] %v7061_v30  ;;  %10690 = vst [vmem:[#allocation279_spill] sm:$0xff] %v7063_v32  ;;  %3375 = vperm.xlu1 %5821, %v5555_v44   ;;  %3370 = vperm.xlu0 %5820, %v5554_v38   ;;  %v5561_v44 = vld [vmem:[%s5961_s28 + $0x89] sm:$0xf]  ;;  %v5560_v38 = vld [vmem:[%s5961_s28 + $0x81] sm:$0xff] }
 0x327   : > { %v7067_v28 = vpop.permute.xlu1 %2833  ;;  %v7069_v14 = vpop.permute.xlu0 %2828 }
 0x328   : > { %10691 = vst [vmem:[#allocation280_spill] sm:$0xff] %v7067_v28  ;;  %10692 = vst [vmem:[#allocation281_spill] sm:$0xff] %v7069_v14  ;;  %3385 = vperm.xlu1 %5821, %v5557_v40   ;;  %3380 = vperm.xlu0 %5820, %v5556_v34   ;;  %v5563_v40 = vld [vmem:[%s5961_s28 + $0x99] sm:$0xf]  ;;  %v5562_v34 = vld [vmem:[%s5961_s28 + $0x91] sm:$0xff] }
 0x32b   : > { %v7073_v24 = vpop.permute.xlu1 %2843  ;;  %v7075_v30 = vpop.permute.xlu0 %2838 }
 0x32c   : > { %10693 = vst [vmem:[#allocation282_spill] sm:$0xff] %v7073_v24  ;;  %10694 = vst [vmem:[#allocation283_spill] sm:$0xff] %v7075_v30  ;;  %3395 = vperm.xlu1 %5821, %v5559_v42   ;;  %3390 = vperm.xlu0 %5820, %v5558_v36   ;;  %v5565_v42 = vld [vmem:[%s5961_s28 + $0xa9] sm:$0xf]  ;;  %v5564_v36 = vld [vmem:[%s5961_s28 + $0xa1] sm:$0xff] }
 0x32f   : > { %v7079_v32 = vpop.permute.xlu1 %2853  ;;  %v7081_v28 = vpop.permute.xlu0 %2848 }
 0x330   : > { %10695 = vst [vmem:[#allocation284_spill] sm:$0xff] %v7079_v32  ;;  %10696 = vst [vmem:[#allocation285_spill] sm:$0xff] %v7081_v28  ;;  %3405 = vperm.xlu1 %5821, %v5561_v44   ;;  %3400 = vperm.xlu0 %5820, %v5560_v38   ;;  %v5567_v44 = vld [vmem:[%s5961_s28 + $0xb9] sm:$0xf]  ;;  %v5566_v38 = vld [vmem:[%s5961_s28 + $0xb1] sm:$0xff] }
 0x333   : > { %v7085_v14 = vpop.permute.xlu1 %2863  ;;  %v7087_v24 = vpop.permute.xlu0 %2858 }
 0x334   : > { %10697 = vst [vmem:[#allocation286_spill] sm:$0xff] %v7085_v14  ;;  %10698 = vst [vmem:[#allocation287_spill] sm:$0xff] %v7087_v24  ;;  %3415 = vperm.xlu1 %5821, %v5563_v40   ;;  %3410 = vperm.xlu0 %5820, %v5562_v34   ;;  %v5569_v40 = vld [vmem:[%s5961_s28 + $0xc9] sm:$0xf]  ;;  %v5568_v34 = vld [vmem:[%s5961_s28 + $0xc1] sm:$0xff] }
 0x337   : > { %v7091_v30 = vpop.permute.xlu1 %2873  ;;  %v7093_v32 = vpop.permute.xlu0 %2868 }
 0x338   : > { %10699 = vst [vmem:[#allocation288_spill] sm:$0xff] %v7091_v30  ;;  %10700 = vst [vmem:[#allocation289_spill] sm:$0xff] %v7093_v32  ;;  %3425 = vperm.xlu1 %5821, %v5565_v42   ;;  %3420 = vperm.xlu0 %5820, %v5564_v36   ;;  %v5571_v42 = vld [vmem:[%s5961_s28 + $0xd9] sm:$0xf]  ;;  %v5570_v36 = vld [vmem:[%s5961_s28 + $0xd1] sm:$0xff] }
 0x33b   : > { %v7097_v28 = vpop.permute.xlu1 %2960  ;;  %v7099_v14 = vpop.permute.xlu0 %2955 }
 0x33c   : > { %10701 = vst [vmem:[#allocation290_spill] sm:$0xff] %v7097_v28  ;;  %10702 = vst [vmem:[#allocation291_spill] sm:$0xff] %v7099_v14  ;;  %3435 = vperm.xlu1 %5821, %v5567_v44   ;;  %3430 = vperm.xlu0 %5820, %v5566_v38   ;;  %v5573_v44 = vld [vmem:[%s5961_s28 + $0xe9] sm:$0xf]  ;;  %v5572_v38 = vld [vmem:[%s5961_s28 + $0xe1] sm:$0xff] }
 0x33f   : > { %v7103_v24 = vpop.permute.xlu1 %2970  ;;  %v7105_v30 = vpop.permute.xlu0 %2965 }
 0x340   : > { %10703 = vst [vmem:[#allocation292_spill] sm:$0xff] %v7103_v24  ;;  %10704 = vst [vmem:[#allocation293_spill] sm:$0xff] %v7105_v30  ;;  %3445 = vperm.xlu1 %5821, %v5569_v40   ;;  %3440 = vperm.xlu0 %5820, %v5568_v34   ;;  %v5576_v40 = vld [vmem:[%s5961_s28 + $0x3a] sm:$0xf]  ;;  %v5575_v34 = vld [vmem:[%s5961_s28 + $0x32] sm:$0xff] }
 0x343   : > { %v7109_v32 = vpop.permute.xlu1 %2980  ;;  %v7111_v28 = vpop.permute.xlu0 %2975 }
 0x344   : > { %10705 = vst [vmem:[#allocation294_spill] sm:$0xff] %v7109_v32  ;;  %10706 = vst [vmem:[#allocation295_spill] sm:$0xff] %v7111_v28  ;;  %3455 = vperm.xlu1 %5821, %v5571_v42   ;;  %3450 = vperm.xlu0 %5820, %v5570_v36   ;;  %v5578_v42 = vld [vmem:[%s5961_s28 + $0x4a] sm:$0xf]  ;;  %v5577_v36 = vld [vmem:[%s5961_s28 + $0x42] sm:$0xff] }
 0x347   : > { %v7115_v14 = vpop.permute.xlu1 %2990  ;;  %v7117_v24 = vpop.permute.xlu0 %2985 }
 0x348   : > { %10707 = vst [vmem:[#allocation296_spill] sm:$0xff] %v7115_v14  ;;  %10708 = vst [vmem:[#allocation297_spill] sm:$0xff] %v7117_v24  ;;  %3465 = vperm.xlu1 %5821, %v5573_v44   ;;  %3460 = vperm.xlu0 %5820, %v5572_v38   ;;  %v5580_v44 = vld [vmem:[%s5961_s28 + $0x5a] sm:$0xf]  ;;  %v5579_v38 = vld [vmem:[%s5961_s28 + $0x52] sm:$0xff] }
 0x34b   : > { %v7121_v30 = vpop.permute.xlu1 %3000  ;;  %v7123_v32 = vpop.permute.xlu0 %2995 }
 0x34c   : > { %10709 = vst [vmem:[#allocation298_spill] sm:$0xff] %v7121_v30  ;;  %10710 = vst [vmem:[#allocation299_spill] sm:$0xff] %v7123_v32  ;;  %3552 = vperm.xlu1 %5821, %v5576_v40   ;;  %3547 = vperm.xlu0 %5820, %v5575_v34   ;;  %v5582_v40 = vld [vmem:[%s5961_s28 + $0x6a] sm:$0xf]  ;;  %v5581_v34 = vld [vmem:[%s5961_s28 + $0x62] sm:$0xff] }
 0x34f   : > { %v7127_v28 = vpop.permute.xlu1 %3010  ;;  %v7129_v14 = vpop.permute.xlu0 %3005 }
 0x350   : > { %10711 = vst [vmem:[#allocation300_spill] sm:$0xff] %v7127_v28  ;;  %10712 = vst [vmem:[#allocation301_spill] sm:$0xff] %v7129_v14  ;;  %3562 = vperm.xlu1 %5821, %v5578_v42   ;;  %3557 = vperm.xlu0 %5820, %v5577_v36   ;;  %v5584_v42 = vld [vmem:[%s5961_s28 + $0x7a] sm:$0xf]  ;;  %v5583_v36 = vld [vmem:[%s5961_s28 + $0x72] sm:$0xff] }
 0x353   : > { %v7133_v24 = vpop.permute.xlu1 %3020  ;;  %v7135_v30 = vpop.permute.xlu0 %3015 }
 0x354   : > { %10713 = vst [vmem:[#allocation302_spill] sm:$0xff] %v7133_v24  ;;  %10714 = vst [vmem:[#allocation303_spill] sm:$0xff] %v7135_v30  ;;  %3572 = vperm.xlu1 %5821, %v5580_v44   ;;  %3567 = vperm.xlu0 %5820, %v5579_v38   ;;  %v5586_v44 = vld [vmem:[%s5961_s28 + $0x8a] sm:$0xf]  ;;  %v5585_v38 = vld [vmem:[%s5961_s28 + $0x82] sm:$0xff] }
 0x357   : > { %v7139_v32 = vpop.permute.xlu1 %3030  ;;  %v7141_v28 = vpop.permute.xlu0 %3025 }
 0x358   : > { %10715 = vst [vmem:[#allocation304_spill] sm:$0xff] %v7139_v32  ;;  %10716 = vst [vmem:[#allocation305_spill] sm:$0xff] %v7141_v28  ;;  %3582 = vperm.xlu1 %5821, %v5582_v40   ;;  %3577 = vperm.xlu0 %5820, %v5581_v34   ;;  %v5588_v40 = vld [vmem:[%s5961_s28 + $0x9a] sm:$0xf]  ;;  %v5587_v34 = vld [vmem:[%s5961_s28 + $0x92] sm:$0xff] }
 0x35b   : > { %v7145_v14 = vpop.permute.xlu1 %3040  ;;  %v7147_v24 = vpop.permute.xlu0 %3035 }
 0x35c   : > { %10717 = vst [vmem:[#allocation306_spill] sm:$0xff] %v7145_v14  ;;  %10718 = vst [vmem:[#allocation307_spill] sm:$0xff] %v7147_v24  ;;  %3592 = vperm.xlu1 %5821, %v5584_v42   ;;  %3587 = vperm.xlu0 %5820, %v5583_v36   ;;  %v5590_v42 = vld [vmem:[%s5961_s28 + $0xaa] sm:$0xf]  ;;  %v5589_v36 = vld [vmem:[%s5961_s28 + $0xa2] sm:$0xff] }
 0x35f   : > { %v7151_v30 = vpop.permute.xlu1 %3050  ;;  %v7153_v32 = vpop.permute.xlu0 %3045 }
 0x360   : > { %10719 = vst [vmem:[#allocation308_spill] sm:$0xff] %v7151_v30  ;;  %10720 = vst [vmem:[#allocation309_spill] sm:$0xff] %v7153_v32  ;;  %3602 = vperm.xlu1 %5821, %v5586_v44   ;;  %3597 = vperm.xlu0 %5820, %v5585_v38   ;;  %v5592_v44 = vld [vmem:[%s5961_s28 + $0xba] sm:$0xf]  ;;  %v5591_v38 = vld [vmem:[%s5961_s28 + $0xb2] sm:$0xff] }
 0x363   : > { %v7157_v28 = vpop.permute.xlu1 %3060  ;;  %v7159_v14 = vpop.permute.xlu0 %3055 }
 0x364   : > { %10721 = vst [vmem:[#allocation310_spill] sm:$0xff] %v7157_v28  ;;  %10722 = vst [vmem:[#allocation311_spill] sm:$0xff] %v7159_v14  ;;  %3612 = vperm.xlu1 %5821, %v5588_v40   ;;  %3607 = vperm.xlu0 %5820, %v5587_v34   ;;  %v5594_v40 = vld [vmem:[%s5961_s28 + $0xca] sm:$0xf]  ;;  %v5593_v34 = vld [vmem:[%s5961_s28 + $0xc2] sm:$0xff] }
 0x367   : > { %v7163_v24 = vpop.permute.xlu1 %3070  ;;  %v7165_v30 = vpop.permute.xlu0 %3065 }
 0x368   : > { %10723 = vst [vmem:[#allocation312_spill] sm:$0xff] %v7163_v24  ;;  %10724 = vst [vmem:[#allocation313_spill] sm:$0xff] %v7165_v30  ;;  %3622 = vperm.xlu1 %5821, %v5590_v42   ;;  %3617 = vperm.xlu0 %5820, %v5589_v36   ;;  %v5596_v42 = vld [vmem:[%s5961_s28 + $0xda] sm:$0xf]  ;;  %v5595_v36 = vld [vmem:[%s5961_s28 + $0xd2] sm:$0xff] }
 0x36b   : > { %v7169_v32 = vpop.permute.xlu1 %3158  ;;  %v7171_v28 = vpop.permute.xlu0 %3153 }
 0x36c   : > { %10725 = vst [vmem:[#allocation314_spill] sm:$0xff] %v7169_v32  ;;  %10726 = vst [vmem:[#allocation315_spill] sm:$0xff] %v7171_v28  ;;  %3632 = vperm.xlu1 %5821, %v5592_v44   ;;  %3627 = vperm.xlu0 %5820, %v5591_v38   ;;  %v5598_v44 = vld [vmem:[%s5961_s28 + $0xea] sm:$0xf]  ;;  %v5597_v38 = vld [vmem:[%s5961_s28 + $0xe2] sm:$0xff] }
 0x36f   : > { %v7175_v14 = vpop.permute.xlu1 %3168  ;;  %v7177_v24 = vpop.permute.xlu0 %3163 }
 0x370   : > { %10727 = vst [vmem:[#allocation316_spill] sm:$0xff] %v7175_v14  ;;  %10728 = vst [vmem:[#allocation317_spill] sm:$0xff] %v7177_v24  ;;  %3642 = vperm.xlu1 %5821, %v5594_v40   ;;  %3637 = vperm.xlu0 %5820, %v5593_v34   ;;  %v5601_v40 = vld [vmem:[%s5961_s28 + $0x3b] sm:$0xf]  ;;  %v5600_v34 = vld [vmem:[%s5961_s28 + $0x33] sm:$0xff] }
 0x373   : > { %v7181_v30 = vpop.permute.xlu1 %3178  ;;  %v7183_v32 = vpop.permute.xlu0 %3173 }
 0x374   : > { %10729 = vst [vmem:[#allocation318_spill] sm:$0xff] %v7181_v30  ;;  %10730 = vst [vmem:[#allocation319_spill] sm:$0xff] %v7183_v32  ;;  %3652 = vperm.xlu1 %5821, %v5596_v42   ;;  %3647 = vperm.xlu0 %5820, %v5595_v36   ;;  %v5603_v42 = vld [vmem:[%s5961_s28 + $0x4b] sm:$0xf]  ;;  %v5602_v36 = vld [vmem:[%s5961_s28 + $0x43] sm:$0xff] }
 0x377   : > { %v7187_v28 = vpop.permute.xlu1 %3188  ;;  %v7189_v14 = vpop.permute.xlu0 %3183 }
 0x378   : > { %10731 = vst [vmem:[#allocation320_spill] sm:$0xff] %v7187_v28  ;;  %10732 = vst [vmem:[#allocation321_spill] sm:$0xff] %v7189_v14  ;;  %3662 = vperm.xlu1 %5821, %v5598_v44   ;;  %3657 = vperm.xlu0 %5820, %v5597_v38   ;;  %v5605_v44 = vld [vmem:[%s5961_s28 + $0x5b] sm:$0xf]  ;;  %v5604_v38 = vld [vmem:[%s5961_s28 + $0x53] sm:$0xff] }
 0x37b   : > { %v7193_v24 = vpop.permute.xlu1 %3198  ;;  %v7195_v30 = vpop.permute.xlu0 %3193 }
 0x37c   : > { %10733 = vst [vmem:[#allocation322_spill] sm:$0xff] %v7193_v24  ;;  %10734 = vst [vmem:[#allocation323_spill] sm:$0xff] %v7195_v30  ;;  %3749 = vperm.xlu1 %5821, %v5601_v40   ;;  %3744 = vperm.xlu0 %5820, %v5600_v34   ;;  %v5607_v40 = vld [vmem:[%s5961_s28 + $0x6b] sm:$0xf]  ;;  %v5606_v34 = vld [vmem:[%s5961_s28 + $0x63] sm:$0xff] }
 0x37f   : > { %v7199_v32 = vpop.permute.xlu1 %3208  ;;  %v7201_v28 = vpop.permute.xlu0 %3203 }
 0x380   : > { %10735 = vst [vmem:[#allocation324_spill] sm:$0xff] %v7199_v32  ;;  %10736 = vst [vmem:[#allocation325_spill] sm:$0xff] %v7201_v28  ;;  %3759 = vperm.xlu1 %5821, %v5603_v42   ;;  %3754 = vperm.xlu0 %5820, %v5602_v36   ;;  %v5609_v42 = vld [vmem:[%s5961_s28 + $0x7b] sm:$0xf]  ;;  %v5608_v36 = vld [vmem:[%s5961_s28 + $0x73] sm:$0xff] }
 0x383   : > { %v7205_v14 = vpop.permute.xlu1 %3218  ;;  %v7207_v24 = vpop.permute.xlu0 %3213 }
 0x384   : > { %10737 = vst [vmem:[#allocation326_spill] sm:$0xff] %v7205_v14  ;;  %10738 = vst [vmem:[#allocation327_spill] sm:$0xff] %v7207_v24  ;;  %3769 = vperm.xlu1 %5821, %v5605_v44   ;;  %3764 = vperm.xlu0 %5820, %v5604_v38   ;;  %v5611_v44 = vld [vmem:[%s5961_s28 + $0x8b] sm:$0xf]  ;;  %v5610_v38 = vld [vmem:[%s5961_s28 + $0x83] sm:$0xff] }
 0x387   : > { %v7211_v30 = vpop.permute.xlu1 %3228  ;;  %v7213_v32 = vpop.permute.xlu0 %3223 }
 0x388   : > { %10739 = vst [vmem:[#allocation328_spill] sm:$0xff] %v7211_v30  ;;  %10740 = vst [vmem:[#allocation329_spill] sm:$0xff] %v7213_v32  ;;  %3779 = vperm.xlu1 %5821, %v5607_v40   ;;  %3774 = vperm.xlu0 %5820, %v5606_v34   ;;  %v5613_v40 = vld [vmem:[%s5961_s28 + $0x9b] sm:$0xf]  ;;  %v5612_v34 = vld [vmem:[%s5961_s28 + $0x93] sm:$0xff] }
 0x38b   : > { %v7217_v28 = vpop.permute.xlu1 %3238  ;;  %v7219_v14 = vpop.permute.xlu0 %3233 }
 0x38c   : > { %10741 = vst [vmem:[#allocation330_spill] sm:$0xff] %v7217_v28  ;;  %10742 = vst [vmem:[#allocation331_spill] sm:$0xff] %v7219_v14  ;;  %3789 = vperm.xlu1 %5821, %v5609_v42   ;;  %3784 = vperm.xlu0 %5820, %v5608_v36   ;;  %v5615_v42 = vld [vmem:[%s5961_s28 + $0xab] sm:$0xf]  ;;  %v5614_v36 = vld [vmem:[%s5961_s28 + $0xa3] sm:$0xff] }
 0x38f   : > { %v7223_v24 = vpop.permute.xlu1 %3248  ;;  %v7225_v30 = vpop.permute.xlu0 %3243 }
 0x390   : > { %10743 = vst [vmem:[#allocation332_spill] sm:$0xff] %v7223_v24  ;;  %10744 = vst [vmem:[#allocation333_spill] sm:$0xff] %v7225_v30  ;;  %3799 = vperm.xlu1 %5821, %v5611_v44   ;;  %3794 = vperm.xlu0 %5820, %v5610_v38   ;;  %v5617_v44 = vld [vmem:[%s5961_s28 + $0xbb] sm:$0xf]  ;;  %v5616_v38 = vld [vmem:[%s5961_s28 + $0xb3] sm:$0xff] }
 0x393   : > { %v7229_v32 = vpop.permute.xlu1 %3258  ;;  %v7231_v28 = vpop.permute.xlu0 %3253 }
 0x394   : > { %10745 = vst [vmem:[#allocation334_spill] sm:$0xff] %v7229_v32  ;;  %10746 = vst [vmem:[#allocation335_spill] sm:$0xff] %v7231_v28  ;;  %3809 = vperm.xlu1 %5821, %v5613_v40   ;;  %3804 = vperm.xlu0 %5820, %v5612_v34   ;;  %v5619_v40 = vld [vmem:[%s5961_s28 + $0xcb] sm:$0xf]  ;;  %v5618_v34 = vld [vmem:[%s5961_s28 + $0xc3] sm:$0xff] }
 0x397   : > { %v7235_v14 = vpop.permute.xlu1 %3268  ;;  %v7237_v24 = vpop.permute.xlu0 %3263 }
 0x398   : > { %10747 = vst [vmem:[#allocation336_spill] sm:$0xff] %v7235_v14  ;;  %10748 = vst [vmem:[#allocation337_spill] sm:$0xff] %v7237_v24  ;;  %3819 = vperm.xlu1 %5821, %v5615_v42   ;;  %3814 = vperm.xlu0 %5820, %v5614_v36   ;;  %v5621_v42 = vld [vmem:[%s5961_s28 + $0xdb] sm:$0xf]  ;;  %v5620_v36 = vld [vmem:[%s5961_s28 + $0xd3] sm:$0xff] }
 0x39b   : > { %v7241_v30 = vpop.permute.xlu1 %3355  ;;  %v7243_v32 = vpop.permute.xlu0 %3350 }
 0x39c   : > { %10749 = vst [vmem:[#allocation338_spill] sm:$0xff] %v7241_v30  ;;  %10750 = vst [vmem:[#allocation339_spill] sm:$0xff] %v7243_v32  ;;  %3829 = vperm.xlu1 %5821, %v5617_v44   ;;  %3824 = vperm.xlu0 %5820, %v5616_v38   ;;  %v5623_v44 = vld [vmem:[%s5961_s28 + $0xeb] sm:$0xf]  ;;  %v5622_v38 = vld [vmem:[%s5961_s28 + $0xe3] sm:$0xff] }
 0x39f   : > { %v7247_v28 = vpop.permute.xlu1 %3365  ;;  %v7249_v14 = vpop.permute.xlu0 %3360 }
 0x3a0   : > { %10751 = vst [vmem:[#allocation340_spill] sm:$0xff] %v7247_v28  ;;  %10752 = vst [vmem:[#allocation341_spill] sm:$0xff] %v7249_v14  ;;  %3839 = vperm.xlu1 %5821, %v5619_v40   ;;  %3834 = vperm.xlu0 %5820, %v5618_v34   ;;  %v5626_v40 = vld [vmem:[%s5961_s28 + $0x3c] sm:$0xf]  ;;  %v5625_v34 = vld [vmem:[%s5961_s28 + $0x34] sm:$0xff] }
 0x3a3   : > { %v7253_v24 = vpop.permute.xlu1 %3375  ;;  %v7255_v30 = vpop.permute.xlu0 %3370 }
 0x3a4   : > { %10753 = vst [vmem:[#allocation342_spill] sm:$0xff] %v7253_v24  ;;  %10754 = vst [vmem:[#allocation343_spill] sm:$0xff] %v7255_v30  ;;  %3849 = vperm.xlu1 %5821, %v5621_v42   ;;  %3844 = vperm.xlu0 %5820, %v5620_v36   ;;  %v5628_v42 = vld [vmem:[%s5961_s28 + $0x4c] sm:$0xf]  ;;  %v5627_v36 = vld [vmem:[%s5961_s28 + $0x44] sm:$0xff] }
 0x3a7   : > { %v7259_v32 = vpop.permute.xlu1 %3385  ;;  %v7261_v28 = vpop.permute.xlu0 %3380 }
 0x3a8   : > { %10755 = vst [vmem:[#allocation344_spill] sm:$0xff] %v7259_v32  ;;  %10756 = vst [vmem:[#allocation345_spill] sm:$0xff] %v7261_v28  ;;  %3859 = vperm.xlu1 %5821, %v5623_v44   ;;  %3854 = vperm.xlu0 %5820, %v5622_v38   ;;  %v5630_v44 = vld [vmem:[%s5961_s28 + $0x5c] sm:$0xf]  ;;  %v5629_v38 = vld [vmem:[%s5961_s28 + $0x54] sm:$0xff] }
 0x3ab   : > { %v7265_v14 = vpop.permute.xlu1 %3395  ;;  %v7267_v24 = vpop.permute.xlu0 %3390 }
 0x3ac   : > { %10757 = vst [vmem:[#allocation346_spill] sm:$0xff] %v7265_v14  ;;  %10758 = vst [vmem:[#allocation347_spill] sm:$0xff] %v7267_v24  ;;  %3946 = vperm.xlu1 %5821, %v5626_v40   ;;  %3941 = vperm.xlu0 %5820, %v5625_v34   ;;  %v5632_v40 = vld [vmem:[%s5961_s28 + $0x6c] sm:$0xf]  ;;  %v5631_v34 = vld [vmem:[%s5961_s28 + $0x64] sm:$0xff] }
 0x3af   : > { %v7271_v30 = vpop.permute.xlu1 %3405  ;;  %v7273_v32 = vpop.permute.xlu0 %3400 }
 0x3b0   : > { %10759 = vst [vmem:[#allocation348_spill] sm:$0xff] %v7271_v30  ;;  %10760 = vst [vmem:[#allocation349_spill] sm:$0xff] %v7273_v32  ;;  %3956 = vperm.xlu1 %5821, %v5628_v42   ;;  %3951 = vperm.xlu0 %5820, %v5627_v36   ;;  %v5634_v42 = vld [vmem:[%s5961_s28 + $0x7c] sm:$0xf]  ;;  %v5633_v36 = vld [vmem:[%s5961_s28 + $0x74] sm:$0xff] }
 0x3b3   : > { %v7277_v28 = vpop.permute.xlu1 %3415  ;;  %v7279_v14 = vpop.permute.xlu0 %3410 }
 0x3b4   : > { %10761 = vst [vmem:[#allocation350_spill] sm:$0xff] %v7277_v28  ;;  %10762 = vst [vmem:[#allocation351_spill] sm:$0xff] %v7279_v14  ;;  %3966 = vperm.xlu1 %5821, %v5630_v44   ;;  %3961 = vperm.xlu0 %5820, %v5629_v38   ;;  %v5636_v44 = vld [vmem:[%s5961_s28 + $0x8c] sm:$0xf]  ;;  %v5635_v38 = vld [vmem:[%s5961_s28 + $0x84] sm:$0xff] }
 0x3b7   : > { %v7283_v24 = vpop.permute.xlu1 %3425  ;;  %v7285_v30 = vpop.permute.xlu0 %3420 }
 0x3b8   : > { %10763 = vst [vmem:[#allocation352_spill] sm:$0xff] %v7283_v24  ;;  %10764 = vst [vmem:[#allocation353_spill] sm:$0xff] %v7285_v30  ;;  %3976 = vperm.xlu1 %5821, %v5632_v40   ;;  %3971 = vperm.xlu0 %5820, %v5631_v34   ;;  %v5638_v40 = vld [vmem:[%s5961_s28 + $0x9c] sm:$0xf]  ;;  %v5637_v34 = vld [vmem:[%s5961_s28 + $0x94] sm:$0xff] }
 0x3bb   : > { %v7289_v32 = vpop.permute.xlu1 %3435  ;;  %v7291_v28 = vpop.permute.xlu0 %3430 }
 0x3bc   : > { %10765 = vst [vmem:[#allocation354_spill] sm:$0xff] %v7289_v32  ;;  %10766 = vst [vmem:[#allocation355_spill] sm:$0xff] %v7291_v28  ;;  %3986 = vperm.xlu1 %5821, %v5634_v42   ;;  %3981 = vperm.xlu0 %5820, %v5633_v36   ;;  %v5270_v32 = vld [vmem:[%s10411_s1] ss:$0 sm:$0xff]  ;;  %v5640_v42 = vld [vmem:[%s5961_s28 + $0xac] sm:$0xf] }
 0x3bd   : > { %v5639_v36 = vld [vmem:[%s5961_s28 + $0xa4] sm:$0xff]  ;;  %v322_v10 = vmul.f32 %v5270_v32, %v6101_v19  ;;  %v325_v19 = vmul.f32 %v5270_v32, %v6115_v35  ;;  %v7348_v35 = vmul.f32 %v5270_v32, %v6137_v55 }
 0x3bf   : > { %v7295_v14 = vpop.permute.xlu1 %3445  ;;  %v7297_v24 = vpop.permute.xlu0 %3440 }
 0x3c0   : > { %10767 = vst [vmem:[#allocation356_spill] sm:$0xff] %v7295_v14  ;;  %10768 = vst [vmem:[#allocation357_spill] sm:$0xff] %v7297_v24  ;;  %3996 = vperm.xlu1 %5821, %v5636_v44   ;;  %3991 = vperm.xlu0 %5820, %v5635_v38   ;;  %v319_v14 = vmul.f32 %v5270_v32, %v6089_v4  ;;  %v317_v24 = vmul.f32 %v5270_v32, %v6091_v5 }
 0x3c1   : > { %v320_v44 = vmul.f32 %v5270_v32, %v6095_v11  ;;  %v318_v38 = vmul.f32 %v5270_v32, %v6097_v13  ;;  %v323_v11 = vmul.f32 %v5270_v32, %v6109_v27  ;;  %v326_v13 = vmul.f32 %v5270_v32, %v6113_v33 }
 0x3c2   : > { %v7342_v27 = vmul.f32 %v5270_v32, %v6131_v51  ;;  %v7345_v33 = vmul.f32 %v5270_v32, %v6133_v52 }
 0x3c3   : > { %v7304_v30 = vpop.permute.xlu1 %3455  ;;  %v7306_v28 = vpop.permute.xlu0 %3450 }
 0x3c4   : > { %10769 = vst [vmem:[#allocation358_spill] sm:$0xff] %v7304_v30  ;;  %10770 = vst [vmem:[#allocation359_spill] sm:$0xff] %v7306_v28  ;;  %4006 = vperm.xlu1 %5821, %v5638_v40   ;;  %4001 = vperm.xlu0 %5820, %v5637_v34   ;;  %v321_v30 = vmul.f32 %v5270_v32, %v6103_v21  ;;  %v324_v28 = vmul.f32 %v5270_v32, %v6107_v26  ;;  %v7320_v40 = vld [vmem:[%s10411_s1 + $0x1] ss:$0 sm:$0xff] }
 0x3c5   : > { %v328_v21 = vmul.f32 %v5270_v32, %v6119_v41  ;;  %v7331_v26 = vmul.f32 %v5270_v32, %v6121_v43  ;;  %v7334_v34 = vmul.f32 %v5270_v32, %v6125_v47  ;;  %v515_v41 = vmul.f32 %v7320_v40, %v6161_v23 }
 0x3c6   : > { %v7353_v43 = vmul.f32 %v5270_v32, %v6139_v56  ;;  %v7356_v47 = vmul.f32 %v5270_v32, %v6143_v59  ;;  %v517_v51 = vmul.f32 %v7320_v40, %v6167_v37  ;;  %v7367_v23 = vmul.f32 %v5270_v32, %v6145_v60 }
 0x3c7   : > { %v7322_v4 = vpop.permute.xlu1 %3465  ;;  %v7324_v5 = vpop.permute.xlu0 %3460  ;;  %v516_v56 = vmul.f32 %v7320_v40, %v6169_v39  ;;  %v519_v59 = vmul.f32 %v7320_v40, %v6173_v49  ;;  %v7377_v37 = vmul.f32 %v5270_v32, %v6151_v0  ;;  %v521_v60 = vmul.f32 %v7320_v40, %v6179_v57 }
 0x3c8   : > { %10771 = vst [vmem:[#allocation360_spill] sm:$0xff] %v7322_v4  ;;  %10772 = vst [vmem:[#allocation361_spill] sm:$0xff] %v7324_v5  ;;  %4016 = vperm.xlu1 %5821, %v5640_v42   ;;  %4011 = vperm.xlu0 %5820, %v5639_v36   ;;  %v7337_v4 = vmul.f32 %v5270_v32, %v6127_v48  ;;  %v5642_v5 = vld [vmem:[%s5961_s28 + $0xbc] sm:$0xf]  ;;  %v514_v48 = vmul.f32 %v7320_v40, %v6163_v25  ;;  %v5644_v36 = vld [vmem:[%s5961_s28 + $0xcc] sm:$0xf] }
 0x3c9   : > { %v7374_v25 = vmul.f32 %v5270_v32, %v6149_v63  ;;  %v518_v42 = vmul.f32 %v7320_v40, %v6175_v50  ;;  %v7386_v39 = vmul.f32 %v5270_v32, %v6155_v7  ;;  %v7389_v49 = vmul.f32 %v5270_v32, %v6157_v9 }
 0x3ca   : > { %v520_v63 = vmul.f32 %v7320_v40, %v6181_v58  ;;  %v7395_v0 = vadd.f32 %v514_v48, %v317_v24  ;;  %v7397_v50 = vadd.f32 %v517_v51, %v320_v44  ;;  %v523_v57 = vmul.f32 %v7320_v40, %v6185_v2  ;;  %v10778_v58 = vld [vmem:[#allocation6_spill] sm:$0xff]  ;;  %v10779_v2 = vld [vmem:[#allocation7_spill] sm:$0xff]  ;;  %v10780_v51 = vld [vmem:[#allocation8_spill] sm:$0xff] }
 0x3cb   : > { %v7362_v52 = vpop.permute.xlu1 %3552  ;;  %v7364_v55 = vpop.permute.xlu0 %3547  ;;  %v7407_v32 = vadd.f32 %v516_v56, %v319_v14  ;;  %v525_v24 = vmul.f32 %v7320_v40, %v10778_v58  ;;  %v7413_v44 = vadd.f32 %v518_v42, %v321_v30  ;;  %v524_v48 = vmul.f32 %v7320_v40, %v10779_v2  ;;  %v5645_v14 = vld [vmem:[%s5961_s28 + $0xd4] sm:$0xff]  ;;  %v10782_v58 = vld [vmem:[#allocation10_spill] sm:$0xff] }
 0x3cc   : > { %10773 = vst [vmem:[#allocation362_spill] sm:$0xff] %v7362_v52  ;;  %10774 = vst [vmem:[#allocation363_spill] sm:$0xff] %v7364_v55  ;;  %4026 = vperm.xlu1 %5821, %v5642_v5   ;;  %4021 = vperm.xlu0 %5820, %v5641_v3   ;;  %v5643_v55 = vld [vmem:[%s5961_s28 + $0xc4] sm:$0xff]  ;;  %v7391_v3 = vadd.f32 %v515_v41, %v318_v38  ;;  %v7409_v38 = vadd.f32 %v519_v59, %v322_v10  ;;  %v10783_v30 = vld [vmem:[#allocation11_spill] sm:$0xff] }
 0x3cd   : > { %v10775_v5 = vld [vmem:[#allocation5_spill] sm:$0xff]  ;;  %v7415_v41 = vadd.f32 %v521_v60, %v324_v28  ;;  %v7423_v56 = vadd.f32 %v520_v63, %v323_v11  ;;  %v528_v28 = vmul.f32 %v7320_v40, %v10783_v30  ;;  %v7431_v42 = vadd.f32 %v523_v57, %v326_v13  ;;  %v10789_v57 = vld [vmem:[#allocation15_spill] sm:$0xff] }
 0x3ce   : > { %v522_v7 = vmul.f32 %v7320_v40, %v10775_v5  ;;  %v527_v5 = vmul.f32 %v7320_v40, %v10780_v51  ;;  %v10781_v10 = vld [vmem:[#allocation9_spill] sm:$0xff]  ;;  %v7455_v30 = vadd.f32 %v524_v48, %v7331_v26  ;;  %v10792_v48 = vld [vmem:[#allocation18_spill] sm:$0xff] }
 0x3cf   : > { %v7403_v52 = vpop.permute.xlu1 %3562  ;;  %v7405_v9 = vpop.permute.xlu0 %3557  ;;  %v526_v59 = vmul.f32 %v7320_v40, %v10781_v10  ;;  %v10785_v11 = vld [vmem:[#allocation13_spill] sm:$0xff]  ;;  %v7473_v26 = vadd.f32 %v528_v28, %v7345_v33 }
 0x3d0   : > { %10776 = vst [vmem:[#allocation5_spill] sm:$0xff] %v7403_v52  ;;  %10777 = vst [vmem:[#allocation364_spill] sm:$0xff] %v7405_v9  ;;  %4036 = vperm.xlu1 %5821, %v5644_v36   ;;  %4031 = vperm.xlu0 %5820, %v5643_v55   ;;  %v5646_v9 = vld [vmem:[%s5961_s28 + $0xdc] sm:$0xf]  ;;  %v529_v55 = vmul.f32 %v7320_v40, %v10782_v58  ;;  %v7433_v60 = vadd.f32 %v522_v7, %v325_v19  ;;  %v10788_v52 = vld [vmem:[#allocation14_spill] sm:$0xff] }
 0x3d1   : > { %v10784_v36 = vld [vmem:[#allocation12_spill] sm:$0xff]  ;;  %v530_v63 = vmul.f32 %v7320_v40, %v10785_v11  ;;  %v7443_v58 = vadd.f32 %v525_v24, %v328_v21  ;;  %v533_v13 = vmul.f32 %v7320_v40, %v10788_v52  ;;  %v532_v19 = vmul.f32 %v7320_v40, %v10789_v57  ;;  %v7452_v7 = vld [vmem:[%s10411_s1 + $0x2] ss:$0 sm:$0xff]  ;;  %v5648_v57 = vld [vmem:[%s5961_s28 + $0xec] sm:$0xf] }
 0x3d2   : > { %v531_v2 = vmul.f32 %v7320_v40, %v10784_v36  ;;  %v7458_v36 = vadd.f32 %v527_v5, %v7334_v34  ;;  %v10790_v21 = vld [vmem:[#allocation16_spill] sm:$0xff]  ;;  %v10791_v52 = vld [vmem:[#allocation17_spill] sm:$0xff]  ;;  %v537_v34 = vmul.f32 %v7320_v40, %v10792_v48 }
 0x3d3   : > { %v7439_v51 = vpop.permute.xlu1 %3572  ;;  %v7441_v10 = vpop.permute.xlu0 %3567  ;;  %v535_v24 = vmul.f32 %v7320_v40, %v10790_v21  ;;  %v534_v11 = vmul.f32 %v7320_v40, %v10791_v52  ;;  %v10793_v21 = vld [vmem:[#allocation19_spill] sm:$0xff]  ;;  %v7492_v28 = vadd.f32 %v533_v13, %v7356_v47  ;;  %v10796_v52 = vld [vmem:[#allocation22_spill] sm:$0xff] }
 0x3d4   : > { %10786 = vst [vmem:[#allocation6_spill] sm:$0xff] %v7439_v51  ;;  %10787 = vst [vmem:[#allocation7_spill] sm:$0xff] %v7441_v10  ;;  %4046 = vperm.xlu1 %5821, %v5646_v9   ;;  %4041 = vperm.xlu0 %5820, %v5645_v14   ;;  %v5647_v10 = vld [vmem:[%s5961_s28 + $0xe4] sm:$0xff]  ;;  %v7467_v51 = vadd.f32 %v526_v59, %v7337_v4  ;;  %v7470_v9 = vadd.f32 %v529_v55, %v7342_v27  ;;  %v10794_v59 = vld [vmem:[#allocation20_spill] sm:$0xff] }
 0x3d5   : > { %v7478_v5 = vadd.f32 %v531_v2, %v7348_v35  ;;  %v7481_v14 = vadd.f32 %v530_v63, %v7353_v43  ;;  %v536_v4 = vmul.f32 %v7320_v40, %v10793_v21  ;;  %v712_v27 = vmul.f32 %v7452_v7, %v10794_v59  ;;  %v10795_v2 = vld [vmem:[#allocation21_spill] sm:$0xff]  ;;  %v10797_v21 = vld [vmem:[#allocation23_spill] sm:$0xff] }
 0x3d6   : > { %v7495_v35 = vadd.f32 %v532_v19, %v7367_v23  ;;  %v711_v43 = vmul.f32 %v7452_v7, %v10795_v2  ;;  %v7500_v40 = vadd.f32 %v535_v24, %v7374_v25  ;;  %v7503_v63 = vadd.f32 %v534_v11, %v7377_v37  ;;  %v5651_v13 = vld [vmem:[%s5961_s28 + $0x48] sm:$0xf]  ;;  %v5650_v23 = vld [vmem:[%s5961_s28 + $0x40] sm:$0xff] }
 0x3d7   : > { %v7487_v55 = vpop.permute.xlu1 %3582  ;;  %v7489_v33 = vpop.permute.xlu0 %3577  ;;  %v714_v48 = vmul.f32 %v7452_v7, %v10796_v52  ;;  %v713_v47 = vmul.f32 %v7452_v7, %v10797_v21  ;;  %v7512_v19 = vadd.f32 %v537_v34, %v7386_v39  ;;  %v718_v37 = vmul.f32 %v7452_v7, %v6251_v29  ;;  %v10799_v59 = vld [vmem:[#allocation25_spill] sm:$0xff]  ;;  %v10800_v52 = vld [vmem:[#allocation26_spill] sm:$0xff] }
 0x3d8   : > { %4056 = vperm.xlu1 %5821, %v5648_v57   ;;  %4051 = vperm.xlu0 %5820, %v5647_v10   ;;  %v716_v10 = vmul.f32 %v7452_v7, %v6245_v54  ;;  %v10798_v57 = vld [vmem:[#allocation24_spill] sm:$0xff]  ;;  %v7521_v24 = vadd.f32 %v536_v4, %v7389_v49  ;;  %v7524_v11 = vadd.f32 %v712_v27, %v7391_v3  ;;  %v10801_v27 = vld [vmem:[#allocation27_spill] sm:$0xff] }
 0x3d9   : > { %v715_v25 = vmul.f32 %v7452_v7, %v10798_v57  ;;  %v717_v39 = vmul.f32 %v7452_v7, %v10799_v59  ;;  %v720_v54 = vmul.f32 %v7452_v7, %v6256_v62  ;;  %v7535_v29 = vadd.f32 %v711_v43, %v7395_v0  ;;  %v5653_v43 = vld [vmem:[%s5961_s28 + $0x58] sm:$0xf]  ;;  %v5652_v57 = vld [vmem:[%s5961_s28 + $0x50] sm:$0xff] }
 0x3da   : > { %v719_v49 = vmul.f32 %v7452_v7, %v10800_v52  ;;  %v722_v3 = vmul.f32 %v7452_v7, %v6262_v17  ;;  %v7542_v4 = vadd.f32 %v714_v48, %v7397_v50  ;;  %v7545_v62 = vadd.f32 %v713_v47, %v7407_v32  ;;  %v10802_v48 = vld [vmem:[#allocation28_spill] sm:$0xff] }
 0x3db   : > { %v7530_v34 = vpop.permute.xlu1 %3592  ;;  %v7532_v2 = vpop.permute.xlu0 %3587  ;;  %v721_v21 = vmul.f32 %v7452_v7, %v10801_v27  ;;  %v724_v0 = vmul.f32 %v7452_v7, %v6268_v46  ;;  %v7554_v59 = vadd.f32 %v716_v10, %v7409_v38  ;;  %v7557_v17 = vadd.f32 %v715_v25, %v7413_v44 }
 0x3dc   : > { %4144 = vperm.xlu1 %5821, %v5651_v13   ;;  %4139 = vperm.xlu0 %5820, %v5650_v23   ;;  %v7560_v50 = vadd.f32 %v718_v37, %v7415_v41  ;;  %v723_v32 = vmul.f32 %v7452_v7, %v10802_v48  ;;  %v7565_v47 = vadd.f32 %v717_v39, %v7423_v56  ;;  %v10803_v13 = vld [vmem:[#allocation29_spill] sm:$0xff]  ;;  %v10804_v37 = vld [vmem:[#allocation30_spill] sm:$0xff] }
 0x3dd   : > { %v7568_v46 = vadd.f32 %v720_v54, %v7431_v42  ;;  %v726_v38 = vmul.f32 %v7452_v7, %v6274_v61  ;;  %v725_v44 = vmul.f32 %v7452_v7, %v10803_v13  ;;  %v7579_v10 = vadd.f32 %v719_v49, %v7433_v60  ;;  %v5654_v54 = vld [vmem:[%s5961_s28 + $0x60] sm:$0xff]  ;;  %v10808_v48 = vld [vmem:[#allocation34_spill] sm:$0xff] }
 0x3de   : > { %v7582_v56 = vadd.f32 %v722_v3, %v7443_v58  ;;  %v728_v42 = vmul.f32 %v7452_v7, %v6280_v15  ;;  %v7587_v61 = vadd.f32 %v721_v21, %v7455_v30  ;;  %v7590_v25 = vadd.f32 %v724_v0, %v7458_v36  ;;  %v7599_v58 = vld [vmem:[%s10411_s1 + $0x3] ss:$0 sm:$0xff]  ;;  %v5655_v15 = vld [vmem:[%s5961_s28 + $0x68] sm:$0xf]  ;;  %v10805_v36 = vld [vmem:[#allocation31_spill] sm:$0xff] }
 0x3df   : > { %v7574_v23 = vpop.permute.xlu1 %3602  ;;  %v7576_v41 = vpop.permute.xlu0 %3597  ;;  %v727_v39 = vmul.f32 %v7452_v7, %v10804_v37  ;;  %v730_v60 = vmul.f32 %v7452_v7, %v6286_v45  ;;  %v7604_v52 = vadd.f32 %v723_v32, %v7467_v51  ;;  %v729_v30 = vmul.f32 %v7452_v7, %v6288_v31  ;;  %v10806_v21 = vld [vmem:[#allocation32_spill] sm:$0xff]  ;;  %v10807_v0 = vld [vmem:[#allocation33_spill] sm:$0xff]  ;;  %v5656_v37 = vld [vmem:[%s5961_s28 + $0x70] sm:$0xff] }
 0x3e0   : > { %4154 = vperm.xlu1 %5821, %v5653_v43   ;;  %4149 = vperm.xlu0 %5820, %v5652_v57   ;;  %v732_v49 = vmul.f32 %v7452_v7, %v10805_v36  ;;  %v731_v3 = vmul.f32 %v7452_v7, %v6294_v53  ;;  %v7613_v45 = vadd.f32 %v726_v38, %v7470_v9  ;;  %v10809_v38 = vld [vmem:[#allocation35_spill] sm:$0xff]  ;;  %v10812_v36 = vld [vmem:[#allocation38_spill] sm:$0xff] }
 0x3e1   : > { %v7616_v27 = vadd.f32 %v725_v44, %v7473_v26  ;;  %v734_v51 = vmul.f32 %v7452_v7, %v10806_v21  ;;  %v733_v31 = vmul.f32 %v7452_v7, %v10807_v0  ;;  %v7627_v53 = vadd.f32 %v728_v42, %v7478_v5  ;;  %v10810_v44 = vld [vmem:[#allocation36_spill] sm:$0xff]  ;;  %v10813_v21 = vld [vmem:[#allocation39_spill] sm:$0xff] }
 0x3e2   : > { %v909_v9 = vmul.f32 %v7599_v58, %v6304_v8  ;;  %v908_v26 = vmul.f32 %v7599_v58, %v10808_v48  ;;  %v7634_v32 = vadd.f32 %v727_v39, %v7481_v14  ;;  %v7637_v7 = vadd.f32 %v730_v60, %v7492_v28  ;;  %v5657_v42 = vld [vmem:[%s5961_s28 + $0x78] sm:$0xf] }
 0x3e3   : > { %v7622_v43 = vpop.permute.xlu1 %3612  ;;  %v7624_v57 = vpop.permute.xlu0 %3607  ;;  %v911_v13 = vmul.f32 %v7599_v58, %v10809_v38  ;;  %v910_v5 = vmul.f32 %v7599_v58, %v10810_v44  ;;  %v7646_v8 = vadd.f32 %v729_v30, %v7495_v35  ;;  %v7652_v14 = vadd.f32 %v731_v3, %v7503_v63  ;;  %v10816_v44 = vld [vmem:[#allocation42_spill] sm:$0xff] }
 0x3e4   : > { %4164 = vperm.xlu1 %5821, %v5655_v15   ;;  %4159 = vperm.xlu0 %5820, %v5654_v54   ;;  %v7649_v15 = vadd.f32 %v732_v49, %v7500_v40  ;;  %v913_v28 = vmul.f32 %v7599_v58, %v6316_v12  ;;  %v7657_v39 = vadd.f32 %v734_v51, %v7512_v19  ;;  %v10811_v54 = vld [vmem:[#allocation37_spill] sm:$0xff] }
 0x3e5   : > { %v7660_v60 = vadd.f32 %v733_v31, %v7521_v24  ;;  %v912_v35 = vmul.f32 %v7599_v58, %v10811_v54  ;;  %v915_v40 = vmul.f32 %v7599_v58, %v6323_v1  ;;  %v7671_v12 = vadd.f32 %v909_v9, %v7524_v11  ;;  %v5659_v51 = vld [vmem:[%s5961_s28 + $0x88] sm:$0xf]  ;;  %v10814_v9 = vld [vmem:[#allocation40_spill] sm:$0xff] }
 0x3e6   : > { %v7674_v19 = vadd.f32 %v908_v26, %v7535_v29  ;;  %v914_v24 = vmul.f32 %v7599_v58, %v10812_v36  ;;  %v7679_v49 = vadd.f32 %v911_v13, %v7542_v4  ;;  %v7682_v1 = vadd.f32 %v910_v5, %v7545_v62  ;;  %v5658_v29 = vld [vmem:[%s5961_s28 + $0x80] sm:$0xff]  ;;  %v5661_v54 = vld [vmem:[%s5961_s28 + $0x98] sm:$0xf] }
 0x3e7   : > { %v7666_v30 = vpop.permute.xlu1 %3622  ;;  %v7668_v63 = vpop.permute.xlu0 %3617  ;;  %v917_v3 = vmul.f32 %v7599_v58, %v6328_v16  ;;  %v916_v11 = vmul.f32 %v7599_v58, %v10813_v21  ;;  %v7691_v0 = vadd.f32 %v913_v28, %v7554_v59  ;;  %v919_v31 = vmul.f32 %v7599_v58, %v6334_v18  ;;  %v10815_v26 = vld [vmem:[#allocation41_spill] sm:$0xff]  ;;  %v10818_v28 = vld [vmem:[#allocation44_spill] sm:$0xff]  ;;  %v10821_v21 = vld [vmem:[#allocation47_spill] sm:$0xff] }
 0x3e8   : > { %4174 = vperm.xlu1 %5821, %v5657_v42   ;;  %4169 = vperm.xlu0 %5820, %v5656_v37   ;;  %v918_v4 = vmul.f32 %v7599_v58, %v10814_v9  ;;  %v921_v62 = vmul.f32 %v7599_v58, %v6340_v20  ;;  %v7700_v16 = vadd.f32 %v912_v35, %v7557_v17  ;;  %v10817_v42 = vld [vmem:[#allocation43_spill] sm:$0xff]  ;;  %v10819_v36 = vld [vmem:[#allocation45_spill] sm:$0xff]  ;;  %v10822_v9 = vld [vmem:[#allocation48_spill] sm:$0xff] }
 0x3e9   : > { %v7703_v48 = vadd.f32 %v915_v40, %v7560_v50  ;;  %v920_v59 = vmul.f32 %v7599_v58, %v10815_v26  ;;  %v923_v18 = vmul.f32 %v7599_v58, %v6346_v22  ;;  %v7714_v20 = vadd.f32 %v914_v24, %v7565_v47  ;;  %v5660_v35 = vld [vmem:[%s5961_s28 + $0x90] sm:$0xff]  ;;  %v7746_v24 = vld [vmem:[%s10411_s1 + $0x4] ss:$0 sm:$0xff] }
 0x3ea   : > { %v922_v17 = vmul.f32 %v7599_v58, %v6348_v6  ;;  %v925_v50 = vmul.f32 %v7599_v58, %v10816_v44  ;;  %v7721_v5 = vadd.f32 %v917_v3, %v7568_v46  ;;  %v7724_v22 = vadd.f32 %v916_v11, %v7579_v10  ;;  %v10823_v26 = vld [vmem:[#allocation49_spill] sm:$0xff] }
 0x3eb   : > { %v7709_v38 = vpop.permute.xlu1 %3632  ;;  %v7711_v13 = vpop.permute.xlu0 %3627  ;;  %v924_v37 = vmul.f32 %v7599_v58, %v10817_v42  ;;  %v927_v47 = vmul.f32 %v7599_v58, %v10818_v28  ;;  %v7733_v6 = vadd.f32 %v919_v31, %v7582_v56  ;;  %v7736_v40 = vadd.f32 %v918_v4, %v7587_v61  ;;  %v10820_v61 = vld [vmem:[#allocation46_spill] sm:$0xff]  ;;  %v10826_v28 = vld [vmem:[#allocation52_spill] sm:$0xff] }
 0x3ec   : > { %4184 = vperm.xlu1 %5821, %v5659_v51   ;;  %4179 = vperm.xlu0 %5820, %v5658_v29   ;;  %v7739_v46 = vadd.f32 %v921_v62, %v7590_v25  ;;  %v926_v10 = vmul.f32 %v7599_v58, %v10819_v36  ;;  %v7749_v3 = vadd.f32 %v920_v59, %v7604_v52 }
 0x3ed   : > { %v7752_v56 = vadd.f32 %v923_v18, %v7613_v45  ;;  %v929_v25 = vmul.f32 %v7599_v58, %v10820_v61  ;;  %v928_v11 = vmul.f32 %v7599_v58, %v10821_v21  ;;  %v7763_v31 = vadd.f32 %v922_v17, %v7616_v27  ;;  %v10824_v18 = vld [vmem:[#allocation50_spill] sm:$0xff] }
 0x3ee   : > { %v7766_v52 = vadd.f32 %v925_v50, %v7627_v53  ;;  %v931_v45 = vmul.f32 %v7599_v58, %v10822_v9  ;;  %v7771_v4 = vadd.f32 %v924_v37, %v7634_v32  ;;  %v7774_v62 = vadd.f32 %v927_v47, %v7637_v7  ;;  %v5663_v17 = vld [vmem:[%s5961_s28 + $0xa8] sm:$0xf]  ;;  %v5662_v53 = vld [vmem:[%s5961_s28 + $0xa0] sm:$0xff]  ;;  %v10825_v50 = vld [vmem:[#allocation51_spill] sm:$0xff] }
 0x3ef   : > { %v7758_v51 = vpop.permute.xlu1 %3642  ;;  %v7760_v29 = vpop.permute.xlu0 %3637  ;;  %v930_v59 = vmul.f32 %v7599_v58, %v10823_v26  ;;  %v1106_v27 = vmul.f32 %v7746_v24, %v10824_v18  ;;  %v7783_v44 = vadd.f32 %v926_v10, %v7646_v8  ;;  %v1105_v42 = vmul.f32 %v7746_v24, %v10825_v50  ;;  %v10827_v37 = vld [vmem:[#allocation53_spill] sm:$0xff]  ;;  %v10830_v9 = vld [vmem:[#allocation56_spill] sm:$0xff]  ;;  %v10832_v18 = vld [vmem:[#allocation58_spill] sm:$0xff] }
 0x3f0   : > { %4194 = vperm.xlu1 %5821, %v5661_v54   ;;  %4189 = vperm.xlu0 %5820, %v5660_v35   ;;  %v1108_v32 = vmul.f32 %v7746_v24, %v10826_v28  ;;  %v1107_v7 = vmul.f32 %v7746_v24, %v10827_v37  ;;  %v7792_v58 = vadd.f32 %v929_v25, %v7649_v15  ;;  %v10828_v54 = vld [vmem:[#allocation54_spill] sm:$0xff]  ;;  %v10829_v35 = vld [vmem:[#allocation55_spill] sm:$0xff]  ;;  %v10831_v25 = vld [vmem:[#allocation57_spill] sm:$0xff] }
 0x3f1   : > { %v7795_v47 = vadd.f32 %v928_v11, %v7652_v14  ;;  %v1110_v8 = vmul.f32 %v7746_v24, %v10828_v54  ;;  %v1109_v36 = vmul.f32 %v7746_v24, %v10829_v35  ;;  %v7806_v21 = vadd.f32 %v931_v45, %v7657_v39  ;;  %v10833_v28 = vld [vmem:[#allocation59_spill] sm:$0xff]  ;;  %v10835_v35 = vld [vmem:[#allocation61_spill] sm:$0xff] }
 0x3f2   : > { %v1112_v15 = vmul.f32 %v7746_v24, %v10830_v9  ;;  %v1111_v14 = vmul.f32 %v7746_v24, %v10831_v25  ;;  %v7813_v11 = vadd.f32 %v930_v59, %v7660_v60  ;;  %v7816_v26 = vadd.f32 %v1106_v27, %v7671_v12  ;;  %v5665_v45 = vld [vmem:[%s5961_s28 + $0xb8] sm:$0xf]  ;;  %v5664_v37 = vld [vmem:[%s5961_s28 + $0xb0] sm:$0xff] }
 0x3f3   : > { %v7801_v10 = vpop.permute.xlu1 %3652  ;;  %v7803_v61 = vpop.permute.xlu0 %3647  ;;  %v1114_v50 = vmul.f32 %v7746_v24, %v10832_v18  ;;  %v1113_v39 = vmul.f32 %v7746_v24, %v10833_v28  ;;  %v7825_v54 = vadd.f32 %v1105_v42, %v7674_v19  ;;  %v7831_v60 = vadd.f32 %v1107_v7, %v7682_v1  ;;  %v10834_v59 = vld [vmem:[#allocation60_spill] sm:$0xff]  ;;  %v10836_v42 = vld [vmem:[#allocation62_spill] sm:$0xff]  ;;  %v10840_v28 = vld [vmem:[#allocation65_spill] sm:$0xff] }
 0x3f4   : > { %4204 = vperm.xlu1 %5821, %v5663_v17   ;;  %4199 = vperm.xlu0 %5820, %v5662_v53   ;;  %v7828_v17 = vadd.f32 %v1108_v32, %v7679_v49  ;;  %v1116_v12 = vmul.f32 %v7746_v24, %v10834_v59  ;;  %v7836_v27 = vadd.f32 %v1110_v8, %v7691_v0  ;;  %v10838_v8 = vld [vmem:[#allocation63_spill] sm:$0xff]  ;;  %v10839_v25 = vld [vmem:[#allocation64_spill] sm:$0xff]  ;;  %v10841_v59 = vld [vmem:[#allocation66_spill] sm:$0xff] }
 0x3f5   : > { %v7839_v53 = vadd.f32 %v1109_v36, %v7700_v16  ;;  %v1115_v19 = vmul.f32 %v7746_v24, %v10835_v35  ;;  %v1118_v49 = vmul.f32 %v7746_v24, %v10836_v42  ;;  %v7850_v7 = vadd.f32 %v1112_v15, %v7703_v48  ;;  %v5667_v15 = vld [vmem:[%s5961_s28 + $0xc8] sm:$0xf] }
 0x3f6   : > { %v7853_v0 = vadd.f32 %v1111_v14, %v7714_v20  ;;  %v1117_v16 = vmul.f32 %v7746_v24, %v10838_v8  ;;  %v7858_v36 = vadd.f32 %v1114_v50, %v7721_v5  ;;  %v7861_v9 = vadd.f32 %v1113_v39, %v7724_v22  ;;  %v5666_v20 = vld [vmem:[%s5961_s28 + $0xc0] sm:$0xff]  ;;  %v10845_v8 = vld [vmem:[#allocation70_spill] sm:$0xff] }
 0x3f7   : > { %v7845_v32 = vpop.permute.xlu1 %3662  ;;  %v7847_v1 = vpop.permute.xlu0 %3657  ;;  %v1120_v18 = vmul.f32 %v7746_v24, %v10839_v25  ;;  %v1119_v48 = vmul.f32 %v7746_v24, %v10840_v28  ;;  %v7870_v14 = vadd.f32 %v1116_v12, %v7733_v6  ;;  %v10843_v50 = vld [vmem:[#allocation68_spill] sm:$0xff]  ;;  %v7881_v39 = vld [vmem:[%s10411_s1 + $0x5] ss:$0 sm:$0xff]  ;;  %v7884_v35 = vadd.f32 %v1115_v19, %v7736_v40 }
 0x3f8   : > { %10837 = vst [vmem:[#allocation8_spill] sm:$0xff] %v7847_v1  ;;  %4214 = vperm.xlu1 %5821, %v5665_v45   ;;  %4209 = vperm.xlu0 %5820, %v5664_v37   ;;  %v1122_v45 = vmul.f32 %v7746_v24, %v10841_v59  ;;  %v10842_v37 = vld [vmem:[#allocation67_spill] sm:$0xff]  ;;  %v1124_v22 = vmul.f32 %v7746_v24, %v10843_v50  ;;  %v10844_v12 = vld [vmem:[#allocation69_spill] sm:$0xff]  ;;  %v10849_v19 = vld [vmem:[#allocation72_spill] sm:$0xff] }
 0x3f9   : > { %v1121_v5 = vmul.f32 %v7746_v24, %v10842_v37  ;;  %v7887_v6 = vadd.f32 %v1118_v49, %v7739_v46  ;;  %v1123_v42 = vmul.f32 %v7746_v24, %v10844_v12  ;;  %v1126_v25 = vmul.f32 %v7746_v24, %v10845_v8  ;;  %v10848_v50 = vld [vmem:[#allocation71_spill] sm:$0xff]  ;;  %v10850_v8 = vld [vmem:[#allocation73_spill] sm:$0xff] }
 0x3fa   : > { %v7898_v37 = vadd.f32 %v1117_v16, %v7749_v3  ;;  %v1125_v40 = vmul.f32 %v7746_v24, %v10848_v50  ;;  %v1128_v46 = vmul.f32 %v7746_v24, %v10849_v19  ;;  %v7905_v49 = vadd.f32 %v1120_v18, %v7752_v56  ;;  %v5669_v16 = vld [vmem:[%s5961_s28 + $0xd8] sm:$0xf]  ;;  %v5668_v1 = vld [vmem:[%s5961_s28 + $0xd0] sm:$0xff] }
 0x3fb   : > { %v7893_v28 = vpop.permute.xlu1 %3749  ;;  %v7895_v59 = vpop.permute.xlu0 %3744  ;;  %v7908_v12 = vadd.f32 %v1119_v48, %v7763_v31  ;;  %v7917_v50 = vadd.f32 %v1122_v45, %v7766_v52  ;;  %v7923_v56 = vadd.f32 %v1124_v22, %v7774_v62  ;;  %v10852_v18 = vld [vmem:[#allocation75_spill] sm:$0xff]  ;;  %v7931_v48 = vadd.f32 %v1126_v25, %v7792_v58  ;;  %v10854_v45 = vld [vmem:[#allocation77_spill] sm:$0xff] }
 0x3fc   : > { %10846 = vst [vmem:[#allocation9_spill] sm:$0xff] %v7893_v28  ;;  %10847 = vst [vmem:[#allocation10_spill] sm:$0xff] %v7895_v59  ;;  %4224 = vperm.xlu1 %5821, %v5667_v15   ;;  %4219 = vperm.xlu0 %5820, %v5666_v20   ;;  %v1127_v59 = vmul.f32 %v7746_v24, %v10850_v8  ;;  %v10851_v28 = vld [vmem:[#allocation74_spill] sm:$0xff]  ;;  %v7920_v15 = vadd.f32 %v1121_v5, %v7771_v4  ;;  %v10853_v20 = vld [vmem:[#allocation76_spill] sm:$0xff] }
 0x3fd   : > { %v1304_v3 = vmul.f32 %v7881_v39, %v10851_v28  ;;  %v1303_v31 = vmul.f32 %v7881_v39, %v10852_v18  ;;  %v7928_v24 = vadd.f32 %v1123_v42, %v7783_v44  ;;  %v1306_v52 = vmul.f32 %v7881_v39, %v10853_v20  ;;  %v10857_v42 = vld [vmem:[#allocation78_spill] sm:$0xff]  ;;  %v10858_v19 = vld [vmem:[#allocation79_spill] sm:$0xff]  ;;  %v10859_v18 = vld [vmem:[#allocation80_spill] sm:$0xff] }
 0x3fe   : > { %v1305_v4 = vmul.f32 %v7881_v39, %v10854_v45  ;;  %v7942_v22 = vadd.f32 %v1125_v40, %v7795_v47  ;;  %v7945_v44 = vadd.f32 %v1128_v46, %v7806_v21  ;;  %v1308_v58 = vmul.f32 %v7881_v39, %v10857_v42  ;;  %v5671_v40 = vld [vmem:[%s5961_s28 + $0xe8] sm:$0xf]  ;;  %v5670_v21 = vld [vmem:[%s5961_s28 + $0xe0] sm:$0xff] }
 0x3ff   : > { %v7937_v5 = vpop.permute.xlu1 %3759  ;;  %v7939_v62 = vpop.permute.xlu0 %3754  ;;  %v7950_v25 = vadd.f32 %v1127_v59, %v7813_v11  ;;  %v7953_v28 = vadd.f32 %v1304_v3, %v7816_v26  ;;  %v1307_v8 = vmul.f32 %v7881_v39, %v10858_v19  ;;  %v1310_v47 = vmul.f32 %v7881_v39, %v10859_v18  ;;  %v10860_v20 = vld [vmem:[#allocation81_spill] sm:$0xff]  ;;  %v10862_v59 = vld [vmem:[#allocation83_spill] sm:$0xff]  ;;  %v10863_v42 = vld [vmem:[#allocation84_spill] sm:$0xff] }
 0x400   : > { %10855 = vst [vmem:[#allocation11_spill] sm:$0xff] %v7937_v5  ;;  %10856 = vst [vmem:[#allocation12_spill] sm:$0xff] %v7939_v62  ;;  %4234 = vperm.xlu1 %5821, %v5669_v16   ;;  %4229 = vperm.xlu0 %5820, %v5668_v1   ;;  %v7962_v46 = vadd.f32 %v1303_v31, %v7825_v54  ;;  %v1309_v1 = vmul.f32 %v7881_v39, %v10860_v20  ;;  %v10861_v16 = vld [vmem:[#allocation82_spill] sm:$0xff]  ;;  %v10864_v31 = vld [vmem:[#allocation85_spill] sm:$0xff] }
 0x401   : > { %v1312_v11 = vmul.f32 %v7881_v39, %v10861_v16  ;;  %v1311_v26 = vmul.f32 %v7881_v39, %v10862_v59  ;;  %v7971_v3 = vadd.f32 %v1306_v52, %v7828_v17  ;;  %v7974_v45 = vadd.f32 %v1305_v4, %v7831_v60  ;;  %v10867_v59 = vld [vmem:[#allocation86_spill] sm:$0xff]  ;;  %v10868_v52 = vld [vmem:[#allocation87_spill] sm:$0xff] }
 0x402   : > { %v1314_v54 = vmul.f32 %v7881_v39, %v10863_v42  ;;  %v1313_v19 = vmul.f32 %v7881_v39, %v10864_v31  ;;  %v7985_v16 = vadd.f32 %v1308_v58, %v7836_v27  ;;  %v1316_v17 = vmul.f32 %v7881_v39, %v10867_v59  ;;  %v10869_v31 = vld [vmem:[#allocation88_spill] sm:$0xff]  ;;  %v5672_v62 = vld [vmem:[%s5961_s28 + $0xf0] sm:$0xff] }
 0x403   : > { %v7980_v18 = vpop.permute.xlu1 %3769  ;;  %v7982_v20 = vpop.permute.xlu0 %3764  ;;  %v1315_v60 = vmul.f32 %v7881_v39, %v10868_v52  ;;  %v7992_v4 = vadd.f32 %v1307_v8, %v7839_v53  ;;  %v7995_v42 = vadd.f32 %v1310_v47, %v7850_v7  ;;  %v5673_v58 = vld [vmem:[%s5961_s28 + $0xf8] sm:$0xf]  ;;  %v8004_v59 = vadd.f32 %v1309_v1, %v7853_v0  ;;  %v10871_v8 = vld [vmem:[#allocation90_spill] sm:$0xff] }
 0x404   : > { %10865 = vst [vmem:[#allocation13_spill] sm:$0xff] %v7980_v18  ;;  %10866 = vst [vmem:[#allocation14_spill] sm:$0xff] %v7982_v20  ;;  %4244 = vperm.xlu1 %5821, %v5671_v40   ;;  %4239 = vperm.xlu0 %5820, %v5670_v21   ;;  %v1318_v20 = vmul.f32 %v7881_v39, %v10869_v31  ;;  %v10870_v18 = vld [vmem:[#allocation89_spill] sm:$0xff]  ;;  %v8007_v40 = vadd.f32 %v1312_v11, %v7858_v36  ;;  %v10873_v1 = vld [vmem:[#allocation92_spill] sm:$0xff] }
 0x405   : > { %v1317_v27 = vmul.f32 %v7881_v39, %v10870_v18  ;;  %v8010_v53 = vadd.f32 %v1311_v26, %v7861_v9  ;;  %v1320_v7 = vmul.f32 %v7881_v39, %v10871_v8  ;;  %v8015_v47 = vadd.f32 %v1314_v54, %v7870_v14  ;;  %v10872_v18 = vld [vmem:[#allocation91_spill] sm:$0xff]  ;;  %v8027_v9 = vld [vmem:[%s10411_s1 + $0x6] ss:$0 sm:$0xff]  ;;  %v10877_v8 = vld [vmem:[#allocation94_spill] sm:$0xff] }
 0x406   : > { %v8018_v21 = vadd.f32 %v1313_v19, %v7884_v35  ;;  %v1319_v0 = vmul.f32 %v7881_v39, %v10872_v18  ;;  %v1322_v36 = vmul.f32 %v7881_v39, %v10873_v1  ;;  %v8034_v26 = vadd.f32 %v1316_v17, %v7887_v6  ;;  %v10876_v54 = vld [vmem:[#allocation93_spill] sm:$0xff]  ;;  %v10878_v1 = vld [vmem:[#allocation95_spill] sm:$0xff] }
 0x407   : > { %v8029_v11 = vpop.permute.xlu1 %3779  ;;  %v8031_v14 = vpop.permute.xlu0 %3774  ;;  %v8037_v35 = vadd.f32 %v1315_v60, %v7898_v37  ;;  %v1321_v19 = vmul.f32 %v7881_v39, %v10876_v54  ;;  %v8042_v52 = vadd.f32 %v1318_v20, %v7905_v49  ;;  %v8045_v31 = vadd.f32 %v1317_v27, %v7908_v12  ;;  %v5676_v17 = vld [vmem:[%s5961_s28 + $0x49] sm:$0xf]  ;;  %v5675_v37 = vld [vmem:[%s5961_s28 + $0x41] sm:$0xff]  ;;  %v5702_v5 = vld [vmem:[%s5961_s28 + $0x52] sm:$0xff] }
 0x408   : > { %10874 = vst [vmem:[#allocation15_spill] sm:$0xff] %v8029_v11  ;;  %10875 = vst [vmem:[#allocation16_spill] sm:$0xff] %v8031_v14  ;;  %4254 = vperm.xlu1 %5821, %v5673_v58   ;;  %4249 = vperm.xlu0 %5820, %v5672_v62   ;;  %v1324_v18 = vmul.f32 %v7881_v39, %v10877_v8  ;;  %v1323_v6 = vmul.f32 %v7881_v39, %v10878_v1  ;;  %v10879_v54 = vld [vmem:[#allocation96_spill] sm:$0xff]  ;;  %v10880_v58 = vld [vmem:[#allocation97_spill] sm:$0xff] }
 0x409   : > { %v8054_v60 = vadd.f32 %v1320_v7, %v7917_v50  ;;  %v1326_v62 = vmul.f32 %v7881_v39, %v10879_v54  ;;  %v1325_v49 = vmul.f32 %v7881_v39, %v10880_v58  ;;  %v10881_v20 = vld [vmem:[#allocation98_spill] sm:$0xff]  ;;  %v8063_v27 = vadd.f32 %v1319_v0, %v7920_v15  ;;  %v10882_v1 = vld [vmem:[#allocation99_spill] sm:$0xff]  ;;  %v10883_v7 = vld [vmem:[#allocation100_spill] sm:$0xff] }
 0x40a   : > { %v1501_v12 = vmul.f32 %v8027_v9, %v10881_v20  ;;  %v8066_v8 = vadd.f32 %v1322_v36, %v7923_v56  ;;  %v1500_v50 = vmul.f32 %v8027_v9, %v10882_v1  ;;  %v1503_v54 = vmul.f32 %v8027_v9, %v10883_v7  ;;  %v10886_v20 = vld [vmem:[#allocation101_spill] sm:$0xff]  ;;  %v10887_v0 = vld [vmem:[#allocation102_spill] sm:$0xff]  ;;  %v10888_v7 = vld [vmem:[#allocation103_spill] sm:$0xff] }
 0x40b   : > { %v8072_v14 = vpop.permute.xlu1 %3789  ;;  %v8074_v39 = vpop.permute.xlu0 %3784  ;;  %v8077_v58 = vadd.f32 %v1321_v19, %v7928_v24  ;;  %v1502_v15 = vmul.f32 %v8027_v9, %v10886_v20  ;;  %v1505_v56 = vmul.f32 %v8027_v9, %v10887_v0  ;;  %v8084_v36 = vadd.f32 %v1324_v18, %v7931_v48  ;;  %v5678_v19 = vld [vmem:[%s5961_s28 + $0x59] sm:$0xf]  ;;  %v5677_v11 = vld [vmem:[%s5961_s28 + $0x51] sm:$0xff]  ;;  %v10890_v18 = vld [vmem:[#allocation105_spill] sm:$0xff] }
 0x40c   : > { %10884 = vst [vmem:[#allocation17_spill] sm:$0xff] %v8072_v14  ;;  %10885 = vst [vmem:[#allocation18_spill] sm:$0xff] %v8074_v39  ;;  %4341 = vperm.xlu1 %5821, %v5676_v17   ;;  %4336 = vperm.xlu0 %5820, %v5675_v37   ;;  %v8087_v1 = vadd.f32 %v1323_v6, %v7942_v22  ;;  %v1504_v39 = vmul.f32 %v8027_v9, %v10888_v7  ;;  %v10889_v14 = vld [vmem:[#allocation104_spill] sm:$0xff]  ;;  %v10891_v37 = vld [vmem:[#allocation106_spill] sm:$0xff] }
 0x40d   : > { %v1507_v24 = vmul.f32 %v8027_v9, %v10889_v14  ;;  %v8096_v20 = vadd.f32 %v1326_v62, %v7945_v44  ;;  %v8099_v17 = vadd.f32 %v1325_v49, %v7950_v25  ;;  %v8102_v48 = vadd.f32 %v1501_v12, %v7953_v28  ;;  %v10892_v62 = vld [vmem:[#allocation107_spill] sm:$0xff]  ;;  %v10896_v7 = vld [vmem:[#allocation109_spill] sm:$0xff] }
 0x40e   : > { %v1506_v22 = vmul.f32 %v8027_v9, %v10890_v18  ;;  %v8107_v6 = vadd.f32 %v1500_v50, %v7962_v46  ;;  %v8110_v14 = vadd.f32 %v1503_v54, %v7971_v3  ;;  %v1509_v44 = vmul.f32 %v8027_v9, %v10891_v37  ;;  %v10895_v50 = vld [vmem:[#allocation108_spill] sm:$0xff]  ;;  %v10897_v37 = vld [vmem:[#allocation110_spill] sm:$0xff] }
 0x40f   : > { %v1508_v25 = vmul.f32 %v8027_v9, %v10892_v62  ;;  %v8116_v49 = vpop.permute.xlu1 %3799  ;;  %v8118_v28 = vpop.permute.xlu0 %3794  ;;  %v8121_v12 = vadd.f32 %v1502_v15, %v7974_v45  ;;  %v8124_v46 = vadd.f32 %v1505_v56, %v7985_v16  ;;  %v1511_v3 = vmul.f32 %v8027_v9, %v10895_v50  ;;  %v5680_v15 = vld [vmem:[%s5961_s28 + $0x69] sm:$0xf]  ;;  %v5679_v16 = vld [vmem:[%s5961_s28 + $0x61] sm:$0xff]  ;;  %v10898_v62 = vld [vmem:[#allocation111_spill] sm:$0xff] }
 0x410   : > { %10893 = vst [vmem:[#allocation19_spill] sm:$0xff] %v8116_v49  ;;  %10894 = vst [vmem:[#allocation20_spill] sm:$0xff] %v8118_v28  ;;  %4351 = vperm.xlu1 %5821, %v5678_v19   ;;  %4346 = vperm.xlu0 %5820, %v5677_v11   ;;  %v8129_v54 = vadd.f32 %v1504_v39, %v7992_v4  ;;  %v8132_v0 = vadd.f32 %v1507_v24, %v7995_v42  ;;  %v10899_v19 = vld [vmem:[#allocation112_spill] sm:$0xff]  ;;  %v10900_v39 = vld [vmem:[#allocation113_spill] sm:$0xff] }
 0x411   : > { %v1510_v18 = vmul.f32 %v8027_v9, %v10896_v7  ;;  %v1513_v45 = vmul.f32 %v8027_v9, %v10897_v37  ;;  %v8141_v56 = vadd.f32 %v1506_v22, %v8004_v59  ;;  %v1512_v11 = vmul.f32 %v8027_v9, %v10898_v62  ;;  %v10901_v7 = vld [vmem:[#allocation114_spill] sm:$0xff]  ;;  %v10902_v22 = vld [vmem:[#allocation115_spill] sm:$0xff]  ;;  %v10906_v28 = vld [vmem:[#allocation117_spill] sm:$0xff] }
 0x412   : > { %v1515_v4 = vmul.f32 %v8027_v9, %v10899_v19  ;;  %v1514_v42 = vmul.f32 %v8027_v9, %v10900_v39  ;;  %v8150_v24 = vadd.f32 %v1509_v44, %v8007_v40  ;;  %v8153_v50 = vadd.f32 %v1508_v25, %v8010_v53  ;;  %v10905_v40 = vld [vmem:[#allocation116_spill] sm:$0xff]  ;;  %v8173_v25 = vld [vmem:[%s10411_s1 + $0x7] ss:$0 sm:$0xff] }
 0x413   : > { %v1517_v59 = vmul.f32 %v8027_v9, %v10901_v7  ;;  %v1516_v37 = vmul.f32 %v8027_v9, %v10902_v22  ;;  %v8159_v62 = vpop.permute.xlu1 %3809  ;;  %v8161_v19 = vpop.permute.xlu0 %3804  ;;  %v8164_v39 = vadd.f32 %v1511_v3, %v8015_v47  ;;  %v1519_v44 = vmul.f32 %v8027_v9, %v10905_v40  ;;  %v10907_v47 = vld [vmem:[#allocation118_spill] sm:$0xff]  ;;  %v10908_v40 = vld [vmem:[#allocation119_spill] sm:$0xff] }
 0x414   : > { %10903 = vst [vmem:[#allocation21_spill] sm:$0xff] %v8159_v62  ;;  %10904 = vst [vmem:[#allocation22_spill] sm:$0xff] %v8161_v19  ;;  %v1518_v53 = vmul.f32 %v8027_v9, %v10906_v28  ;;  %4361 = vperm.xlu1 %5821, %v5680_v15   ;;  %4356 = vperm.xlu0 %5820, %v5679_v16   ;;  %v8176_v7 = vadd.f32 %v1510_v18, %v8018_v21  ;;  %v5682_v28 = vld [vmem:[%s5961_s28 + $0x79] sm:$0xf]  ;;  %v5681_v62 = vld [vmem:[%s5961_s28 + $0x71] sm:$0xff] }
 0x415   : > { %v8179_v22 = vadd.f32 %v1513_v45, %v8034_v26  ;;  %v1521_v3 = vmul.f32 %v8027_v9, %v10907_v47  ;;  %v1520_v19 = vmul.f32 %v8027_v9, %v10908_v40  ;;  %v8188_v49 = vadd.f32 %v1512_v11, %v8037_v35  ;;  %v10909_v18 = vld [vmem:[#allocation120_spill] sm:$0xff]  ;;  %v10910_v47 = vld [vmem:[#allocation121_spill] sm:$0xff]  ;;  %v10911_v11 = vld [vmem:[#allocation122_spill] sm:$0xff] }
 0x416   : > { %v8191_v15 = vadd.f32 %v1515_v4, %v8042_v52  ;;  %v8194_v21 = vadd.f32 %v1514_v42, %v8045_v31  ;;  %v1523_v26 = vmul.f32 %v8027_v9, %v10909_v18  ;;  %v8199_v45 = vadd.f32 %v1517_v59, %v8054_v60  ;;  %v10914_v59 = vld [vmem:[#allocation123_spill] sm:$0xff]  ;;  %v10915_v40 = vld [vmem:[#allocation124_spill] sm:$0xff] }
 0x417   : > { %v8202_v16 = vadd.f32 %v1516_v37, %v8063_v27  ;;  %v1522_v35 = vmul.f32 %v8027_v9, %v10910_v47  ;;  %v1698_v52 = vmul.f32 %v8173_v25, %v10911_v11  ;;  %v8208_v4 = vpop.permute.xlu1 %3819  ;;  %v8210_v31 = vpop.permute.xlu0 %3814  ;;  %v8213_v42 = vadd.f32 %v1519_v44, %v8066_v8  ;;  %v10916_v47 = vld [vmem:[#allocation125_spill] sm:$0xff]  ;;  %v10917_v11 = vld [vmem:[#allocation126_spill] sm:$0xff] }
 0x418   : > { %10912 = vst [vmem:[#allocation23_spill] sm:$0xff] %v8208_v4  ;;  %10913 = vst [vmem:[#allocation24_spill] sm:$0xff] %v8210_v31  ;;  %v8216_v60 = vadd.f32 %v1518_v53, %v8077_v58  ;;  %v1697_v27 = vmul.f32 %v8173_v25, %v10914_v59  ;;  %4371 = vperm.xlu1 %5821, %v5682_v28   ;;  %4366 = vperm.xlu0 %5820, %v5681_v62   ;;  %v5684_v44 = vld [vmem:[%s5961_s28 + $0x89] sm:$0xf]  ;;  %v5683_v58 = vld [vmem:[%s5961_s28 + $0x81] sm:$0xff] }
 0x419   : > { %v8221_v9 = vadd.f32 %v1521_v3, %v8084_v36  ;;  %v8224_v37 = vadd.f32 %v1520_v19, %v8087_v1  ;;  %v1700_v18 = vmul.f32 %v8173_v25, %v10915_v40  ;;  %v1699_v8 = vmul.f32 %v8173_v25, %v10916_v47  ;;  %v10918_v28 = vld [vmem:[#allocation127_spill] sm:$0xff]  ;;  %v10919_v3 = vld [vmem:[#allocation128_spill] sm:$0xff]  ;;  %v10920_v40 = vld [vmem:[#allocation129_spill] sm:$0xff] }
 0x41a   : > { %v8233_v53 = vadd.f32 %v1523_v26, %v8096_v20  ;;  %v1702_v62 = vmul.f32 %v8173_v25, %v10917_v11  ;;  %v1701_v36 = vmul.f32 %v8173_v25, %v10918_v28  ;;  %v1704_v1 = vmul.f32 %v8173_v25, %v10919_v3  ;;  %v10921_v26 = vld [vmem:[#allocation130_spill] sm:$0xff]  ;;  %v10924_v31 = vld [vmem:[#allocation131_spill] sm:$0xff] }
 0x41b   : > { %v8242_v19 = vadd.f32 %v1522_v35, %v8099_v17  ;;  %v8245_v59 = vadd.f32 %v1698_v52, %v8102_v48  ;;  %v1703_v20 = vmul.f32 %v8173_v25, %v10920_v40  ;;  %v1706_v47 = vmul.f32 %v8173_v25, %v10921_v26  ;;  %v8251_v11 = vpop.permute.xlu1 %3829  ;;  %v8253_v28 = vpop.permute.xlu0 %3824  ;;  %v10925_v35 = vld [vmem:[#allocation132_spill] sm:$0xff]  ;;  %v10926_v26 = vld [vmem:[#allocation133_spill] sm:$0xff]  ;;  %v5685_v4 = vld [vmem:[%s5961_s28 + $0x91] sm:$0xff] }
 0x41c   : > { %10922 = vst [vmem:[#allocation25_spill] sm:$0xff] %v8251_v11  ;;  %10923 = vst [vmem:[#allocation26_spill] sm:$0xff] %v8253_v28  ;;  %v8256_v3 = vadd.f32 %v1697_v27, %v8107_v6  ;;  %v1705_v17 = vmul.f32 %v8173_v25, %v10924_v31  ;;  %v1708_v48 = vmul.f32 %v8173_v25, %v10925_v35  ;;  %4381 = vperm.xlu1 %5821, %v5684_v44   ;;  %v10927_v11 = vld [vmem:[#allocation134_spill] sm:$0xff]  ;;  %v5686_v27 = vld [vmem:[%s5961_s28 + $0x99] sm:$0xf] }
 0x41d   : > { %4376 = vperm.xlu0 %5820, %v5683_v58   ;;  %v8263_v52 = vadd.f32 %v1700_v18, %v8110_v14  ;;  %v8266_v40 = vadd.f32 %v1699_v8, %v8121_v12  ;;  %v1707_v28 = vmul.f32 %v8173_v25, %v10926_v26  ;;  %v1710_v6 = vmul.f32 %v8173_v25, %v10927_v11  ;;  %v10928_v18 = vld [vmem:[#allocation135_spill] sm:$0xff]  ;;  %v10929_v11 = vld [vmem:[#allocation136_spill] sm:$0xff] }
 0x41e   : > { %v8275_v31 = vadd.f32 %v1702_v62, %v8124_v46  ;;  %v8278_v44 = vadd.f32 %v1701_v36, %v8129_v54  ;;  %v8281_v14 = vadd.f32 %v1704_v1, %v8132_v0  ;;  %v1709_v12 = vmul.f32 %v8173_v25, %v10928_v18  ;;  %v10930_v62 = vld [vmem:[#allocation137_spill] sm:$0xff]  ;;  %v10934_v26 = vld [vmem:[#allocation139_spill] sm:$0xff] }
 0x41f   : > { %v8286_v8 = vadd.f32 %v1703_v20, %v8141_v56  ;;  %v8289_v58 = vadd.f32 %v1706_v47, %v8150_v24  ;;  %v1712_v46 = vmul.f32 %v8173_v25, %v10929_v11  ;;  %v1711_v54 = vmul.f32 %v8173_v25, %v10930_v62  ;;  %v8295_v36 = vpop.permute.xlu1 %3839  ;;  %v8297_v0 = vpop.permute.xlu0 %3834  ;;  %v10933_v20 = vld [vmem:[#allocation138_spill] sm:$0xff]  ;;  %v10935_v11 = vld [vmem:[#allocation140_spill] sm:$0xff] }
 0x420   : > { %10931 = vst [vmem:[#allocation27_spill] sm:$0xff] %v8295_v36  ;;  %10932 = vst [vmem:[#allocation28_spill] sm:$0xff] %v8297_v0  ;;  %v8300_v1 = vadd.f32 %v1705_v17, %v8153_v50  ;;  %v8303_v56 = vadd.f32 %v1708_v48, %v8164_v39  ;;  %v1714_v24 = vmul.f32 %v8173_v25, %v10933_v20  ;;  %4391 = vperm.xlu1 %5821, %v5686_v27   ;;  %v8320_v39 = vld [vmem:[%s10411_s1 + $0x8] ss:$0 sm:$0xff]  ;;  %v5688_v17 = vld [vmem:[%s5961_s28 + $0xa9] sm:$0xf] }
 0x421   : > { %4386 = vperm.xlu0 %5820, %v5685_v4   ;;  %v8308_v47 = vadd.f32 %v1707_v28, %v8176_v7  ;;  %v8311_v35 = vadd.f32 %v1710_v6, %v8179_v22  ;;  %v1713_v18 = vmul.f32 %v8173_v25, %v10934_v26  ;;  %v1716_v50 = vmul.f32 %v8173_v25, %v10935_v11  ;;  %v5687_v48 = vld [vmem:[%s5961_s28 + $0xa1] sm:$0xff]  ;;  %v10937_v28 = vld [vmem:[#allocation142_spill] sm:$0xff]  ;;  %v10938_v27 = vld [vmem:[#allocation143_spill] sm:$0xff] }
 0x422   : > { %v8325_v4 = vadd.f32 %v1709_v12, %v8188_v49  ;;  %v10936_v7 = vld [vmem:[#allocation141_spill] sm:$0xff]  ;;  %v1718_v6 = vmul.f32 %v8173_v25, %v10937_v28  ;;  %v1717_v62 = vmul.f32 %v8173_v25, %v10938_v27  ;;  %v8334_v20 = vadd.f32 %v1712_v46, %v8191_v15  ;;  %v10939_v11 = vld [vmem:[#allocation144_spill] sm:$0xff]  ;;  %v10943_v36 = vld [vmem:[#allocation146_spill] sm:$0xff] }
 0x423   : > { %v1715_v22 = vmul.f32 %v8173_v25, %v10936_v7  ;;  %v8337_v26 = vadd.f32 %v1711_v54, %v8194_v21  ;;  %v1720_v49 = vmul.f32 %v8173_v25, %v10939_v11  ;;  %v10940_v12 = vld [vmem:[#allocation145_spill] sm:$0xff]  ;;  %v8343_v0 = vpop.permute.xlu1 %3849  ;;  %v8345_v28 = vpop.permute.xlu0 %3844  ;;  %v8348_v27 = vadd.f32 %v1714_v24, %v8199_v45  ;;  %v10944_v46 = vld [vmem:[#allocation147_spill] sm:$0xff]  ;;  %v10945_v11 = vld [vmem:[#allocation148_spill] sm:$0xff] }
 0x424   : > { %v1719_v7 = vmul.f32 %v8173_v25, %v10940_v12  ;;  %10941 = vst [vmem:[#allocation29_spill] sm:$0xff] %v8343_v0  ;;  %10942 = vst [vmem:[#allocation30_spill] sm:$0xff] %v8345_v28  ;;  %v1895_v15 = vmul.f32 %v8320_v39, %v10943_v36  ;;  %v1894_v21 = vmul.f32 %v8320_v39, %v10944_v46  ;;  %4401 = vperm.xlu1 %5821, %v5688_v17   ;;  %v10946_v28 = vld [vmem:[#allocation149_spill] sm:$0xff]  ;;  %v5690_v24 = vld [vmem:[%s5961_s28 + $0xb9] sm:$0xf] }
 0x425   : > { %4396 = vperm.xlu0 %5820, %v5687_v48   ;;  %v8355_v54 = vadd.f32 %v1713_v18, %v8202_v16  ;;  %v8358_v25 = vadd.f32 %v1716_v50, %v8213_v42  ;;  %v1897_v12 = vmul.f32 %v8320_v39, %v10945_v11  ;;  %v1896_v45 = vmul.f32 %v8320_v39, %v10946_v28  ;;  %v5689_v0 = vld [vmem:[%s5961_s28 + $0xb1] sm:$0xff] }
 0x426   : > { %v8367_v36 = vadd.f32 %v1715_v22, %v8216_v60  ;;  %v8370_v17 = vadd.f32 %v1718_v6, %v8221_v9  ;;  %v8373_v16 = vadd.f32 %v1717_v62, %v8224_v37  ;;  %v10947_v18 = vld [vmem:[#allocation150_spill] sm:$0xff]  ;;  %v8378_v50 = vadd.f32 %v1720_v49, %v8233_v53  ;;  %v10948_v28 = vld [vmem:[#allocation151_spill] sm:$0xff]  ;;  %v10949_v22 = vld [vmem:[#allocation152_spill] sm:$0xff] }
 0x427   : > { %v1899_v42 = vmul.f32 %v8320_v39, %v10947_v18  ;;  %v8381_v48 = vadd.f32 %v1719_v7, %v8242_v19  ;;  %v1898_v60 = vmul.f32 %v8320_v39, %v10948_v28  ;;  %v1901_v9 = vmul.f32 %v8320_v39, %v10949_v22  ;;  %v8387_v6 = vpop.permute.xlu1 %3859  ;;  %v8389_v37 = vpop.permute.xlu0 %3854  ;;  %v10952_v49 = vld [vmem:[#allocation153_spill] sm:$0xff]  ;;  %v10953_v11 = vld [vmem:[#allocation154_spill] sm:$0xff]  ;;  %v10954_v28 = vld [vmem:[#allocation155_spill] sm:$0xff] }
 0x428   : > { %10950 = vst [vmem:[#allocation31_spill] sm:$0xff] %v8387_v6  ;;  %10951 = vst [vmem:[#allocation32_spill] sm:$0xff] %v8389_v37  ;;  %v8392_v62 = vadd.f32 %v1895_v15, %v8245_v59  ;;  %v8395_v53 = vadd.f32 %v1894_v21, %v8256_v3  ;;  %v1900_v19 = vmul.f32 %v8320_v39, %v10952_v49  ;;  %4411 = vperm.xlu1 %5821, %v5690_v24   ;;  %v5692_v15 = vld [vmem:[%s5961_s28 + $0xc9] sm:$0xf]  ;;  %v5691_v3 = vld [vmem:[%s5961_s28 + $0xc1] sm:$0xff] }
 0x429   : > { %4406 = vperm.xlu0 %5820, %v5689_v0   ;;  %v8400_v7 = vadd.f32 %v1897_v12, %v8263_v52  ;;  %v8403_v46 = vadd.f32 %v1896_v45, %v8266_v40  ;;  %v1903_v18 = vmul.f32 %v8320_v39, %v10953_v11  ;;  %v1902_v59 = vmul.f32 %v8320_v39, %v10954_v28  ;;  %v10955_v22 = vld [vmem:[#allocation156_spill] sm:$0xff]  ;;  %v10956_v24 = vld [vmem:[#allocation157_spill] sm:$0xff]  ;;  %v10957_v12 = vld [vmem:[#allocation158_spill] sm:$0xff] }
 0x42a   : > { %v8412_v21 = vadd.f32 %v1899_v42, %v8275_v31  ;;  %v1905_v0 = vmul.f32 %v8320_v39, %v10955_v22  ;;  %v1904_v52 = vmul.f32 %v8320_v39, %v10956_v24  ;;  %v1907_v40 = vmul.f32 %v8320_v39, %v10957_v12  ;;  %v10958_v11 = vld [vmem:[#allocation159_spill] sm:$0xff]  ;;  %v10959_v42 = vld [vmem:[#allocation160_spill] sm:$0xff]  ;;  %v10962_v37 = vld [vmem:[#allocation161_spill] sm:$0xff] }
 0x42b   : > { %v8421_v45 = vadd.f32 %v1898_v60, %v8278_v44  ;;  %v8424_v49 = vadd.f32 %v1901_v9, %v8281_v14  ;;  %v1906_v31 = vmul.f32 %v8320_v39, %v10958_v11  ;;  %v1909_v28 = vmul.f32 %v8320_v39, %v10959_v42  ;;  %v8430_v22 = vpop.permute.xlu1 %3946  ;;  %v8432_v24 = vpop.permute.xlu0 %3941  ;;  %v10963_v60 = vld [vmem:[#allocation162_spill] sm:$0xff]  ;;  %v10964_v42 = vld [vmem:[#allocation163_spill] sm:$0xff] }
 0x42c   : > { %10960 = vst [vmem:[#allocation33_spill] sm:$0xff] %v8430_v22  ;;  %10961 = vst [vmem:[#allocation34_spill] sm:$0xff] %v8432_v24  ;;  %v8435_v12 = vadd.f32 %v1900_v19, %v8286_v8  ;;  %v1908_v44 = vmul.f32 %v8320_v39, %v10962_v37  ;;  %v1911_v14 = vmul.f32 %v8320_v39, %v10963_v60  ;;  %4421 = vperm.xlu1 %5821, %v5692_v15   ;;  %v10965_v22 = vld [vmem:[#allocation164_spill] sm:$0xff]  ;;  %v5693_v6 = vld [vmem:[%s5961_s28 + $0xd1] sm:$0xff] }
 0x42d   : > { %4416 = vperm.xlu0 %5820, %v5691_v3   ;;  %v8442_v9 = vadd.f32 %v1903_v18, %v8289_v58  ;;  %v8445_v11 = vadd.f32 %v1902_v59, %v8300_v1  ;;  %v1910_v24 = vmul.f32 %v8320_v39, %v10964_v42  ;;  %v1913_v8 = vmul.f32 %v8320_v39, %v10965_v22  ;;  %v5694_v19 = vld [vmem:[%s5961_s28 + $0xd9] sm:$0xf]  ;;  %v10966_v18 = vld [vmem:[#allocation165_spill] sm:$0xff] }
 0x42e   : > { %v8454_v37 = vadd.f32 %v1905_v0, %v8303_v56  ;;  %v8457_v15 = vadd.f32 %v1904_v52, %v8308_v47  ;;  %v8460_v58 = vadd.f32 %v1907_v40, %v8311_v35  ;;  %v1912_v1 = vmul.f32 %v8320_v39, %v10966_v18  ;;  %v8467_v59 = vld [vmem:[%s10411_s1 + $0x9] ss:$0 sm:$0xff]  ;;  %v10967_v47 = vld [vmem:[#allocation166_spill] sm:$0xff]  ;;  %v10968_v0 = vld [vmem:[#allocation167_spill] sm:$0xff] }
 0x42f   : > { %v8470_v3 = vadd.f32 %v1906_v31, %v8325_v4  ;;  %v8473_v56 = vadd.f32 %v1909_v28, %v8334_v20  ;;  %v1915_v35 = vmul.f32 %v8320_v39, %v10967_v47  ;;  %v1914_v52 = vmul.f32 %v8320_v39, %v10968_v0  ;;  %v8479_v40 = vpop.permute.xlu1 %3956  ;;  %v8481_v22 = vpop.permute.xlu0 %3951  ;;  %v10971_v31 = vld [vmem:[#allocation168_spill] sm:$0xff]  ;;  %v10972_v18 = vld [vmem:[#allocation169_spill] sm:$0xff]  ;;  %v10973_v0 = vld [vmem:[#allocation170_spill] sm:$0xff] }
 0x430   : > { %10969 = vst [vmem:[#allocation35_spill] sm:$0xff] %v8479_v40  ;;  %10970 = vst [vmem:[#allocation36_spill] sm:$0xff] %v8481_v22  ;;  %v8484_v60 = vadd.f32 %v1908_v44, %v8337_v26  ;;  %v8487_v4 = vadd.f32 %v1911_v14, %v8348_v27  ;;  %v1917_v20 = vmul.f32 %v8320_v39, %v10971_v31  ;;  %4431 = vperm.xlu1 %5821, %v5694_v19   ;;  %v5696_v44 = vld [vmem:[%s5961_s28 + $0xe9] sm:$0xf]  ;;  %v5695_v27 = vld [vmem:[%s5961_s28 + $0xe1] sm:$0xff] }
 0x431   : > { %4426 = vperm.xlu0 %5820, %v5693_v6   ;;  %v8492_v28 = vadd.f32 %v1910_v24, %v8355_v54  ;;  %v8495_v42 = vadd.f32 %v1913_v8, %v8358_v25  ;;  %v1916_v47 = vmul.f32 %v8320_v39, %v10972_v18  ;;  %v2092_v26 = vmul.f32 %v8467_v59, %v10973_v0  ;;  %v10974_v31 = vld [vmem:[#allocation171_spill] sm:$0xff]  ;;  %v10975_v19 = vld [vmem:[#allocation172_spill] sm:$0xff]  ;;  %v10976_v24 = vld [vmem:[#allocation173_spill] sm:$0xff] }
 0x432   : > { %v8504_v14 = vadd.f32 %v1912_v1, %v8367_v36  ;;  %v2091_v6 = vmul.f32 %v8467_v59, %v10974_v31  ;;  %v2094_v54 = vmul.f32 %v8467_v59, %v10975_v19  ;;  %v2093_v25 = vmul.f32 %v8467_v59, %v10976_v24  ;;  %v10977_v18 = vld [vmem:[#allocation174_spill] sm:$0xff]  ;;  %v10978_v1 = vld [vmem:[#allocation175_spill] sm:$0xff]  ;;  %v10981_v22 = vld [vmem:[#allocation176_spill] sm:$0xff] }
 0x433   : > { %v8513_v39 = vadd.f32 %v1915_v35, %v8370_v17  ;;  %v8516_v8 = vadd.f32 %v1914_v52, %v8373_v16  ;;  %v2096_v36 = vmul.f32 %v8467_v59, %v10977_v18  ;;  %v2095_v0 = vmul.f32 %v8467_v59, %v10978_v1  ;;  %v8522_v31 = vpop.permute.xlu1 %3966  ;;  %v8524_v19 = vpop.permute.xlu0 %3961  ;;  %v10982_v35 = vld [vmem:[#allocation177_spill] sm:$0xff]  ;;  %v10983_v1 = vld [vmem:[#allocation178_spill] sm:$0xff] }
 0x434   : > { %10979 = vst [vmem:[#allocation37_spill] sm:$0xff] %v8522_v31  ;;  %10980 = vst [vmem:[#allocation38_spill] sm:$0xff] %v8524_v19  ;;  %v8527_v24 = vadd.f32 %v1917_v20, %v8378_v50  ;;  %v2098_v17 = vmul.f32 %v8467_v59, %v10981_v22  ;;  %v2097_v16 = vmul.f32 %v8467_v59, %v10982_v35  ;;  %4441 = vperm.xlu1 %5821, %v5696_v44   ;;  %v10984_v31 = vld [vmem:[#allocation179_spill] sm:$0xff] }
 0x435   : > { %4436 = vperm.xlu0 %5820, %v5695_v27   ;;  %v8534_v52 = vadd.f32 %v1916_v47, %v8381_v48  ;;  %v8537_v18 = vadd.f32 %v2092_v26, %v8392_v62  ;;  %v2100_v19 = vmul.f32 %v8467_v59, %v10983_v1  ;;  %v2099_v50 = vmul.f32 %v8467_v59, %v10984_v31  ;;  %v5698_v20 = vld [vmem:[%s5961_s28 + $0xf9] sm:$0xf]  ;;  %v5697_v40 = vld [vmem:[%s5961_s28 + $0xf1] sm:$0xff]  ;;  %v10986_v31 = vld [vmem:[#allocation181_spill] sm:$0xff] }
 0x436   : > { %v8546_v22 = vadd.f32 %v2091_v6, %v8395_v53  ;;  %v8549_v44 = vadd.f32 %v2094_v54, %v8400_v7  ;;  %v8552_v48 = vadd.f32 %v2093_v25, %v8403_v46  ;;  %v10985_v47 = vld [vmem:[#allocation180_spill] sm:$0xff]  ;;  %v8557_v26 = vadd.f32 %v2096_v36, %v8412_v21  ;;  %v10987_v6 = vld [vmem:[#allocation182_spill] sm:$0xff]  ;;  %v10990_v36 = vld [vmem:[#allocation183_spill] sm:$0xff] }
 0x437   : > { %v2102_v62 = vmul.f32 %v8467_v59, %v10985_v47  ;;  %v8560_v27 = vadd.f32 %v2095_v0, %v8421_v45  ;;  %v2101_v53 = vmul.f32 %v8467_v59, %v10986_v31  ;;  %v2104_v7 = vmul.f32 %v8467_v59, %v10987_v6  ;;  %v8566_v54 = vpop.permute.xlu1 %3976  ;;  %v8568_v46 = vpop.permute.xlu0 %3971  ;;  %v10991_v1 = vld [vmem:[#allocation184_spill] sm:$0xff]  ;;  %v10992_v31 = vld [vmem:[#allocation185_spill] sm:$0xff]  ;;  %v10993_v6 = vld [vmem:[#allocation186_spill] sm:$0xff] }
 0x438   : > { %10988 = vst [vmem:[#allocation39_spill] sm:$0xff] %v8566_v54  ;;  %10989 = vst [vmem:[#allocation40_spill] sm:$0xff] %v8568_v46  ;;  %v8571_v25 = vadd.f32 %v2098_v17, %v8424_v49  ;;  %v8574_v21 = vadd.f32 %v2097_v16, %v8435_v12  ;;  %v2103_v45 = vmul.f32 %v8467_v59, %v10990_v36  ;;  %4451 = vperm.xlu1 %5821, %v5698_v20   ;;  %v5701_v17 = vld [vmem:[%s5961_s28 + $0x4a] sm:$0xf]  ;;  %v5700_v12 = vld [vmem:[%s5961_s28 + $0x42] sm:$0xff] }
 0x439   : > { %4446 = vperm.xlu0 %5820, %v5697_v40   ;;  %v8579_v0 = vadd.f32 %v2100_v19, %v8442_v9  ;;  %v8582_v35 = vadd.f32 %v2099_v50, %v8445_v11  ;;  %v2106_v47 = vmul.f32 %v8467_v59, %v10991_v1  ;;  %v2105_v49 = vmul.f32 %v8467_v59, %v10992_v31  ;;  %v10994_v20 = vld [vmem:[#allocation187_spill] sm:$0xff]  ;;  %v10995_v19 = vld [vmem:[#allocation188_spill] sm:$0xff]  ;;  %v8602_v50 = vld [vmem:[%s10411_s1 + $0xa] ss:$0 sm:$0xff] }
 0x43a   : > { %v8591_v16 = vadd.f32 %v2102_v62, %v8454_v37  ;;  %v2108_v40 = vmul.f32 %v8467_v59, %v10993_v6  ;;  %v2107_v9 = vmul.f32 %v8467_v59, %v10994_v20  ;;  %v2110_v11 = vmul.f32 %v8467_v59, %v10995_v19  ;;  %v10996_v62 = vld [vmem:[#allocation189_spill] sm:$0xff]  ;;  %v10997_v31 = vld [vmem:[#allocation190_spill] sm:$0xff]  ;;  %v11000_v54 = vld [vmem:[#allocation191_spill] sm:$0xff] }
 0x43b   : > { %v8605_v36 = vadd.f32 %v2101_v53, %v8457_v15  ;;  %v8608_v37 = vadd.f32 %v2104_v7, %v8460_v58  ;;  %v2109_v1 = vmul.f32 %v8467_v59, %v10996_v62  ;;  %v2112_v6 = vmul.f32 %v8467_v59, %v10997_v31  ;;  %v8614_v20 = vpop.permute.xlu1 %3986  ;;  %v8616_v19 = vpop.permute.xlu0 %3981  ;;  %v11001_v53 = vld [vmem:[#allocation192_spill] sm:$0xff]  ;;  %v11002_v31 = vld [vmem:[#allocation193_spill] sm:$0xff] }
 0x43c   : > { %10998 = vst [vmem:[#allocation41_spill] sm:$0xff] %v8614_v20  ;;  %10999 = vst [vmem:[#allocation42_spill] sm:$0xff] %v8616_v19  ;;  %v8619_v46 = vadd.f32 %v2103_v45, %v8470_v3  ;;  %v2111_v15 = vmul.f32 %v8467_v59, %v11000_v54  ;;  %v2114_v58 = vmul.f32 %v8467_v59, %v11001_v53  ;;  %4538 = vperm.xlu1 %5821, %v5701_v17   ;;  %v11003_v20 = vld [vmem:[#allocation194_spill] sm:$0xff]  ;;  %v5703_v45 = vld [vmem:[%s5961_s28 + $0x5a] sm:$0xf] }
 0x43d   : > { %4533 = vperm.xlu0 %5820, %v5700_v12   ;;  %v8626_v7 = vadd.f32 %v2106_v47, %v8473_v56  ;;  %v8629_v62 = vadd.f32 %v2105_v49, %v8484_v60  ;;  %v2113_v19 = vmul.f32 %v8467_v59, %v11002_v31  ;;  %v2290_v3 = vmul.f32 %v8602_v50, %v11003_v20  ;;  %v11004_v47 = vld [vmem:[#allocation195_spill] sm:$0xff]  ;;  %v11005_v12 = vld [vmem:[#allocation196_spill] sm:$0xff] }
 0x43e   : > { %v8638_v54 = vadd.f32 %v2108_v40, %v8487_v4  ;;  %v8641_v17 = vadd.f32 %v2107_v9, %v8492_v28  ;;  %v8644_v56 = vadd.f32 %v2110_v11, %v8495_v42  ;;  %v2289_v60 = vmul.f32 %v8602_v50, %v11004_v47  ;;  %v11006_v40 = vld [vmem:[#allocation197_spill] sm:$0xff]  ;;  %v11010_v53 = vld [vmem:[#allocation199_spill] sm:$0xff]  ;;  %v11011_v47 = vld [vmem:[#allocation200_spill] sm:$0xff] }
 0x43f   : > { %v8649_v59 = vadd.f32 %v2109_v1, %v8504_v14  ;;  %v8652_v49 = vadd.f32 %v2112_v6, %v8513_v39  ;;  %v2292_v4 = vmul.f32 %v8602_v50, %v11005_v12  ;;  %v2291_v28 = vmul.f32 %v8602_v50, %v11006_v40  ;;  %v8658_v9 = vpop.permute.xlu1 %3996  ;;  %v8660_v42 = vpop.permute.xlu0 %3991  ;;  %v11009_v1 = vld [vmem:[#allocation198_spill] sm:$0xff]  ;;  %v11012_v12 = vld [vmem:[#allocation201_spill] sm:$0xff] }
 0x440   : > { %11007 = vst [vmem:[#allocation43_spill] sm:$0xff] %v8658_v9  ;;  %11008 = vst [vmem:[#allocation44_spill] sm:$0xff] %v8660_v42  ;;  %v8663_v11 = vadd.f32 %v2111_v15, %v8516_v8  ;;  %v8666_v14 = vadd.f32 %v2114_v58, %v8527_v24  ;;  %v2294_v39 = vmul.f32 %v8602_v50, %v11009_v1  ;;  %4548 = vperm.xlu1 %5821, %v5703_v45   ;;  %v5705_v15 = vld [vmem:[%s5961_s28 + $0x6a] sm:$0xf]  ;;  %v5704_v24 = vld [vmem:[%s5961_s28 + $0x62] sm:$0xff] }
 0x441   : > { %4543 = vperm.xlu0 %5820, %v5702_v5   ;;  %v8671_v6 = vadd.f32 %v2113_v19, %v8534_v52  ;;  %v8674_v20 = vadd.f32 %v2290_v3, %v8537_v18  ;;  %v2293_v31 = vmul.f32 %v8602_v50, %v11010_v53  ;;  %v2296_v8 = vmul.f32 %v8602_v50, %v11011_v47  ;;  %v11013_v45 = vld [vmem:[#allocation202_spill] sm:$0xff]  ;;  %v11014_v19 = vld [vmem:[#allocation203_spill] sm:$0xff]  ;;  %v11015_v1 = vld [vmem:[#allocation204_spill] sm:$0xff] }
 0x442   : > { %v8683_v58 = vadd.f32 %v2289_v60, %v8546_v22  ;;  %v2295_v5 = vmul.f32 %v8602_v50, %v11012_v12  ;;  %v2298_v52 = vmul.f32 %v8602_v50, %v11013_v45  ;;  %v2297_v18 = vmul.f32 %v8602_v50, %v11014_v19  ;;  %v11016_v60 = vld [vmem:[#allocation205_spill] sm:$0xff]  ;;  %v11019_v19 = vld [vmem:[#allocation206_spill] sm:$0xff]  ;;  %v5706_v42 = vld [vmem:[%s5961_s28 + $0x72] sm:$0xff] }
 0x443   : > { %v8692_v3 = vadd.f32 %v2292_v4, %v8549_v44  ;;  %v8695_v40 = vadd.f32 %v2291_v28, %v8552_v48  ;;  %v2300_v22 = vmul.f32 %v8602_v50, %v11015_v1  ;;  %v2299_v53 = vmul.f32 %v8602_v50, %v11016_v60  ;;  %v8701_v47 = vpop.permute.xlu1 %4006  ;;  %v8703_v12 = vpop.permute.xlu0 %4001  ;;  %v11020_v4 = vld [vmem:[#allocation207_spill] sm:$0xff]  ;;  %v11021_v60 = vld [vmem:[#allocation208_spill] sm:$0xff] }
 0x444   : > { %11017 = vst [vmem:[#allocation45_spill] sm:$0xff] %v8701_v47  ;;  %11018 = vst [vmem:[#allocation46_spill] sm:$0xff] %v8703_v12  ;;  %v8706_v45 = vadd.f32 %v2294_v39, %v8557_v26  ;;  %v2302_v44 = vmul.f32 %v8602_v50, %v11019_v19  ;;  %v2301_v48 = vmul.f32 %v8602_v50, %v11020_v4  ;;  %4558 = vperm.xlu1 %5821, %v5705_v15   ;;  %v11022_v47 = vld [vmem:[#allocation209_spill] sm:$0xff]  ;;  %v5707_v39 = vld [vmem:[%s5961_s28 + $0x7a] sm:$0xf] }
 0x445   : > { %4553 = vperm.xlu0 %5820, %v5704_v24   ;;  %v8713_v28 = vadd.f32 %v2293_v31, %v8560_v27  ;;  %v8716_v1 = vadd.f32 %v2296_v8, %v8571_v25  ;;  %v2304_v12 = vmul.f32 %v8602_v50, %v11021_v60  ;;  %v2303_v26 = vmul.f32 %v8602_v50, %v11022_v47  ;;  %v11023_v31 = vld [vmem:[#allocation210_spill] sm:$0xff]  ;;  %v11024_v47 = vld [vmem:[#allocation211_spill] sm:$0xff] }
 0x446   : > { %v8725_v19 = vadd.f32 %v2295_v5, %v8574_v21  ;;  %v8728_v15 = vadd.f32 %v2298_v52, %v8579_v0  ;;  %v8731_v27 = vadd.f32 %v2297_v18, %v8582_v35  ;;  %v2306_v25 = vmul.f32 %v8602_v50, %v11023_v31  ;;  %v11025_v5 = vld [vmem:[#allocation212_spill] sm:$0xff]  ;;  %v8748_v35 = vld [vmem:[%s10411_s1 + $0xb] ss:$0 sm:$0xff]  ;;  %v11076_v9 = vld [vmem:[#allocation251_spill] sm:$0xff] }
 0x447   : > { %v8736_v8 = vadd.f32 %v2300_v22, %v8591_v16  ;;  %v8739_v24 = vadd.f32 %v2299_v53, %v8605_v36  ;;  %v2305_v21 = vmul.f32 %v8602_v50, %v11024_v47  ;;  %v2308_v0 = vmul.f32 %v8602_v50, %v11025_v5  ;;  %v8750_v52 = vpop.permute.xlu1 %4016  ;;  %v8752_v16 = vpop.permute.xlu0 %4011  ;;  %v11028_v22 = vld [vmem:[#allocation213_spill] sm:$0xff]  ;;  %v11029_v31 = vld [vmem:[#allocation214_spill] sm:$0xff]  ;;  %v11030_v5 = vld [vmem:[#allocation215_spill] sm:$0xff] }
 0x448   : > { %11026 = vst [vmem:[#allocation47_spill] sm:$0xff] %v8750_v52  ;;  %11027 = vst [vmem:[#allocation48_spill] sm:$0xff] %v8752_v16  ;;  %v8755_v18 = vadd.f32 %v2302_v44, %v8608_v37  ;;  %v8758_v36 = vadd.f32 %v2301_v48, %v8619_v46  ;;  %v2307_v53 = vmul.f32 %v8602_v50, %v11028_v22  ;;  %4568 = vperm.xlu1 %5821, %v5707_v39   ;;  %v5709_v44 = vld [vmem:[%s5961_s28 + $0x8a] sm:$0xf]  ;;  %v5708_v46 = vld [vmem:[%s5961_s28 + $0x82] sm:$0xff] }
 0x449   : > { %4563 = vperm.xlu0 %5820, %v5706_v42   ;;  %v8763_v4 = vadd.f32 %v2304_v12, %v8626_v7  ;;  %v8766_v60 = vadd.f32 %v2303_v26, %v8629_v62  ;;  %v2310_v47 = vmul.f32 %v8602_v50, %v11029_v31  ;;  %v2309_v37 = vmul.f32 %v8602_v50, %v11030_v5  ;;  %v11031_v22 = vld [vmem:[#allocation216_spill] sm:$0xff]  ;;  %v11032_v39 = vld [vmem:[#allocation217_spill] sm:$0xff]  ;;  %v11033_v12 = vld [vmem:[#allocation218_spill] sm:$0xff] }
 0x44a   : > { %v8775_v48 = vadd.f32 %v2306_v25, %v8638_v54  ;;  %v2312_v42 = vmul.f32 %v8602_v50, %v11031_v22  ;;  %v2311_v7 = vmul.f32 %v8602_v50, %v11032_v39  ;;  %v2487_v62 = vmul.f32 %v8748_v35, %v11033_v12  ;;  %v11034_v5 = vld [vmem:[#allocation219_spill] sm:$0xff]  ;;  %v11035_v25 = vld [vmem:[#allocation220_spill] sm:$0xff]  ;;  %v11038_v12 = vld [vmem:[#allocation221_spill] sm:$0xff] }
 0x44b   : > { %v8784_v26 = vadd.f32 %v2305_v21, %v8641_v17  ;;  %v8787_v31 = vadd.f32 %v2308_v0, %v8644_v56  ;;  %v2486_v54 = vmul.f32 %v8748_v35, %v11034_v5  ;;  %v2489_v22 = vmul.f32 %v8748_v35, %v11035_v25  ;;  %v8793_v16 = vpop.permute.xlu1 %4026  ;;  %v8795_v50 = vpop.permute.xlu0 %4021  ;;  %v11039_v21 = vld [vmem:[#allocation222_spill] sm:$0xff]  ;;  %v11040_v25 = vld [vmem:[#allocation223_spill] sm:$0xff] }
 0x44c   : > { %11036 = vst [vmem:[#allocation49_spill] sm:$0xff] %v8793_v16  ;;  %11037 = vst [vmem:[#allocation50_spill] sm:$0xff] %v8795_v50  ;;  %v8798_v39 = vadd.f32 %v2307_v53, %v8649_v59  ;;  %v2488_v17 = vmul.f32 %v8748_v35, %v11038_v12  ;;  %v2491_v56 = vmul.f32 %v8748_v35, %v11039_v21  ;;  %4578 = vperm.xlu1 %5821, %v5709_v44   ;;  %v11041_v16 = vld [vmem:[#allocation224_spill] sm:$0xff]  ;;  %v5710_v52 = vld [vmem:[%s5961_s28 + $0x92] sm:$0xff] }
 0x44d   : > { %4573 = vperm.xlu0 %5820, %v5708_v46   ;;  %v8805_v0 = vadd.f32 %v2310_v47, %v8652_v49  ;;  %v8808_v5 = vadd.f32 %v2309_v37, %v8663_v11  ;;  %v2490_v50 = vmul.f32 %v8748_v35, %v11040_v25  ;;  %v2493_v59 = vmul.f32 %v8748_v35, %v11041_v16  ;;  %v5711_v53 = vld [vmem:[%s5961_s28 + $0x9a] sm:$0xf]  ;;  %v11042_v47 = vld [vmem:[#allocation225_spill] sm:$0xff]  ;;  %v11043_v46 = vld [vmem:[#allocation226_spill] sm:$0xff] }
 0x44e   : > { %v8817_v12 = vadd.f32 %v2312_v42, %v8666_v14  ;;  %v8820_v44 = vadd.f32 %v2311_v7, %v8671_v6  ;;  %v8823_v49 = vadd.f32 %v2487_v62, %v8674_v20  ;;  %v2492_v11 = vmul.f32 %v8748_v35, %v11042_v47  ;;  %v11044_v42 = vld [vmem:[#allocation227_spill] sm:$0xff]  ;;  %v11048_v25 = vld [vmem:[#allocation229_spill] sm:$0xff] }
 0x44f   : > { %v8828_v37 = vadd.f32 %v2486_v54, %v8683_v58  ;;  %v8831_v16 = vadd.f32 %v2489_v22, %v8692_v3  ;;  %v2495_v14 = vmul.f32 %v8748_v35, %v11043_v46  ;;  %v2494_v6 = vmul.f32 %v8748_v35, %v11044_v42  ;;  %v8837_v7 = vpop.permute.xlu1 %4036  ;;  %v8839_v20 = vpop.permute.xlu0 %4031  ;;  %v11047_v54 = vld [vmem:[#allocation228_spill] sm:$0xff]  ;;  %v11049_v46 = vld [vmem:[#allocation230_spill] sm:$0xff]  ;;  %v11050_v42 = vld [vmem:[#allocation231_spill] sm:$0xff] }
 0x450   : > { %11045 = vst [vmem:[#allocation51_spill] sm:$0xff] %v8837_v7  ;;  %11046 = vst [vmem:[#allocation52_spill] sm:$0xff] %v8839_v20  ;;  %v8842_v62 = vadd.f32 %v2488_v17, %v8695_v40  ;;  %v8845_v58 = vadd.f32 %v2491_v56, %v8706_v45  ;;  %v2497_v3 = vmul.f32 %v8748_v35, %v11047_v54  ;;  %4588 = vperm.xlu1 %5821, %v5711_v53   ;;  %v5713_v17 = vld [vmem:[%s5961_s28 + $0xaa] sm:$0xf]  ;;  %v5712_v45 = vld [vmem:[%s5961_s28 + $0xa2] sm:$0xff] }
 0x451   : > { %4583 = vperm.xlu0 %5820, %v5710_v52   ;;  %v8850_v22 = vadd.f32 %v2490_v50, %v8713_v28  ;;  %v8853_v21 = vadd.f32 %v2493_v59, %v8716_v1  ;;  %v2496_v47 = vmul.f32 %v8748_v35, %v11048_v25  ;;  %v2499_v40 = vmul.f32 %v8748_v35, %v11049_v46  ;;  %v11051_v53 = vld [vmem:[#allocation232_spill] sm:$0xff]  ;;  %v11052_v50 = vld [vmem:[#allocation233_spill] sm:$0xff]  ;;  %v11053_v25 = vld [vmem:[#allocation234_spill] sm:$0xff] }
 0x452   : > { %v8862_v56 = vadd.f32 %v2492_v11, %v8725_v19  ;;  %v2498_v52 = vmul.f32 %v8748_v35, %v11050_v42  ;;  %v2501_v28 = vmul.f32 %v8748_v35, %v11051_v53  ;;  %v2500_v1 = vmul.f32 %v8748_v35, %v11052_v50  ;;  %v11054_v11 = vld [vmem:[#allocation235_spill] sm:$0xff]  ;;  %v11058_v20 = vld [vmem:[#allocation237_spill] sm:$0xff] }
 0x453   : > { %v8871_v59 = vadd.f32 %v2495_v14, %v8728_v15  ;;  %v8874_v54 = vadd.f32 %v2494_v6, %v8731_v27  ;;  %v2503_v19 = vmul.f32 %v8748_v35, %v11053_v25  ;;  %v2502_v46 = vmul.f32 %v8748_v35, %v11054_v11  ;;  %v8880_v42 = vpop.permute.xlu1 %4046  ;;  %v8882_v53 = vpop.permute.xlu0 %4041  ;;  %v11057_v15 = vld [vmem:[#allocation236_spill] sm:$0xff]  ;;  %v8894_v6 = vld [vmem:[%s10411_s1 + $0xc] ss:$0 sm:$0xff] }
 0x454   : > { %11055 = vst [vmem:[#allocation53_spill] sm:$0xff] %v8880_v42  ;;  %11056 = vst [vmem:[#allocation54_spill] sm:$0xff] %v8882_v53  ;;  %v8885_v50 = vadd.f32 %v2497_v3, %v8736_v8  ;;  %v2505_v14 = vmul.f32 %v8748_v35, %v11057_v15  ;;  %v2504_v27 = vmul.f32 %v8748_v35, %v11058_v20  ;;  %4598 = vperm.xlu1 %5821, %v5713_v17   ;;  %v11059_v8 = vld [vmem:[#allocation238_spill] sm:$0xff]  ;;  %v11060_v15 = vld [vmem:[#allocation239_spill] sm:$0xff] }
 0x455   : > { %4593 = vperm.xlu0 %5820, %v5712_v45   ;;  %v8897_v25 = vadd.f32 %v2496_v47, %v8739_v24  ;;  %v8900_v11 = vadd.f32 %v2499_v40, %v8755_v18  ;;  %v2507_v3 = vmul.f32 %v8748_v35, %v11059_v8  ;;  %v2506_v53 = vmul.f32 %v8748_v35, %v11060_v15  ;;  %v5715_v20 = vld [vmem:[%s5961_s28 + $0xba] sm:$0xf]  ;;  %v5714_v42 = vld [vmem:[%s5961_s28 + $0xb2] sm:$0xff]  ;;  %v11062_v8 = vld [vmem:[#allocation241_spill] sm:$0xff] }
 0x456   : > { %v8909_v7 = vadd.f32 %v2498_v52, %v8758_v36  ;;  %v8912_v17 = vadd.f32 %v2501_v28, %v8763_v4  ;;  %v8915_v24 = vadd.f32 %v2500_v1, %v8766_v60  ;;  %v11061_v47 = vld [vmem:[#allocation240_spill] sm:$0xff]  ;;  %v8920_v40 = vadd.f32 %v2503_v19, %v8775_v48  ;;  %v11063_v52 = vld [vmem:[#allocation242_spill] sm:$0xff]  ;;  %v11066_v19 = vld [vmem:[#allocation243_spill] sm:$0xff] }
 0x457   : > { %v2509_v18 = vmul.f32 %v8748_v35, %v11061_v47  ;;  %v8923_v45 = vadd.f32 %v2502_v46, %v8784_v26  ;;  %v2508_v36 = vmul.f32 %v8748_v35, %v11062_v8  ;;  %v2684_v4 = vmul.f32 %v8894_v6, %v11063_v52  ;;  %v8929_v28 = vpop.permute.xlu1 %4056  ;;  %v8931_v60 = vpop.permute.xlu0 %4051  ;;  %v11067_v15 = vld [vmem:[#allocation244_spill] sm:$0xff]  ;;  %v11068_v8 = vld [vmem:[#allocation245_spill] sm:$0xff]  ;;  %v11069_v52 = vld [vmem:[#allocation246_spill] sm:$0xff] }
 0x458   : > { %11064 = vst [vmem:[#allocation55_spill] sm:$0xff] %v8929_v28  ;;  %11065 = vst [vmem:[#allocation56_spill] sm:$0xff] %v8931_v60  ;;  %v8934_v1 = vadd.f32 %v2505_v14, %v8787_v31  ;;  %v8937_v48 = vadd.f32 %v2504_v27, %v8798_v39  ;;  %v2683_v26 = vmul.f32 %v8894_v6, %v11066_v19  ;;  %4608 = vperm.xlu1 %5821, %v5715_v20   ;;  %v5717_v14 = vld [vmem:[%s5961_s28 + $0xca] sm:$0xf]  ;;  %v5716_v39 = vld [vmem:[%s5961_s28 + $0xc2] sm:$0xff] }
 0x459   : > { %4603 = vperm.xlu0 %5820, %v5714_v42   ;;  %v8942_v35 = vadd.f32 %v2507_v3, %v8805_v0  ;;  %v8945_v46 = vadd.f32 %v2506_v53, %v8808_v5  ;;  %v2686_v47 = vmul.f32 %v8894_v6, %v11067_v15  ;;  %v2685_v31 = vmul.f32 %v8894_v6, %v11068_v8  ;;  %v11070_v20 = vld [vmem:[#allocation247_spill] sm:$0xff]  ;;  %v11071_v3 = vld [vmem:[#allocation248_spill] sm:$0xff]  ;;  %v11072_v15 = vld [vmem:[#allocation249_spill] sm:$0xff] }
 0x45a   : > { %v8954_v27 = vadd.f32 %v2509_v18, %v8817_v12  ;;  %v2688_v42 = vmul.f32 %v8894_v6, %v11069_v52  ;;  %v2687_v0 = vmul.f32 %v8894_v6, %v11070_v20  ;;  %v2690_v5 = vmul.f32 %v8894_v6, %v11071_v3  ;;  %v11073_v18 = vld [vmem:[#allocation250_spill] sm:$0xff]  ;;  %v5718_v60 = vld [vmem:[%s5961_s28 + $0xd2] sm:$0xff] }
 0x45b   : > { %v8963_v53 = vadd.f32 %v2508_v36, %v8820_v44  ;;  %v8966_v19 = vadd.f32 %v2684_v4, %v8823_v49  ;;  %v2689_v12 = vmul.f32 %v8894_v6, %v11072_v15  ;;  %v2692_v8 = vmul.f32 %v8894_v6, %v11073_v18  ;;  %v8972_v52 = vpop.permute.xlu1 %4144  ;;  %v8974_v20 = vpop.permute.xlu0 %4139  ;;  %v11077_v36 = vld [vmem:[#allocation252_spill] sm:$0xff]  ;;  %v11078_v18 = vld [vmem:[#allocation253_spill] sm:$0xff] }
 0x45c   : > { %11074 = vst [vmem:[#allocation57_spill] sm:$0xff] %v8972_v52  ;;  %11075 = vst [vmem:[#allocation58_spill] sm:$0xff] %v8974_v20  ;;  %v8977_v3 = vadd.f32 %v2683_v26, %v8828_v37  ;;  %v2691_v44 = vmul.f32 %v8894_v6, %v11076_v9  ;;  %v2694_v49 = vmul.f32 %v8894_v6, %v11077_v36  ;;  %4618 = vperm.xlu1 %5821, %v5717_v14   ;;  %v11079_v52 = vld [vmem:[#allocation254_spill] sm:$0xff]  ;;  %v5719_v26 = vld [vmem:[%s5961_s28 + $0xda] sm:$0xf] }
 0x45d   : > { %4613 = vperm.xlu0 %5820, %v5716_v39   ;;  %v8984_v4 = vadd.f32 %v2686_v47, %v8831_v16  ;;  %v8987_v15 = vadd.f32 %v2685_v31, %v8842_v62  ;;  %v2693_v20 = vmul.f32 %v8894_v6, %v11078_v18  ;;  %v2696_v37 = vmul.f32 %v8894_v6, %v11079_v52  ;;  %v11080_v47 = vld [vmem:[#allocation255_spill] sm:$0xff]  ;;  %v11081_v52 = vld [vmem:[#allocation256_spill] sm:$0xff] }
 0x45e   : > { %v8996_v9 = vadd.f32 %v2688_v42, %v8845_v58  ;;  %v8999_v14 = vadd.f32 %v2687_v0, %v8850_v22  ;;  %v9002_v16 = vadd.f32 %v2690_v5, %v8853_v21  ;;  %v2695_v62 = vmul.f32 %v8894_v6, %v11080_v47  ;;  %v11082_v42 = vld [vmem:[#allocation257_spill] sm:$0xff]  ;;  %v11086_v18 = vld [vmem:[#allocation259_spill] sm:$0xff] }
 0x45f   : > { %v9007_v31 = vadd.f32 %v2689_v12, %v8862_v56  ;;  %v9010_v39 = vadd.f32 %v2692_v8, %v8871_v59  ;;  %v2698_v58 = vmul.f32 %v8894_v6, %v11081_v52  ;;  %v2697_v22 = vmul.f32 %v8894_v6, %v11082_v42  ;;  %v9016_v0 = vpop.permute.xlu1 %4154  ;;  %v9018_v21 = vpop.permute.xlu0 %4149  ;;  %v11085_v12 = vld [vmem:[#allocation258_spill] sm:$0xff]  ;;  %v11087_v52 = vld [vmem:[#allocation260_spill] sm:$0xff] }
 0x460   : > { %11083 = vst [vmem:[#allocation59_spill] sm:$0xff] %v9016_v0  ;;  %11084 = vst [vmem:[#allocation60_spill] sm:$0xff] %v9018_v21  ;;  %v9021_v5 = vadd.f32 %v2691_v44, %v8874_v54  ;;  %v9024_v56 = vadd.f32 %v2694_v49, %v8885_v50  ;;  %v2700_v59 = vmul.f32 %v8894_v6, %v11085_v12  ;;  %4628 = vperm.xlu1 %5821, %v5719_v26   ;;  %v9041_v50 = vld [vmem:[%s10411_s1 + $0xd] ss:$0 sm:$0xff]  ;;  %v5720_v49 = vld [vmem:[%s5961_s28 + $0xe2] sm:$0xff] }
 0x461   : > { %4623 = vperm.xlu0 %5820, %v5718_v60   ;;  %v9029_v8 = vadd.f32 %v2693_v20, %v8897_v25  ;;  %v9032_v36 = vadd.f32 %v2696_v37, %v8900_v11  ;;  %v2699_v47 = vmul.f32 %v8894_v6, %v11086_v18  ;;  %v2702_v54 = vmul.f32 %v8894_v6, %v11087_v52  ;;  %v5721_v44 = vld [vmem:[%s5961_s28 + $0xea] sm:$0xf]  ;;  %v11088_v25 = vld [vmem:[#allocation261_spill] sm:$0xff]  ;;  %v11090_v26 = vld [vmem:[#allocation263_spill] sm:$0xff] }
 0x462   : > { %v9046_v60 = vadd.f32 %v2695_v62, %v8909_v7  ;;  %v2701_v11 = vmul.f32 %v8894_v6, %v11088_v25  ;;  %v11089_v20 = vld [vmem:[#allocation262_spill] sm:$0xff]  ;;  %v2703_v42 = vmul.f32 %v8894_v6, %v11090_v26  ;;  %v9055_v12 = vadd.f32 %v2698_v58, %v8912_v17  ;;  %v11091_v52 = vld [vmem:[#allocation264_spill] sm:$0xff]  ;;  %v11092_v62 = vld [vmem:[#allocation265_spill] sm:$0xff] }
 0x463   : > { %v2704_v37 = vmul.f32 %v8894_v6, %v11089_v20  ;;  %v9058_v18 = vadd.f32 %v2697_v22, %v8915_v24  ;;  %v2706_v7 = vmul.f32 %v8894_v6, %v11091_v52  ;;  %v2705_v25 = vmul.f32 %v8894_v6, %v11092_v62  ;;  %v9064_v21 = vpop.permute.xlu1 %4164  ;;  %v9066_v20 = vpop.permute.xlu0 %4159  ;;  %v11095_v0 = vld [vmem:[#allocation266_spill] sm:$0xff]  ;;  %v11096_v58 = vld [vmem:[#allocation267_spill] sm:$0xff]  ;;  %v11097_v52 = vld [vmem:[#allocation268_spill] sm:$0xff] }
 0x464   : > { %11093 = vst [vmem:[#allocation61_spill] sm:$0xff] %v9064_v21  ;;  %11094 = vst [vmem:[#allocation62_spill] sm:$0xff] %v9066_v20  ;;  %v9069_v26 = vadd.f32 %v2700_v59, %v8920_v40  ;;  %v2881_v17 = vmul.f32 %v9041_v50, %v11095_v0  ;;  %v2880_v24 = vmul.f32 %v9041_v50, %v11096_v58  ;;  %4638 = vperm.xlu1 %5821, %v5721_v44   ;;  %v11098_v20 = vld [vmem:[#allocation269_spill] sm:$0xff]  ;;  %v5723_v59 = vld [vmem:[%s5961_s28 + $0xfa] sm:$0xf] }
 0x465   : > { %4633 = vperm.xlu0 %5820, %v5720_v49   ;;  %v9076_v22 = vadd.f32 %v2699_v47, %v8923_v45  ;;  %v9079_v6 = vadd.f32 %v2702_v54, %v8934_v1  ;;  %v2883_v62 = vmul.f32 %v9041_v50, %v11097_v52  ;;  %v2882_v40 = vmul.f32 %v9041_v50, %v11098_v20  ;;  %v5722_v21 = vld [vmem:[%s5961_s28 + $0xf2] sm:$0xff]  ;;  %v11099_v47 = vld [vmem:[#allocation270_spill] sm:$0xff] }
 0x466   : > { %v9088_v0 = vadd.f32 %v2701_v11, %v8937_v48  ;;  %v9091_v44 = vadd.f32 %v2704_v37, %v8942_v35  ;;  %v9094_v45 = vadd.f32 %v2703_v42, %v8945_v46  ;;  %v2885_v1 = vmul.f32 %v9041_v50, %v11099_v47  ;;  %v11100_v20 = vld [vmem:[#allocation271_spill] sm:$0xff]  ;;  %v11101_v11 = vld [vmem:[#allocation272_spill] sm:$0xff]  ;;  %v11105_v52 = vld [vmem:[#allocation274_spill] sm:$0xff] }
 0x467   : > { %v9099_v54 = vadd.f32 %v2706_v7, %v8954_v27  ;;  %v9102_v49 = vadd.f32 %v2705_v25, %v8963_v53  ;;  %v2884_v48 = vmul.f32 %v9041_v50, %v11100_v20  ;;  %v2887_v35 = vmul.f32 %v9041_v50, %v11101_v11  ;;  %v9108_v37 = vpop.permute.xlu1 %4174  ;;  %v9110_v46 = vpop.permute.xlu0 %4169  ;;  %v11104_v7 = vld [vmem:[#allocation273_spill] sm:$0xff]  ;;  %v11106_v20 = vld [vmem:[#allocation275_spill] sm:$0xff]  ;;  %v11107_v11 = vld [vmem:[#allocation276_spill] sm:$0xff] }
 0x468   : > { %11102 = vst [vmem:[#allocation63_spill] sm:$0xff] %v9108_v37  ;;  %11103 = vst [vmem:[#allocation64_spill] sm:$0xff] %v9110_v46  ;;  %v9113_v42 = vadd.f32 %v2881_v17, %v8966_v19  ;;  %v9116_v27 = vadd.f32 %v2880_v24, %v8977_v3  ;;  %v2886_v53 = vmul.f32 %v9041_v50, %v11104_v7  ;;  %4648 = vperm.xlu1 %5821, %v5723_v59   ;;  %v5726_v17 = vld [vmem:[%s5961_s28 + $0x4b] sm:$0xf]  ;;  %v5725_v3 = vld [vmem:[%s5961_s28 + $0x43] sm:$0xff] }
 0x469   : > { %4643 = vperm.xlu0 %5820, %v5722_v21   ;;  %v9121_v25 = vadd.f32 %v2883_v62, %v8984_v4  ;;  %v9124_v58 = vadd.f32 %v2882_v40, %v8987_v15  ;;  %v2889_v47 = vmul.f32 %v9041_v50, %v11105_v52  ;;  %v2888_v19 = vmul.f32 %v9041_v50, %v11106_v20  ;;  %v11108_v59 = vld [vmem:[#allocation277_spill] sm:$0xff]  ;;  %v11109_v62 = vld [vmem:[#allocation278_spill] sm:$0xff]  ;;  %v11110_v52 = vld [vmem:[#allocation279_spill] sm:$0xff] }
 0x46a   : > { %v9133_v24 = vadd.f32 %v2885_v1, %v8996_v9  ;;  %v2891_v21 = vmul.f32 %v9041_v50, %v11107_v11  ;;  %v2890_v4 = vmul.f32 %v9041_v50, %v11108_v59  ;;  %v2893_v15 = vmul.f32 %v9041_v50, %v11109_v62  ;;  %v11111_v1 = vld [vmem:[#allocation280_spill] sm:$0xff]  ;;  %v11114_v46 = vld [vmem:[#allocation281_spill] sm:$0xff] }
 0x46b   : > { %v9142_v40 = vadd.f32 %v2884_v48, %v8999_v14  ;;  %v9145_v7 = vadd.f32 %v2887_v35, %v9002_v16  ;;  %v2892_v9 = vmul.f32 %v9041_v50, %v11110_v52  ;;  %v2895_v20 = vmul.f32 %v9041_v50, %v11111_v1  ;;  %v9151_v11 = vpop.permute.xlu1 %4184  ;;  %v9153_v59 = vpop.permute.xlu0 %4179  ;;  %v11115_v48 = vld [vmem:[#allocation282_spill] sm:$0xff]  ;;  %v11116_v1 = vld [vmem:[#allocation283_spill] sm:$0xff] }
 0x46c   : > { %11112 = vst [vmem:[#allocation65_spill] sm:$0xff] %v9151_v11  ;;  %11113 = vst [vmem:[#allocation66_spill] sm:$0xff] %v9153_v59  ;;  %v9156_v62 = vadd.f32 %v2886_v53, %v9007_v31  ;;  %v2894_v14 = vmul.f32 %v9041_v50, %v11114_v46  ;;  %v2897_v16 = vmul.f32 %v9041_v50, %v11115_v48  ;;  %4735 = vperm.xlu1 %5821, %v5726_v17   ;;  %v11117_v11 = vld [vmem:[#allocation284_spill] sm:$0xff] }
 0x46d   : > { %4730 = vperm.xlu0 %5820, %v5725_v3   ;;  %v9163_v35 = vadd.f32 %v2889_v47, %v9010_v39  ;;  %v9166_v52 = vadd.f32 %v2888_v19, %v9021_v5  ;;  %v2896_v59 = vmul.f32 %v9041_v50, %v11116_v1  ;;  %v2899_v31 = vmul.f32 %v9041_v50, %v11117_v11  ;;  %v5728_v53 = vld [vmem:[%s5961_s28 + $0x5b] sm:$0xf]  ;;  %v5727_v37 = vld [vmem:[%s5961_s28 + $0x53] sm:$0xff]  ;;  %v11118_v47 = vld [vmem:[#allocation285_spill] sm:$0xff] }
 0x46e   : > { %v9175_v46 = vadd.f32 %v2891_v21, %v9024_v56  ;;  %v9178_v17 = vadd.f32 %v2890_v4, %v9029_v8  ;;  %v9181_v39 = vadd.f32 %v2893_v15, %v9032_v36  ;;  %v2898_v5 = vmul.f32 %v9041_v50, %v11118_v47  ;;  %v9188_v19 = vld [vmem:[%s10411_s1 + $0xe] ss:$0 sm:$0xff]  ;;  %v11120_v21 = vld [vmem:[#allocation287_spill] sm:$0xff]  ;;  %v11124_v47 = vld [vmem:[#allocation289_spill] sm:$0xff] }
 0x46f   : > { %v9191_v3 = vadd.f32 %v2892_v9, %v9046_v60  ;;  %v9194_v56 = vadd.f32 %v2895_v20, %v9055_v12  ;;  %v11119_v8 = vld [vmem:[#allocation286_spill] sm:$0xff]  ;;  %v2900_v4 = vmul.f32 %v9041_v50, %v11120_v21  ;;  %v9200_v15 = vpop.permute.xlu1 %4194  ;;  %v9202_v11 = vpop.permute.xlu0 %4189  ;;  %v9205_v48 = vadd.f32 %v2894_v14, %v9058_v18  ;;  %v11123_v9 = vld [vmem:[#allocation288_spill] sm:$0xff] }
 0x470   : > { %v2901_v36 = vmul.f32 %v9041_v50, %v11119_v8  ;;  %11121 = vst [vmem:[#allocation67_spill] sm:$0xff] %v9200_v15  ;;  %11122 = vst [vmem:[#allocation68_spill] sm:$0xff] %v9202_v11  ;;  %v9208_v60 = vadd.f32 %v2897_v16, %v9069_v26  ;;  %v2903_v12 = vmul.f32 %v9041_v50, %v11123_v9  ;;  %4745 = vperm.xlu1 %5821, %v5728_v53   ;;  %v11125_v21 = vld [vmem:[#allocation290_spill] sm:$0xff]  ;;  %v11126_v9 = vld [vmem:[#allocation291_spill] sm:$0xff] }
 0x471   : > { %4740 = vperm.xlu0 %5820, %v5727_v37   ;;  %v9213_v20 = vadd.f32 %v2896_v59, %v9076_v22  ;;  %v9216_v1 = vadd.f32 %v2899_v31, %v9079_v6  ;;  %v2902_v8 = vmul.f32 %v9041_v50, %v11124_v47  ;;  %v3078_v18 = vmul.f32 %v9188_v19, %v11125_v21  ;;  %v5730_v14 = vld [vmem:[%s5961_s28 + $0x6b] sm:$0xf]  ;;  %v5729_v26 = vld [vmem:[%s5961_s28 + $0x63] sm:$0xff]  ;;  %v11127_v53 = vld [vmem:[#allocation292_spill] sm:$0xff] }
 0x472   : > { %v9225_v16 = vadd.f32 %v2898_v5, %v9088_v0  ;;  %v3077_v37 = vmul.f32 %v9188_v19, %v11126_v9  ;;  %v3080_v22 = vmul.f32 %v9188_v19, %v11127_v53  ;;  %v11128_v59 = vld [vmem:[#allocation293_spill] sm:$0xff]  ;;  %v9234_v50 = vadd.f32 %v2901_v36, %v9091_v44  ;;  %v11129_v47 = vld [vmem:[#allocation294_spill] sm:$0xff]  ;;  %v11130_v5 = vld [vmem:[#allocation295_spill] sm:$0xff] }
 0x473   : > { %v3079_v6 = vmul.f32 %v9188_v19, %v11128_v59  ;;  %v9237_v31 = vadd.f32 %v2900_v4, %v9094_v45  ;;  %v3082_v0 = vmul.f32 %v9188_v19, %v11129_v47  ;;  %v3081_v21 = vmul.f32 %v9188_v19, %v11130_v5  ;;  %v9243_v9 = vpop.permute.xlu1 %4204  ;;  %v9245_v53 = vpop.permute.xlu0 %4199  ;;  %v11133_v11 = vld [vmem:[#allocation296_spill] sm:$0xff]  ;;  %v11134_v36 = vld [vmem:[#allocation297_spill] sm:$0xff]  ;;  %v11135_v5 = vld [vmem:[#allocation298_spill] sm:$0xff] }
 0x474   : > { %11131 = vst [vmem:[#allocation69_spill] sm:$0xff] %v9243_v9  ;;  %11132 = vst [vmem:[#allocation70_spill] sm:$0xff] %v9245_v53  ;;  %v9248_v59 = vadd.f32 %v2903_v12, %v9099_v54  ;;  %v3084_v44 = vmul.f32 %v9188_v19, %v11133_v11  ;;  %v3083_v45 = vmul.f32 %v9188_v19, %v11134_v36  ;;  %4755 = vperm.xlu1 %5821, %v5730_v14   ;;  %v11136_v9 = vld [vmem:[#allocation299_spill] sm:$0xff]  ;;  %v5732_v12 = vld [vmem:[%s5961_s28 + $0x7b] sm:$0xf] }
 0x475   : > { %4750 = vperm.xlu0 %5820, %v5729_v26   ;;  %v9255_v4 = vadd.f32 %v2902_v8, %v9102_v49  ;;  %v9258_v47 = vadd.f32 %v3078_v18, %v9113_v42  ;;  %v3086_v53 = vmul.f32 %v9188_v19, %v11135_v5  ;;  %v3085_v54 = vmul.f32 %v9188_v19, %v11136_v9  ;;  %v5731_v15 = vld [vmem:[%s5961_s28 + $0x73] sm:$0xff]  ;;  %v11138_v9 = vld [vmem:[#allocation301_spill] sm:$0xff] }
 0x476   : > { %v9267_v11 = vadd.f32 %v3077_v37, %v9116_v27  ;;  %v9270_v14 = vadd.f32 %v3080_v22, %v9121_v25  ;;  %v9273_v49 = vadd.f32 %v3079_v6, %v9124_v58  ;;  %v11137_v8 = vld [vmem:[#allocation300_spill] sm:$0xff]  ;;  %v9278_v18 = vadd.f32 %v3082_v0, %v9133_v24  ;;  %v11139_v37 = vld [vmem:[#allocation302_spill] sm:$0xff]  ;;  %v11142_v0 = vld [vmem:[#allocation303_spill] sm:$0xff] }
 0x477   : > { %v3088_v42 = vmul.f32 %v9188_v19, %v11137_v8  ;;  %v9281_v26 = vadd.f32 %v3081_v21, %v9142_v40  ;;  %v3087_v27 = vmul.f32 %v9188_v19, %v11138_v9  ;;  %v3090_v25 = vmul.f32 %v9188_v19, %v11139_v37  ;;  %v9287_v22 = vpop.permute.xlu1 %4214  ;;  %v9289_v58 = vpop.permute.xlu0 %4209  ;;  %v11143_v5 = vld [vmem:[#allocation304_spill] sm:$0xff]  ;;  %v11144_v9 = vld [vmem:[#allocation305_spill] sm:$0xff]  ;;  %v11145_v37 = vld [vmem:[#allocation306_spill] sm:$0xff] }
 0x478   : > { %11140 = vst [vmem:[#allocation71_spill] sm:$0xff] %v9287_v22  ;;  %11141 = vst [vmem:[#allocation72_spill] sm:$0xff] %v9289_v58  ;;  %v9292_v6 = vadd.f32 %v3084_v44, %v9145_v7  ;;  %v9295_v24 = vadd.f32 %v3083_v45, %v9156_v62  ;;  %v3089_v40 = vmul.f32 %v9188_v19, %v11142_v0  ;;  %4765 = vperm.xlu1 %5821, %v5732_v12   ;;  %v5734_v44 = vld [vmem:[%s5961_s28 + $0x8b] sm:$0xf]  ;;  %v5733_v62 = vld [vmem:[%s5961_s28 + $0x83] sm:$0xff] }
 0x479   : > { %4760 = vperm.xlu0 %5820, %v5731_v15   ;;  %v9300_v21 = vadd.f32 %v3086_v53, %v9163_v35  ;;  %v9303_v36 = vadd.f32 %v3085_v54, %v9166_v52  ;;  %v3092_v8 = vmul.f32 %v9188_v19, %v11143_v5  ;;  %v3091_v7 = vmul.f32 %v9188_v19, %v11144_v9  ;;  %v11146_v12 = vld [vmem:[#allocation307_spill] sm:$0xff]  ;;  %v11147_v53 = vld [vmem:[#allocation308_spill] sm:$0xff]  ;;  %v9323_v54 = vld [vmem:[%s10411_s1 + $0xf] ss:$0 sm:$0xff] }
 0x47a   : > { %v9312_v45 = vadd.f32 %v3088_v42, %v9175_v46  ;;  %v3094_v15 = vmul.f32 %v9188_v19, %v11145_v37  ;;  %v3093_v35 = vmul.f32 %v9188_v19, %v11146_v12  ;;  %v3096_v52 = vmul.f32 %v9188_v19, %v11147_v53  ;;  %v11148_v42 = vld [vmem:[#allocation309_spill] sm:$0xff]  ;;  %v11149_v9 = vld [vmem:[#allocation310_spill] sm:$0xff]  ;;  %v11152_v22 = vld [vmem:[#allocation311_spill] sm:$0xff] }
 0x47b   : > { %v9326_v0 = vadd.f32 %v3087_v27, %v9178_v17  ;;  %v9329_v46 = vadd.f32 %v3090_v25, %v9181_v39  ;;  %v3095_v5 = vmul.f32 %v9188_v19, %v11148_v42  ;;  %v3098_v37 = vmul.f32 %v9188_v19, %v11149_v9  ;;  %v9335_v12 = vpop.permute.xlu1 %4224  ;;  %v9337_v53 = vpop.permute.xlu0 %4219  ;;  %v11153_v27 = vld [vmem:[#allocation312_spill] sm:$0xff]  ;;  %v11154_v9 = vld [vmem:[#allocation313_spill] sm:$0xff] }
 0x47c   : > { %11150 = vst [vmem:[#allocation73_spill] sm:$0xff] %v9335_v12  ;;  %11151 = vst [vmem:[#allocation74_spill] sm:$0xff] %v9337_v53  ;;  %v9340_v58 = vadd.f32 %v3089_v40, %v9191_v3  ;;  %v3097_v17 = vmul.f32 %v9188_v19, %v11152_v22  ;;  %v3100_v39 = vmul.f32 %v9188_v19, %v11153_v27  ;;  %4775 = vperm.xlu1 %5821, %v5734_v44   ;;  %v11155_v12 = vld [vmem:[#allocation314_spill] sm:$0xff]  ;;  %v5736_v40 = vld [vmem:[%s5961_s28 + $0x9b] sm:$0xf] }
 0x47d   : > { %4770 = vperm.xlu0 %5820, %v5733_v62   ;;  %v9347_v25 = vadd.f32 %v3092_v8, %v9194_v56  ;;  %v9350_v42 = vadd.f32 %v3091_v7, %v9205_v48  ;;  %v3099_v53 = vmul.f32 %v9188_v19, %v11154_v9  ;;  %v3276_v3 = vmul.f32 %v9323_v54, %v11155_v12  ;;  %v5735_v28 = vld [vmem:[%s5961_s28 + $0x93] sm:$0xff] }
 0x47e   : > { %v9359_v22 = vadd.f32 %v3094_v15, %v9208_v60  ;;  %v9362_v44 = vadd.f32 %v3093_v35, %v9213_v20  ;;  %v9365_v56 = vadd.f32 %v3096_v52, %v9216_v1  ;;  %v11156_v8 = vld [vmem:[#allocation315_spill] sm:$0xff]  ;;  %v9370_v19 = vadd.f32 %v3095_v5, %v9225_v16  ;;  %v11157_v62 = vld [vmem:[#allocation316_spill] sm:$0xff]  ;;  %v11158_v15 = vld [vmem:[#allocation317_spill] sm:$0xff] }
 0x47f   : > { %v3275_v48 = vmul.f32 %v9323_v54, %v11156_v8  ;;  %v9373_v7 = vadd.f32 %v3098_v37, %v9234_v50  ;;  %v3278_v60 = vmul.f32 %v9323_v54, %v11157_v62  ;;  %v3277_v20 = vmul.f32 %v9323_v54, %v11158_v15  ;;  %v9379_v35 = vpop.permute.xlu1 %4234  ;;  %v9381_v1 = vpop.permute.xlu0 %4229  ;;  %v11161_v5 = vld [vmem:[#allocation318_spill] sm:$0xff]  ;;  %v11162_v27 = vld [vmem:[#allocation319_spill] sm:$0xff]  ;;  %v11163_v8 = vld [vmem:[#allocation320_spill] sm:$0xff] }
 0x480   : > { %11159 = vst [vmem:[#allocation75_spill] sm:$0xff] %v9379_v35  ;;  %11160 = vst [vmem:[#allocation76_spill] sm:$0xff] %v9381_v1  ;;  %v9384_v52 = vadd.f32 %v3097_v17, %v9237_v31  ;;  %v9387_v16 = vadd.f32 %v3100_v39, %v9248_v59  ;;  %v3280_v50 = vmul.f32 %v9323_v54, %v11161_v5  ;;  %4785 = vperm.xlu1 %5821, %v5736_v40   ;;  %v5738_v17 = vld [vmem:[%s5961_s28 + $0xab] sm:$0xf]  ;;  %v5737_v59 = vld [vmem:[%s5961_s28 + $0xa3] sm:$0xff] }
 0x481   : > { %4780 = vperm.xlu0 %5820, %v5735_v28   ;;  %v9392_v37 = vadd.f32 %v3099_v53, %v9255_v4  ;;  %v9395_v12 = vadd.f32 %v3276_v3, %v9258_v47  ;;  %v3279_v9 = vmul.f32 %v9323_v54, %v11162_v27  ;;  %v3282_v31 = vmul.f32 %v9323_v54, %v11163_v8  ;;  %v11164_v62 = vld [vmem:[#allocation321_spill] sm:$0xff]  ;;  %v11165_v40 = vld [vmem:[#allocation322_spill] sm:$0xff]  ;;  %v11166_v53 = vld [vmem:[#allocation323_spill] sm:$0xff] }
 0x482   : > { %v9404_v39 = vadd.f32 %v3275_v48, %v9267_v11  ;;  %v3281_v28 = vmul.f32 %v9323_v54, %v11164_v62  ;;  %v3284_v4 = vmul.f32 %v9323_v54, %v11165_v40  ;;  %v3283_v47 = vmul.f32 %v9323_v54, %v11166_v53  ;;  %v11167_v5 = vld [vmem:[#allocation324_spill] sm:$0xff]  ;;  %v11168_v48 = vld [vmem:[#allocation325_spill] sm:$0xff]  ;;  %v11171_v53 = vld [vmem:[#allocation326_spill] sm:$0xff] }
 0x483   : > { %v9413_v3 = vadd.f32 %v3278_v60, %v9270_v14  ;;  %v9416_v15 = vadd.f32 %v3277_v20, %v9273_v49  ;;  %v3286_v11 = vmul.f32 %v9323_v54, %v11167_v5  ;;  %v3285_v27 = vmul.f32 %v9323_v54, %v11168_v48  ;;  %v9422_v8 = vpop.permute.xlu1 %4244  ;;  %v9424_v62 = vpop.permute.xlu0 %4239  ;;  %v11172_v60 = vld [vmem:[#allocation327_spill] sm:$0xff]  ;;  %v11173_v48 = vld [vmem:[#allocation328_spill] sm:$0xff] }
 0x484   : > { %11169 = vst [vmem:[#allocation77_spill] sm:$0xff] %v9422_v8  ;;  %11170 = vst [vmem:[#allocation78_spill] sm:$0xff] %v9424_v62  ;;  %v9427_v40 = vadd.f32 %v3280_v50, %v9278_v18  ;;  %v3288_v14 = vmul.f32 %v9323_v54, %v11171_v53  ;;  %v3287_v49 = vmul.f32 %v9323_v54, %v11172_v60  ;;  %4795 = vperm.xlu1 %5821, %v5738_v17   ;;  %v11174_v8 = vld [vmem:[#allocation329_spill] sm:$0xff]  ;;  %v5751_v50 = vld [vmem:[%s5961_s28 + $0x4c] sm:$0xf] }
 0x485   : > { %4790 = vperm.xlu0 %5820, %v5737_v59   ;;  %v9434_v20 = vadd.f32 %v3279_v9, %v9281_v26  ;;  %v9437_v5 = vadd.f32 %v3282_v31, %v9292_v6  ;;  %v3290_v62 = vmul.f32 %v9323_v54, %v11173_v48  ;;  %v3289_v18 = vmul.f32 %v9323_v54, %v11174_v8  ;;  %v5739_v1 = vld [vmem:[%s5961_s28 + $0xb3] sm:$0xff]  ;;  %v11175_v9 = vld [vmem:[#allocation330_spill] sm:$0xff] }
 0x486   : > { %v9446_v53 = vadd.f32 %v3281_v28, %v9295_v24  ;;  %v9449_v17 = vadd.f32 %v3284_v4, %v9300_v21  ;;  %v9452_v26 = vadd.f32 %v3283_v47, %v9303_v36  ;;  %v3292_v6 = vmul.f32 %v9323_v54, %v11175_v9  ;;  %v11176_v8 = vld [vmem:[#allocation331_spill] sm:$0xff]  ;;  %v11177_v28 = vld [vmem:[#allocation332_spill] sm:$0xff]  ;;  %v9469_v36 = vld [vmem:[%s10411_s1 + $0x10] ss:$0 sm:$0xff] }
 0x487   : > { %v9457_v31 = vadd.f32 %v3286_v11, %v9312_v45  ;;  %v9460_v59 = vadd.f32 %v3285_v27, %v9326_v0  ;;  %v3291_v24 = vmul.f32 %v9323_v54, %v11176_v8  ;;  %v3294_v21 = vmul.f32 %v9323_v54, %v11177_v28  ;;  %v9471_v4 = vpop.permute.xlu1 %4254  ;;  %v9473_v45 = vpop.permute.xlu0 %4249  ;;  %v11179_v11 = vld [vmem:[#allocation333_spill] sm:$0xff]  ;;  %v11180_v9 = vld [vmem:[#allocation334_spill] sm:$0xff]  ;;  %v11181_v28 = vld [vmem:[#allocation335_spill] sm:$0xff] }
 0x488   : > { %11178 = vst [vmem:[#allocation79_spill] sm:$0xff] %v9473_v45  ;;  %v9476_v47 = vadd.f32 %v3288_v14, %v9329_v46  ;;  %v9479_v0 = vadd.f32 %v3287_v49, %v9340_v58  ;;  %v3293_v27 = vmul.f32 %v9323_v54, %v11179_v11  ;;  %4932 = vperm.xlu1 %5821, %v5751_v50   ;;  %v5752_v14 = vld [vmem:[%s5961_s28 + $0x54] sm:$0xff]  ;;  %v5750_v58 = vld [vmem:[%s5961_s28 + $0x44] sm:$0xff]  ;;  %v5753_v45 = vld [vmem:[%s5961_s28 + $0x5c] sm:$0xf] }
 0x489   : > { %4800 = vperm.xlu0 %5820, %v5739_v1   ;;  %v9484_v60 = vadd.f32 %v3290_v62, %v9347_v25  ;;  %v9487_v48 = vadd.f32 %v3289_v18, %v9350_v42  ;;  %v3296_v8 = vmul.f32 %v9323_v54, %v11180_v9  ;;  %v3295_v46 = vmul.f32 %v9323_v54, %v11181_v28  ;;  %v11182_v11 = vld [vmem:[#allocation336_spill] sm:$0xff]  ;;  %v11183_v50 = vld [vmem:[#allocation337_spill] sm:$0xff]  ;;  %v11184_v62 = vld [vmem:[#allocation338_spill] sm:$0xff] }
 0x48a   : > { %v9496_v49 = vadd.f32 %v3292_v6, %v9359_v22  ;;  %v3298_v1 = vmul.f32 %v9323_v54, %v11182_v11  ;;  %v3297_v25 = vmul.f32 %v9323_v54, %v11183_v50  ;;  %v3473_v42 = vmul.f32 %v9469_v36, %v11184_v62  ;;  %v11185_v28 = vld [vmem:[#allocation339_spill] sm:$0xff]  ;;  %v11186_v6 = vld [vmem:[#allocation340_spill] sm:$0xff]  ;;  %v11189_v62 = vld [vmem:[#allocation341_spill] sm:$0xff] }
 0x48b   : > { %v9505_v18 = vadd.f32 %v3291_v24, %v9362_v44  ;;  %v9508_v9 = vadd.f32 %v3294_v21, %v9365_v56  ;;  %v3472_v22 = vmul.f32 %v9469_v36, %v11185_v28  ;;  %v3475_v11 = vmul.f32 %v9469_v36, %v11186_v6  ;;  %v9514_v35 = vpop.permute.xlu1 %4341  ;;  %v9516_v54 = vpop.permute.xlu0 %4336  ;;  %v11190_v24 = vld [vmem:[#allocation342_spill] sm:$0xff]  ;;  %v11191_v6 = vld [vmem:[#allocation343_spill] sm:$0xff] }
 0x48c   : > { %11187 = vst [vmem:[#allocation80_spill] sm:$0xff] %v9514_v35  ;;  %11188 = vst [vmem:[#allocation81_spill] sm:$0xff] %v9516_v54  ;;  %v9519_v50 = vadd.f32 %v3293_v27, %v9370_v19  ;;  %v3474_v44 = vmul.f32 %v9469_v36, %v11189_v62  ;;  %v3477_v56 = vmul.f32 %v9469_v36, %v11190_v24  ;;  %4937 = vperm.xlu1 %5821, %v5752_v14   ;;  %v11192_v35 = vld [vmem:[#allocation344_spill] sm:$0xff]  ;;  %v5754_v27 = vld [vmem:[%s5961_s28 + $0x64] sm:$0xff] }
 0x48d   : > { %4927 = vperm.xlu0 %5820, %v5750_v58   ;;  %v9526_v21 = vadd.f32 %v3296_v8, %v9373_v7  ;;  %v9529_v28 = vadd.f32 %v3295_v46, %v9384_v52  ;;  %v3476_v54 = vmul.f32 %v9469_v36, %v11191_v6  ;;  %v3479_v19 = vmul.f32 %v9469_v36, %v11192_v35  ;;  %v11193_v8 = vld [vmem:[#allocation345_spill] sm:$0xff]  ;;  %v11194_v58 = vld [vmem:[#allocation346_spill] sm:$0xff] }
 0x48e   : > { %v9538_v62 = vadd.f32 %v3298_v1, %v9387_v16  ;;  %v9541_v14 = vadd.f32 %v3297_v25, %v9392_v37  ;;  %v9544_v7 = vadd.f32 %v3473_v42, %v9395_v12  ;;  %v3478_v52 = vmul.f32 %v9469_v36, %v11193_v8  ;;  %v11195_v1 = vld [vmem:[#allocation347_spill] sm:$0xff]  ;;  %v11199_v6 = vld [vmem:[#allocation349_spill] sm:$0xff] }
 0x48f   : > { %v9549_v46 = vadd.f32 %v3472_v22, %v9404_v39  ;;  %v9552_v35 = vadd.f32 %v3475_v11, %v9413_v3  ;;  %v3481_v16 = vmul.f32 %v9469_v36, %v11194_v58  ;;  %v3480_v37 = vmul.f32 %v9469_v36, %v11195_v1  ;;  %v9558_v25 = vpop.permute.xlu1 %4351  ;;  %v9560_v12 = vpop.permute.xlu0 %4346  ;;  %v11198_v22 = vld [vmem:[#allocation348_spill] sm:$0xff]  ;;  %v11200_v58 = vld [vmem:[#allocation350_spill] sm:$0xff]  ;;  %v11201_v1 = vld [vmem:[#allocation351_spill] sm:$0xff] }
 0x490   : > { %11196 = vst [vmem:[#allocation82_spill] sm:$0xff] %v9558_v25  ;;  %11197 = vst [vmem:[#allocation83_spill] sm:$0xff] %v9560_v12  ;;  %v9563_v42 = vadd.f32 %v3474_v44, %v9416_v15  ;;  %v9566_v39 = vadd.f32 %v3477_v56, %v9427_v40  ;;  %v3483_v3 = vmul.f32 %v9469_v36, %v11198_v22  ;;  %4947 = vperm.xlu1 %5821, %v5754_v27   ;;  %v5756_v44 = vld [vmem:[%s5961_s28 + $0x74] sm:$0xff]  ;;  %v5755_v40 = vld [vmem:[%s5961_s28 + $0x6c] sm:$0xf] }
 0x491   : > { %4942 = vperm.xlu0 %5820, %v5753_v45   ;;  %v9571_v11 = vadd.f32 %v3476_v54, %v9434_v20  ;;  %v9574_v24 = vadd.f32 %v3479_v19, %v9437_v5  ;;  %v3482_v8 = vmul.f32 %v9469_v36, %v11199_v6  ;;  %v3485_v15 = vmul.f32 %v9469_v36, %v11200_v58  ;;  %v11202_v27 = vld [vmem:[#allocation352_spill] sm:$0xff]  ;;  %v11203_v54 = vld [vmem:[#allocation353_spill] sm:$0xff]  ;;  %v11204_v6 = vld [vmem:[#allocation354_spill] sm:$0xff] }
 0x492   : > { %v9583_v56 = vadd.f32 %v3478_v52, %v9446_v53  ;;  %v3484_v45 = vmul.f32 %v9469_v36, %v11201_v1  ;;  %v3487_v20 = vmul.f32 %v9469_v36, %v11202_v27  ;;  %v3486_v5 = vmul.f32 %v9469_v36, %v11203_v54  ;;  %v11205_v52 = vld [vmem:[#allocation355_spill] sm:$0xff]  ;;  %v11209_v12 = vld [vmem:[#allocation357_spill] sm:$0xff] }
 0x493   : > { %v9592_v19 = vadd.f32 %v3481_v16, %v9449_v17  ;;  %v9595_v22 = vadd.f32 %v3480_v37, %v9452_v26  ;;  %v3489_v53 = vmul.f32 %v9469_v36, %v11204_v6  ;;  %v3488_v58 = vmul.f32 %v9469_v36, %v11205_v52  ;;  %v9601_v1 = vpop.permute.xlu1 %4361  ;;  %v9603_v27 = vpop.permute.xlu0 %4356  ;;  %v11208_v17 = vld [vmem:[#allocation356_spill] sm:$0xff]  ;;  %v9615_v37 = vld [vmem:[%s10411_s1 + $0x11] ss:$0 sm:$0xff] }
 0x494   : > { %11206 = vst [vmem:[#allocation84_spill] sm:$0xff] %v9601_v1  ;;  %11207 = vst [vmem:[#allocation85_spill] sm:$0xff] %v9603_v27  ;;  %v9606_v54 = vadd.f32 %v3483_v3, %v9457_v31  ;;  %v3491_v16 = vmul.f32 %v9469_v36, %v11208_v17  ;;  %v3490_v26 = vmul.f32 %v9469_v36, %v11209_v12  ;;  %4957 = vperm.xlu1 %5821, %v5756_v44   ;;  %v11210_v31 = vld [vmem:[#allocation358_spill] sm:$0xff]  ;;  %v11211_v17 = vld [vmem:[#allocation359_spill] sm:$0xff] }
 0x495   : > { %4952 = vperm.xlu0 %5820, %v5755_v40   ;;  %v9618_v6 = vadd.f32 %v3482_v8, %v9460_v59  ;;  %v9621_v52 = vadd.f32 %v3485_v15, %v9476_v47  ;;  %v3493_v3 = vmul.f32 %v9469_v36, %v11210_v31  ;;  %v3492_v27 = vmul.f32 %v9469_v36, %v11211_v17  ;;  %v5758_v12 = vld [vmem:[%s5961_s28 + $0x84] sm:$0xff]  ;;  %v5757_v1 = vld [vmem:[%s5961_s28 + $0x7c] sm:$0xf] }
 0x496   : > { %v9630_v25 = vadd.f32 %v3484_v45, %v9479_v0  ;;  %v9633_v44 = vadd.f32 %v3487_v20, %v9484_v60  ;;  %v9636_v59 = vadd.f32 %v3486_v5, %v9487_v48  ;;  %v11212_v8 = vld [vmem:[#allocation360_spill] sm:$0xff]  ;;  %v9641_v15 = vadd.f32 %v3489_v53, %v9496_v49  ;;  %v11213_v31 = vld [vmem:[#allocation361_spill] sm:$0xff]  ;;  %v11214_v45 = vld [vmem:[#allocation362_spill] sm:$0xff] }
 0x497   : > { %v3495_v47 = vmul.f32 %v9469_v36, %v11212_v8  ;;  %v9644_v40 = vadd.f32 %v3488_v58, %v9505_v18  ;;  %v3494_v0 = vmul.f32 %v9469_v36, %v11213_v31  ;;  %v3670_v60 = vmul.f32 %v9615_v37, %v11214_v45  ;;  %v9650_v20 = vpop.permute.xlu1 %4371  ;;  %v9652_v48 = vpop.permute.xlu0 %4366  ;;  %v11215_v53 = vld [vmem:[#allocation363_spill] sm:$0xff]  ;;  %v11216_v17 = vld [vmem:[#allocation5_spill] sm:$0xff]  ;;  %v11217_v31 = vld [vmem:[#allocation364_spill] sm:$0xff] }
 0x498   : > { %v9655_v5 = vadd.f32 %v3491_v16, %v9508_v9  ;;  %v9658_v49 = vadd.f32 %v3490_v26, %v9519_v50  ;;  %v3669_v18 = vmul.f32 %v9615_v37, %v11215_v53  ;;  %4967 = vperm.xlu1 %5821, %v5758_v12   ;;  %v9663_v36 = vadd.f32 %v3493_v3, %v9526_v21  ;;  %v5760_v16 = vld [vmem:[%s5961_s28 + $0x94] sm:$0xff]  ;;  %v5759_v50 = vld [vmem:[%s5961_s28 + $0x8c] sm:$0xf] }
 0x499   : > { %4962 = vperm.xlu0 %5820, %v5757_v1   ;;  %v9666_v58 = vadd.f32 %v3492_v27, %v9529_v28  ;;  %v3672_v8 = vmul.f32 %v9615_v37, %v11216_v17  ;;  %v3671_v9 = vmul.f32 %v9615_v37, %v11217_v31  ;;  %v9675_v26 = vadd.f32 %v3495_v47, %v9538_v62  ;;  %v11218_v45 = vld [vmem:[#allocation6_spill] sm:$0xff]  ;;  %v11219_v12 = vld [vmem:[#allocation7_spill] sm:$0xff] }
 0x49a   : > { %v3674_v1 = vmul.f32 %v9615_v37, %v11218_v45  ;;  %v3673_v21 = vmul.f32 %v9615_v37, %v11219_v12  ;;  %v3676_v28 = vmul.f32 %v9615_v37, %v7487_v55  ;;  %v9684_v27 = vadd.f32 %v3494_v0, %v9541_v14  ;;  %v11220_v45 = vld [vmem:[#allocation8_spill] sm:$0xff]  ;;  %v11221_v12 = vld [vmem:[#allocation9_spill] sm:$0xff] }
 0x49b   : > { %v9687_v3 = vadd.f32 %v3670_v60, %v9544_v7  ;;  %v3675_v62 = vmul.f32 %v9615_v37, %v7489_v33  ;;  %v3678_v47 = vmul.f32 %v9615_v37, %v7530_v34  ;;  %v9693_v53 = vpop.permute.xlu1 %4381  ;;  %v9698_v55 = vadd.f32 %v3669_v18, %v9549_v46  ;;  %v5762_v60 = vld [vmem:[%s5961_s28 + $0xa4] sm:$0xff]  ;;  %v5761_v18 = vld [vmem:[%s5961_s28 + $0x9c] sm:$0xf] }
 0x49c   : > { %v9695_v17 = vpop.permute.xlu0 %4376  ;;  %v3677_v14 = vmul.f32 %v9615_v37, %v7532_v2  ;;  %v3680_v7 = vmul.f32 %v9615_v37, %v7574_v23  ;;  %4977 = vperm.xlu1 %5821, %v5760_v16   ;;  %v9705_v33 = vadd.f32 %v3672_v8, %v9552_v35  ;;  %v9708_v34 = vadd.f32 %v3671_v9, %v9563_v42  ;;  %v5763_v9 = vld [vmem:[%s5961_s28 + $0xac] sm:$0xf] }
 0x49d   : > { %4972 = vperm.xlu0 %5820, %v5759_v50   ;;  %v3679_v0 = vmul.f32 %v9615_v37, %v7576_v41  ;;  %v3682_v46 = vmul.f32 %v9615_v37, %v7622_v43  ;;  %v9717_v2 = vadd.f32 %v3674_v1, %v9566_v39  ;;  %v9720_v23 = vadd.f32 %v3673_v21, %v9571_v11  ;;  %v11222_v21 = vld [vmem:[#allocation10_spill] sm:$0xff] }
 0x49e   : > { %v9723_v35 = vadd.f32 %v3676_v28, %v9574_v24  ;;  %v3681_v42 = vmul.f32 %v9615_v37, %v7624_v57  ;;  %v9728_v8 = vadd.f32 %v3675_v62, %v9583_v56  ;;  %v9731_v41 = vadd.f32 %v3678_v47, %v9592_v19  ;;  %v11223_v28 = vld [vmem:[#allocation11_spill] sm:$0xff]  ;;  %v11224_v47 = vld [vmem:[#allocation12_spill] sm:$0xff] }
 0x49f   : > { %v3684_v43 = vmul.f32 %v9615_v37, %v7666_v30  ;;  %v3683_v39 = vmul.f32 %v9615_v37, %v7668_v63  ;;  %v9737_v11 = vpop.permute.xlu1 %4391  ;;  %v9742_v57 = vadd.f32 %v3677_v14, %v9595_v22  ;;  %v9745_v56 = vadd.f32 %v3680_v7, %v9606_v54  ;;  %v9762_v54 = vld [vmem:[%s10411_s1 + $0x12] ss:$0 sm:$0xff]  ;;  %v5765_v14 = vld [vmem:[%s5961_s28 + $0xbc] sm:$0xf]  ;;  %v5764_v7 = vld [vmem:[%s5961_s28 + $0xb4] sm:$0xff] }
 0x4a0   : > { %v9739_v24 = vpop.permute.xlu0 %4386  ;;  %v3686_v19 = vmul.f32 %v9615_v37, %v7709_v38  ;;  %4987 = vperm.xlu1 %5821, %v5762_v60   ;;  %v9750_v30 = vadd.f32 %v3679_v0, %v9618_v6  ;;  %v9753_v63 = vadd.f32 %v3682_v46, %v9621_v52  ;;  %v3685_v31 = vmul.f32 %v9615_v37, %v7711_v13  ;;  %v5740_v38 = vld [vmem:[%s5961_s28 + $0xbb] sm:$0xf]  ;;  %v11227_v60 = vld [vmem:[#allocation13_spill] sm:$0xff] }
 0x4a1   : > { %4982 = vperm.xlu0 %5820, %v5761_v18   ;;  %v3688_v22 = vmul.f32 %v9615_v37, %v7758_v51  ;;  %v9767_v16 = vadd.f32 %v3681_v42, %v9630_v25  ;;  %v3687_v6 = vmul.f32 %v9615_v37, %v7760_v29  ;;  %v3690_v52 = vmul.f32 %v9615_v37, %v7801_v10 }
 0x4a2   : > { %v3689_v13 = vmul.f32 %v9615_v37, %v7803_v61  ;;  %v9776_v51 = vadd.f32 %v3684_v43, %v9633_v44  ;;  %v9779_v50 = vadd.f32 %v3683_v39, %v9636_v59  ;;  %v3692_v25 = vmul.f32 %v9615_v37, %v7845_v32  ;;  %v11228_v43 = vld [vmem:[#allocation14_spill] sm:$0xff]  ;;  %v11229_v39 = vld [vmem:[#allocation15_spill] sm:$0xff] }
 0x4a3   : > { %v3691_v29 = vmul.f32 %v9615_v37, %v11220_v45  ;;  %v9785_v1 = vpop.permute.xlu1 %4401  ;;  %v9790_v61 = vadd.f32 %v3686_v19, %v9641_v15  ;;  %v3867_v44 = vmul.f32 %v9762_v54, %v11221_v12  ;;  %v3866_v59 = vmul.f32 %v9762_v54, %v11222_v21  ;;  %v11235_v21 = vld [vmem:[#allocation21_spill] sm:$0xff] }
 0x4a4   : > { %v9787_v10 = vpop.permute.xlu0 %4396  ;;  %4805 = vperm.xlu1 %5821, %v5740_v38   ;;  %v9797_v32 = vadd.f32 %v3685_v31, %v9644_v40  ;;  %v9800_v37 = vadd.f32 %v3688_v22, %v9655_v5  ;;  %v3869_v62 = vmul.f32 %v9762_v54, %v11223_v28  ;;  %v3868_v15 = vmul.f32 %v9762_v54, %v11224_v47  ;;  %v11230_v22 = vld [vmem:[#allocation16_spill] sm:$0xff]  ;;  %v11237_v47 = vld [vmem:[#allocation23_spill] sm:$0xff] }
 0x4a5   : > { %4992 = vperm.xlu0 %5820, %v5763_v9   ;;  %v9809_v0 = vadd.f32 %v3687_v6, %v9658_v49  ;;  %v9812_v46 = vadd.f32 %v3690_v52, %v9663_v36  ;;  %v9815_v40 = vadd.f32 %v3689_v13, %v9666_v58  ;;  %v3871_v5 = vmul.f32 %v9762_v54, %v11227_v60  ;;  %v11231_v6 = vld [vmem:[#allocation17_spill] sm:$0xff]  ;;  %v11232_v13 = vld [vmem:[#allocation18_spill] sm:$0xff] }
 0x4a6   : > { %v9820_v18 = vadd.f32 %v3692_v25, %v9675_v26  ;;  %v9823_v42 = vadd.f32 %v3691_v29, %v9684_v27  ;;  %v3870_v49 = vmul.f32 %v9762_v54, %v11228_v43  ;;  %v3873_v36 = vmul.f32 %v9762_v54, %v11229_v39  ;;  %v5742_v25 = vld [vmem:[%s5961_s28 + $0xcb] sm:$0xf]  ;;  %v11233_v29 = vld [vmem:[#allocation19_spill] sm:$0xff]  ;;  %v11239_v43 = vld [vmem:[#allocation25_spill] sm:$0xff] }
 0x4a7   : > { %11225 = vst [vmem:[#allocation86_spill] sm:$0xff] %v9812_v46  ;;  %11226 = vst [vmem:[#allocation87_spill] sm:$0xff] %v9815_v40  ;;  %v9829_v19 = vpop.permute.xlu1 %4411  ;;  %v9834_v31 = vadd.f32 %v3867_v44, %v9687_v3  ;;  %v9837_v26 = vadd.f32 %v3866_v59, %v9698_v55  ;;  %v3872_v27 = vmul.f32 %v9762_v54, %v11230_v22  ;;  %v5741_v55 = vld [vmem:[%s5961_s28 + $0xc3] sm:$0xff]  ;;  %v11234_v44 = vld [vmem:[#allocation20_spill] sm:$0xff] }
 0x4a8   : > { %v9831_v58 = vpop.permute.xlu0 %4406  ;;  %5002 = vperm.xlu1 %5821, %v5765_v14   ;;  %v9842_v38 = vadd.f32 %v3869_v62, %v9705_v33  ;;  %v9845_v9 = vadd.f32 %v3868_v15, %v9708_v34  ;;  %v3875_v52 = vmul.f32 %v9762_v54, %v11231_v6  ;;  %v3874_v3 = vmul.f32 %v9762_v54, %v11232_v13  ;;  %v11236_v62 = vld [vmem:[#allocation22_spill] sm:$0xff]  ;;  %v11241_v6 = vld [vmem:[#allocation27_spill] sm:$0xff] }
 0x4a9   : > { %4997 = vperm.xlu0 %5820, %v5764_v7   ;;  %v9854_v45 = vadd.f32 %v3871_v5, %v9717_v2  ;;  %v3877_v12 = vmul.f32 %v9762_v54, %v11233_v29  ;;  %v3876_v33 = vmul.f32 %v9762_v54, %v11234_v44  ;;  %v3879_v34 = vmul.f32 %v9762_v54, %v11235_v21  ;;  %v5767_v13 = vld [vmem:[%s5961_s28 + $0xcc] sm:$0xf]  ;;  %v11243_v21 = vld [vmem:[#allocation31_spill] sm:$0xff] }
 0x4aa   : > { %v9863_v59 = vadd.f32 %v3870_v49, %v9720_v23  ;;  %v9866_v28 = vadd.f32 %v3873_v36, %v9723_v35  ;;  %v3878_v2 = vmul.f32 %v9762_v54, %v11236_v62  ;;  %v3881_v15 = vmul.f32 %v9762_v54, %v11237_v47  ;;  %v11238_v23 = vld [vmem:[#allocation24_spill] sm:$0xff]  ;;  %v11240_v36 = vld [vmem:[#allocation26_spill] sm:$0xff]  ;;  %v11245_v62 = vld [vmem:[#allocation33_spill] sm:$0xff] }
 0x4ab   : > { %v9872_v14 = vpop.permute.xlu1 %4421  ;;  %v9877_v60 = vadd.f32 %v3872_v27, %v9728_v8  ;;  %v3880_v5 = vmul.f32 %v9762_v54, %v11238_v23  ;;  %v3883_v35 = vmul.f32 %v9762_v54, %v11239_v43  ;;  %v9884_v49 = vadd.f32 %v3875_v52, %v9731_v41  ;;  %v9896_v27 = vld [vmem:[%s10411_s1 + $0x13] ss:$0 sm:$0xff]  ;;  %v11242_v52 = vld [vmem:[#allocation28_spill] sm:$0xff] }
 0x4ac   : > { %v9874_v7 = vpop.permute.xlu0 %4416  ;;  %4815 = vperm.xlu1 %5821, %v5742_v25   ;;  %v9887_v39 = vadd.f32 %v3874_v3, %v9742_v57  ;;  %v3882_v22 = vmul.f32 %v9762_v54, %v11240_v36  ;;  %v3885_v8 = vmul.f32 %v9762_v54, %v11241_v6  ;;  %v5766_v25 = vld [vmem:[%s5961_s28 + $0xc4] sm:$0xff]  ;;  %v9904_v41 = vadd.f32 %v3876_v33, %v9750_v30  ;;  %v11247_v43 = vld [vmem:[#allocation56_spill] sm:$0xff] }
 0x4ad   : > { %4810 = vperm.xlu0 %5820, %v5741_v55   ;;  %v9901_v55 = vadd.f32 %v3877_v12, %v9745_v56  ;;  %v9907_v57 = vadd.f32 %v3879_v34, %v9753_v63  ;;  %v3884_v3 = vmul.f32 %v9762_v54, %v11242_v52  ;;  %v9912_v29 = vadd.f32 %v3878_v2, %v9767_v16  ;;  %v11244_v12 = vld [vmem:[#allocation32_spill] sm:$0xff]  ;;  %v11248_v36 = vld [vmem:[#allocation34_spill] sm:$0xff] }
 0x4ae   : > { %v9915_v44 = vadd.f32 %v3881_v15, %v9776_v51  ;;  %v3889_v56 = vmul.f32 %v9762_v54, %v11243_v21  ;;  %v3888_v30 = vmul.f32 %v9762_v54, %v11244_v12  ;;  %v9926_v34 = vadd.f32 %v3880_v5, %v9779_v50  ;;  %v11246_v15 = vld [vmem:[#allocation55_spill] sm:$0xff]  ;;  %v5744_v5 = vld [vmem:[%s5961_s28 + $0xdb] sm:$0xf] }
 0x4af   : > { %v9921_v33 = vpop.permute.xlu1 %4431  ;;  %v9929_v16 = vadd.f32 %v3883_v35, %v9790_v61  ;;  %v4064_v51 = vmul.f32 %v9896_v27, %v11245_v62  ;;  %v9934_v2 = vadd.f32 %v3882_v22, %v9797_v32  ;;  %v9937_v47 = vadd.f32 %v3885_v8, %v9800_v37  ;;  %v5743_v61 = vld [vmem:[%s5961_s28 + $0xd3] sm:$0xff] }
 0x4b0   : > { %v9923_v63 = vpop.permute.xlu0 %4426  ;;  %5012 = vperm.xlu1 %5821, %v5767_v13   ;;  %v4086_v23 = vmul.f32 %v9896_v27, %v11246_v15  ;;  %v4085_v50 = vmul.f32 %v9896_v27, %v11247_v43  ;;  %v9946_v35 = vadd.f32 %v3884_v3, %v9809_v0  ;;  %v4063_v6 = vmul.f32 %v9896_v27, %v11248_v36  ;;  %v11249_v13 = vld [vmem:[#allocation35_spill] sm:$0xff]  ;;  %v11250_v22 = vld [vmem:[#allocation36_spill] sm:$0xff]  ;;  %v11254_v15 = vld [vmem:[#allocation29_spill] sm:$0xff] }
 0x4b1   : > { %5007 = vperm.xlu0 %5820, %v5766_v25   ;;  %v4066_v32 = vmul.f32 %v9896_v27, %v11249_v13  ;;  %v4065_v37 = vmul.f32 %v9896_v27, %v11250_v22  ;;  %v9957_v8 = vld [vmem:[%s10411_s1 + $0x14] ss:$0 sm:$0xff]  ;;  %v3913_v25 = vadd.f32 %v3889_v56, %v9820_v18  ;;  %v3912_v0 = vadd.f32 %v3888_v30, %v9823_v42  ;;  %v11256_v36 = vld [vmem:[#allocation30_spill] sm:$0xff]  ;;  %v11258_v56 = vld [vmem:[#allocation37_spill] sm:$0xff] }
 0x4b2   : > { %v4284_v52 = vmul.f32 %v9957_v8, %v9471_v4  ;;  %v11251_v3 = vld [vmem:[#allocation79_spill] sm:$0xff]  ;;  %v9971_v43 = vmul.f32 %v9762_v54, %v11254_v15  ;;  %v9975_v18 = vmul.f32 %v9762_v54, %v11256_v36  ;;  %v4088_v42 = vadd.f32 %v4064_v51, %v9834_v31 }
 0x4b3   : > { %v4283_v21 = vmul.f32 %v9957_v8, %v11251_v3  ;;  %v9965_v12 = vpop.permute.xlu1 %4441  ;;  %v9981_v4 = vld [vmem:[%s10411_s1 + $0x15] ss:$0 sm:$0xff]  ;;  %v4068_v30 = vmul.f32 %v9896_v27, %v11258_v56  ;;  %v4110_v13 = vadd.f32 %v4086_v23, %v3913_v25  ;;  %v4109_v22 = vadd.f32 %v4085_v50, %v3912_v0  ;;  %v11259_v3 = vld [vmem:[#allocation57_spill] sm:$0xff]  ;;  %v11262_v25 = vld [vmem:[#allocation80_spill] sm:$0xff] }
 0x4b4   : > { %11252 = vst [vmem:[#allocation88_spill] sm:$0xff] %v9965_v12  ;;  %v9967_v62 = vpop.permute.xlu0 %4436  ;;  %11255 = vst [vmem:[#allocation90_spill] sm:$0xff] %v9971_v43  ;;  %4825 = vperm.xlu1 %5821, %v5744_v5   ;;  %v4262_v15 = vmul.f32 %v9957_v8, %v11259_v3  ;;  %v5768_v54 = vld [vmem:[%s5961_s28 + $0xd4] sm:$0xff]  ;;  %v4087_v36 = vadd.f32 %v4063_v6, %v9837_v26  ;;  %v4090_v31 = vadd.f32 %v4066_v32, %v9842_v38  ;;  %v11260_v12 = vld [vmem:[#allocation58_spill] sm:$0xff] }
 0x4b5   : > { %11253 = vst [vmem:[#allocation89_spill] sm:$0xff] %v9967_v62  ;;  %11257 = vst [vmem:[#allocation91_spill] sm:$0xff] %v9975_v18  ;;  %4820 = vperm.xlu0 %5820, %v5743_v61   ;;  %v5769_v62 = vld [vmem:[%s5961_s28 + $0xdc] sm:$0xf]  ;;  %v4089_v51 = vadd.f32 %v4065_v37, %v9845_v9  ;;  %v4261_v5 = vmul.f32 %v9957_v8, %v11260_v12  ;;  %v11261_v61 = vld [vmem:[#allocation38_spill] sm:$0xff]  ;;  %v4308_v23 = vadd.f32 %v4284_v52, %v4110_v13 }
 0x4b6   : > { %v4067_v18 = vmul.f32 %v9896_v27, %v11261_v61  ;;  %v4307_v50 = vadd.f32 %v4283_v21, %v4109_v22  ;;  %v4459_v0 = vmul.f32 %v9981_v4, %v11262_v25  ;;  %v11263_v26 = vld [vmem:[#allocation81_spill] sm:$0xff]  ;;  %v4092_v32 = vadd.f32 %v4068_v30, %v9854_v45  ;;  %v11264_v52 = vld [vmem:[#allocation59_spill] sm:$0xff]  ;;  %v11265_v12 = vld [vmem:[#allocation60_spill] sm:$0xff] }
 0x4b7   : > { %v4452_v56 = vpop.permute.xlu1 %4451  ;;  %v4458_v38 = vmul.f32 %v9981_v4, %v11263_v26  ;;  %v4286_v37 = vadd.f32 %v4262_v15, %v4088_v42  ;;  %v4264_v21 = vmul.f32 %v9957_v8, %v11264_v52  ;;  %v4263_v13 = vmul.f32 %v9957_v8, %v11265_v12  ;;  %v10010_v22 = vld [vmem:[%s10411_s1 + $0x16] ss:$0 sm:$0xff]  ;;  %v5746_v61 = vld [vmem:[%s5961_s28 + $0xeb] sm:$0xf]  ;;  %v5745_v25 = vld [vmem:[%s5961_s28 + $0xe3] sm:$0xff] }
 0x4b8   : > { %v4447_v3 = vpop.permute.xlu0 %4446  ;;  %v4481_v9 = vmul.f32 %v9981_v4, %v4452_v56  ;;  %5022 = vperm.xlu1 %5821, %v5769_v62   ;;  %v11266_v56 = vld [vmem:[#allocation39_spill] sm:$0xff]  ;;  %v4091_v42 = vadd.f32 %v4067_v18, %v9863_v59  ;;  %v11267_v15 = vld [vmem:[#allocation82_spill] sm:$0xff] }
 0x4b9   : > { %v4480_v6 = vmul.f32 %v9981_v4, %v4447_v3  ;;  %5017 = vperm.xlu0 %5820, %v5768_v54   ;;  %v4070_v62 = vmul.f32 %v9896_v27, %v11266_v56  ;;  %v4285_v54 = vadd.f32 %v4261_v5, %v4087_v36  ;;  %v4483_v30 = vadd.f32 %v4459_v0, %v4286_v37  ;;  %v11268_v52 = vld [vmem:[#allocation83_spill] sm:$0xff]  ;;  %v11270_v0 = vld [vmem:[#allocation61_spill] sm:$0xff] }
 0x4ba   : > { %v10016_v3 = vadd.f32 %v4481_v9, %v4308_v23  ;;  %v4461_v26 = vmul.f32 %v9981_v4, %v11267_v15  ;;  %v4460_v12 = vmul.f32 %v9981_v4, %v11268_v52  ;;  %v11269_v23 = vld [vmem:[#allocation40_spill] sm:$0xff]  ;;  %v4288_v18 = vadd.f32 %v4264_v21, %v4090_v31  ;;  %v5770_v37 = vld [vmem:[%s5961_s28 + $0xe4] sm:$0xff] }
 0x4bb   : > { %v10018_v45 = vadd.f32 %v4480_v6, %v4307_v50  ;;  %v4539_v40 = vpop.permute.xlu1 %4538  ;;  %v4482_v46 = vadd.f32 %v4458_v38, %v4285_v54  ;;  %v4069_v59 = vmul.f32 %v9896_v27, %v11269_v23  ;;  %v4287_v50 = vadd.f32 %v4263_v13, %v4089_v51  ;;  %v5771_v6 = vld [vmem:[%s5961_s28 + $0xec] sm:$0xf]  ;;  %v11273_v21 = vld [vmem:[#allocation84_spill] sm:$0xff]  ;;  %v11275_v23 = vld [vmem:[#allocation63_spill] sm:$0xff] }
 0x4bc   : > { %v4534_v43 = vpop.permute.xlu0 %4533  ;;  %v4656_v36 = vmul.f32 %v10010_v22, %v4539_v40  ;;  %4835 = vperm.xlu1 %5821, %v5746_v61   ;;  %v4266_v9 = vmul.f32 %v9957_v8, %v11270_v0  ;;  %v4094_v56 = vadd.f32 %v4070_v62, %v9866_v28  ;;  %v11271_v15 = vld [vmem:[#allocation62_spill] sm:$0xff]  ;;  %v11272_v61 = vld [vmem:[#allocation41_spill] sm:$0xff]  ;;  %v4485_v31 = vadd.f32 %v4461_v26, %v4288_v18  ;;  %v5747_v0 = vld [vmem:[%s5961_s28 + $0xf3] sm:$0xff] }
 0x4bd   : > { %v4655_v5 = vmul.f32 %v10010_v22, %v4534_v43  ;;  %4830 = vperm.xlu0 %5820, %v5745_v25   ;;  %v4265_v38 = vmul.f32 %v9957_v8, %v11271_v15  ;;  %v4072_v25 = vmul.f32 %v9896_v27, %v11272_v61  ;;  %v4484_v51 = vadd.f32 %v4460_v12, %v4287_v50  ;;  %v11274_v28 = vld [vmem:[#allocation85_spill] sm:$0xff]  ;;  %v11276_v12 = vld [vmem:[#allocation64_spill] sm:$0xff]  ;;  %v11277_v15 = vld [vmem:[#allocation42_spill] sm:$0xff] }
 0x4be   : > { %v10036_v40 = vadd.f32 %v4656_v36, %v4483_v30  ;;  %v4463_v13 = vmul.f32 %v9981_v4, %v11273_v21  ;;  %v4462_v62 = vmul.f32 %v9981_v4, %v11274_v28  ;;  %v4093_v36 = vadd.f32 %v4069_v59, %v9877_v60  ;;  %v5748_v50 = vld [vmem:[%s5961_s28 + $0xfb] sm:$0xf] }
 0x4bf   : > { %v10038_v43 = vadd.f32 %v4655_v5, %v4482_v46  ;;  %v4549_v54 = vpop.permute.xlu1 %4548  ;;  %v4290_v5 = vadd.f32 %v4266_v9, %v4092_v32  ;;  %v4268_v26 = vmul.f32 %v9957_v8, %v11275_v23  ;;  %v4267_v18 = vmul.f32 %v9957_v8, %v11276_v12 }
 0x4c0   : > { %v4544_v52 = vpop.permute.xlu0 %4543  ;;  %v4658_v30 = vmul.f32 %v10010_v22, %v4549_v54  ;;  %5032 = vperm.xlu1 %5821, %v5771_v6   ;;  %v4071_v61 = vmul.f32 %v9896_v27, %v11277_v15  ;;  %v4289_v21 = vadd.f32 %v4265_v38, %v4091_v42  ;;  %v4096_v60 = vadd.f32 %v4072_v25, %v9884_v49  ;;  %v11279_v25 = vld [vmem:[#allocation44_spill] sm:$0xff] }
 0x4c1   : > { %v4657_v46 = vmul.f32 %v10010_v22, %v4544_v52  ;;  %5027 = vperm.xlu0 %5820, %v5770_v37   ;;  %v4487_v32 = vadd.f32 %v4463_v13, %v4290_v5  ;;  %v4465_v59 = vmul.f32 %v9981_v4, %v9650_v20  ;;  %v4464_v9 = vmul.f32 %v9981_v4, %v9652_v48  ;;  %v11280_v48 = vld [vmem:[#allocation65_spill] sm:$0xff] }
 0x4c2   : > { %v10057_v54 = vadd.f32 %v4658_v30, %v4485_v31  ;;  %v4486_v28 = vadd.f32 %v4462_v62, %v4289_v21  ;;  %v11278_v31 = vld [vmem:[#allocation43_spill] sm:$0xff]  ;;  %v4292_v13 = vadd.f32 %v4268_v26, %v4094_v56  ;;  %v4291_v20 = vadd.f32 %v4267_v18, %v4093_v36  ;;  %v5773_v30 = vld [vmem:[%s5961_s28 + $0xfc] sm:$0xf]  ;;  %v11281_v62 = vld [vmem:[#allocation66_spill] sm:$0xff] }
 0x4c3   : > { %v10059_v52 = vadd.f32 %v4657_v46, %v4484_v51  ;;  %v4559_v6 = vpop.permute.xlu1 %4558  ;;  %v4074_v49 = vmul.f32 %v9896_v27, %v11278_v31  ;;  %v4073_v51 = vmul.f32 %v9896_v27, %v11279_v25  ;;  %v5772_v46 = vld [vmem:[%s5961_s28 + $0xf4] sm:$0xff]  ;;  %v4270_v5 = vmul.f32 %v9957_v8, %v11280_v48  ;;  %v11284_v31 = vld [vmem:[#allocation45_spill] sm:$0xff] }
 0x4c4   : > { %v4554_v37 = vpop.permute.xlu0 %4553  ;;  %v4660_v42 = vmul.f32 %v10010_v22, %v4559_v6  ;;  %4845 = vperm.xlu1 %5821, %v5748_v50   ;;  %v4269_v23 = vmul.f32 %v9957_v8, %v11281_v62  ;;  %v4489_v15 = vadd.f32 %v4465_v59, %v4292_v13  ;;  %v4488_v21 = vadd.f32 %v4464_v9, %v4291_v20  ;;  %v11283_v9 = vld [vmem:[#allocation68_spill] sm:$0xff]  ;;  %v11285_v13 = vld [vmem:[#allocation46_spill] sm:$0xff] }
 0x4c5   : > { %v4659_v38 = vmul.f32 %v10010_v22, %v4554_v37  ;;  %4840 = vperm.xlu0 %5820, %v5747_v0   ;;  %v4095_v0 = vadd.f32 %v4071_v61, %v9887_v39  ;;  %v4467_v56 = vmul.f32 %v9981_v4, %v9693_v53  ;;  %v4466_v18 = vmul.f32 %v9981_v4, %v9695_v17  ;;  %v11282_v61 = vld [vmem:[#allocation67_spill] sm:$0xff] }
 0x4c6   : > { %v10078_v12 = vadd.f32 %v4660_v42, %v4487_v32  ;;  %v4098_v32 = vadd.f32 %v4074_v49, %v9901_v55  ;;  %v4097_v39 = vadd.f32 %v4073_v51, %v9904_v41  ;;  %v4272_v59 = vmul.f32 %v9957_v8, %v11282_v61 }
 0x4c7   : > { %v10080_v50 = vadd.f32 %v4659_v38, %v4486_v28  ;;  %v4569_v36 = vpop.permute.xlu1 %4568  ;;  %v4271_v53 = vmul.f32 %v9957_v8, %v11283_v9  ;;  %v4294_v28 = vadd.f32 %v4270_v5, %v4096_v60  ;;  %v4293_v42 = vadd.f32 %v4269_v23, %v4095_v0  ;;  %v11286_v5 = vld [vmem:[#allocation47_spill] sm:$0xff]  ;;  %v11287_v23 = vld [vmem:[#allocation48_spill] sm:$0xff] }
 0x4c8   : > { %v4564_v26 = vpop.permute.xlu0 %4563  ;;  %v4662_v6 = vmul.f32 %v10010_v22, %v4569_v36  ;;  %5042 = vperm.xlu1 %5821, %v5773_v30   ;;  %v4076_v25 = vmul.f32 %v9896_v27, %v11284_v31  ;;  %v4075_v55 = vmul.f32 %v9896_v27, %v11285_v13  ;;  %v4469_v41 = vmul.f32 %v9981_v4, %v9737_v11  ;;  %v11288_v11 = vld [vmem:[#allocation69_spill] sm:$0xff]  ;;  %v11291_v13 = vld [vmem:[#allocation72_spill] sm:$0xff] }
 0x4c9   : > { %v4661_v37 = vmul.f32 %v10010_v22, %v4564_v26  ;;  %5037 = vperm.xlu0 %5820, %v5772_v46   ;;  %v4468_v49 = vmul.f32 %v9981_v4, %v9739_v24  ;;  %v4491_v60 = vadd.f32 %v4467_v56, %v4294_v28  ;;  %v4490_v30 = vadd.f32 %v4466_v18, %v4293_v42  ;;  %v11289_v24 = vld [vmem:[#allocation70_spill] sm:$0xff] }
 0x4ca   : > { %v10095_v38 = vadd.f32 %v4662_v6, %v4489_v15  ;;  %v4078_v62 = vmul.f32 %v9896_v27, %v11286_v5  ;;  %v4077_v0 = vmul.f32 %v9896_v27, %v11287_v23  ;;  %v4296_v15 = vadd.f32 %v4272_v59, %v4098_v32 }
 0x4cb   : > { %v10097_v17 = vadd.f32 %v4661_v37, %v4488_v21  ;;  %v4579_v51 = vpop.permute.xlu1 %4578  ;;  %v4295_v21 = vadd.f32 %v4271_v53, %v4097_v39  ;;  %v4274_v36 = vmul.f32 %v9957_v8, %v11288_v11  ;;  %v4273_v26 = vmul.f32 %v9957_v8, %v11289_v24  ;;  %v11295_v11 = vld [vmem:[#allocation52_spill] sm:$0xff] }
 0x4cc   : > { %v4574_v20 = vpop.permute.xlu0 %4573  ;;  %v4664_v46 = vmul.f32 %v10010_v22, %v4579_v51  ;;  %v4100_v6 = vadd.f32 %v4076_v25, %v9907_v57  ;;  %v4099_v37 = vadd.f32 %v4075_v55, %v9912_v29  ;;  %v4493_v61 = vadd.f32 %v4469_v41, %v4296_v15  ;;  %v11290_v25 = vld [vmem:[#allocation71_spill] sm:$0xff] }
 0x4cd   : > { %v4663_v48 = vmul.f32 %v10010_v22, %v4574_v20  ;;  %v4492_v9 = vadd.f32 %v4468_v49, %v4295_v21  ;;  %v4471_v32 = vmul.f32 %v9981_v4, %v9785_v1  ;;  %v4470_v39 = vmul.f32 %v9981_v4, %v9787_v10  ;;  %v11292_v10 = vld [vmem:[#allocation49_spill] sm:$0xff]  ;;  %v11294_v15 = vld [vmem:[#allocation51_spill] sm:$0xff] }
 0x4ce   : > { %v10117_v56 = vadd.f32 %v4664_v46, %v4491_v60  ;;  %v4102_v31 = vadd.f32 %v4078_v62, %v9915_v44  ;;  %v4101_v57 = vadd.f32 %v4077_v0, %v9926_v34  ;;  %v4276_v29 = vmul.f32 %v9957_v8, %v11290_v25  ;;  %v11293_v60 = vld [vmem:[#allocation50_spill] sm:$0xff] }
 0x4cf   : > { %v10119_v18 = vadd.f32 %v4663_v48, %v4490_v30  ;;  %v4589_v28 = vpop.permute.xlu1 %4588  ;;  %v4275_v55 = vmul.f32 %v9957_v8, %v11291_v13  ;;  %v4298_v41 = vadd.f32 %v4274_v36, %v4100_v6  ;;  %v4297_v49 = vadd.f32 %v4273_v26, %v4099_v37 }
 0x4d0   : > { %v4584_v42 = vpop.permute.xlu0 %4583  ;;  %v4666_v59 = vmul.f32 %v10010_v22, %v4589_v28  ;;  %v4080_v20 = vmul.f32 %v9896_v27, %v11292_v10  ;;  %v4079_v44 = vmul.f32 %v9896_v27, %v11293_v60  ;;  %v4473_v34 = vmul.f32 %v9981_v4, %v9829_v19  ;;  %v11296_v19 = vld [vmem:[#allocation73_spill] sm:$0xff] }
 0x4d1   : > { %v4665_v53 = vmul.f32 %v10010_v22, %v4584_v42  ;;  %v4472_v30 = vmul.f32 %v9981_v4, %v9831_v58  ;;  %v4495_v5 = vadd.f32 %v4471_v32, %v4298_v41  ;;  %v4494_v62 = vadd.f32 %v4470_v39, %v4297_v49  ;;  %v11297_v58 = vld [vmem:[#allocation74_spill] sm:$0xff]  ;;  %v11299_v41 = vld [vmem:[#allocation76_spill] sm:$0xff] }
 0x4d2   : > { %v10135_v1 = vadd.f32 %v4666_v59, %v4493_v61  ;;  %v4082_v21 = vmul.f32 %v9896_v27, %v11294_v15  ;;  %v4081_v36 = vmul.f32 %v9896_v27, %v11295_v11  ;;  %v4300_v24 = vadd.f32 %v4276_v29, %v4102_v31  ;;  %v11302_v15 = vld [vmem:[#allocation86_spill] sm:$0xff] }
 0x4d3   : > { %v10137_v51 = vadd.f32 %v4665_v53, %v4492_v9  ;;  %v4599_v46 = vpop.permute.xlu1 %4598  ;;  %v4299_v26 = vadd.f32 %v4275_v55, %v4101_v57  ;;  %v4278_v6 = vmul.f32 %v9957_v8, %v11296_v19  ;;  %v4277_v37 = vmul.f32 %v9957_v8, %v11297_v58  ;;  %v11298_v55 = vld [vmem:[#allocation75_spill] sm:$0xff] }
 0x4d4   : > { %v4594_v48 = vpop.permute.xlu0 %4593  ;;  %v4668_v23 = vmul.f32 %v10010_v22, %v4599_v46  ;;  %v4104_v28 = vadd.f32 %v4080_v20, %v9929_v16  ;;  %v4103_v42 = vadd.f32 %v4079_v44, %v9934_v2  ;;  %v4497_v32 = vadd.f32 %v4473_v34, %v4300_v24  ;;  %v11301_v34 = vld [vmem:[#allocation54_spill] sm:$0xff]  ;;  %v11305_v24 = vld [vmem:[#allocation91_spill] sm:$0xff] }
 0x4d5   : > { %v4667_v0 = vmul.f32 %v10010_v22, %v4594_v48  ;;  %v4496_v39 = vadd.f32 %v4472_v30, %v4299_v26  ;;  %v4475_v31 = vmul.f32 %v9981_v4, %v9872_v14  ;;  %v4474_v57 = vmul.f32 %v9981_v4, %v9874_v7  ;;  %v11300_v7 = vld [vmem:[#allocation53_spill] sm:$0xff] }
 0x4d6   : > { %v10157_v61 = vadd.f32 %v4668_v23, %v4495_v5  ;;  %v4106_v13 = vadd.f32 %v4082_v21, %v9937_v47  ;;  %v4105_v16 = vadd.f32 %v4081_v36, %v9946_v35  ;;  %v4280_v2 = vmul.f32 %v9957_v8, %v11298_v55  ;;  %v11303_v21 = vld [vmem:[#allocation90_spill] sm:$0xff]  ;;  %v11304_v36 = vld [vmem:[#allocation87_spill] sm:$0xff] }
 0x4d7   : > { %v10159_v9 = vadd.f32 %v4667_v0, %v4494_v62  ;;  %v4609_v59 = vpop.permute.xlu1 %4608  ;;  %v4279_v49 = vmul.f32 %v9957_v8, %v11299_v41  ;;  %v4302_v10 = vadd.f32 %v4278_v6, %v4104_v28  ;;  %v4301_v20 = vadd.f32 %v4277_v37, %v4103_v42 }
 0x4d8   : > { %v4604_v53 = vpop.permute.xlu0 %4603  ;;  %v4670_v25 = vmul.f32 %v10010_v22, %v4609_v59  ;;  %v4084_v44 = vmul.f32 %v9896_v27, %v11300_v7  ;;  %v4083_v47 = vmul.f32 %v9896_v27, %v11301_v34  ;;  %v4477_v35 = vmul.f32 %v9981_v4, %v9921_v33  ;;  %v11306_v33 = vld [vmem:[#allocation77_spill] sm:$0xff] }
 0x4d9   : > { %v4669_v29 = vmul.f32 %v10010_v22, %v4604_v53  ;;  %v4476_v30 = vmul.f32 %v9981_v4, %v9923_v63  ;;  %v4499_v5 = vadd.f32 %v4475_v31, %v4302_v10  ;;  %v4498_v62 = vadd.f32 %v4474_v57, %v4301_v20  ;;  %v11307_v63 = vld [vmem:[#allocation78_spill] sm:$0xff]  ;;  %v11308_v57 = vld [vmem:[#allocation88_spill] sm:$0xff] }
 0x4da   : > { %v10175_v14 = vadd.f32 %v4670_v25, %v4497_v32  ;;  %v3911_v11 = vadd.f32 %v11303_v21, %v11302_v15  ;;  %v3910_v27 = vadd.f32 %v11305_v24, %v11304_v36  ;;  %v4304_v26 = vadd.f32 %v4280_v2, %v4106_v13 }
 0x4db   : > { %v10177_v60 = vadd.f32 %v4669_v29, %v4496_v39  ;;  %v4619_v46 = vpop.permute.xlu1 %4618  ;;  %v4303_v19 = vadd.f32 %v4279_v49, %v4105_v16  ;;  %v4282_v6 = vmul.f32 %v9957_v8, %v11306_v33  ;;  %v4281_v58 = vmul.f32 %v9957_v8, %v11307_v63  ;;  %v11309_v29 = vld [vmem:[#allocation89_spill] sm:$0xff] }
 0x4dc   : > { %v4614_v48 = vpop.permute.xlu0 %4613  ;;  %v4672_v23 = vmul.f32 %v10010_v22, %v4619_v46  ;;  %v4108_v42 = vadd.f32 %v4084_v44, %v3911_v11  ;;  %v4107_v32 = vadd.f32 %v4083_v47, %v3910_v27  ;;  %v4501_v39 = vadd.f32 %v4477_v35, %v4304_v26 }
 0x4dd   : > { %v4671_v0 = vmul.f32 %v10010_v22, %v4614_v48  ;;  %v4500_v59 = vadd.f32 %v4476_v30, %v4303_v19  ;;  %v4479_v25 = vmul.f32 %v9981_v4, %v11308_v57  ;;  %v4478_v13 = vmul.f32 %v9981_v4, %v11309_v29 }
 0x4de   : > { %v10197_v37 = vadd.f32 %v4672_v23, %v4499_v5  ;;  %v4306_v55 = vadd.f32 %v4282_v6, %v4108_v42  ;;  %v4305_v2 = vadd.f32 %v4281_v58, %v4107_v32  ;;  %v10242_v42 = vld [vmem:[%s10411_s1 + $0x18] ss:$0 sm:$0xff] }
 0x4df   : > { %v10199_v28 = vadd.f32 %v4671_v0, %v4498_v62  ;;  %v4629_v53 = vpop.permute.xlu1 %4628 }
 0x4e0   : > { %v4624_v31 = vpop.permute.xlu0 %4623  ;;  %v4674_v16 = vmul.f32 %v10010_v22, %v4629_v53  ;;  %v4503_v7 = vadd.f32 %v4479_v25, %v4306_v55  ;;  %v4502_v44 = vadd.f32 %v4478_v13, %v4305_v2  ;;  %v10253_v25 = vld [vmem:[%s10412_s2] ss:$0 sm:$0xff] }
 0x4e1   : > { %v4673_v8 = vmul.f32 %v10010_v22, %v4624_v31 }
 0x4e2   : > { %v10207_v41 = vadd.f32 %v4674_v16, %v4501_v39 }
 0x4e3   : > { %v10209_v49 = vadd.f32 %v4673_v8, %v4500_v59  ;;  %v4639_v10 = vpop.permute.xlu1 %4638 }
 0x4e4   : > { %v4634_v20 = vpop.permute.xlu0 %4633  ;;  %v4676_v34 = vmul.f32 %v10010_v22, %v4639_v10 }
 0x4e5   : > { %v4675_v47 = vmul.f32 %v10010_v22, %v4634_v20 }
 0x4e6   : > { %v10213_v35 = vadd.f32 %v4676_v34, %v4503_v7 }
 0x4e7   : > { %v10215_v4 = vadd.f32 %v4675_v47, %v4502_v44  ;;  %v4649_v30 = vpop.permute.xlu1 %4648 }
 0x4e8   : > { %v4644_v46 = vpop.permute.xlu0 %4643  ;;  %v4678_v48 = vmul.f32 %v10010_v22, %v4649_v30 }
 0x4e9   : > { %v4677_v5 = vmul.f32 %v10010_v22, %v4644_v46 }
 0x4ea   : > { %v10220_v62 = vadd.f32 %v4678_v48, %v10016_v3  ;;  %v10232_v3 = vld [vmem:[%s10411_s1 + $0x17] ss:$0 sm:$0xff] }
 0x4eb   : > { %v10223_v23 = vadd.f32 %v4677_v5, %v10018_v45  ;;  %v4736_v0 = vpop.permute.xlu1 %4735 }
 0x4ec   : > { %v4731_v15 = vpop.permute.xlu0 %4730  ;;  %v4853_v58 = vmul.f32 %v10232_v3, %v4736_v0 }
 0x4ed   : > { %v4852_v32 = vmul.f32 %v10232_v3, %v4731_v15 }
 0x4ee   : > { %v4877_v31 = vadd.f32 %v4853_v58, %v10036_v40 }
 0x4ef   : > { %v4746_v21 = vpop.permute.xlu1 %4745  ;;  %v4876_v13 = vadd.f32 %v4852_v32, %v10038_v43 }
 0x4f0   : > { %v4741_v11 = vpop.permute.xlu0 %4740  ;;  %v4855_v7 = vmul.f32 %v10232_v3, %v4746_v21 }
 0x4f1   : > { %v4854_v39 = vmul.f32 %v10232_v3, %v4741_v11 }
 0x4f2   : > { %v4879_v21 = vadd.f32 %v4855_v7, %v10057_v54 }
 0x4f3   : > { %v4756_v36 = vpop.permute.xlu1 %4755  ;;  %v4878_v16 = vadd.f32 %v4854_v39, %v10059_v52 }
 0x4f4   : > { %v4751_v24 = vpop.permute.xlu0 %4750  ;;  %v4857_v44 = vmul.f32 %v10232_v3, %v4756_v36 }
 0x4f5   : > { %v4856_v2 = vmul.f32 %v10232_v3, %v4751_v24 }
 0x4f6   : > { %v4881_v36 = vadd.f32 %v4857_v44, %v10078_v12 }
 0x4f7   : > { %v4766_v27 = vpop.permute.xlu1 %4765  ;;  %v4880_v48 = vadd.f32 %v4856_v2, %v10080_v50 }
 0x4f8   : > { %v4761_v26 = vpop.permute.xlu0 %4760 }
 0x4f9   : > { %v4858_v43 = vmul.f32 %v10232_v3, %v4761_v26 }
 0x4fb   : > { %v10225_v19 = vpop.permute.xlu1 %4775  ;;  %v4882_v58 = vadd.f32 %v4858_v43, %v10097_v17 }
 0x4fc   : > { %v4771_v33 = vpop.permute.xlu0 %4770  ;;  %v4861_v43 = vmul.f32 %v10232_v3, %v10225_v19 }
 0x4fd   : > { %v4860_v32 = vmul.f32 %v10232_v3, %v4771_v33 }
 0x4ff   : > { %v10227_v6 = vpop.permute.xlu1 %4785  ;;  %v4884_v7 = vadd.f32 %v4860_v32, %v10119_v18 }
 0x500   : > { %v4781_v22 = vpop.permute.xlu0 %4780  ;;  %v4863_v18 = vmul.f32 %v10232_v3, %v10227_v6 }
 0x501   : > { %v4862_v2 = vmul.f32 %v10232_v3, %v4781_v22 }
 0x503   : > { %v10234_v45 = vpop.permute.xlu1 %4795 }
 0x504   : > { %v10236_v63 = vpop.permute.xlu0 %4790 }
 0x507   : > { %v4933_v59 = vpop.permute.xlu1 %4932 }
 0x508   : > { %v10246_v53 = vpop.permute.xlu0 %4800  ;;  %v5050_v57 = vmul.f32 %v10242_v42, %v4933_v59 }
 0x50a   : > { %v5074_v29 = vadd.f32 %v5050_v57, %v4877_v31 }
 0x50b   : > { %v4938_v8 = vpop.permute.xlu1 %4937 }
 0x50c   : > { %v4928_v55 = vpop.permute.xlu0 %4927  ;;  %v5105_v10 = vadd.f32 %v10253_v25, %v5074_v29  ;;  %v5051_v40 = vmul.f32 %v10242_v42, %v4938_v8 }
 0x50d   : > { %v5049_v20 = vmul.f32 %v10242_v42, %v4928_v55 }
 0x50e   : > { %v5075_v34 = vadd.f32 %v5051_v40, %v4878_v16  ;;  %v5129_v52 = vmax.f32 %v5105_v10, 0.0  ;;  %v4859_v16 = vmul.f32 %v10232_v3, %v4766_v27 }
 0x50f   : > { %v5073_v47 = vadd.f32 %v5049_v20, %v4876_v13  ;;  %v4948_v30 = vpop.permute.xlu1 %4947 }
 0x510   : > { %v4943_v46 = vpop.permute.xlu0 %4942  ;;  %v5106_v5 = vadd.f32 %v10253_v25, %v5075_v34  ;;  %v5053_v15 = vmul.f32 %v10242_v42, %v4948_v30  ;;  %v5153_v50 = vsel %vm5152_vm0, %v5129_v52, 0.0 }
 0x511   : > { %v5104_v0 = vadd.f32 %v10253_v25, %v5073_v47  ;;  %v5052_v11 = vmul.f32 %v10242_v42, %v4943_v46  ;;  %v4883_v47 = vadd.f32 %v4859_v16, %v10095_v38  ;;  %v4864_v38 = vmul.f32 %v10232_v3, %v10236_v63 }
 0x512   : > { %v5077_v26 = vadd.f32 %v5053_v15, %v4880_v48  ;;  %v5130_v57 = vmax.f32 %v5106_v5, 0.0 }
 0x513   : > { %v5128_v24 = vmax.f32 %v5104_v0, 0.0  ;;  %v5076_v39 = vadd.f32 %v5052_v11, %v4879_v21  ;;  %v4958_v59 = vpop.permute.xlu1 %4957  ;;  %v4886_v0 = vadd.f32 %v4862_v2, %v10137_v51 }
 0x514   : > { %v4953_v31 = vpop.permute.xlu0 %4952  ;;  %v5055_v13 = vmul.f32 %v10242_v42, %v4958_v59  ;;  %v5108_v12 = vadd.f32 %v10253_v25, %v5077_v26  ;;  %v4885_v26 = vadd.f32 %v4861_v43, %v10117_v56  ;;  %v4887_v59 = vadd.f32 %v4863_v18, %v10135_v1 }
 0x515   : > { %v5154_v29 = vadd.f32 %v5153_v50, %v5128_v24  ;;  %v5054_v54 = vmul.f32 %v10242_v42, %v4953_v31  ;;  %v5107_v8 = vadd.f32 %v10253_v25, %v5076_v39 }
 0x516   : > { %v5079_v55 = vadd.f32 %v5055_v13, %v4882_v58  ;;  %v5132_v52 = vmax.f32 %v5108_v12, 0.0  ;;  %v4888_v13 = vadd.f32 %v4864_v38, %v10159_v9  ;;  %v4865_v12 = vmul.f32 %v10232_v3, %v10234_v45 }
 0x517   : > { %v5155_v17 = vadd.f32 %v5154_v29, %v5130_v57  ;;  %v5078_v33 = vadd.f32 %v5054_v54, %v4881_v36  ;;  %v5131_v10 = vmax.f32 %v5107_v8, 0.0  ;;  %v4968_v40 = vpop.permute.xlu1 %4967  ;;  %v4866_v9 = vmul.f32 %v10232_v3, %v10246_v53 }
 0x518   : > { %v4963_v20 = vpop.permute.xlu0 %4962  ;;  %v5057_v34 = vmul.f32 %v10242_v42, %v4968_v40  ;;  %v5110_v46 = vadd.f32 %v10253_v25, %v5079_v55 }
 0x519   : > { %v5109_v44 = vadd.f32 %v10253_v25, %v5078_v33  ;;  %v5056_v27 = vmul.f32 %v10242_v42, %v4963_v20  ;;  %v5156_v30 = vsel %vm5152_vm0, %v5131_v10, 0.0  ;;  %v4890_v53 = vadd.f32 %v4866_v9, %v10177_v60 }
 0x51a   : > { %v5157_v22 = vadd.f32 %v5156_v30, %v5155_v17  ;;  %v5081_v5 = vadd.f32 %v5057_v34, %v4884_v7  ;;  %v5134_v51 = vmax.f32 %v5110_v46, 0.0 }
 0x51b   : > { %v5133_v48 = vmax.f32 %v5109_v44, 0.0  ;;  %v5080_v15 = vadd.f32 %v5056_v27, %v4883_v47  ;;  %v4978_v21 = vpop.permute.xlu1 %4977  ;;  %v4889_v27 = vadd.f32 %v4865_v12, %v10157_v61 }
 0x51c   : > { %v4973_v11 = vpop.permute.xlu0 %4972  ;;  %v5158_v19 = vadd.f32 %v5157_v22, %v5132_v52  ;;  %v5059_v24 = vmul.f32 %v10242_v42, %v4978_v21  ;;  %v5112_v58 = vadd.f32 %v10253_v25, %v5081_v5 }
 0x51d   : > { %v5159_v36 = vsel %vm5152_vm0, %v5133_v48, 0.0  ;;  %v5111_v32 = vadd.f32 %v10253_v25, %v5080_v15  ;;  %v5058_v6 = vmul.f32 %v10242_v42, %v4973_v11 }
 0x51e   : > { %v5160_v50 = vadd.f32 %v5159_v36, %v5158_v19  ;;  %v5083_v39 = vadd.f32 %v5059_v24, %v4886_v0  ;;  %v5136_v8 = vmax.f32 %v5112_v58, 0.0 }
 0x51f   : > { %v5135_v31 = vmax.f32 %v5111_v32, 0.0  ;;  %v5082_v63 = vadd.f32 %v5058_v6, %v4885_v26  ;;  %v4988_v57 = vpop.permute.xlu1 %4987 }
 0x520   : > { %v4983_v29 = vpop.permute.xlu0 %4982  ;;  %v5161_v54 = vadd.f32 %v5160_v50, %v5134_v51  ;;  %v5061_v56 = vmul.f32 %v10242_v42, %v4988_v57  ;;  %v5114_v33 = vadd.f32 %v10253_v25, %v5083_v39 }
 0x521   : > { %v5060_v16 = vmul.f32 %v10242_v42, %v4983_v29  ;;  %v5162_v17 = vsel %vm5152_vm0, %v5135_v31, 0.0  ;;  %v5113_v55 = vadd.f32 %v10253_v25, %v5082_v63 }
 0x522   : > { %v5163_v1 = vadd.f32 %v5162_v17, %v5161_v54  ;;  %v5085_v2 = vadd.f32 %v5061_v56, %v4888_v13  ;;  %v5138_v52 = vmax.f32 %v5114_v33, 0.0 }
 0x523   : > { %v5084_v10 = vadd.f32 %v5060_v16, %v4887_v59  ;;  %v5137_v40 = vmax.f32 %v5113_v55, 0.0  ;;  %v4806_v20 = vpop.permute.xlu1 %4805 }
 0x524   : > { %v4993_v7 = vpop.permute.xlu0 %4992  ;;  %v5164_v44 = vadd.f32 %v5163_v1, %v5136_v8  ;;  %v4867_v45 = vmul.f32 %v10232_v3, %v4806_v20  ;;  %v5116_v22 = vadd.f32 %v10253_v25, %v5085_v2 }
 0x525   : > { %v5115_v34 = vadd.f32 %v10253_v25, %v5084_v10  ;;  %v5165_v47 = vsel %vm5152_vm0, %v5137_v40, 0.0  ;;  %v5062_v43 = vmul.f32 %v10242_v42, %v4993_v7 }
 0x526   : > { %v5166_v30 = vadd.f32 %v5165_v47, %v5164_v44  ;;  %v4891_v48 = vadd.f32 %v4867_v45, %v10175_v14  ;;  %v5140_v19 = vmax.f32 %v5116_v22, 0.0 }
 0x527   : > { %v5139_v46 = vmax.f32 %v5115_v34, 0.0  ;;  %v5086_v5 = vadd.f32 %v5062_v43, %v4889_v27  ;;  %v5003_v18 = vpop.permute.xlu1 %5002 }
 0x528   : > { %v4998_v0 = vpop.permute.xlu0 %4997  ;;  %v5167_v15 = vadd.f32 %v5166_v30, %v5138_v52  ;;  %v5064_v61 = vmul.f32 %v10242_v42, %v5003_v18 }
 0x529   : > { %v5168_v21 = vsel %vm5152_vm0, %v5139_v46, 0.0  ;;  %v5063_v11 = vmul.f32 %v10242_v42, %v4998_v0  ;;  %v5117_v38 = vadd.f32 %v10253_v25, %v5086_v5 }
 0x52a   : > { %v5169_v36 = vadd.f32 %v5168_v21, %v5167_v15  ;;  %v5088_v24 = vadd.f32 %v5064_v61, %v4891_v48 }
 0x52b   : > { %v5087_v26 = vadd.f32 %v5063_v11, %v4890_v53  ;;  %v5141_v58 = vmax.f32 %v5117_v38, 0.0  ;;  %v4816_v60 = vpop.permute.xlu1 %4815 }
 0x52c   : > { %v4811_v32 = vpop.permute.xlu0 %4810  ;;  %v5170_v14 = vadd.f32 %v5169_v36, %v5140_v19  ;;  %v5119_v6 = vadd.f32 %v10253_v25, %v5088_v24  ;;  %v4869_v50 = vmul.f32 %v10232_v3, %v4816_v60 }
 0x52d   : > { %v5118_v51 = vadd.f32 %v10253_v25, %v5087_v26  ;;  %v5171_v39 = vsel %vm5152_vm0, %v5141_v58, 0.0  ;;  %v4868_v59 = vmul.f32 %v10232_v3, %v4811_v32 }
 0x52e   : > { %v5172_v31 = vadd.f32 %v5171_v39, %v5170_v14  ;;  %v5143_v63 = vmax.f32 %v5119_v6, 0.0  ;;  %v4893_v29 = vadd.f32 %v4869_v50, %v10197_v37 }
 0x52f   : > { %v5142_v57 = vmax.f32 %v5118_v51, 0.0  ;;  %v4892_v13 = vadd.f32 %v4868_v59, %v10199_v28  ;;  %v5013_v54 = vpop.permute.xlu1 %5012 }
 0x530   : > { %v5008_v56 = vpop.permute.xlu0 %5007  ;;  %v5174_v16 = vsel %vm5152_vm0, %v5143_v63, 0.0  ;;  %v5066_v8 = vmul.f32 %v10242_v42, %v5013_v54 }
 0x531   : > { %v5173_v12 = vadd.f32 %v5172_v31, %v5142_v57  ;;  %v5065_v17 = vmul.f32 %v10242_v42, %v5008_v56 }
 0x532   : > { %v5090_v55 = vadd.f32 %v5066_v8, %v4893_v29 }
 0x533   : > { %v5175_v1 = vadd.f32 %v5174_v16, %v5173_v12  ;;  %v5089_v33 = vadd.f32 %v5065_v17, %v4892_v13  ;;  %v4826_v2 = vpop.permute.xlu1 %4825 }
 0x534   : > { %v4821_v10 = vpop.permute.xlu0 %4820  ;;  %v5121_v9 = vadd.f32 %v10253_v25, %v5090_v55  ;;  %v4871_v28 = vmul.f32 %v10232_v3, %v4826_v2 }
 0x535   : > { %v5120_v37 = vadd.f32 %v10253_v25, %v5089_v33  ;;  %v4870_v40 = vmul.f32 %v10232_v3, %v4821_v10 }
 0x536   : > { %v5145_v20 = vmax.f32 %v5121_v9, 0.0  ;;  %v4895_v44 = vadd.f32 %v4871_v28, %v10207_v41 }
 0x537   : > { %v5144_v7 = vmax.f32 %v5120_v37, 0.0  ;;  %v4894_v34 = vadd.f32 %v4870_v40, %v10209_v49  ;;  %v5023_v45 = vpop.permute.xlu1 %5022 }
 0x538   : > { %v5018_v27 = vpop.permute.xlu0 %5017  ;;  %v5177_v47 = vsel %vm5152_vm0, %v5145_v20, 0.0  ;;  %v5068_v52 = vmul.f32 %v10242_v42, %v5023_v45 }
 0x539   : > { %v5176_v43 = vadd.f32 %v5175_v1, %v5144_v7  ;;  %v5067_v30 = vmul.f32 %v10242_v42, %v5018_v27 }
 0x53a   : > { %v5092_v22 = vadd.f32 %v5068_v52, %v4895_v44 }
 0x53b   : > { %v5178_v46 = vadd.f32 %v5177_v47, %v5176_v43  ;;  %v5091_v53 = vadd.f32 %v5067_v30, %v4894_v34  ;;  %v4836_v48 = vpop.permute.xlu1 %4835 }
 0x53c   : > { %v4831_v5 = vpop.permute.xlu0 %4830  ;;  %v5123_v18 = vadd.f32 %v10253_v25, %v5092_v22  ;;  %v4873_v49 = vmul.f32 %v10232_v3, %v4836_v48 }
 0x53d   : > { %v5122_v41 = vadd.f32 %v10253_v25, %v5091_v53  ;;  %v4872_v0 = vmul.f32 %v10232_v3, %v4831_v5 }
 0x53e   : > { %v5147_v15 = vmax.f32 %v5123_v18, 0.0  ;;  %v4897_v61 = vadd.f32 %v4873_v49, %v10213_v35 }
 0x53f   : > { %v5146_v21 = vmax.f32 %v5122_v41, 0.0  ;;  %v4896_v11 = vadd.f32 %v4872_v0, %v10215_v4  ;;  %v5033_v38 = vpop.permute.xlu1 %5032 }
 0x540   : > { %v5028_v19 = vpop.permute.xlu0 %5027  ;;  %v5180_v36 = vsel %vm5152_vm0, %v5147_v15, 0.0  ;;  %v5070_v26 = vmul.f32 %v10242_v42, %v5033_v38 }
 0x541   : > { %v5179_v24 = vadd.f32 %v5178_v46, %v5146_v21  ;;  %v5069_v58 = vmul.f32 %v10242_v42, %v5028_v19 }
 0x542   : > { %v5094_v60 = vadd.f32 %v5070_v26, %v4897_v61 }
 0x543   : > { %v5181_v32 = vadd.f32 %v5180_v36, %v5179_v24  ;;  %v5093_v14 = vadd.f32 %v5069_v58, %v4896_v11  ;;  %v4846_v6 = vpop.permute.xlu1 %4845 }
 0x544   : > { %v4841_v51 = vpop.permute.xlu0 %4840  ;;  %v5125_v50 = vadd.f32 %v10253_v25, %v5094_v60  ;;  %v4875_v4 = vmul.f32 %v10232_v3, %v4846_v6 }
 0x545   : > { %v5124_v35 = vadd.f32 %v10253_v25, %v5093_v14  ;;  %v4874_v39 = vmul.f32 %v10232_v3, %v4841_v51 }
 0x546   : > { %v5149_v59 = vmax.f32 %v5125_v50, 0.0  ;;  %v4899_v63 = vadd.f32 %v4875_v4, %v10220_v62 }
 0x547   : > { %v5148_v31 = vmax.f32 %v5124_v35, 0.0  ;;  %v4898_v57 = vadd.f32 %v4874_v39, %v10223_v23  ;;  %v5043_v29 = vpop.permute.xlu1 %5042 }
 0x548   : > { %v5038_v13 = vpop.permute.xlu0 %5037  ;;  %v5183_v54 = vsel %vm5152_vm0, %v5149_v59, 0.0  ;;  %v5072_v16 = vmul.f32 %v10242_v42, %v5043_v29 }
 0x549   : > { %v5182_v56 = vadd.f32 %v5181_v32, %v5148_v31  ;;  %v5071_v12 = vmul.f32 %v10242_v42, %v5038_v13 }
 0x54a   : > { %v5096_v8 = vadd.f32 %v5072_v16, %v4899_v63 }
 0x54b   : > { %v5184_v17 = vadd.f32 %v5183_v54, %v5182_v56  ;;  %v5095_v3 = vadd.f32 %v5071_v12, %v4898_v57 }
 0x54c   : > { %v5127_v55 = vadd.f32 %v10253_v25, %v5096_v8 }
 0x54d   : > { %v5126_v62 = vadd.f32 %v10253_v25, %v5095_v3 }
 0x54e   : > { %v5151_v1 = vmax.f32 %v5127_v55, 0.0 }
 0x54f   : > { %v5150_v23 = vmax.f32 %v5126_v62, 0.0 }
 0x550   : > { %v5186_v33 = vsel %vm5152_vm0, %v5151_v1, 0.0 }
 0x551   : > { %v5185_v2 = vadd.f32 %v5184_v17, %v5150_v23 }
 0x553   : > { %v5187_v10 = vadd.f32 %v5186_v33, %v5185_v2 }
 0x555   : > { %v5188_v9 = vrot.slane %v5187_v10, 4 }
 0x557   : > { %v5189_v37 = vadd.f32 %v5188_v9, %v5187_v10 }
 0x559   : > { %v5190_v28 = vrot.slane %v5189_v37, 2 }
 0x55b   : > { %v5191_v42 = vadd.f32 %v5190_v28, %v5189_v37 }
 0x55d   : > { %v5192_v40 = vrot.slane %v5191_v42, 1 }
 0x55f   : > { %v5193_v20 = vadd.f32 %v5192_v40, %v5191_v42 }
 0x561   : > { %v5194_v7 = vmul.f32 0.0069444445, %v5193_v20 }
 0x563   : > { %5195 = vst [vmem:[%s162_s4] sm:$0x1] %v5194_v7 }
 0x564   : > { %5835 = shalt.err (!%p5832_p3)
}
 0x565   : > { %s5836_s19 = scalar_lea.hbm %s10368_s8, 16  ;;  %s5840_s24 = scalar_lea.hbm %s10413_s3, 32 }
 0x566   : > { %p5837_p4 = scmp.ne.s32.totalorder %s10368_s8, %s5836_s19  ;;  %p5841_p9 = scmp.lt.u32.totalorder %s10368_s8, %s10413_s3 }
 0x567   : > { %p5842_p10 = scmp.lt.u32.totalorder %s5840_s24, %s5836_s19  ;;  %p5844_p12 = scmp.lt.u32.totalorder %s5836_s19, %s10368_s8 }
 0x568   : > { %p5838_p7 = pnand %p5837_p4, %p5946_p5 }
 0x569   : > { %p5843_p11 = por %p5842_p10, %p5841_p9 }
 0x56a   : > { %p5839_p8 = pneg %p5838_p7 }
 0x56b   : > { %p5845_p13 = por %p5844_p12, %p5843_p11 }
 0x56d   : > { %p5846_p0 = pnand %p5845_p13, %p5839_p8 }
 0x56f   : > { %5849 = shalt.err (!%p5846_p0)
}
 0x570   : > { %5780 = dma.vmem_to_hbm [thread:$0]  (%p5946_p5), %s10370_s5, 16, %s10368_s8, %s5197_s9  }
 0x571 PF: > { %p5786_p1 = scmp.ge.s32.totalorder %s5884_s15, 2  ;;  %s5221_s27 = sand.u32 1, %s5872_s12  }
 0x572   : > { %s5222_s29 = scalar_lea.sflag [#allocation3], %s5221_s27 }
 0x573   : > { %p5783_p2 = pnand %p5786_p1, %p5950_p6 }
 0x575   : > { %5867 = dma.done.wait (!%p5783_p2), %s5222_s29, 16  }
 0x576   : > { %5869 = vsyncadd (!%p5783_p2), %s5222_s29, 4294967280  ;;  %p13_p3 = scmp.ge.s32.totalorder %s5933_s18, 4   ;;  %s11310_s12 = smov %s5876_s13 }
 0x577   : > { %s11311_s13 = smov %s5880_s14  ;;  %s11312_s14 = smov %s5944_s21 }
 0x578   : > { %s11313_s15 = smov %s5933_s18  ;;  %15 = sbr.rel (!%p13_p3) target bundleno = 3 (0x3), region = 71 }
 0x57f   :  { %5226 = vsyncpa [#allocation3], 1 }
 0x580   :  { %5228 = vsyncpa [#allocation3 + $0x1], 1 }

</bundles_post_ra>
